<compile_context>
chip_gen: v6e
topology: v6e:2x2x1
jax: 0.10.0
libtpu: 0.0.40
codegen_flags: <defaults>
</compile_context>

<pallas_src>
import math
import jax
import jax.numpy as jnp
from jax import lax
from jax.experimental import pallas as pl
from jax.experimental.pallas import tpu as pltpu

KSIZE = 5                         # conv filter size (stride 1, no padding)
POOL = 3                          # max-pool window
POOL_STRIDE = 2
CHANNELS_SEQ = (16, 32, 64, 32, 16)   # conv output channels
CIN_ALIGN = 16                    # pad first-layer input channels to a bf16 sublane multiple


# --------------------------- in-kernel layer helpers ---------------------------
def _conv_relu_layer(in_ref, w_ref, b_ref, out_ref):
    """5x5 valid conv + bias + ReLU (kh folded into the MXU contraction).

    in_ref : (H_in*C_in, W_in)  bf16, row index = h*C_in + c
    w_ref  : (KSIZE, C_out, KSIZE*C_in) bf16, [kw, c_out, kh*C_in + c_in]
    b_ref  : (C_out, 1) f32
    out_ref: (H_out*C_out, W_out) bf16
    """
    C_out = w_ref.shape[1]
    C_in = w_ref.shape[2] // KSIZE
    W_out = out_ref.shape[1]
    H_out = out_ref.shape[0] // C_out
    bias = b_ref[...]                                        # (C_out, 1) f32

    def row(h, carry):
        src = pl.multiple_of(h * C_in, C_in)
        slab = in_ref[pl.ds(src, KSIZE * C_in), :]           # (5*C_in, W_in) bf16
        acc = jnp.dot(w_ref[0], slab[:, 0:W_out],
                      preferred_element_type=jnp.float32)
        for kw in range(1, KSIZE):
            acc = acc + jnp.dot(w_ref[kw], slab[:, kw:kw + W_out],
                                preferred_element_type=jnp.float32)
        dst = pl.multiple_of(h * C_out, C_out)
        out_ref[pl.ds(dst, C_out), :] = jnp.maximum(acc + bias, 0.0).astype(out_ref.dtype)
        return carry

    lax.fori_loop(0, H_out, row, 0, unroll=H_out <= 8)


def _maxpool_layer(in_ref, out_ref, C):
    """3x3 max-pool, stride 2 (valid).

    in_ref : (H_in*C, W_in) bf16    out_ref: (H_out*C, W_out) bf16
    """
    W_in = in_ref.shape[1]
    W_out = out_ref.shape[1]
    H_out = out_ref.shape[0] // C
    Wm = W_in - 2
    # stride-2 column selection as a 0/1 matmul on the MXU (built once per layer, per image)
    sel = (lax.broadcasted_iota(jnp.int32, (Wm, W_out), 0) ==
           POOL_STRIDE * lax.broadcasted_iota(jnp.int32, (Wm, W_out), 1)).astype(in_ref.dtype)

    def row(h, carry):
        r0 = in_ref[pl.ds(pl.multiple_of(2 * h * C, C), C), :]
        r1 = in_ref[pl.ds(pl.multiple_of((2 * h + 1) * C, C), C), :]
        r2 = in_ref[pl.ds(pl.multiple_of((2 * h + 2) * C, C), C), :]
        r = jnp.maximum(jnp.maximum(r0, r1), r2)                         # vertical 3-max
        m3 = jnp.maximum(jnp.maximum(r[:, 0:Wm], r[:, 1:Wm + 1]),
                         r[:, 2:Wm + 2])                                 # horizontal 3-max
        dst = pl.multiple_of(h * C, C)
        out_ref[pl.ds(dst, C), :] = jnp.dot(
            m3, sel, preferred_element_type=jnp.float32).astype(out_ref.dtype)
        return carry

    lax.fori_loop(0, H_out, row, 0, unroll=H_out <= 8)


def _head(c5_ref, wl1_ref, bl1_ref, wl2_ref, bl2_ref, o_ref):
    """Final max-pool on the (5,16,5) conv5 output -> flatten -> Linear1 -> Linear2 -> softmax.

    c5_ref : (5*16, 5) bf16           wl1_ref: (input_size, 64) f32 (columns pre-permuted)
    bl1_ref: (input_size, 1) f32      wl2_ref: (4, input_size) f32    bl2_ref: (4, 1) f32
    o_ref  : (4, 1) f32
    """
    C = CHANNELS_SEQ[-1]   # 16
    cols = []
    for h in range(2):                                   # two pooled rows (static unroll)
        r0 = c5_ref[pl.ds(2 * h * C, C), :]
        r1 = c5_ref[pl.ds((2 * h + 1) * C, C), :]
        r2 = c5_ref[pl.ds((2 * h + 2) * C, C), :]
        r = jnp.maximum(jnp.maximum(r0, r1), r2)                           # (16, 5)
        m3 = jnp.maximum(jnp.maximum(r[:, 0:3], r[:, 1:4]), r[:, 2:5])     # (16, 3)
        cols.append(m3[:, 0:1])                          # pooled column w = 0
        cols.append(m3[:, 2:3])                          # pooled column w = 1
    # feature column index = 16*(2h+w) + c ; Linear1's weight columns were permuted to match
    feat = jnp.concatenate(cols, axis=0).astype(jnp.float32)               # (64, 1)
    h1 = jnp.dot(wl1_ref[...], feat, preferred_element_type=jnp.float32) + bl1_ref[...]
    logits = jnp.dot(wl2_ref[...], h1, preferred_element_type=jnp.float32) + bl2_ref[...]
    m = jnp.max(logits, axis=0, keepdims=True)
    e = jnp.exp(logits - m)
    o_ref[...] = e / jnp.sum(e, axis=0, keepdims=True)


def _cnn_fused_kernel(x_ref,
                      w1, b1, w2, b2, w3, b3, w4, b4, w5, b5,
                      wl1, bl1, wl2, bl2,
                      o_ref,
                      c1, p1, c2, p2, c3, p3, c4, p4, c5):
    _conv_relu_layer(x_ref, w1, b1, c1)
    # TODO(synk): nn.Dropout() treated as eval-mode identity (stochastic train-mode drop not implemented)
    _maxpool_layer(c1, p1, CHANNELS_SEQ[0])
    _conv_relu_layer(p1, w2, b2, c2)
    _maxpool_layer(c2, p2, CHANNELS_SEQ[1])
    _conv_relu_layer(p2, w3, b3, c3)
    _maxpool_layer(c3, p3, CHANNELS_SEQ[2])
    _conv_relu_layer(p3, w4, b4, c4)
    _maxpool_layer(c4, p4, CHANNELS_SEQ[3])
    _conv_relu_layer(p4, w5, b5, c5)
    _head(c5, wl1, bl1, wl2, bl2, o_ref)


# ------------------------------ host-side wrapper ------------------------------
def _conv_out(h):
    return h - (KSIZE - 1)


def _pool_out(h):
    return (h - POOL) // POOL_STRIDE + 1


def cnn_forward(x_nchw, params):
    """x_nchw: (N, C, H, W) f32 (PyTorch layout) -> (N, 4) softmax probabilities."""
    N, C, H, W = x_nchw.shape
    Cp = params["conv1_w"].shape[2] // KSIZE              # padded first-layer C_in (16)

    # NCHW -> (N, H*Cp, W) bf16 (row index = h*Cp + c), zero-padded input channels
    x = jnp.pad(x_nchw, ((0, 0), (0, Cp - C), (0, 0), (0, 0)))
    x = jnp.transpose(x, (0, 2, 1, 3)).reshape(N, H * Cp, W).astype(jnp.bfloat16)

    # per-layer activation scratches kept in VMEM, (H*C, W) bf16
    scratch_shapes = []
    h, w = H, W
    for i, co in enumerate(CHANNELS_SEQ):
        hc, wc = _conv_out(h), _conv_out(w)
        scratch_shapes.append(pltpu.VMEM((hc * co, wc), jnp.bfloat16))
        hp, wp = _pool_out(hc), _pool_out(wc)
        if i < len(CHANNELS_SEQ) - 1:
            scratch_shapes.append(pltpu.VMEM((hp * co, wp), jnp.bfloat16))
        h, w = hp, wp
    assert (h, w) == (2, 2), "input spatial size must reduce to 2x2 (flatten_size == 64)"

    def bcast_spec(a):
        return pl.BlockSpec(a.shape, lambda n, _r=a.ndim: (0,) * _r)

    weight_args = []
    in_specs = [pl.BlockSpec((None, H * Cp, W), lambda n: (n, 0, 0))]
    for i in range(1, 6):
        for k in (f"conv{i}_w", f"conv{i}_b"):
            weight_args.append(params[k])
            in_specs.append(bcast_spec(params[k]))
    for k in ("lin1_w", "lin1_b", "lin2_w", "lin2_b"):
        weight_args.append(params[k])
        in_specs.append(bcast_spec(params[k]))

    out = pl.pallas_call(
        _cnn_fused_kernel,
        out_shape=jax.ShapeDtypeStruct((N, 4, 1), jnp.float32),
        grid=(N,),
        in_specs=in_specs,
        out_specs=pl.BlockSpec((None, 4, 1), lambda n: (n, 0, 0)),
        scratch_shapes=scratch_shapes,
        compiler_params=pltpu.CompilerParams(
            dimension_semantics=("parallel",),       # one image per TensorCore on v7x megacore
            vmem_limit_bytes=32 * 1024 * 1024,       # actual peak ~10 MiB incl. double buffers
        ),
    )(x, *weight_args)
    return out.reshape(N, 4)


# ------------------------------ parameter creation ------------------------------
def init_params(key, channels, input_size):
    keys = jax.random.split(key, 14)
    params = {}
    cin = channels
    for i, cout in enumerate(CHANNELS_SEQ, start=1):
        kw_, kb_ = keys[2 * i - 2], keys[2 * i - 1]
        bound = 1.0 / math.sqrt(cin * KSIZE * KSIZE)         # PyTorch default (unpadded fan_in)
        wt = jax.random.uniform(kw_, (cout, cin, KSIZE, KSIZE), jnp.float32, -bound, bound)
        bt = jax.random.uniform(kb_, (cout,), jnp.float32, -bound, bound)
        cin_p = ((cin + CIN_ALIGN - 1) // CIN_ALIGN) * CIN_ALIGN
        if cin_p != cin:                                     # zero-pad the extra input channels
            wt = jnp.pad(wt, ((0, 0), (0, cin_p - cin), (0, 0), (0, 0)))
        # (C_out, C_in, KH, KW) -> (KW, C_out, KH, C_in) -> (KW, C_out, KH*C_in), bf16
        params[f"conv{i}_w"] = jnp.transpose(wt, (3, 0, 2, 1)).reshape(
            KSIZE, cout, KSIZE * cin_p).astype(jnp.bfloat16)
        params[f"conv{i}_b"] = bt.reshape(cout, 1)
        cin = cout

    flat = 64
    bound = 1.0 / math.sqrt(flat)
    w1 = jax.random.uniform(keys[10], (input_size, flat), jnp.float32, -bound, bound)
    b1 = jax.random.uniform(keys[11], (input_size,), jnp.float32, -bound, bound)
    # PyTorch flatten order is c*4 + (2h+w); the kernel builds features ordered 16*(2h+w) + c,
    # so permute Linear1's input columns accordingly (host-side, zero runtime cost).
    params["lin1_w"] = w1.reshape(input_size, 16, 4).transpose(0, 2, 1).reshape(input_size, flat)
    params["lin1_b"] = b1.reshape(input_size, 1)

    bound = 1.0 / math.sqrt(input_size)
    w2 = jax.random.uniform(keys[12], (4, input_size), jnp.float32, -bound, bound)
    b2 = jax.random.uniform(keys[13], (4,), jnp.float32, -bound, bound)
    params["lin2_w"] = w2
    params["lin2_b"] = b2.reshape(4, 1)
    return params


if __name__ == "__main__":
    batch = 2
    channels = 3
    input_size = 32    # the module's `input_size` ctor arg (Linear1 output width)
    spatial = 219      # smallest square input for which flatten width == 64 (16 * 2 * 2)

    key = jax.random.PRNGKey(0)
    k_x, k_p = jax.random.split(key)
    x = jax.random.normal(k_x, (batch, channels, spatial, spatial), jnp.float32)
    params = init_params(k_p, channels, input_size)

    fwd = jax.jit(lambda xx: cnn_forward(xx, params))
    out = jax.block_until_ready(fwd(x))

    assert out.shape == (batch, 4)
    assert bool(jnp.all(jnp.isfinite(out)))
    assert bool(jnp.allclose(jnp.sum(out, axis=-1), 1.0, atol=1e-5))
    print("KERNEL_OK")
</pallas_src>

<mosaic_0001>
module attributes {stable_mosaic.version = 11 : i64} {
  func.func @_cnn_fused_kernel(%arg0: i32, %arg1: memref<1x3504x219xbf16, #tpu.memory_space<vmem>>, %arg2: memref<5x16x80xbf16, #tpu.memory_space<vmem>>, %arg3: memref<16x1xf32, #tpu.memory_space<vmem>>, %arg4: memref<5x32x80xbf16, #tpu.memory_space<vmem>>, %arg5: memref<32x1xf32, #tpu.memory_space<vmem>>, %arg6: memref<5x64x160xbf16, #tpu.memory_space<vmem>>, %arg7: memref<64x1xf32, #tpu.memory_space<vmem>>, %arg8: memref<5x32x320xbf16, #tpu.memory_space<vmem>>, %arg9: memref<32x1xf32, #tpu.memory_space<vmem>>, %arg10: memref<5x16x160xbf16, #tpu.memory_space<vmem>>, %arg11: memref<16x1xf32, #tpu.memory_space<vmem>>, %arg12: memref<32x64xf32, #tpu.memory_space<vmem>>, %arg13: memref<32x1xf32, #tpu.memory_space<vmem>>, %arg14: memref<4x32xf32, #tpu.memory_space<vmem>>, %arg15: memref<4x1xf32, #tpu.memory_space<vmem>>, %arg16: memref<1x4x1xf32, #tpu.memory_space<vmem>>, %arg17: memref<3440x215xbf16, #tpu.memory_space<vmem>>, %arg18: memref<1712x107xbf16, #tpu.memory_space<vmem>>, %arg19: memref<3296x103xbf16, #tpu.memory_space<vmem>>, %arg20: memref<1632x51xbf16, #tpu.memory_space<vmem>>, %arg21: memref<3008x47xbf16, #tpu.memory_space<vmem>>, %arg22: memref<1472x23xbf16, #tpu.memory_space<vmem>>, %arg23: memref<608x19xbf16, #tpu.memory_space<vmem>>, %arg24: memref<288x9xbf16, #tpu.memory_space<vmem>>, %arg25: memref<80x5xbf16, #tpu.memory_space<vmem>>) attributes {dimension_semantics = [#tpu.dimension_semantics<parallel>], iteration_bounds = array<i64: 2>, scalar_prefetch = 0 : i64, scratch_operands = 9 : i64, tpu.core_type = #tpu.core_type<tc>, window_params = [{transform_indices = @transform_0, window_bounds = array<i64: 1, 3504, 219>}, {pipeline_mode = #tpu.pipeline_mode<synchronous>, transform_indices = @transform_1, window_bounds = array<i64: 5, 16, 80>}, {pipeline_mode = #tpu.pipeline_mode<synchronous>, transform_indices = @transform_2, window_bounds = array<i64: 16, 1>}, {pipeline_mode = #tpu.pipeline_mode<synchronous>, transform_indices = @transform_3, window_bounds = array<i64: 5, 32, 80>}, {pipeline_mode = #tpu.pipeline_mode<synchronous>, transform_indices = @transform_4, window_bounds = array<i64: 32, 1>}, {pipeline_mode = #tpu.pipeline_mode<synchronous>, transform_indices = @transform_5, window_bounds = array<i64: 5, 64, 160>}, {pipeline_mode = #tpu.pipeline_mode<synchronous>, transform_indices = @transform_6, window_bounds = array<i64: 64, 1>}, {pipeline_mode = #tpu.pipeline_mode<synchronous>, transform_indices = @transform_7, window_bounds = array<i64: 5, 32, 320>}, {pipeline_mode = #tpu.pipeline_mode<synchronous>, transform_indices = @transform_8, window_bounds = array<i64: 32, 1>}, {pipeline_mode = #tpu.pipeline_mode<synchronous>, transform_indices = @transform_9, window_bounds = array<i64: 5, 16, 160>}, {pipeline_mode = #tpu.pipeline_mode<synchronous>, transform_indices = @transform_10, window_bounds = array<i64: 16, 1>}, {pipeline_mode = #tpu.pipeline_mode<synchronous>, transform_indices = @transform_11, window_bounds = array<i64: 32, 64>}, {pipeline_mode = #tpu.pipeline_mode<synchronous>, transform_indices = @transform_12, window_bounds = array<i64: 32, 1>}, {pipeline_mode = #tpu.pipeline_mode<synchronous>, transform_indices = @transform_13, window_bounds = array<i64: 4, 32>}, {pipeline_mode = #tpu.pipeline_mode<synchronous>, transform_indices = @transform_14, window_bounds = array<i64: 4, 1>}, {transform_indices = @transform_15, window_bounds = array<i64: 1, 4, 1>}]} {
    %c0 = arith.constant 0 : index
    %c0_0 = arith.constant 0 : index
    %0 = vector.load %arg3[%c0, %c0_0] : memref<16x1xf32, #tpu.memory_space<vmem>>, vector<16x1xf32>
    %c0_i32 = arith.constant 0 : i32
    %c215_i32 = arith.constant 215 : i32
    %1 = arith.addi %c0_i32, %c215_i32 : i32
    %c1_i32 = arith.constant 1 : i32
    scf.for %arg26 = %c0_i32 to %1 step %c1_i32  : i32 {
      %c16_i32_178 = arith.constant 16 : i32
      %276 = arith.muli %arg26, %c16_i32_178 : i32
      %277 = tpu.assume_multiple %276, 16 : i32
      %c0_179 = arith.constant 0 : index
      %278 = arith.index_cast %277 : i32 to index
      %c0_180 = arith.constant 0 : index
      %279 = vector.load %arg1[%c0_179, %278, %c0_180] : memref<1x3504x219xbf16, #tpu.memory_space<vmem>>, vector<1x80x219xbf16>
      %280 = vector.shape_cast %279 : vector<1x80x219xbf16> to vector<80x219xbf16>
      %c0_181 = arith.constant 0 : index
      %c0_182 = arith.constant 0 : index
      %c0_183 = arith.constant 0 : index
      %281 = vector.load %arg2[%c0_181, %c0_182, %c0_183] : memref<5x16x80xbf16, #tpu.memory_space<vmem>>, vector<1x16x80xbf16>
      %282 = vector.shape_cast %281 : vector<1x16x80xbf16> to vector<16x80xbf16>
      %283 = vector.extract_strided_slice %280 {offsets = [0, 0], sizes = [80, 215], strides = [1, 1]} : vector<80x219xbf16> to vector<80x215xbf16>
      %cst_184 = arith.constant dense<0.000000e+00> : vector<16x215xf32>
      %284 = tpu.matmul %282, %283, %cst_184 {dimension_numbers = #tpu.dot_dimension_numbers<[1], [0], [0], [1], [0, 0, 1, 1], [], []>} : vector<16x80xbf16>, vector<80x215xbf16>, vector<16x215xf32> -> vector<16x215xf32>
      %c1_185 = arith.constant 1 : index
      %c0_186 = arith.constant 0 : index
      %c0_187 = arith.constant 0 : index
      %285 = vector.load %arg2[%c1_185, %c0_186, %c0_187] : memref<5x16x80xbf16, #tpu.memory_space<vmem>>, vector<1x16x80xbf16>
      %286 = vector.shape_cast %285 : vector<1x16x80xbf16> to vector<16x80xbf16>
      %287 = vector.extract_strided_slice %280 {offsets = [0, 1], sizes = [80, 215], strides = [1, 1]} : vector<80x219xbf16> to vector<80x215xbf16>
      %cst_188 = arith.constant dense<0.000000e+00> : vector<16x215xf32>
      %288 = tpu.matmul %286, %287, %cst_188 {dimension_numbers = #tpu.dot_dimension_numbers<[1], [0], [0], [1], [0, 0, 1, 1], [], []>} : vector<16x80xbf16>, vector<80x215xbf16>, vector<16x215xf32> -> vector<16x215xf32>
      %289 = arith.addf %284, %288 : vector<16x215xf32>
      %c2_189 = arith.constant 2 : index
      %c0_190 = arith.constant 0 : index
      %c0_191 = arith.constant 0 : index
      %290 = vector.load %arg2[%c2_189, %c0_190, %c0_191] : memref<5x16x80xbf16, #tpu.memory_space<vmem>>, vector<1x16x80xbf16>
      %291 = vector.shape_cast %290 : vector<1x16x80xbf16> to vector<16x80xbf16>
      %292 = vector.extract_strided_slice %280 {offsets = [0, 2], sizes = [80, 215], strides = [1, 1]} : vector<80x219xbf16> to vector<80x215xbf16>
      %cst_192 = arith.constant dense<0.000000e+00> : vector<16x215xf32>
      %293 = tpu.matmul %291, %292, %cst_192 {dimension_numbers = #tpu.dot_dimension_numbers<[1], [0], [0], [1], [0, 0, 1, 1], [], []>} : vector<16x80xbf16>, vector<80x215xbf16>, vector<16x215xf32> -> vector<16x215xf32>
      %294 = arith.addf %289, %293 : vector<16x215xf32>
      %c3_193 = arith.constant 3 : index
      %c0_194 = arith.constant 0 : index
      %c0_195 = arith.constant 0 : index
      %295 = vector.load %arg2[%c3_193, %c0_194, %c0_195] : memref<5x16x80xbf16, #tpu.memory_space<vmem>>, vector<1x16x80xbf16>
      %296 = vector.shape_cast %295 : vector<1x16x80xbf16> to vector<16x80xbf16>
      %297 = vector.extract_strided_slice %280 {offsets = [0, 3], sizes = [80, 215], strides = [1, 1]} : vector<80x219xbf16> to vector<80x215xbf16>
      %cst_196 = arith.constant dense<0.000000e+00> : vector<16x215xf32>
      %298 = tpu.matmul %296, %297, %cst_196 {dimension_numbers = #tpu.dot_dimension_numbers<[1], [0], [0], [1], [0, 0, 1, 1], [], []>} : vector<16x80xbf16>, vector<80x215xbf16>, vector<16x215xf32> -> vector<16x215xf32>
      %299 = arith.addf %294, %298 : vector<16x215xf32>
      %c4_197 = arith.constant 4 : index
      %c0_198 = arith.constant 0 : index
      %c0_199 = arith.constant 0 : index
      %300 = vector.load %arg2[%c4_197, %c0_198, %c0_199] : memref<5x16x80xbf16, #tpu.memory_space<vmem>>, vector<1x16x80xbf16>
      %301 = vector.shape_cast %300 : vector<1x16x80xbf16> to vector<16x80xbf16>
      %302 = vector.extract_strided_slice %280 {offsets = [0, 4], sizes = [80, 215], strides = [1, 1]} : vector<80x219xbf16> to vector<80x215xbf16>
      %cst_200 = arith.constant dense<0.000000e+00> : vector<16x215xf32>
      %303 = tpu.matmul %301, %302, %cst_200 {dimension_numbers = #tpu.dot_dimension_numbers<[1], [0], [0], [1], [0, 0, 1, 1], [], []>} : vector<16x80xbf16>, vector<80x215xbf16>, vector<16x215xf32> -> vector<16x215xf32>
      %304 = arith.addf %299, %303 : vector<16x215xf32>
      %c16_i32_201 = arith.constant 16 : i32
      %305 = arith.muli %arg26, %c16_i32_201 : i32
      %306 = tpu.assume_multiple %305, 16 : i32
      %307 = vector.broadcast %0 : vector<16x1xf32> to vector<16x215xf32>
      %308 = arith.addf %304, %307 : vector<16x215xf32>
      %cst_202 = arith.constant 0.000000e+00 : f32
      %309 = vector.broadcast %cst_202 : f32 to vector<16x215xf32>
      %310 = arith.maximumf %308, %309 : vector<16x215xf32>
      %311 = arith.truncf %310 : vector<16x215xf32> to vector<16x215xbf16>
      %312 = arith.index_cast %306 : i32 to index
      %c0_203 = arith.constant 0 : index
      %313 = vector.load %arg17[%312, %c0_203] : memref<3440x215xbf16, #tpu.memory_space<vmem>>, vector<16x215xbf16>
      tpu.vector_store %arg17[%312, %c0_203], %311 {strides = array<i32>} : memref<3440x215xbf16, #tpu.memory_space<vmem>>, vector<16x215xbf16>,
    }
    %c215_i32_1 = arith.constant 215 : i32
    %2 = tpu.iota {dimensions = array<i32: 0>} : vector<213x107xi32>
    %3 = tpu.iota {dimensions = array<i32: 1>} : vector<213x107xi32>
    %c2_i32 = arith.constant 2 : i32
    %4 = vector.broadcast %c2_i32 : i32 to vector<213x107xi32>
    %5 = arith.muli %4, %3 : vector<213x107xi32>
    %6 = arith.cmpi eq, %2, %5 : vector<213x107xi32>
    %7 = arith.extui %6 : vector<213x107xi1> to vector<213x107xi32>
    %8 = arith.sitofp %7 : vector<213x107xi32> to vector<213x107xf32>
    %9 = arith.truncf %8 : vector<213x107xf32> to vector<213x107xbf16>
    %c0_i32_2 = arith.constant 0 : i32
    %c107_i32 = arith.constant 107 : i32
    %10 = arith.addi %c0_i32_2, %c107_i32 : i32
    %c1_i32_3 = arith.constant 1 : i32
    scf.for %arg26 = %c0_i32_2 to %10 step %c1_i32_3  : i32 {
      %c2_i32_178 = arith.constant 2 : i32
      %276 = arith.muli %c2_i32_178, %arg26 : i32
      %c16_i32_179 = arith.constant 16 : i32
      %277 = arith.muli %276, %c16_i32_179 : i32
      %278 = tpu.assume_multiple %277, 16 : i32
      %279 = arith.index_cast %278 : i32 to index
      %c0_180 = arith.constant 0 : index
      %280 = vector.load %arg17[%279, %c0_180] : memref<3440x215xbf16, #tpu.memory_space<vmem>>, vector<16x215xbf16>
      %c2_i32_181 = arith.constant 2 : i32
      %281 = arith.muli %c2_i32_181, %arg26 : i32
      %c1_i32_182 = arith.constant 1 : i32
      %282 = arith.addi %281, %c1_i32_182 : i32
      %c16_i32_183 = arith.constant 16 : i32
      %283 = arith.muli %282, %c16_i32_183 : i32
      %284 = tpu.assume_multiple %283, 16 : i32
      %285 = arith.index_cast %284 : i32 to index
      %c0_184 = arith.constant 0 : index
      %286 = vector.load %arg17[%285, %c0_184] : memref<3440x215xbf16, #tpu.memory_space<vmem>>, vector<16x215xbf16>
      %c2_i32_185 = arith.constant 2 : i32
      %287 = arith.muli %c2_i32_185, %arg26 : i32
      %c2_i32_186 = arith.constant 2 : i32
      %288 = arith.addi %287, %c2_i32_186 : i32
      %c16_i32_187 = arith.constant 16 : i32
      %289 = arith.muli %288, %c16_i32_187 : i32
      %290 = tpu.assume_multiple %289, 16 : i32
      %291 = arith.index_cast %290 : i32 to index
      %c0_188 = arith.constant 0 : index
      %292 = vector.load %arg17[%291, %c0_188] : memref<3440x215xbf16, #tpu.memory_space<vmem>>, vector<16x215xbf16>
      %293 = arith.maximumf %280, %286 : vector<16x215xbf16>
      %294 = arith.maximumf %293, %292 : vector<16x215xbf16>
      %295 = vector.extract_strided_slice %294 {offsets = [0, 0], sizes = [16, 213], strides = [1, 1]} : vector<16x215xbf16> to vector<16x213xbf16>
      %296 = vector.extract_strided_slice %294 {offsets = [0, 1], sizes = [16, 213], strides = [1, 1]} : vector<16x215xbf16> to vector<16x213xbf16>
      %297 = arith.maximumf %295, %296 : vector<16x213xbf16>
      %298 = vector.extract_strided_slice %294 {offsets = [0, 2], sizes = [16, 213], strides = [1, 1]} : vector<16x215xbf16> to vector<16x213xbf16>
      %299 = arith.maximumf %297, %298 : vector<16x213xbf16>
      %c16_i32_189 = arith.constant 16 : i32
      %300 = arith.muli %arg26, %c16_i32_189 : i32
      %301 = tpu.assume_multiple %300, 16 : i32
      %cst_190 = arith.constant dense<0.000000e+00> : vector<16x107xf32>
      %302 = tpu.matmul %299, %9, %cst_190 {dimension_numbers = #tpu.dot_dimension_numbers<[1], [0], [0], [1], [0, 0, 1, 1], [], []>} : vector<16x213xbf16>, vector<213x107xbf16>, vector<16x107xf32> -> vector<16x107xf32>
      %303 = arith.truncf %302 : vector<16x107xf32> to vector<16x107xbf16>
      %304 = arith.index_cast %301 : i32 to index
      %c0_191 = arith.constant 0 : index
      %305 = vector.load %arg18[%304, %c0_191] : memref<1712x107xbf16, #tpu.memory_space<vmem>>, vector<16x107xbf16>
      tpu.vector_store %arg18[%304, %c0_191], %303 {strides = array<i32>} : memref<1712x107xbf16, #tpu.memory_space<vmem>>, vector<16x107xbf16>,
    }
    %c107_i32_4 = arith.constant 107 : i32
    %c0_5 = arith.constant 0 : index
    %c0_6 = arith.constant 0 : index
    %11 = vector.load %arg5[%c0_5, %c0_6] : memref<32x1xf32, #tpu.memory_space<vmem>>, vector<32x1xf32>
    %c0_i32_7 = arith.constant 0 : i32
    %c103_i32 = arith.constant 103 : i32
    %12 = arith.addi %c0_i32_7, %c103_i32 : i32
    %c1_i32_8 = arith.constant 1 : i32
    scf.for %arg26 = %c0_i32_7 to %12 step %c1_i32_8  : i32 {
      %c16_i32_178 = arith.constant 16 : i32
      %276 = arith.muli %arg26, %c16_i32_178 : i32
      %277 = tpu.assume_multiple %276, 16 : i32
      %278 = arith.index_cast %277 : i32 to index
      %c0_179 = arith.constant 0 : index
      %279 = vector.load %arg18[%278, %c0_179] : memref<1712x107xbf16, #tpu.memory_space<vmem>>, vector<80x107xbf16>
      %c0_180 = arith.constant 0 : index
      %c0_181 = arith.constant 0 : index
      %c0_182 = arith.constant 0 : index
      %280 = vector.load %arg4[%c0_180, %c0_181, %c0_182] : memref<5x32x80xbf16, #tpu.memory_space<vmem>>, vector<1x32x80xbf16>
      %281 = vector.shape_cast %280 : vector<1x32x80xbf16> to vector<32x80xbf16>
      %282 = vector.extract_strided_slice %279 {offsets = [0, 0], sizes = [80, 103], strides = [1, 1]} : vector<80x107xbf16> to vector<80x103xbf16>
      %cst_183 = arith.constant dense<0.000000e+00> : vector<32x103xf32>
      %283 = tpu.matmul %281, %282, %cst_183 {dimension_numbers = #tpu.dot_dimension_numbers<[1], [0], [0], [1], [0, 0, 1, 1], [], []>} : vector<32x80xbf16>, vector<80x103xbf16>, vector<32x103xf32> -> vector<32x103xf32>
      %c1_184 = arith.constant 1 : index
      %c0_185 = arith.constant 0 : index
      %c0_186 = arith.constant 0 : index
      %284 = vector.load %arg4[%c1_184, %c0_185, %c0_186] : memref<5x32x80xbf16, #tpu.memory_space<vmem>>, vector<1x32x80xbf16>
      %285 = vector.shape_cast %284 : vector<1x32x80xbf16> to vector<32x80xbf16>
      %286 = vector.extract_strided_slice %279 {offsets = [0, 1], sizes = [80, 103], strides = [1, 1]} : vector<80x107xbf16> to vector<80x103xbf16>
      %cst_187 = arith.constant dense<0.000000e+00> : vector<32x103xf32>
      %287 = tpu.matmul %285, %286, %cst_187 {dimension_numbers = #tpu.dot_dimension_numbers<[1], [0], [0], [1], [0, 0, 1, 1], [], []>} : vector<32x80xbf16>, vector<80x103xbf16>, vector<32x103xf32> -> vector<32x103xf32>
      %288 = arith.addf %283, %287 : vector<32x103xf32>
      %c2_188 = arith.constant 2 : index
      %c0_189 = arith.constant 0 : index
      %c0_190 = arith.constant 0 : index
      %289 = vector.load %arg4[%c2_188, %c0_189, %c0_190] : memref<5x32x80xbf16, #tpu.memory_space<vmem>>, vector<1x32x80xbf16>
      %290 = vector.shape_cast %289 : vector<1x32x80xbf16> to vector<32x80xbf16>
      %291 = vector.extract_strided_slice %279 {offsets = [0, 2], sizes = [80, 103], strides = [1, 1]} : vector<80x107xbf16> to vector<80x103xbf16>
      %cst_191 = arith.constant dense<0.000000e+00> : vector<32x103xf32>
      %292 = tpu.matmul %290, %291, %cst_191 {dimension_numbers = #tpu.dot_dimension_numbers<[1], [0], [0], [1], [0, 0, 1, 1], [], []>} : vector<32x80xbf16>, vector<80x103xbf16>, vector<32x103xf32> -> vector<32x103xf32>
      %293 = arith.addf %288, %292 : vector<32x103xf32>
      %c3_192 = arith.constant 3 : index
      %c0_193 = arith.constant 0 : index
      %c0_194 = arith.constant 0 : index
      %294 = vector.load %arg4[%c3_192, %c0_193, %c0_194] : memref<5x32x80xbf16, #tpu.memory_space<vmem>>, vector<1x32x80xbf16>
      %295 = vector.shape_cast %294 : vector<1x32x80xbf16> to vector<32x80xbf16>
      %296 = vector.extract_strided_slice %279 {offsets = [0, 3], sizes = [80, 103], strides = [1, 1]} : vector<80x107xbf16> to vector<80x103xbf16>
      %cst_195 = arith.constant dense<0.000000e+00> : vector<32x103xf32>
      %297 = tpu.matmul %295, %296, %cst_195 {dimension_numbers = #tpu.dot_dimension_numbers<[1], [0], [0], [1], [0, 0, 1, 1], [], []>} : vector<32x80xbf16>, vector<80x103xbf16>, vector<32x103xf32> -> vector<32x103xf32>
      %298 = arith.addf %293, %297 : vector<32x103xf32>
      %c4_196 = arith.constant 4 : index
      %c0_197 = arith.constant 0 : index
      %c0_198 = arith.constant 0 : index
      %299 = vector.load %arg4[%c4_196, %c0_197, %c0_198] : memref<5x32x80xbf16, #tpu.memory_space<vmem>>, vector<1x32x80xbf16>
      %300 = vector.shape_cast %299 : vector<1x32x80xbf16> to vector<32x80xbf16>
      %301 = vector.extract_strided_slice %279 {offsets = [0, 4], sizes = [80, 103], strides = [1, 1]} : vector<80x107xbf16> to vector<80x103xbf16>
      %cst_199 = arith.constant dense<0.000000e+00> : vector<32x103xf32>
      %302 = tpu.matmul %300, %301, %cst_199 {dimension_numbers = #tpu.dot_dimension_numbers<[1], [0], [0], [1], [0, 0, 1, 1], [], []>} : vector<32x80xbf16>, vector<80x103xbf16>, vector<32x103xf32> -> vector<32x103xf32>
      %303 = arith.addf %298, %302 : vector<32x103xf32>
      %c32_i32_200 = arith.constant 32 : i32
      %304 = arith.muli %arg26, %c32_i32_200 : i32
      %305 = tpu.assume_multiple %304, 32 : i32
      %306 = vector.broadcast %11 : vector<32x1xf32> to vector<32x103xf32>
      %307 = arith.addf %303, %306 : vector<32x103xf32>
      %cst_201 = arith.constant 0.000000e+00 : f32
      %308 = vector.broadcast %cst_201 : f32 to vector<32x103xf32>
      %309 = arith.maximumf %307, %308 : vector<32x103xf32>
      %310 = arith.truncf %309 : vector<32x103xf32> to vector<32x103xbf16>
      %311 = arith.index_cast %305 : i32 to index
      %c0_202 = arith.constant 0 : index
      %312 = vector.load %arg19[%311, %c0_202] : memref<3296x103xbf16, #tpu.memory_space<vmem>>, vector<32x103xbf16>
      tpu.vector_store %arg19[%311, %c0_202], %310 {strides = array<i32>} : memref<3296x103xbf16, #tpu.memory_space<vmem>>, vector<32x103xbf16>,
    }
    %c103_i32_9 = arith.constant 103 : i32
    %13 = tpu.iota {dimensions = array<i32: 0>} : vector<101x51xi32>
    %14 = tpu.iota {dimensions = array<i32: 1>} : vector<101x51xi32>
    %c2_i32_10 = arith.constant 2 : i32
    %15 = vector.broadcast %c2_i32_10 : i32 to vector<101x51xi32>
    %16 = arith.muli %15, %14 : vector<101x51xi32>
    %17 = arith.cmpi eq, %13, %16 : vector<101x51xi32>
    %18 = arith.extui %17 : vector<101x51xi1> to vector<101x51xi32>
    %19 = arith.sitofp %18 : vector<101x51xi32> to vector<101x51xf32>
    %20 = arith.truncf %19 : vector<101x51xf32> to vector<101x51xbf16>
    %c0_i32_11 = arith.constant 0 : i32
    %c51_i32 = arith.constant 51 : i32
    %21 = arith.addi %c0_i32_11, %c51_i32 : i32
    %c1_i32_12 = arith.constant 1 : i32
    scf.for %arg26 = %c0_i32_11 to %21 step %c1_i32_12  : i32 {
      %c2_i32_178 = arith.constant 2 : i32
      %276 = arith.muli %c2_i32_178, %arg26 : i32
      %c32_i32_179 = arith.constant 32 : i32
      %277 = arith.muli %276, %c32_i32_179 : i32
      %278 = tpu.assume_multiple %277, 32 : i32
      %279 = arith.index_cast %278 : i32 to index
      %c0_180 = arith.constant 0 : index
      %280 = vector.load %arg19[%279, %c0_180] : memref<3296x103xbf16, #tpu.memory_space<vmem>>, vector<32x103xbf16>
      %c2_i32_181 = arith.constant 2 : i32
      %281 = arith.muli %c2_i32_181, %arg26 : i32
      %c1_i32_182 = arith.constant 1 : i32
      %282 = arith.addi %281, %c1_i32_182 : i32
      %c32_i32_183 = arith.constant 32 : i32
      %283 = arith.muli %282, %c32_i32_183 : i32
      %284 = tpu.assume_multiple %283, 32 : i32
      %285 = arith.index_cast %284 : i32 to index
      %c0_184 = arith.constant 0 : index
      %286 = vector.load %arg19[%285, %c0_184] : memref<3296x103xbf16, #tpu.memory_space<vmem>>, vector<32x103xbf16>
      %c2_i32_185 = arith.constant 2 : i32
      %287 = arith.muli %c2_i32_185, %arg26 : i32
      %c2_i32_186 = arith.constant 2 : i32
      %288 = arith.addi %287, %c2_i32_186 : i32
      %c32_i32_187 = arith.constant 32 : i32
      %289 = arith.muli %288, %c32_i32_187 : i32
      %290 = tpu.assume_multiple %289, 32 : i32
      %291 = arith.index_cast %290 : i32 to index
      %c0_188 = arith.constant 0 : index
      %292 = vector.load %arg19[%291, %c0_188] : memref<3296x103xbf16, #tpu.memory_space<vmem>>, vector<32x103xbf16>
      %293 = arith.maximumf %280, %286 : vector<32x103xbf16>
      %294 = arith.maximumf %293, %292 : vector<32x103xbf16>
      %295 = vector.extract_strided_slice %294 {offsets = [0, 0], sizes = [32, 101], strides = [1, 1]} : vector<32x103xbf16> to vector<32x101xbf16>
      %296 = vector.extract_strided_slice %294 {offsets = [0, 1], sizes = [32, 101], strides = [1, 1]} : vector<32x103xbf16> to vector<32x101xbf16>
      %297 = arith.maximumf %295, %296 : vector<32x101xbf16>
      %298 = vector.extract_strided_slice %294 {offsets = [0, 2], sizes = [32, 101], strides = [1, 1]} : vector<32x103xbf16> to vector<32x101xbf16>
      %299 = arith.maximumf %297, %298 : vector<32x101xbf16>
      %c32_i32_189 = arith.constant 32 : i32
      %300 = arith.muli %arg26, %c32_i32_189 : i32
      %301 = tpu.assume_multiple %300, 32 : i32
      %cst_190 = arith.constant dense<0.000000e+00> : vector<32x51xf32>
      %302 = tpu.matmul %299, %20, %cst_190 {dimension_numbers = #tpu.dot_dimension_numbers<[1], [0], [0], [1], [0, 0, 1, 1], [], []>} : vector<32x101xbf16>, vector<101x51xbf16>, vector<32x51xf32> -> vector<32x51xf32>
      %303 = arith.truncf %302 : vector<32x51xf32> to vector<32x51xbf16>
      %304 = arith.index_cast %301 : i32 to index
      %c0_191 = arith.constant 0 : index
      %305 = vector.load %arg20[%304, %c0_191] : memref<1632x51xbf16, #tpu.memory_space<vmem>>, vector<32x51xbf16>
      tpu.vector_store %arg20[%304, %c0_191], %303 {strides = array<i32>} : memref<1632x51xbf16, #tpu.memory_space<vmem>>, vector<32x51xbf16>,
    }
    %c51_i32_13 = arith.constant 51 : i32
    %c0_14 = arith.constant 0 : index
    %c0_15 = arith.constant 0 : index
    %22 = vector.load %arg7[%c0_14, %c0_15] : memref<64x1xf32, #tpu.memory_space<vmem>>, vector<64x1xf32>
    %c0_i32_16 = arith.constant 0 : i32
    %c47_i32 = arith.constant 47 : i32
    %23 = arith.addi %c0_i32_16, %c47_i32 : i32
    %c1_i32_17 = arith.constant 1 : i32
    scf.for %arg26 = %c0_i32_16 to %23 step %c1_i32_17  : i32 {
      %c32_i32_178 = arith.constant 32 : i32
      %276 = arith.muli %arg26, %c32_i32_178 : i32
      %277 = tpu.assume_multiple %276, 32 : i32
      %278 = arith.index_cast %277 : i32 to index
      %c0_179 = arith.constant 0 : index
      %279 = vector.load %arg20[%278, %c0_179] : memref<1632x51xbf16, #tpu.memory_space<vmem>>, vector<160x51xbf16>
      %c0_180 = arith.constant 0 : index
      %c0_181 = arith.constant 0 : index
      %c0_182 = arith.constant 0 : index
      %280 = vector.load %arg6[%c0_180, %c0_181, %c0_182] : memref<5x64x160xbf16, #tpu.memory_space<vmem>>, vector<1x64x160xbf16>
      %281 = vector.shape_cast %280 : vector<1x64x160xbf16> to vector<64x160xbf16>
      %282 = vector.extract_strided_slice %279 {offsets = [0, 0], sizes = [160, 47], strides = [1, 1]} : vector<160x51xbf16> to vector<160x47xbf16>
      %cst_183 = arith.constant dense<0.000000e+00> : vector<64x47xf32>
      %283 = tpu.matmul %281, %282, %cst_183 {dimension_numbers = #tpu.dot_dimension_numbers<[1], [0], [0], [1], [0, 0, 1, 1], [], []>} : vector<64x160xbf16>, vector<160x47xbf16>, vector<64x47xf32> -> vector<64x47xf32>
      %c1_184 = arith.constant 1 : index
      %c0_185 = arith.constant 0 : index
      %c0_186 = arith.constant 0 : index
      %284 = vector.load %arg6[%c1_184, %c0_185, %c0_186] : memref<5x64x160xbf16, #tpu.memory_space<vmem>>, vector<1x64x160xbf16>
      %285 = vector.shape_cast %284 : vector<1x64x160xbf16> to vector<64x160xbf16>
      %286 = vector.extract_strided_slice %279 {offsets = [0, 1], sizes = [160, 47], strides = [1, 1]} : vector<160x51xbf16> to vector<160x47xbf16>
      %cst_187 = arith.constant dense<0.000000e+00> : vector<64x47xf32>
      %287 = tpu.matmul %285, %286, %cst_187 {dimension_numbers = #tpu.dot_dimension_numbers<[1], [0], [0], [1], [0, 0, 1, 1], [], []>} : vector<64x160xbf16>, vector<160x47xbf16>, vector<64x47xf32> -> vector<64x47xf32>
      %288 = arith.addf %283, %287 : vector<64x47xf32>
      %c2_188 = arith.constant 2 : index
      %c0_189 = arith.constant 0 : index
      %c0_190 = arith.constant 0 : index
      %289 = vector.load %arg6[%c2_188, %c0_189, %c0_190] : memref<5x64x160xbf16, #tpu.memory_space<vmem>>, vector<1x64x160xbf16>
      %290 = vector.shape_cast %289 : vector<1x64x160xbf16> to vector<64x160xbf16>
      %291 = vector.extract_strided_slice %279 {offsets = [0, 2], sizes = [160, 47], strides = [1, 1]} : vector<160x51xbf16> to vector<160x47xbf16>
      %cst_191 = arith.constant dense<0.000000e+00> : vector<64x47xf32>
      %292 = tpu.matmul %290, %291, %cst_191 {dimension_numbers = #tpu.dot_dimension_numbers<[1], [0], [0], [1], [0, 0, 1, 1], [], []>} : vector<64x160xbf16>, vector<160x47xbf16>, vector<64x47xf32> -> vector<64x47xf32>
      %293 = arith.addf %288, %292 : vector<64x47xf32>
      %c3_192 = arith.constant 3 : index
      %c0_193 = arith.constant 0 : index
      %c0_194 = arith.constant 0 : index
      %294 = vector.load %arg6[%c3_192, %c0_193, %c0_194] : memref<5x64x160xbf16, #tpu.memory_space<vmem>>, vector<1x64x160xbf16>
      %295 = vector.shape_cast %294 : vector<1x64x160xbf16> to vector<64x160xbf16>
      %296 = vector.extract_strided_slice %279 {offsets = [0, 3], sizes = [160, 47], strides = [1, 1]} : vector<160x51xbf16> to vector<160x47xbf16>
      %cst_195 = arith.constant dense<0.000000e+00> : vector<64x47xf32>
      %297 = tpu.matmul %295, %296, %cst_195 {dimension_numbers = #tpu.dot_dimension_numbers<[1], [0], [0], [1], [0, 0, 1, 1], [], []>} : vector<64x160xbf16>, vector<160x47xbf16>, vector<64x47xf32> -> vector<64x47xf32>
      %298 = arith.addf %293, %297 : vector<64x47xf32>
      %c4_196 = arith.constant 4 : index
      %c0_197 = arith.constant 0 : index
      %c0_198 = arith.constant 0 : index
      %299 = vector.load %arg6[%c4_196, %c0_197, %c0_198] : memref<5x64x160xbf16, #tpu.memory_space<vmem>>, vector<1x64x160xbf16>
      %300 = vector.shape_cast %299 : vector<1x64x160xbf16> to vector<64x160xbf16>
      %301 = vector.extract_strided_slice %279 {offsets = [0, 4], sizes = [160, 47], strides = [1, 1]} : vector<160x51xbf16> to vector<160x47xbf16>
      %cst_199 = arith.constant dense<0.000000e+00> : vector<64x47xf32>
      %302 = tpu.matmul %300, %301, %cst_199 {dimension_numbers = #tpu.dot_dimension_numbers<[1], [0], [0], [1], [0, 0, 1, 1], [], []>} : vector<64x160xbf16>, vector<160x47xbf16>, vector<64x47xf32> -> vector<64x47xf32>
      %303 = arith.addf %298, %302 : vector<64x47xf32>
      %c64_i32 = arith.constant 64 : i32
      %304 = arith.muli %arg26, %c64_i32 : i32
      %305 = tpu.assume_multiple %304, 64 : i32
      %306 = vector.broadcast %22 : vector<64x1xf32> to vector<64x47xf32>
      %307 = arith.addf %303, %306 : vector<64x47xf32>
      %cst_200 = arith.constant 0.000000e+00 : f32
      %308 = vector.broadcast %cst_200 : f32 to vector<64x47xf32>
      %309 = arith.maximumf %307, %308 : vector<64x47xf32>
      %310 = arith.truncf %309 : vector<64x47xf32> to vector<64x47xbf16>
      %311 = arith.index_cast %305 : i32 to index
      %c0_201 = arith.constant 0 : index
      %312 = vector.load %arg21[%311, %c0_201] : memref<3008x47xbf16, #tpu.memory_space<vmem>>, vector<64x47xbf16>
      tpu.vector_store %arg21[%311, %c0_201], %310 {strides = array<i32>} : memref<3008x47xbf16, #tpu.memory_space<vmem>>, vector<64x47xbf16>,
    }
    %c47_i32_18 = arith.constant 47 : i32
    %24 = tpu.iota {dimensions = array<i32: 0>} : vector<45x23xi32>
    %25 = tpu.iota {dimensions = array<i32: 1>} : vector<45x23xi32>
    %c2_i32_19 = arith.constant 2 : i32
    %26 = vector.broadcast %c2_i32_19 : i32 to vector<45x23xi32>
    %27 = arith.muli %26, %25 : vector<45x23xi32>
    %28 = arith.cmpi eq, %24, %27 : vector<45x23xi32>
    %29 = arith.extui %28 : vector<45x23xi1> to vector<45x23xi32>
    %30 = arith.sitofp %29 : vector<45x23xi32> to vector<45x23xf32>
    %31 = arith.truncf %30 : vector<45x23xf32> to vector<45x23xbf16>
    %c0_i32_20 = arith.constant 0 : i32
    %c23_i32 = arith.constant 23 : i32
    %32 = arith.addi %c0_i32_20, %c23_i32 : i32
    %c1_i32_21 = arith.constant 1 : i32
    scf.for %arg26 = %c0_i32_20 to %32 step %c1_i32_21  : i32 {
      %c2_i32_178 = arith.constant 2 : i32
      %276 = arith.muli %c2_i32_178, %arg26 : i32
      %c64_i32 = arith.constant 64 : i32
      %277 = arith.muli %276, %c64_i32 : i32
      %278 = tpu.assume_multiple %277, 64 : i32
      %279 = arith.index_cast %278 : i32 to index
      %c0_179 = arith.constant 0 : index
      %280 = vector.load %arg21[%279, %c0_179] : memref<3008x47xbf16, #tpu.memory_space<vmem>>, vector<64x47xbf16>
      %c2_i32_180 = arith.constant 2 : i32
      %281 = arith.muli %c2_i32_180, %arg26 : i32
      %c1_i32_181 = arith.constant 1 : i32
      %282 = arith.addi %281, %c1_i32_181 : i32
      %c64_i32_182 = arith.constant 64 : i32
      %283 = arith.muli %282, %c64_i32_182 : i32
      %284 = tpu.assume_multiple %283, 64 : i32
      %285 = arith.index_cast %284 : i32 to index
      %c0_183 = arith.constant 0 : index
      %286 = vector.load %arg21[%285, %c0_183] : memref<3008x47xbf16, #tpu.memory_space<vmem>>, vector<64x47xbf16>
      %c2_i32_184 = arith.constant 2 : i32
      %287 = arith.muli %c2_i32_184, %arg26 : i32
      %c2_i32_185 = arith.constant 2 : i32
      %288 = arith.addi %287, %c2_i32_185 : i32
      %c64_i32_186 = arith.constant 64 : i32
      %289 = arith.muli %288, %c64_i32_186 : i32
      %290 = tpu.assume_multiple %289, 64 : i32
      %291 = arith.index_cast %290 : i32 to index
      %c0_187 = arith.constant 0 : index
      %292 = vector.load %arg21[%291, %c0_187] : memref<3008x47xbf16, #tpu.memory_space<vmem>>, vector<64x47xbf16>
      %293 = arith.maximumf %280, %286 : vector<64x47xbf16>
      %294 = arith.maximumf %293, %292 : vector<64x47xbf16>
      %295 = vector.extract_strided_slice %294 {offsets = [0, 0], sizes = [64, 45], strides = [1, 1]} : vector<64x47xbf16> to vector<64x45xbf16>
      %296 = vector.extract_strided_slice %294 {offsets = [0, 1], sizes = [64, 45], strides = [1, 1]} : vector<64x47xbf16> to vector<64x45xbf16>
      %297 = arith.maximumf %295, %296 : vector<64x45xbf16>
      %298 = vector.extract_strided_slice %294 {offsets = [0, 2], sizes = [64, 45], strides = [1, 1]} : vector<64x47xbf16> to vector<64x45xbf16>
      %299 = arith.maximumf %297, %298 : vector<64x45xbf16>
      %c64_i32_188 = arith.constant 64 : i32
      %300 = arith.muli %arg26, %c64_i32_188 : i32
      %301 = tpu.assume_multiple %300, 64 : i32
      %cst_189 = arith.constant dense<0.000000e+00> : vector<64x23xf32>
      %302 = tpu.matmul %299, %31, %cst_189 {dimension_numbers = #tpu.dot_dimension_numbers<[1], [0], [0], [1], [0, 0, 1, 1], [], []>} : vector<64x45xbf16>, vector<45x23xbf16>, vector<64x23xf32> -> vector<64x23xf32>
      %303 = arith.truncf %302 : vector<64x23xf32> to vector<64x23xbf16>
      %304 = arith.index_cast %301 : i32 to index
      %c0_190 = arith.constant 0 : index
      %305 = vector.load %arg22[%304, %c0_190] : memref<1472x23xbf16, #tpu.memory_space<vmem>>, vector<64x23xbf16>
      tpu.vector_store %arg22[%304, %c0_190], %303 {strides = array<i32>} : memref<1472x23xbf16, #tpu.memory_space<vmem>>, vector<64x23xbf16>,
    }
    %c23_i32_22 = arith.constant 23 : i32
    %c0_23 = arith.constant 0 : index
    %c0_24 = arith.constant 0 : index
    %33 = vector.load %arg9[%c0_23, %c0_24] : memref<32x1xf32, #tpu.memory_space<vmem>>, vector<32x1xf32>
    %c0_i32_25 = arith.constant 0 : i32
    %c19_i32 = arith.constant 19 : i32
    %34 = arith.addi %c0_i32_25, %c19_i32 : i32
    %c1_i32_26 = arith.constant 1 : i32
    scf.for %arg26 = %c0_i32_25 to %34 step %c1_i32_26  : i32 {
      %c64_i32 = arith.constant 64 : i32
      %276 = arith.muli %arg26, %c64_i32 : i32
      %277 = tpu.assume_multiple %276, 64 : i32
      %278 = arith.index_cast %277 : i32 to index
      %c0_178 = arith.constant 0 : index
      %279 = vector.load %arg22[%278, %c0_178] : memref<1472x23xbf16, #tpu.memory_space<vmem>>, vector<320x23xbf16>
      %c0_179 = arith.constant 0 : index
      %c0_180 = arith.constant 0 : index
      %c0_181 = arith.constant 0 : index
      %280 = vector.load %arg8[%c0_179, %c0_180, %c0_181] : memref<5x32x320xbf16, #tpu.memory_space<vmem>>, vector<1x32x320xbf16>
      %281 = vector.shape_cast %280 : vector<1x32x320xbf16> to vector<32x320xbf16>
      %282 = vector.extract_strided_slice %279 {offsets = [0, 0], sizes = [320, 19], strides = [1, 1]} : vector<320x23xbf16> to vector<320x19xbf16>
      %cst_182 = arith.constant dense<0.000000e+00> : vector<32x19xf32>
      %283 = tpu.matmul %281, %282, %cst_182 {dimension_numbers = #tpu.dot_dimension_numbers<[1], [0], [0], [1], [0, 0, 1, 1], [], []>} : vector<32x320xbf16>, vector<320x19xbf16>, vector<32x19xf32> -> vector<32x19xf32>
      %c1_183 = arith.constant 1 : index
      %c0_184 = arith.constant 0 : index
      %c0_185 = arith.constant 0 : index
      %284 = vector.load %arg8[%c1_183, %c0_184, %c0_185] : memref<5x32x320xbf16, #tpu.memory_space<vmem>>, vector<1x32x320xbf16>
      %285 = vector.shape_cast %284 : vector<1x32x320xbf16> to vector<32x320xbf16>
      %286 = vector.extract_strided_slice %279 {offsets = [0, 1], sizes = [320, 19], strides = [1, 1]} : vector<320x23xbf16> to vector<320x19xbf16>
      %cst_186 = arith.constant dense<0.000000e+00> : vector<32x19xf32>
      %287 = tpu.matmul %285, %286, %cst_186 {dimension_numbers = #tpu.dot_dimension_numbers<[1], [0], [0], [1], [0, 0, 1, 1], [], []>} : vector<32x320xbf16>, vector<320x19xbf16>, vector<32x19xf32> -> vector<32x19xf32>
      %288 = arith.addf %283, %287 : vector<32x19xf32>
      %c2_187 = arith.constant 2 : index
      %c0_188 = arith.constant 0 : index
      %c0_189 = arith.constant 0 : index
      %289 = vector.load %arg8[%c2_187, %c0_188, %c0_189] : memref<5x32x320xbf16, #tpu.memory_space<vmem>>, vector<1x32x320xbf16>
      %290 = vector.shape_cast %289 : vector<1x32x320xbf16> to vector<32x320xbf16>
      %291 = vector.extract_strided_slice %279 {offsets = [0, 2], sizes = [320, 19], strides = [1, 1]} : vector<320x23xbf16> to vector<320x19xbf16>
      %cst_190 = arith.constant dense<0.000000e+00> : vector<32x19xf32>
      %292 = tpu.matmul %290, %291, %cst_190 {dimension_numbers = #tpu.dot_dimension_numbers<[1], [0], [0], [1], [0, 0, 1, 1], [], []>} : vector<32x320xbf16>, vector<320x19xbf16>, vector<32x19xf32> -> vector<32x19xf32>
      %293 = arith.addf %288, %292 : vector<32x19xf32>
      %c3_191 = arith.constant 3 : index
      %c0_192 = arith.constant 0 : index
      %c0_193 = arith.constant 0 : index
      %294 = vector.load %arg8[%c3_191, %c0_192, %c0_193] : memref<5x32x320xbf16, #tpu.memory_space<vmem>>, vector<1x32x320xbf16>
      %295 = vector.shape_cast %294 : vector<1x32x320xbf16> to vector<32x320xbf16>
      %296 = vector.extract_strided_slice %279 {offsets = [0, 3], sizes = [320, 19], strides = [1, 1]} : vector<320x23xbf16> to vector<320x19xbf16>
      %cst_194 = arith.constant dense<0.000000e+00> : vector<32x19xf32>
      %297 = tpu.matmul %295, %296, %cst_194 {dimension_numbers = #tpu.dot_dimension_numbers<[1], [0], [0], [1], [0, 0, 1, 1], [], []>} : vector<32x320xbf16>, vector<320x19xbf16>, vector<32x19xf32> -> vector<32x19xf32>
      %298 = arith.addf %293, %297 : vector<32x19xf32>
      %c4_195 = arith.constant 4 : index
      %c0_196 = arith.constant 0 : index
      %c0_197 = arith.constant 0 : index
      %299 = vector.load %arg8[%c4_195, %c0_196, %c0_197] : memref<5x32x320xbf16, #tpu.memory_space<vmem>>, vector<1x32x320xbf16>
      %300 = vector.shape_cast %299 : vector<1x32x320xbf16> to vector<32x320xbf16>
      %301 = vector.extract_strided_slice %279 {offsets = [0, 4], sizes = [320, 19], strides = [1, 1]} : vector<320x23xbf16> to vector<320x19xbf16>
      %cst_198 = arith.constant dense<0.000000e+00> : vector<32x19xf32>
      %302 = tpu.matmul %300, %301, %cst_198 {dimension_numbers = #tpu.dot_dimension_numbers<[1], [0], [0], [1], [0, 0, 1, 1], [], []>} : vector<32x320xbf16>, vector<320x19xbf16>, vector<32x19xf32> -> vector<32x19xf32>
      %303 = arith.addf %298, %302 : vector<32x19xf32>
      %c32_i32_199 = arith.constant 32 : i32
      %304 = arith.muli %arg26, %c32_i32_199 : i32
      %305 = tpu.assume_multiple %304, 32 : i32
      %306 = vector.broadcast %33 : vector<32x1xf32> to vector<32x19xf32>
      %307 = arith.addf %303, %306 : vector<32x19xf32>
      %cst_200 = arith.constant 0.000000e+00 : f32
      %308 = vector.broadcast %cst_200 : f32 to vector<32x19xf32>
      %309 = arith.maximumf %307, %308 : vector<32x19xf32>
      %310 = arith.truncf %309 : vector<32x19xf32> to vector<32x19xbf16>
      %311 = arith.index_cast %305 : i32 to index
      %c0_201 = arith.constant 0 : index
      %312 = vector.load %arg23[%311, %c0_201] : memref<608x19xbf16, #tpu.memory_space<vmem>>, vector<32x19xbf16>
      tpu.vector_store %arg23[%311, %c0_201], %310 {strides = array<i32>} : memref<608x19xbf16, #tpu.memory_space<vmem>>, vector<32x19xbf16>,
    }
    %c19_i32_27 = arith.constant 19 : i32
    %35 = tpu.iota {dimensions = array<i32: 0>} : vector<17x9xi32>
    %36 = tpu.iota {dimensions = array<i32: 1>} : vector<17x9xi32>
    %c2_i32_28 = arith.constant 2 : i32
    %37 = vector.broadcast %c2_i32_28 : i32 to vector<17x9xi32>
    %38 = arith.muli %37, %36 : vector<17x9xi32>
    %39 = arith.cmpi eq, %35, %38 : vector<17x9xi32>
    %40 = arith.extui %39 : vector<17x9xi1> to vector<17x9xi32>
    %41 = arith.sitofp %40 : vector<17x9xi32> to vector<17x9xf32>
    %42 = arith.truncf %41 : vector<17x9xf32> to vector<17x9xbf16>
    %c0_i32_29 = arith.constant 0 : i32
    %c9_i32 = arith.constant 9 : i32
    %43 = arith.addi %c0_i32_29, %c9_i32 : i32
    %c1_i32_30 = arith.constant 1 : i32
    scf.for %arg26 = %c0_i32_29 to %43 step %c1_i32_30  : i32 {
      %c2_i32_178 = arith.constant 2 : i32
      %276 = arith.muli %c2_i32_178, %arg26 : i32
      %c32_i32_179 = arith.constant 32 : i32
      %277 = arith.muli %276, %c32_i32_179 : i32
      %278 = tpu.assume_multiple %277, 32 : i32
      %279 = arith.index_cast %278 : i32 to index
      %c0_180 = arith.constant 0 : index
      %280 = vector.load %arg23[%279, %c0_180] : memref<608x19xbf16, #tpu.memory_space<vmem>>, vector<32x19xbf16>
      %c2_i32_181 = arith.constant 2 : i32
      %281 = arith.muli %c2_i32_181, %arg26 : i32
      %c1_i32_182 = arith.constant 1 : i32
      %282 = arith.addi %281, %c1_i32_182 : i32
      %c32_i32_183 = arith.constant 32 : i32
      %283 = arith.muli %282, %c32_i32_183 : i32
      %284 = tpu.assume_multiple %283, 32 : i32
      %285 = arith.index_cast %284 : i32 to index
      %c0_184 = arith.constant 0 : index
      %286 = vector.load %arg23[%285, %c0_184] : memref<608x19xbf16, #tpu.memory_space<vmem>>, vector<32x19xbf16>
      %c2_i32_185 = arith.constant 2 : i32
      %287 = arith.muli %c2_i32_185, %arg26 : i32
      %c2_i32_186 = arith.constant 2 : i32
      %288 = arith.addi %287, %c2_i32_186 : i32
      %c32_i32_187 = arith.constant 32 : i32
      %289 = arith.muli %288, %c32_i32_187 : i32
      %290 = tpu.assume_multiple %289, 32 : i32
      %291 = arith.index_cast %290 : i32 to index
      %c0_188 = arith.constant 0 : index
      %292 = vector.load %arg23[%291, %c0_188] : memref<608x19xbf16, #tpu.memory_space<vmem>>, vector<32x19xbf16>
      %293 = arith.maximumf %280, %286 : vector<32x19xbf16>
      %294 = arith.maximumf %293, %292 : vector<32x19xbf16>
      %295 = vector.extract_strided_slice %294 {offsets = [0, 0], sizes = [32, 17], strides = [1, 1]} : vector<32x19xbf16> to vector<32x17xbf16>
      %296 = vector.extract_strided_slice %294 {offsets = [0, 1], sizes = [32, 17], strides = [1, 1]} : vector<32x19xbf16> to vector<32x17xbf16>
      %297 = arith.maximumf %295, %296 : vector<32x17xbf16>
      %298 = vector.extract_strided_slice %294 {offsets = [0, 2], sizes = [32, 17], strides = [1, 1]} : vector<32x19xbf16> to vector<32x17xbf16>
      %299 = arith.maximumf %297, %298 : vector<32x17xbf16>
      %c32_i32_189 = arith.constant 32 : i32
      %300 = arith.muli %arg26, %c32_i32_189 : i32
      %301 = tpu.assume_multiple %300, 32 : i32
      %cst_190 = arith.constant dense<0.000000e+00> : vector<32x9xf32>
      %302 = tpu.matmul %299, %42, %cst_190 {dimension_numbers = #tpu.dot_dimension_numbers<[1], [0], [0], [1], [0, 0, 1, 1], [], []>} : vector<32x17xbf16>, vector<17x9xbf16>, vector<32x9xf32> -> vector<32x9xf32>
      %303 = arith.truncf %302 : vector<32x9xf32> to vector<32x9xbf16>
      %304 = arith.index_cast %301 : i32 to index
      %c0_191 = arith.constant 0 : index
      %305 = vector.load %arg24[%304, %c0_191] : memref<288x9xbf16, #tpu.memory_space<vmem>>, vector<32x9xbf16>
      tpu.vector_store %arg24[%304, %c0_191], %303 {strides = array<i32>} : memref<288x9xbf16, #tpu.memory_space<vmem>>, vector<32x9xbf16>,
    }
    %c9_i32_31 = arith.constant 9 : i32
    %c0_32 = arith.constant 0 : index
    %c0_33 = arith.constant 0 : index
    %44 = vector.load %arg11[%c0_32, %c0_33] : memref<16x1xf32, #tpu.memory_space<vmem>>, vector<16x1xf32>
    %c0_i32_34 = arith.constant 0 : i32
    %c32_i32 = arith.constant 32 : i32
    %45 = arith.muli %c0_i32_34, %c32_i32 : i32
    %46 = tpu.assume_multiple %45, 32 : i32
    %47 = arith.index_cast %46 : i32 to index
    %c0_35 = arith.constant 0 : index
    %48 = vector.load %arg24[%47, %c0_35] : memref<288x9xbf16, #tpu.memory_space<vmem>>, vector<160x9xbf16>
    %c0_36 = arith.constant 0 : index
    %c0_37 = arith.constant 0 : index
    %c0_38 = arith.constant 0 : index
    %49 = vector.load %arg10[%c0_36, %c0_37, %c0_38] : memref<5x16x160xbf16, #tpu.memory_space<vmem>>, vector<1x16x160xbf16>
    %50 = vector.shape_cast %49 : vector<1x16x160xbf16> to vector<16x160xbf16>
    %51 = vector.extract_strided_slice %48 {offsets = [0, 0], sizes = [160, 5], strides = [1, 1]} : vector<160x9xbf16> to vector<160x5xbf16>
    %cst = arith.constant dense<0.000000e+00> : vector<16x5xf32>
    %52 = tpu.matmul %50, %51, %cst {dimension_numbers = #tpu.dot_dimension_numbers<[1], [0], [0], [1], [0, 0, 1, 1], [], []>} : vector<16x160xbf16>, vector<160x5xbf16>, vector<16x5xf32> -> vector<16x5xf32>
    %c1 = arith.constant 1 : index
    %c0_39 = arith.constant 0 : index
    %c0_40 = arith.constant 0 : index
    %53 = vector.load %arg10[%c1, %c0_39, %c0_40] : memref<5x16x160xbf16, #tpu.memory_space<vmem>>, vector<1x16x160xbf16>
    %54 = vector.shape_cast %53 : vector<1x16x160xbf16> to vector<16x160xbf16>
    %55 = vector.extract_strided_slice %48 {offsets = [0, 1], sizes = [160, 5], strides = [1, 1]} : vector<160x9xbf16> to vector<160x5xbf16>
    %cst_41 = arith.constant dense<0.000000e+00> : vector<16x5xf32>
    %56 = tpu.matmul %54, %55, %cst_41 {dimension_numbers = #tpu.dot_dimension_numbers<[1], [0], [0], [1], [0, 0, 1, 1], [], []>} : vector<16x160xbf16>, vector<160x5xbf16>, vector<16x5xf32> -> vector<16x5xf32>
    %57 = arith.addf %52, %56 : vector<16x5xf32>
    %c2 = arith.constant 2 : index
    %c0_42 = arith.constant 0 : index
    %c0_43 = arith.constant 0 : index
    %58 = vector.load %arg10[%c2, %c0_42, %c0_43] : memref<5x16x160xbf16, #tpu.memory_space<vmem>>, vector<1x16x160xbf16>
    %59 = vector.shape_cast %58 : vector<1x16x160xbf16> to vector<16x160xbf16>
    %60 = vector.extract_strided_slice %48 {offsets = [0, 2], sizes = [160, 5], strides = [1, 1]} : vector<160x9xbf16> to vector<160x5xbf16>
    %cst_44 = arith.constant dense<0.000000e+00> : vector<16x5xf32>
    %61 = tpu.matmul %59, %60, %cst_44 {dimension_numbers = #tpu.dot_dimension_numbers<[1], [0], [0], [1], [0, 0, 1, 1], [], []>} : vector<16x160xbf16>, vector<160x5xbf16>, vector<16x5xf32> -> vector<16x5xf32>
    %62 = arith.addf %57, %61 : vector<16x5xf32>
    %c3 = arith.constant 3 : index
    %c0_45 = arith.constant 0 : index
    %c0_46 = arith.constant 0 : index
    %63 = vector.load %arg10[%c3, %c0_45, %c0_46] : memref<5x16x160xbf16, #tpu.memory_space<vmem>>, vector<1x16x160xbf16>
    %64 = vector.shape_cast %63 : vector<1x16x160xbf16> to vector<16x160xbf16>
    %65 = vector.extract_strided_slice %48 {offsets = [0, 3], sizes = [160, 5], strides = [1, 1]} : vector<160x9xbf16> to vector<160x5xbf16>
    %cst_47 = arith.constant dense<0.000000e+00> : vector<16x5xf32>
    %66 = tpu.matmul %64, %65, %cst_47 {dimension_numbers = #tpu.dot_dimension_numbers<[1], [0], [0], [1], [0, 0, 1, 1], [], []>} : vector<16x160xbf16>, vector<160x5xbf16>, vector<16x5xf32> -> vector<16x5xf32>
    %67 = arith.addf %62, %66 : vector<16x5xf32>
    %c4 = arith.constant 4 : index
    %c0_48 = arith.constant 0 : index
    %c0_49 = arith.constant 0 : index
    %68 = vector.load %arg10[%c4, %c0_48, %c0_49] : memref<5x16x160xbf16, #tpu.memory_space<vmem>>, vector<1x16x160xbf16>
    %69 = vector.shape_cast %68 : vector<1x16x160xbf16> to vector<16x160xbf16>
    %70 = vector.extract_strided_slice %48 {offsets = [0, 4], sizes = [160, 5], strides = [1, 1]} : vector<160x9xbf16> to vector<160x5xbf16>
    %cst_50 = arith.constant dense<0.000000e+00> : vector<16x5xf32>
    %71 = tpu.matmul %69, %70, %cst_50 {dimension_numbers = #tpu.dot_dimension_numbers<[1], [0], [0], [1], [0, 0, 1, 1], [], []>} : vector<16x160xbf16>, vector<160x5xbf16>, vector<16x5xf32> -> vector<16x5xf32>
    %72 = arith.addf %67, %71 : vector<16x5xf32>
    %c16_i32 = arith.constant 16 : i32
    %73 = arith.muli %c0_i32_34, %c16_i32 : i32
    %74 = tpu.assume_multiple %73, 16 : i32
    %75 = vector.broadcast %44 : vector<16x1xf32> to vector<16x5xf32>
    %76 = arith.addf %72, %75 : vector<16x5xf32>
    %cst_51 = arith.constant 0.000000e+00 : f32
    %77 = vector.broadcast %cst_51 : f32 to vector<16x5xf32>
    %78 = arith.maximumf %76, %77 : vector<16x5xf32>
    %79 = arith.truncf %78 : vector<16x5xf32> to vector<16x5xbf16>
    %80 = arith.index_cast %74 : i32 to index
    %c0_52 = arith.constant 0 : index
    %81 = vector.load %arg25[%80, %c0_52] : memref<80x5xbf16, #tpu.memory_space<vmem>>, vector<16x5xbf16>
    tpu.vector_store %arg25[%80, %c0_52], %79 {strides = array<i32>} : memref<80x5xbf16, #tpu.memory_space<vmem>>, vector<16x5xbf16>,
    %c1_i32_53 = arith.constant 1 : i32
    %c32_i32_54 = arith.constant 32 : i32
    %82 = arith.muli %c1_i32_53, %c32_i32_54 : i32
    %83 = tpu.assume_multiple %82, 32 : i32
    %84 = arith.index_cast %83 : i32 to index
    %c0_55 = arith.constant 0 : index
    %85 = vector.load %arg24[%84, %c0_55] : memref<288x9xbf16, #tpu.memory_space<vmem>>, vector<160x9xbf16>
    %c0_56 = arith.constant 0 : index
    %c0_57 = arith.constant 0 : index
    %c0_58 = arith.constant 0 : index
    %86 = vector.load %arg10[%c0_56, %c0_57, %c0_58] : memref<5x16x160xbf16, #tpu.memory_space<vmem>>, vector<1x16x160xbf16>
    %87 = vector.shape_cast %86 : vector<1x16x160xbf16> to vector<16x160xbf16>
    %88 = vector.extract_strided_slice %85 {offsets = [0, 0], sizes = [160, 5], strides = [1, 1]} : vector<160x9xbf16> to vector<160x5xbf16>
    %cst_59 = arith.constant dense<0.000000e+00> : vector<16x5xf32>
    %89 = tpu.matmul %87, %88, %cst_59 {dimension_numbers = #tpu.dot_dimension_numbers<[1], [0], [0], [1], [0, 0, 1, 1], [], []>} : vector<16x160xbf16>, vector<160x5xbf16>, vector<16x5xf32> -> vector<16x5xf32>
    %c1_60 = arith.constant 1 : index
    %c0_61 = arith.constant 0 : index
    %c0_62 = arith.constant 0 : index
    %90 = vector.load %arg10[%c1_60, %c0_61, %c0_62] : memref<5x16x160xbf16, #tpu.memory_space<vmem>>, vector<1x16x160xbf16>
    %91 = vector.shape_cast %90 : vector<1x16x160xbf16> to vector<16x160xbf16>
    %92 = vector.extract_strided_slice %85 {offsets = [0, 1], sizes = [160, 5], strides = [1, 1]} : vector<160x9xbf16> to vector<160x5xbf16>
    %cst_63 = arith.constant dense<0.000000e+00> : vector<16x5xf32>
    %93 = tpu.matmul %91, %92, %cst_63 {dimension_numbers = #tpu.dot_dimension_numbers<[1], [0], [0], [1], [0, 0, 1, 1], [], []>} : vector<16x160xbf16>, vector<160x5xbf16>, vector<16x5xf32> -> vector<16x5xf32>
    %94 = arith.addf %89, %93 : vector<16x5xf32>
    %c2_64 = arith.constant 2 : index
    %c0_65 = arith.constant 0 : index
    %c0_66 = arith.constant 0 : index
    %95 = vector.load %arg10[%c2_64, %c0_65, %c0_66] : memref<5x16x160xbf16, #tpu.memory_space<vmem>>, vector<1x16x160xbf16>
    %96 = vector.shape_cast %95 : vector<1x16x160xbf16> to vector<16x160xbf16>
    %97 = vector.extract_strided_slice %85 {offsets = [0, 2], sizes = [160, 5], strides = [1, 1]} : vector<160x9xbf16> to vector<160x5xbf16>
    %cst_67 = arith.constant dense<0.000000e+00> : vector<16x5xf32>
    %98 = tpu.matmul %96, %97, %cst_67 {dimension_numbers = #tpu.dot_dimension_numbers<[1], [0], [0], [1], [0, 0, 1, 1], [], []>} : vector<16x160xbf16>, vector<160x5xbf16>, vector<16x5xf32> -> vector<16x5xf32>
    %99 = arith.addf %94, %98 : vector<16x5xf32>
    %c3_68 = arith.constant 3 : index
    %c0_69 = arith.constant 0 : index
    %c0_70 = arith.constant 0 : index
    %100 = vector.load %arg10[%c3_68, %c0_69, %c0_70] : memref<5x16x160xbf16, #tpu.memory_space<vmem>>, vector<1x16x160xbf16>
    %101 = vector.shape_cast %100 : vector<1x16x160xbf16> to vector<16x160xbf16>
    %102 = vector.extract_strided_slice %85 {offsets = [0, 3], sizes = [160, 5], strides = [1, 1]} : vector<160x9xbf16> to vector<160x5xbf16>
    %cst_71 = arith.constant dense<0.000000e+00> : vector<16x5xf32>
    %103 = tpu.matmul %101, %102, %cst_71 {dimension_numbers = #tpu.dot_dimension_numbers<[1], [0], [0], [1], [0, 0, 1, 1], [], []>} : vector<16x160xbf16>, vector<160x5xbf16>, vector<16x5xf32> -> vector<16x5xf32>
    %104 = arith.addf %99, %103 : vector<16x5xf32>
    %c4_72 = arith.constant 4 : index
    %c0_73 = arith.constant 0 : index
    %c0_74 = arith.constant 0 : index
    %105 = vector.load %arg10[%c4_72, %c0_73, %c0_74] : memref<5x16x160xbf16, #tpu.memory_space<vmem>>, vector<1x16x160xbf16>
    %106 = vector.shape_cast %105 : vector<1x16x160xbf16> to vector<16x160xbf16>
    %107 = vector.extract_strided_slice %85 {offsets = [0, 4], sizes = [160, 5], strides = [1, 1]} : vector<160x9xbf16> to vector<160x5xbf16>
    %cst_75 = arith.constant dense<0.000000e+00> : vector<16x5xf32>
    %108 = tpu.matmul %106, %107, %cst_75 {dimension_numbers = #tpu.dot_dimension_numbers<[1], [0], [0], [1], [0, 0, 1, 1], [], []>} : vector<16x160xbf16>, vector<160x5xbf16>, vector<16x5xf32> -> vector<16x5xf32>
    %109 = arith.addf %104, %108 : vector<16x5xf32>
    %c16_i32_76 = arith.constant 16 : i32
    %110 = arith.muli %c1_i32_53, %c16_i32_76 : i32
    %111 = tpu.assume_multiple %110, 16 : i32
    %112 = vector.broadcast %44 : vector<16x1xf32> to vector<16x5xf32>
    %113 = arith.addf %109, %112 : vector<16x5xf32>
    %cst_77 = arith.constant 0.000000e+00 : f32
    %114 = vector.broadcast %cst_77 : f32 to vector<16x5xf32>
    %115 = arith.maximumf %113, %114 : vector<16x5xf32>
    %116 = arith.truncf %115 : vector<16x5xf32> to vector<16x5xbf16>
    %117 = arith.index_cast %111 : i32 to index
    %c0_78 = arith.constant 0 : index
    %118 = vector.load %arg25[%117, %c0_78] : memref<80x5xbf16, #tpu.memory_space<vmem>>, vector<16x5xbf16>
    tpu.vector_store %arg25[%117, %c0_78], %116 {strides = array<i32>} : memref<80x5xbf16, #tpu.memory_space<vmem>>, vector<16x5xbf16>,
    %c2_i32_79 = arith.constant 2 : i32
    %c32_i32_80 = arith.constant 32 : i32
    %119 = arith.muli %c2_i32_79, %c32_i32_80 : i32
    %120 = tpu.assume_multiple %119, 32 : i32
    %121 = arith.index_cast %120 : i32 to index
    %c0_81 = arith.constant 0 : index
    %122 = vector.load %arg24[%121, %c0_81] : memref<288x9xbf16, #tpu.memory_space<vmem>>, vector<160x9xbf16>
    %c0_82 = arith.constant 0 : index
    %c0_83 = arith.constant 0 : index
    %c0_84 = arith.constant 0 : index
    %123 = vector.load %arg10[%c0_82, %c0_83, %c0_84] : memref<5x16x160xbf16, #tpu.memory_space<vmem>>, vector<1x16x160xbf16>
    %124 = vector.shape_cast %123 : vector<1x16x160xbf16> to vector<16x160xbf16>
    %125 = vector.extract_strided_slice %122 {offsets = [0, 0], sizes = [160, 5], strides = [1, 1]} : vector<160x9xbf16> to vector<160x5xbf16>
    %cst_85 = arith.constant dense<0.000000e+00> : vector<16x5xf32>
    %126 = tpu.matmul %124, %125, %cst_85 {dimension_numbers = #tpu.dot_dimension_numbers<[1], [0], [0], [1], [0, 0, 1, 1], [], []>} : vector<16x160xbf16>, vector<160x5xbf16>, vector<16x5xf32> -> vector<16x5xf32>
    %c1_86 = arith.constant 1 : index
    %c0_87 = arith.constant 0 : index
    %c0_88 = arith.constant 0 : index
    %127 = vector.load %arg10[%c1_86, %c0_87, %c0_88] : memref<5x16x160xbf16, #tpu.memory_space<vmem>>, vector<1x16x160xbf16>
    %128 = vector.shape_cast %127 : vector<1x16x160xbf16> to vector<16x160xbf16>
    %129 = vector.extract_strided_slice %122 {offsets = [0, 1], sizes = [160, 5], strides = [1, 1]} : vector<160x9xbf16> to vector<160x5xbf16>
    %cst_89 = arith.constant dense<0.000000e+00> : vector<16x5xf32>
    %130 = tpu.matmul %128, %129, %cst_89 {dimension_numbers = #tpu.dot_dimension_numbers<[1], [0], [0], [1], [0, 0, 1, 1], [], []>} : vector<16x160xbf16>, vector<160x5xbf16>, vector<16x5xf32> -> vector<16x5xf32>
    %131 = arith.addf %126, %130 : vector<16x5xf32>
    %c2_90 = arith.constant 2 : index
    %c0_91 = arith.constant 0 : index
    %c0_92 = arith.constant 0 : index
    %132 = vector.load %arg10[%c2_90, %c0_91, %c0_92] : memref<5x16x160xbf16, #tpu.memory_space<vmem>>, vector<1x16x160xbf16>
    %133 = vector.shape_cast %132 : vector<1x16x160xbf16> to vector<16x160xbf16>
    %134 = vector.extract_strided_slice %122 {offsets = [0, 2], sizes = [160, 5], strides = [1, 1]} : vector<160x9xbf16> to vector<160x5xbf16>
    %cst_93 = arith.constant dense<0.000000e+00> : vector<16x5xf32>
    %135 = tpu.matmul %133, %134, %cst_93 {dimension_numbers = #tpu.dot_dimension_numbers<[1], [0], [0], [1], [0, 0, 1, 1], [], []>} : vector<16x160xbf16>, vector<160x5xbf16>, vector<16x5xf32> -> vector<16x5xf32>
    %136 = arith.addf %131, %135 : vector<16x5xf32>
    %c3_94 = arith.constant 3 : index
    %c0_95 = arith.constant 0 : index
    %c0_96 = arith.constant 0 : index
    %137 = vector.load %arg10[%c3_94, %c0_95, %c0_96] : memref<5x16x160xbf16, #tpu.memory_space<vmem>>, vector<1x16x160xbf16>
    %138 = vector.shape_cast %137 : vector<1x16x160xbf16> to vector<16x160xbf16>
    %139 = vector.extract_strided_slice %122 {offsets = [0, 3], sizes = [160, 5], strides = [1, 1]} : vector<160x9xbf16> to vector<160x5xbf16>
    %cst_97 = arith.constant dense<0.000000e+00> : vector<16x5xf32>
    %140 = tpu.matmul %138, %139, %cst_97 {dimension_numbers = #tpu.dot_dimension_numbers<[1], [0], [0], [1], [0, 0, 1, 1], [], []>} : vector<16x160xbf16>, vector<160x5xbf16>, vector<16x5xf32> -> vector<16x5xf32>
    %141 = arith.addf %136, %140 : vector<16x5xf32>
    %c4_98 = arith.constant 4 : index
    %c0_99 = arith.constant 0 : index
    %c0_100 = arith.constant 0 : index
    %142 = vector.load %arg10[%c4_98, %c0_99, %c0_100] : memref<5x16x160xbf16, #tpu.memory_space<vmem>>, vector<1x16x160xbf16>
    %143 = vector.shape_cast %142 : vector<1x16x160xbf16> to vector<16x160xbf16>
    %144 = vector.extract_strided_slice %122 {offsets = [0, 4], sizes = [160, 5], strides = [1, 1]} : vector<160x9xbf16> to vector<160x5xbf16>
    %cst_101 = arith.constant dense<0.000000e+00> : vector<16x5xf32>
    %145 = tpu.matmul %143, %144, %cst_101 {dimension_numbers = #tpu.dot_dimension_numbers<[1], [0], [0], [1], [0, 0, 1, 1], [], []>} : vector<16x160xbf16>, vector<160x5xbf16>, vector<16x5xf32> -> vector<16x5xf32>
    %146 = arith.addf %141, %145 : vector<16x5xf32>
    %c16_i32_102 = arith.constant 16 : i32
    %147 = arith.muli %c2_i32_79, %c16_i32_102 : i32
    %148 = tpu.assume_multiple %147, 16 : i32
    %149 = vector.broadcast %44 : vector<16x1xf32> to vector<16x5xf32>
    %150 = arith.addf %146, %149 : vector<16x5xf32>
    %cst_103 = arith.constant 0.000000e+00 : f32
    %151 = vector.broadcast %cst_103 : f32 to vector<16x5xf32>
    %152 = arith.maximumf %150, %151 : vector<16x5xf32>
    %153 = arith.truncf %152 : vector<16x5xf32> to vector<16x5xbf16>
    %154 = arith.index_cast %148 : i32 to index
    %c0_104 = arith.constant 0 : index
    %155 = vector.load %arg25[%154, %c0_104] : memref<80x5xbf16, #tpu.memory_space<vmem>>, vector<16x5xbf16>
    tpu.vector_store %arg25[%154, %c0_104], %153 {strides = array<i32>} : memref<80x5xbf16, #tpu.memory_space<vmem>>, vector<16x5xbf16>,
    %c3_i32 = arith.constant 3 : i32
    %c32_i32_105 = arith.constant 32 : i32
    %156 = arith.muli %c3_i32, %c32_i32_105 : i32
    %157 = tpu.assume_multiple %156, 32 : i32
    %158 = arith.index_cast %157 : i32 to index
    %c0_106 = arith.constant 0 : index
    %159 = vector.load %arg24[%158, %c0_106] : memref<288x9xbf16, #tpu.memory_space<vmem>>, vector<160x9xbf16>
    %c0_107 = arith.constant 0 : index
    %c0_108 = arith.constant 0 : index
    %c0_109 = arith.constant 0 : index
    %160 = vector.load %arg10[%c0_107, %c0_108, %c0_109] : memref<5x16x160xbf16, #tpu.memory_space<vmem>>, vector<1x16x160xbf16>
    %161 = vector.shape_cast %160 : vector<1x16x160xbf16> to vector<16x160xbf16>
    %162 = vector.extract_strided_slice %159 {offsets = [0, 0], sizes = [160, 5], strides = [1, 1]} : vector<160x9xbf16> to vector<160x5xbf16>
    %cst_110 = arith.constant dense<0.000000e+00> : vector<16x5xf32>
    %163 = tpu.matmul %161, %162, %cst_110 {dimension_numbers = #tpu.dot_dimension_numbers<[1], [0], [0], [1], [0, 0, 1, 1], [], []>} : vector<16x160xbf16>, vector<160x5xbf16>, vector<16x5xf32> -> vector<16x5xf32>
    %c1_111 = arith.constant 1 : index
    %c0_112 = arith.constant 0 : index
    %c0_113 = arith.constant 0 : index
    %164 = vector.load %arg10[%c1_111, %c0_112, %c0_113] : memref<5x16x160xbf16, #tpu.memory_space<vmem>>, vector<1x16x160xbf16>
    %165 = vector.shape_cast %164 : vector<1x16x160xbf16> to vector<16x160xbf16>
    %166 = vector.extract_strided_slice %159 {offsets = [0, 1], sizes = [160, 5], strides = [1, 1]} : vector<160x9xbf16> to vector<160x5xbf16>
    %cst_114 = arith.constant dense<0.000000e+00> : vector<16x5xf32>
    %167 = tpu.matmul %165, %166, %cst_114 {dimension_numbers = #tpu.dot_dimension_numbers<[1], [0], [0], [1], [0, 0, 1, 1], [], []>} : vector<16x160xbf16>, vector<160x5xbf16>, vector<16x5xf32> -> vector<16x5xf32>
    %168 = arith.addf %163, %167 : vector<16x5xf32>
    %c2_115 = arith.constant 2 : index
    %c0_116 = arith.constant 0 : index
    %c0_117 = arith.constant 0 : index
    %169 = vector.load %arg10[%c2_115, %c0_116, %c0_117] : memref<5x16x160xbf16, #tpu.memory_space<vmem>>, vector<1x16x160xbf16>
    %170 = vector.shape_cast %169 : vector<1x16x160xbf16> to vector<16x160xbf16>
    %171 = vector.extract_strided_slice %159 {offsets = [0, 2], sizes = [160, 5], strides = [1, 1]} : vector<160x9xbf16> to vector<160x5xbf16>
    %cst_118 = arith.constant dense<0.000000e+00> : vector<16x5xf32>
    %172 = tpu.matmul %170, %171, %cst_118 {dimension_numbers = #tpu.dot_dimension_numbers<[1], [0], [0], [1], [0, 0, 1, 1], [], []>} : vector<16x160xbf16>, vector<160x5xbf16>, vector<16x5xf32> -> vector<16x5xf32>
    %173 = arith.addf %168, %172 : vector<16x5xf32>
    %c3_119 = arith.constant 3 : index
    %c0_120 = arith.constant 0 : index
    %c0_121 = arith.constant 0 : index
    %174 = vector.load %arg10[%c3_119, %c0_120, %c0_121] : memref<5x16x160xbf16, #tpu.memory_space<vmem>>, vector<1x16x160xbf16>
    %175 = vector.shape_cast %174 : vector<1x16x160xbf16> to vector<16x160xbf16>
    %176 = vector.extract_strided_slice %159 {offsets = [0, 3], sizes = [160, 5], strides = [1, 1]} : vector<160x9xbf16> to vector<160x5xbf16>
    %cst_122 = arith.constant dense<0.000000e+00> : vector<16x5xf32>
    %177 = tpu.matmul %175, %176, %cst_122 {dimension_numbers = #tpu.dot_dimension_numbers<[1], [0], [0], [1], [0, 0, 1, 1], [], []>} : vector<16x160xbf16>, vector<160x5xbf16>, vector<16x5xf32> -> vector<16x5xf32>
    %178 = arith.addf %173, %177 : vector<16x5xf32>
    %c4_123 = arith.constant 4 : index
    %c0_124 = arith.constant 0 : index
    %c0_125 = arith.constant 0 : index
    %179 = vector.load %arg10[%c4_123, %c0_124, %c0_125] : memref<5x16x160xbf16, #tpu.memory_space<vmem>>, vector<1x16x160xbf16>
    %180 = vector.shape_cast %179 : vector<1x16x160xbf16> to vector<16x160xbf16>
    %181 = vector.extract_strided_slice %159 {offsets = [0, 4], sizes = [160, 5], strides = [1, 1]} : vector<160x9xbf16> to vector<160x5xbf16>
    %cst_126 = arith.constant dense<0.000000e+00> : vector<16x5xf32>
    %182 = tpu.matmul %180, %181, %cst_126 {dimension_numbers = #tpu.dot_dimension_numbers<[1], [0], [0], [1], [0, 0, 1, 1], [], []>} : vector<16x160xbf16>, vector<160x5xbf16>, vector<16x5xf32> -> vector<16x5xf32>
    %183 = arith.addf %178, %182 : vector<16x5xf32>
    %c16_i32_127 = arith.constant 16 : i32
    %184 = arith.muli %c3_i32, %c16_i32_127 : i32
    %185 = tpu.assume_multiple %184, 16 : i32
    %186 = vector.broadcast %44 : vector<16x1xf32> to vector<16x5xf32>
    %187 = arith.addf %183, %186 : vector<16x5xf32>
    %cst_128 = arith.constant 0.000000e+00 : f32
    %188 = vector.broadcast %cst_128 : f32 to vector<16x5xf32>
    %189 = arith.maximumf %187, %188 : vector<16x5xf32>
    %190 = arith.truncf %189 : vector<16x5xf32> to vector<16x5xbf16>
    %191 = arith.index_cast %185 : i32 to index
    %c0_129 = arith.constant 0 : index
    %192 = vector.load %arg25[%191, %c0_129] : memref<80x5xbf16, #tpu.memory_space<vmem>>, vector<16x5xbf16>
    tpu.vector_store %arg25[%191, %c0_129], %190 {strides = array<i32>} : memref<80x5xbf16, #tpu.memory_space<vmem>>, vector<16x5xbf16>,
    %c4_i32 = arith.constant 4 : i32
    %c32_i32_130 = arith.constant 32 : i32
    %193 = arith.muli %c4_i32, %c32_i32_130 : i32
    %194 = tpu.assume_multiple %193, 32 : i32
    %195 = arith.index_cast %194 : i32 to index
    %c0_131 = arith.constant 0 : index
    %196 = vector.load %arg24[%195, %c0_131] : memref<288x9xbf16, #tpu.memory_space<vmem>>, vector<160x9xbf16>
    %c0_132 = arith.constant 0 : index
    %c0_133 = arith.constant 0 : index
    %c0_134 = arith.constant 0 : index
    %197 = vector.load %arg10[%c0_132, %c0_133, %c0_134] : memref<5x16x160xbf16, #tpu.memory_space<vmem>>, vector<1x16x160xbf16>
    %198 = vector.shape_cast %197 : vector<1x16x160xbf16> to vector<16x160xbf16>
    %199 = vector.extract_strided_slice %196 {offsets = [0, 0], sizes = [160, 5], strides = [1, 1]} : vector<160x9xbf16> to vector<160x5xbf16>
    %cst_135 = arith.constant dense<0.000000e+00> : vector<16x5xf32>
    %200 = tpu.matmul %198, %199, %cst_135 {dimension_numbers = #tpu.dot_dimension_numbers<[1], [0], [0], [1], [0, 0, 1, 1], [], []>} : vector<16x160xbf16>, vector<160x5xbf16>, vector<16x5xf32> -> vector<16x5xf32>
    %c1_136 = arith.constant 1 : index
    %c0_137 = arith.constant 0 : index
    %c0_138 = arith.constant 0 : index
    %201 = vector.load %arg10[%c1_136, %c0_137, %c0_138] : memref<5x16x160xbf16, #tpu.memory_space<vmem>>, vector<1x16x160xbf16>
    %202 = vector.shape_cast %201 : vector<1x16x160xbf16> to vector<16x160xbf16>
    %203 = vector.extract_strided_slice %196 {offsets = [0, 1], sizes = [160, 5], strides = [1, 1]} : vector<160x9xbf16> to vector<160x5xbf16>
    %cst_139 = arith.constant dense<0.000000e+00> : vector<16x5xf32>
    %204 = tpu.matmul %202, %203, %cst_139 {dimension_numbers = #tpu.dot_dimension_numbers<[1], [0], [0], [1], [0, 0, 1, 1], [], []>} : vector<16x160xbf16>, vector<160x5xbf16>, vector<16x5xf32> -> vector<16x5xf32>
    %205 = arith.addf %200, %204 : vector<16x5xf32>
    %c2_140 = arith.constant 2 : index
    %c0_141 = arith.constant 0 : index
    %c0_142 = arith.constant 0 : index
    %206 = vector.load %arg10[%c2_140, %c0_141, %c0_142] : memref<5x16x160xbf16, #tpu.memory_space<vmem>>, vector<1x16x160xbf16>
    %207 = vector.shape_cast %206 : vector<1x16x160xbf16> to vector<16x160xbf16>
    %208 = vector.extract_strided_slice %196 {offsets = [0, 2], sizes = [160, 5], strides = [1, 1]} : vector<160x9xbf16> to vector<160x5xbf16>
    %cst_143 = arith.constant dense<0.000000e+00> : vector<16x5xf32>
    %209 = tpu.matmul %207, %208, %cst_143 {dimension_numbers = #tpu.dot_dimension_numbers<[1], [0], [0], [1], [0, 0, 1, 1], [], []>} : vector<16x160xbf16>, vector<160x5xbf16>, vector<16x5xf32> -> vector<16x5xf32>
    %210 = arith.addf %205, %209 : vector<16x5xf32>
    %c3_144 = arith.constant 3 : index
    %c0_145 = arith.constant 0 : index
    %c0_146 = arith.constant 0 : index
    %211 = vector.load %arg10[%c3_144, %c0_145, %c0_146] : memref<5x16x160xbf16, #tpu.memory_space<vmem>>, vector<1x16x160xbf16>
    %212 = vector.shape_cast %211 : vector<1x16x160xbf16> to vector<16x160xbf16>
    %213 = vector.extract_strided_slice %196 {offsets = [0, 3], sizes = [160, 5], strides = [1, 1]} : vector<160x9xbf16> to vector<160x5xbf16>
    %cst_147 = arith.constant dense<0.000000e+00> : vector<16x5xf32>
    %214 = tpu.matmul %212, %213, %cst_147 {dimension_numbers = #tpu.dot_dimension_numbers<[1], [0], [0], [1], [0, 0, 1, 1], [], []>} : vector<16x160xbf16>, vector<160x5xbf16>, vector<16x5xf32> -> vector<16x5xf32>
    %215 = arith.addf %210, %214 : vector<16x5xf32>
    %c4_148 = arith.constant 4 : index
    %c0_149 = arith.constant 0 : index
    %c0_150 = arith.constant 0 : index
    %216 = vector.load %arg10[%c4_148, %c0_149, %c0_150] : memref<5x16x160xbf16, #tpu.memory_space<vmem>>, vector<1x16x160xbf16>
    %217 = vector.shape_cast %216 : vector<1x16x160xbf16> to vector<16x160xbf16>
    %218 = vector.extract_strided_slice %196 {offsets = [0, 4], sizes = [160, 5], strides = [1, 1]} : vector<160x9xbf16> to vector<160x5xbf16>
    %cst_151 = arith.constant dense<0.000000e+00> : vector<16x5xf32>
    %219 = tpu.matmul %217, %218, %cst_151 {dimension_numbers = #tpu.dot_dimension_numbers<[1], [0], [0], [1], [0, 0, 1, 1], [], []>} : vector<16x160xbf16>, vector<160x5xbf16>, vector<16x5xf32> -> vector<16x5xf32>
    %220 = arith.addf %215, %219 : vector<16x5xf32>
    %c16_i32_152 = arith.constant 16 : i32
    %221 = arith.muli %c4_i32, %c16_i32_152 : i32
    %222 = tpu.assume_multiple %221, 16 : i32
    %223 = vector.broadcast %44 : vector<16x1xf32> to vector<16x5xf32>
    %224 = arith.addf %220, %223 : vector<16x5xf32>
    %cst_153 = arith.constant 0.000000e+00 : f32
    %225 = vector.broadcast %cst_153 : f32 to vector<16x5xf32>
    %226 = arith.maximumf %224, %225 : vector<16x5xf32>
    %227 = arith.truncf %226 : vector<16x5xf32> to vector<16x5xbf16>
    %228 = arith.index_cast %222 : i32 to index
    %c0_154 = arith.constant 0 : index
    %229 = vector.load %arg25[%228, %c0_154] : memref<80x5xbf16, #tpu.memory_space<vmem>>, vector<16x5xbf16>
    tpu.vector_store %arg25[%228, %c0_154], %227 {strides = array<i32>} : memref<80x5xbf16, #tpu.memory_space<vmem>>, vector<16x5xbf16>,
    %c5_i32 = arith.constant 5 : i32
    %c0_155 = arith.constant 0 : index
    %c0_156 = arith.constant 0 : index
    %230 = vector.load %arg25[%c0_155, %c0_156] : memref<80x5xbf16, #tpu.memory_space<vmem>>, vector<16x5xbf16>
    %c16 = arith.constant 16 : index
    %c0_157 = arith.constant 0 : index
    %231 = vector.load %arg25[%c16, %c0_157] : memref<80x5xbf16, #tpu.memory_space<vmem>>, vector<16x5xbf16>
    %c32 = arith.constant 32 : index
    %c0_158 = arith.constant 0 : index
    %232 = vector.load %arg25[%c32, %c0_158] : memref<80x5xbf16, #tpu.memory_space<vmem>>, vector<16x5xbf16>
    %233 = arith.maximumf %230, %231 : vector<16x5xbf16>
    %234 = arith.maximumf %233, %232 : vector<16x5xbf16>
    %235 = vector.extract_strided_slice %234 {offsets = [0, 0], sizes = [16, 3], strides = [1, 1]} : vector<16x5xbf16> to vector<16x3xbf16>
    %236 = vector.extract_strided_slice %234 {offsets = [0, 1], sizes = [16, 3], strides = [1, 1]} : vector<16x5xbf16> to vector<16x3xbf16>
    %237 = arith.maximumf %235, %236 : vector<16x3xbf16>
    %238 = vector.extract_strided_slice %234 {offsets = [0, 2], sizes = [16, 3], strides = [1, 1]} : vector<16x5xbf16> to vector<16x3xbf16>
    %239 = arith.maximumf %237, %238 : vector<16x3xbf16>
    %240 = vector.extract_strided_slice %239 {offsets = [0, 0], sizes = [16, 1], strides = [1, 1]} : vector<16x3xbf16> to vector<16x1xbf16>
    %241 = vector.extract_strided_slice %239 {offsets = [0, 2], sizes = [16, 1], strides = [1, 1]} : vector<16x3xbf16> to vector<16x1xbf16>
    %c32_159 = arith.constant 32 : index
    %c0_160 = arith.constant 0 : index
    %242 = vector.load %arg25[%c32_159, %c0_160] : memref<80x5xbf16, #tpu.memory_space<vmem>>, vector<16x5xbf16>
    %c48 = arith.constant 48 : index
    %c0_161 = arith.constant 0 : index
    %243 = vector.load %arg25[%c48, %c0_161] : memref<80x5xbf16, #tpu.memory_space<vmem>>, vector<16x5xbf16>
    %c64 = arith.constant 64 : index
    %c0_162 = arith.constant 0 : index
    %244 = vector.load %arg25[%c64, %c0_162] : memref<80x5xbf16, #tpu.memory_space<vmem>>, vector<16x5xbf16>
    %245 = arith.maximumf %242, %243 : vector<16x5xbf16>
    %246 = arith.maximumf %245, %244 : vector<16x5xbf16>
    %247 = vector.extract_strided_slice %246 {offsets = [0, 0], sizes = [16, 3], strides = [1, 1]} : vector<16x5xbf16> to vector<16x3xbf16>
    %248 = vector.extract_strided_slice %246 {offsets = [0, 1], sizes = [16, 3], strides = [1, 1]} : vector<16x5xbf16> to vector<16x3xbf16>
    %249 = arith.maximumf %247, %248 : vector<16x3xbf16>
    %250 = vector.extract_strided_slice %246 {offsets = [0, 2], sizes = [16, 3], strides = [1, 1]} : vector<16x5xbf16> to vector<16x3xbf16>
    %251 = arith.maximumf %249, %250 : vector<16x3xbf16>
    %252 = vector.extract_strided_slice %251 {offsets = [0, 0], sizes = [16, 1], strides = [1, 1]} : vector<16x3xbf16> to vector<16x1xbf16>
    %253 = vector.extract_strided_slice %251 {offsets = [0, 2], sizes = [16, 1], strides = [1, 1]} : vector<16x3xbf16> to vector<16x1xbf16>
    %254 = tpu.concatenate %240, %241, %252, %253 in 0 : vector<16x1xbf16>, vector<16x1xbf16>, vector<16x1xbf16>, vector<16x1xbf16> -> vector<64x1xbf16>
    %255 = arith.extf %254 : vector<64x1xbf16> to vector<64x1xf32>
    %c0_163 = arith.constant 0 : index
    %c0_164 = arith.constant 0 : index
    %256 = vector.load %arg12[%c0_163, %c0_164] : memref<32x64xf32, #tpu.memory_space<vmem>>, vector<32x64xf32>
    %cst_165 = arith.constant dense<0.000000e+00> : vector<32x1xf32>
    %257 = tpu.matmul %256, %255, %cst_165 {dimension_numbers = #tpu.dot_dimension_numbers<[1], [0], [0], [1], [0, 0, 1, 1], [], []>} : vector<32x64xf32>, vector<64x1xf32>, vector<32x1xf32> -> vector<32x1xf32>
    %c0_166 = arith.constant 0 : index
    %c0_167 = arith.constant 0 : index
    %258 = vector.load %arg13[%c0_166, %c0_167] : memref<32x1xf32, #tpu.memory_space<vmem>>, vector<32x1xf32>
    %259 = arith.addf %257, %258 : vector<32x1xf32>
    %c0_168 = arith.constant 0 : index
    %c0_169 = arith.constant 0 : index
    %260 = vector.load %arg14[%c0_168, %c0_169] : memref<4x32xf32, #tpu.memory_space<vmem>>, vector<4x32xf32>
    %cst_170 = arith.constant dense<0.000000e+00> : vector<4x1xf32>
    %261 = tpu.matmul %260, %259, %cst_170 {dimension_numbers = #tpu.dot_dimension_numbers<[1], [0], [0], [1], [0, 0, 1, 1], [], []>} : vector<4x32xf32>, vector<32x1xf32>, vector<4x1xf32> -> vector<4x1xf32>
    %c0_171 = arith.constant 0 : index
    %c0_172 = arith.constant 0 : index
    %262 = vector.load %arg15[%c0_171, %c0_172] : memref<4x1xf32, #tpu.memory_space<vmem>>, vector<4x1xf32>
    %263 = arith.addf %261, %262 : vector<4x1xf32>
    %cst_173 = arith.constant dense<0xFF800000> : vector<1xf32>
    %264 = vector.multi_reduction <maximumf>, %263, %cst_173 [0] : vector<4x1xf32> to vector<1xf32>
    %265 = vector.shape_cast %264 : vector<1xf32> to vector<1x1xf32>
    %266 = vector.broadcast %265 : vector<1x1xf32> to vector<4x1xf32>
    %267 = arith.subf %263, %266 : vector<4x1xf32>
    %268 = math.exp %267 : vector<4x1xf32>
    %cst_174 = arith.constant dense<0.000000e+00> : vector<1xf32>
    %269 = vector.multi_reduction <add>, %268, %cst_174 [0] : vector<4x1xf32> to vector<1xf32>
    %270 = vector.shape_cast %269 : vector<1xf32> to vector<1x1xf32>
    %271 = vector.broadcast %270 : vector<1x1xf32> to vector<4x1xf32>
    %272 = arith.divf %268, %271 : vector<4x1xf32>
    %c0_175 = arith.constant 0 : index
    %c0_176 = arith.constant 0 : index
    %c0_177 = arith.constant 0 : index
    %273 = vector.load %arg16[%c0_175, %c0_176, %c0_177] : memref<1x4x1xf32, #tpu.memory_space<vmem>>, vector<1x4x1xf32>
    %274 = vector.shape_cast %273 : vector<1x4x1xf32> to vector<4x1xf32>
    %275 = vector.shape_cast %272 : vector<4x1xf32> to vector<1x4x1xf32>
    tpu.vector_store %arg16[%c0_175, %c0_176, %c0_177], %275 {strides = array<i32>} : memref<1x4x1xf32, #tpu.memory_space<vmem>>, vector<1x4x1xf32>,
    return
  }
  func.func @transform_0(%arg0: i32) -> (i32, i32, i32) {
    %c0_i32 = arith.constant 0 : i32
    %c0_i32_0 = arith.constant 0 : i32
    %c0_i32_1 = arith.constant 0 : i32
    return %arg0, %c0_i32, %c0_i32_0 : i32, i32, i32
  }
  func.func @transform_1(%arg0: i32) -> (i32, i32, i32) {
    %c0_i32 = arith.constant 0 : i32
    %c0_i32_0 = arith.constant 0 : i32
    %c0_i32_1 = arith.constant 0 : i32
    %c0_i32_2 = arith.constant 0 : i32
    return %c0_i32, %c0_i32_0, %c0_i32_1 : i32, i32, i32
  }
  func.func @transform_2(%arg0: i32) -> (i32, i32) {
    %c0_i32 = arith.constant 0 : i32
    %c0_i32_0 = arith.constant 0 : i32
    %c0_i32_1 = arith.constant 0 : i32
    return %c0_i32, %c0_i32_0 : i32, i32
  }
  func.func @transform_3(%arg0: i32) -> (i32, i32, i32) {
    %c0_i32 = arith.constant 0 : i32
    %c0_i32_0 = arith.constant 0 : i32
    %c0_i32_1 = arith.constant 0 : i32
    %c0_i32_2 = arith.constant 0 : i32
    return %c0_i32, %c0_i32_0, %c0_i32_1 : i32, i32, i32
  }
  func.func @transform_4(%arg0: i32) -> (i32, i32) {
    %c0_i32 = arith.constant 0 : i32
    %c0_i32_0 = arith.constant 0 : i32
    %c0_i32_1 = arith.constant 0 : i32
    return %c0_i32, %c0_i32_0 : i32, i32
  }
  func.func @transform_5(%arg0: i32) -> (i32, i32, i32) {
    %c0_i32 = arith.constant 0 : i32
    %c0_i32_0 = arith.constant 0 : i32
    %c0_i32_1 = arith.constant 0 : i32
    %c0_i32_2 = arith.constant 0 : i32
    return %c0_i32, %c0_i32_0, %c0_i32_1 : i32, i32, i32
  }
  func.func @transform_6(%arg0: i32) -> (i32, i32) {
    %c0_i32 = arith.constant 0 : i32
    %c0_i32_0 = arith.constant 0 : i32
    %c0_i32_1 = arith.constant 0 : i32
    return %c0_i32, %c0_i32_0 : i32, i32
  }
  func.func @transform_7(%arg0: i32) -> (i32, i32, i32) {
    %c0_i32 = arith.constant 0 : i32
    %c0_i32_0 = arith.constant 0 : i32
    %c0_i32_1 = arith.constant 0 : i32
    %c0_i32_2 = arith.constant 0 : i32
    return %c0_i32, %c0_i32_0, %c0_i32_1 : i32, i32, i32
  }
  func.func @transform_8(%arg0: i32) -> (i32, i32) {
    %c0_i32 = arith.constant 0 : i32
    %c0_i32_0 = arith.constant 0 : i32
    %c0_i32_1 = arith.constant 0 : i32
    return %c0_i32, %c0_i32_0 : i32, i32
  }
  func.func @transform_9(%arg0: i32) -> (i32, i32, i32) {
    %c0_i32 = arith.constant 0 : i32
    %c0_i32_0 = arith.constant 0 : i32
    %c0_i32_1 = arith.constant 0 : i32
    %c0_i32_2 = arith.constant 0 : i32
    return %c0_i32, %c0_i32_0, %c0_i32_1 : i32, i32, i32
  }
  func.func @transform_10(%arg0: i32) -> (i32, i32) {
    %c0_i32 = arith.constant 0 : i32
    %c0_i32_0 = arith.constant 0 : i32
    %c0_i32_1 = arith.constant 0 : i32
    return %c0_i32, %c0_i32_0 : i32, i32
  }
  func.func @transform_11(%arg0: i32) -> (i32, i32) {
    %c0_i32 = arith.constant 0 : i32
    %c0_i32_0 = arith.constant 0 : i32
    %c0_i32_1 = arith.constant 0 : i32
    return %c0_i32, %c0_i32_0 : i32, i32
  }
  func.func @transform_12(%arg0: i32) -> (i32, i32) {
    %c0_i32 = arith.constant 0 : i32
    %c0_i32_0 = arith.constant 0 : i32
    %c0_i32_1 = arith.constant 0 : i32
    return %c0_i32, %c0_i32_0 : i32, i32
  }
  func.func @transform_13(%arg0: i32) -> (i32, i32) {
    %c0_i32 = arith.constant 0 : i32
    %c0_i32_0 = arith.constant 0 : i32
    %c0_i32_1 = arith.constant 0 : i32
    return %c0_i32, %c0_i32_0 : i32, i32
  }
  func.func @transform_14(%arg0: i32) -> (i32, i32) {
    %c0_i32 = arith.constant 0 : i32
    %c0_i32_0 = arith.constant 0 : i32
    %c0_i32_1 = arith.constant 0 : i32
    return %c0_i32, %c0_i32_0 : i32, i32
  }
  func.func @transform_15(%arg0: i32) -> (i32, i32, i32) {
    %c0_i32 = arith.constant 0 : i32
    %c0_i32_0 = arith.constant 0 : i32
    %c0_i32_1 = arith.constant 0 : i32
    return %arg0, %c0_i32, %c0_i32_0 : i32, i32, i32
  }
}

</mosaic_0001>

<bundles_post_ra>
// kernel: _lambda_.1
= control target key start
LH: loop header
LB: loop body
LE: loop exit
PB: predicated region body
PF: predicated region fallthrough
CT: control target
= control target key end

     0   :  { %s9302_s18 = smov 0   ;;  %s12274_s0 = inlined_call_operand.vmem [shape: bf16[2,3504,219], index: 0, kind: input, shape index: {}]   ;;  %s12275_s1 = inlined_call_operand.vmem [shape: bf16[5,16,80], index: 1, kind: input, shape index: {}]   ;;  %s12276_s2 = inlined_call_operand.vmem [shape: f32[16,1], index: 2, kind: input, shape index: {}]   ;;  %s12277_s3 = inlined_call_operand.vmem [shape: bf16[5,32,80], index: 3, kind: input, shape index: {}]   ;;  %s12278_s4 = inlined_call_operand.vmem [shape: f32[32,1], index: 4, kind: input, shape index: {}]   ;;  %s12279_s5 = inlined_call_operand.vmem [shape: bf16[5,64,160], index: 5, kind: input, shape index: {}]   ;;  %s12280_s6 = inlined_call_operand.vmem [shape: f32[64,1], index: 6, kind: input, shape index: {}]   ;;  %s12281_s7 = inlined_call_operand.vmem [shape: bf16[5,32,320], index: 7, kind: input, shape index: {}]   ;;  %s12282_s8 = inlined_call_operand.vmem [shape: f32[32,1], index: 8, kind: input, shape index: {}]   ;;  %s12283_s9 = inlined_call_operand.vmem [shape: bf16[5,16,160], index: 9, kind: input, shape index: {}]   ;;  %s12284_s10 = inlined_call_operand.vmem [shape: f32[16,1], index: 10, kind: input, shape index: {}]   ;;  %s12285_s11 = inlined_call_operand.vmem [shape: f32[32,64], index: 11, kind: input, shape index: {}]   ;;  %s12286_s12 = inlined_call_operand.vmem [shape: f32[32,1], index: 12, kind: input, shape index: {}]   ;;  %s12287_s13 = inlined_call_operand.vmem [shape: f32[4,32], index: 13, kind: input, shape index: {}]   ;;  %s12288_s14 = inlined_call_operand.vmem [shape: f32[4,1], index: 14, kind: input, shape index: {}]   ;;  %s12289_s15 = inlined_call_operand.vmem [shape: f32[2,4,1], index: 15, kind: output, shape index: {}]  }
   0x1 LB: > { %s7551_s19 = sadd.s32 4294967295, %s9145_s18   ;;  %p7555_p0 = scmp.ge.s32.totalorder %s9145_s18, 1  ;;  %s9145_s18 = sphi %s9302_s18, %s25_s18  }
   0x2   : > { %p437_p1 = scmp.lt.s32.totalorder %s9145_s18, 3 }
   0x4   : > { %p438_p2 = pnand %p7555_p0, %p437_p1 }
   0x6   : > { %441 = sbr.rel (%p438_p2) target bundleno = 4735 (0x127f), region = 80 }
   0xb   : > { %p484_p3 = scmp.lt.s32.totalorder %s7551_s19, 1  ;;  %v9313_v0 = vld [vmem:[%s12276_s2] sm:$0xff]  ;;  %v9318_v1 = vld [vmem:[%s12276_s2 + $0x8] sm:$0xff]  ;;  %s9330_s17 = smov 0  }
   0xd   : > { %s12402_s19 = smov (!%p484_p3, %s7551_s19), 1 }
   0xe   : > { %s8732_s24 = smul.u32 3504, %s12402_s19  ;;  %s7557_s25 = sshll.u32 %s12402_s19, 2 }
   0xf   : > { %s9323_s28 = scalar_lea.vmem %s12289_s15, %s7557_s25 }
  0x10   : > { %s9328_s16 = scalar_lea.vmem %s12274_s0, %s8732_s24 }
  0x11 LB: >> { %s7558_s19 = sshll.u32 %s9149_s17, 4  ;;  %s9179_s21 = smov 127   ;;  %v9180_v11 = vmov 0   ;;  %v8866_v13 = vld [vmem:[%s12275_s1] sm:$0xff]   ;;  %vm12290_vm0 = vcmask 654336   ;;  %vm12292_vm1 = vcmask 1039360   ;;  %s9149_s17 = sphi %s9330_s17, %s501_s17  }
  0x12   : >> { %s507_s20 = scalar_lea.vmem %s9328_s16, %s7558_s19  ;;  %640 = vmatprep.mubr.bf16.mxu0 %v9180_v11  ;;  %701 = vmatprep.mubr.bf16.mxu1 %v9180_v11  ;;  %s9181_s22 = smov 126   ;;  %v8865_v31 = vld [vmem:[%s12275_s1 + $0x8] sm:$0xff]   ;;  %vm12291_vm2 = vcmask 1031168   ;;  %vm834_vm3 = vcmask 1022976   ;;  %v8867_v47 = vld [vmem:[%s12275_s1 + $0x10] sm:$0xff]   ;;  %vm928_vm4 = vcmask 1014784  }
  0x13   : >> { %v8850_v2 = vld [vmem:[%s507_s20 + $0x40] ss:$8 sps:$4 sm:$0xff]   ;;  %v8852_v3 = vld [vmem:[%s507_s20 + $0x30] ss:$8 sps:$4 sm:$0xff]   ;;  %v8854_v4 = vld [vmem:[%s507_s20 + $0x44] ss:$8 sps:$4 sm:$0xff]   ;;  %8848 = vset.pattern.permute.xlu0 %v9180_v11  ;;  %8849 = vset.pattern.permute.xlu1 %v9180_v11 }
  0x14   : >> { %584 = vrot.lane.b32.xlu0 %v8850_v2, %s9179_s21  ;;  %580 = vrot.lane.b32.xlu1 %v8852_v3, %s9179_s21  ;;  %v8855_v5 = vld [vmem:[%s507_s20 + $0x34] ss:$8 sps:$4 sm:$0xff]   ;;  %v8858_v6 = vld [vmem:[%s507_s20 + $0x20] ss:$8 sps:$4 sm:$0xff]   ;;  %s9182_s25 = smov 125   ;;  %s9183_s26 = smov 124  }
  0x15   : >> { %675 = vmatprep.subr.bf16.mxu1 %v8854_v4  ;;  %v8856_v7 = vld [vmem:[%s507_s20 + $0x24] ss:$8 sps:$4 sm:$0xff]   ;;  %v8861_v8 = vld [vmem:[%s507_s20 + $0x10] ss:$8 sps:$4 sm:$0xff]   ;;  %v8859_v9 = vld [vmem:[%s507_s20 + $0x14] ss:$8 sps:$4 sm:$0xff]  }
  0x16   : >> { %676 = vmatpush1.bf16.msra.mxu1 %v8850_v2  ;;  %v8864_v10 = vld [vmem:[%s507_s20] ss:$8 sps:$4 sm:$0xff]   ;;  %v8862_v12 = vld [vmem:[%s507_s20 + $0x4] ss:$8 sps:$4 sm:$0xff]   ;;  %vm1026_vm5 = vcmask 1043456   ;;  %vm1027_vm6 = vcmask 711684  }
  0x17   : >> { %677 = vmatprep.subr.bf16.mxu1 %v8855_v5  ;;  %vm1028_vm7 = vmor %vm1027_vm6, %vm1026_vm5  ;;  %s501_s17 = sadd.s32 1, %s9149_s17  }
  0x18   : >> { %586 = vrot.lane.b32.xlu0 %v8854_v4, %s9179_s21  ;;  %582 = vrot.lane.b32.xlu1 %v8855_v5, %s9179_s21  ;;  %p498_p4 = scmp.ge.s32.totalorder %s501_s17, 215  }
  0x19   : > { %s9567_s16 = smov (%p498_p4), 0  }
  0x1a   : >> { %678 = vmatpush1.bf16.msra.mxu1 %v8852_v3 }
  0x1b   : >> { %679 = vmatprep.subr.bf16.mxu1 %v8856_v7 }
  0x1c   : >> { %576 = vrot.lane.b32.xlu0 %v8858_v6, %s9179_s21  ;;  %578 = vrot.lane.b32.xlu1 %v8856_v7, %s9179_s21 }
  0x1e   : >> { %680 = vmatpush1.bf16.msra.mxu1 %v8858_v6 }
  0x1f   : >> { %681 = vmatprep.subr.bf16.mxu1 %v8859_v9 }
  0x20   : >> { %572 = vrot.lane.b32.xlu0 %v8861_v8, %s9179_s21  ;;  %574 = vrot.lane.b32.xlu1 %v8859_v9, %s9179_s21 }
  0x22   : >> { %682 = vmatpush1.bf16.msra.mxu1 %v8861_v8 }
  0x23   : >> { %683 = vmatprep.subr.bf16.mxu1 %v8862_v12 }
  0x24   : >> { %568 = vrot.lane.b32.xlu0 %v8864_v10, %s9179_s21  ;;  %570 = vrot.lane.b32.xlu1 %v8862_v12, %s9179_s21 }
  0x26   : >> { %684 = vmatpush1.bf16.msra.mxu1 %v8864_v10 }
  0x28   : >> { %736 = vrot.lane.b32.xlu0 %v8850_v2, %s9181_s22  ;;  %738 = vrot.lane.b32.xlu1 %v8854_v4, %s9181_s22 }
  0x29   : >> { %7576 = vmatmul.mubr.msk.bf16.vlgmr.msra.gmra.mxu1 %vm12290_vm0, %v8866_v13 }
  0x2a   : >> { %885 = vmatprep.mubr.bf16.mxu1 %v9180_v11 }
  0x2c   : >> { %732 = vrot.lane.b32.xlu0 %v8852_v3, %s9181_s22  ;;  %734 = vrot.lane.b32.xlu1 %v8855_v5, %s9181_s22 }
  0x30   : >> { %728 = vrot.lane.b32.xlu0 %v8858_v6, %s9181_s22  ;;  %730 = vrot.lane.b32.xlu1 %v8856_v7, %s9181_s22 }
  0x34   : >> { %724 = vrot.lane.b32.xlu0 %v8861_v8, %s9181_s22  ;;  %726 = vrot.lane.b32.xlu1 %v8859_v9, %s9181_s22 }
  0x38   : >> { %720 = vrot.lane.b32.xlu0 %v8864_v10, %s9181_s22  ;;  %722 = vrot.lane.b32.xlu1 %v8862_v12, %s9181_s22 }
  0x3c   : >> { %830 = vrot.lane.b32.xlu0 %v8850_v2, %s9182_s25  ;;  %832 = vrot.lane.b32.xlu1 %v8854_v4, %s9182_s25 }
  0x40   : >> { %924 = vrot.lane.b32.xlu0 %v8850_v2, %s9183_s26  ;;  %926 = vrot.lane.b32.xlu1 %v8854_v4, %s9183_s26 }
  0x44   : >> { %826 = vrot.lane.b32.xlu0 %v8852_v3, %s9182_s25  ;;  %828 = vrot.lane.b32.xlu1 %v8855_v5, %s9182_s25 }
  0x48   : >> { %920 = vrot.lane.b32.xlu0 %v8852_v3, %s9183_s26  ;;  %922 = vrot.lane.b32.xlu1 %v8855_v5, %s9183_s26 }
  0x4c   : >> { %822 = vrot.lane.b32.xlu0 %v8858_v6, %s9182_s25  ;;  %824 = vrot.lane.b32.xlu1 %v8856_v7, %s9182_s25 }
  0x50   : >> { %916 = vrot.lane.b32.xlu0 %v8858_v6, %s9183_s26  ;;  %918 = vrot.lane.b32.xlu1 %v8856_v7, %s9183_s26 }
  0x54   : >> { %818 = vrot.lane.b32.xlu0 %v8861_v8, %s9182_s25  ;;  %820 = vrot.lane.b32.xlu1 %v8859_v9, %s9182_s25 }
  0x58   : >> { %912 = vrot.lane.b32.xlu0 %v8861_v8, %s9183_s26  ;;  %914 = vrot.lane.b32.xlu1 %v8859_v9, %s9183_s26 }
  0x5c   : >> { %814 = vrot.lane.b32.xlu0 %v8864_v10, %s9182_s25  ;;  %816 = vrot.lane.b32.xlu1 %v8862_v12, %s9182_s25  ;;  %s1025_s25 = scalar_lea.vmem [#allocation2], %s7558_s19 }
  0x60   : >> { %908 = vrot.lane.b32.xlu0 %v8864_v10, %s9183_s26  ;;  %910 = vrot.lane.b32.xlu1 %v8862_v12, %s9183_s26 }
  0x64   : >> { %996 = vperm.xlu0 %8848, %v9313_v0   ;;  %1001 = vperm.xlu1 %8849, %v9318_v1  }
  0x86   : >> { %v585_v14 = vpop.permute.xlu0 %584  ;;  %v581_v15 = vpop.permute.xlu1 %580 }
  0x8a   : >> { %v587_v16 = vpop.permute.xlu0 %586  ;;  %v583_v17 = vpop.permute.xlu1 %582 }
  0x8b   : >> { %614 = vmatprep.subr.bf16.mxu0 %v587_v16  ;;  %v593_v18 = vsel %vm12292_vm1, %v585_v14, %v587_v16  ;;  %v592_v21 = vsel %vm12292_vm1, %v581_v15, %v583_v17  ;;  %v8869_v15 = vld [vmem:[%s12275_s1 + $0x20] sm:$0xff]  }
  0x8c   : >> { %615 = vmatpush1.bf16.msra.mxu0 %v593_v18 }
  0x8d   : >> { %616 = vmatprep.subr.bf16.mxu0 %v583_v17 }
  0x8e   : >> { %v577_v19 = vpop.permute.xlu0 %576  ;;  %v579_v20 = vpop.permute.xlu1 %578 }
  0x8f   : >> { %v591_v24 = vsel %vm12292_vm1, %v577_v19, %v579_v20 }
  0x90   : >> { %617 = vmatpush1.bf16.msra.mxu0 %v592_v21 }
  0x91   : >> { %618 = vmatprep.subr.bf16.mxu0 %v579_v20 }
  0x92   : >> { %v573_v22 = vpop.permute.xlu0 %572  ;;  %v575_v23 = vpop.permute.xlu1 %574 }
  0x93   : >> { %v590_v27 = vsel %vm12292_vm1, %v573_v22, %v575_v23 }
  0x94   : >> { %619 = vmatpush1.bf16.msra.mxu0 %v591_v24 }
  0x95   : >> { %620 = vmatprep.subr.bf16.mxu0 %v575_v23 }
  0x96   : >> { %v569_v25 = vpop.permute.xlu0 %568  ;;  %v571_v26 = vpop.permute.xlu1 %570 }
  0x97   : >> { %v589_v30 = vsel %vm12292_vm1, %v569_v25, %v571_v26 }
  0x98   : >> { %621 = vmatpush1.bf16.msra.mxu0 %v590_v27 }
  0x99   : >> { %622 = vmatprep.subr.bf16.mxu0 %v571_v26 }
  0x9a   : >> { %v737_v28 = vpop.permute.xlu0 %736  ;;  %v739_v29 = vpop.permute.xlu1 %738 }
  0x9b   : >> { %v745_v33 = vsel %vm12291_vm2, %v737_v28, %v739_v29 }
  0x9c   : >> { %623 = vmatpush1.bf16.msra.mxu0 %v589_v30 }
  0x9d   : >> { %765 = vmatprep.subr.bf16.mxu0 %v739_v29 }
  0x9e   : >> { %v733_v32 = vpop.permute.xlu0 %732  ;;  %v735_v34 = vpop.permute.xlu1 %734 }
  0x9f   : >> { %7574 = vmatmul.mubr.msk.bf16.vlgmr.msra.gmra.mxu0 %vm12290_vm0, %v8865_v31  ;;  %v744_v36 = vsel %vm12291_vm2, %v733_v32, %v735_v34 }
  0xa0   : >> { %766 = vmatpush1.bf16.msra.mxu0 %v745_v33  ;;  %791 = vmatprep.mubr.bf16.mxu0 %v9180_v11 }
  0xa1   : >> { %767 = vmatprep.subr.bf16.mxu0 %v735_v34 }
  0xa2   : >> { %v729_v35 = vpop.permute.xlu0 %728  ;;  %v731_v37 = vpop.permute.xlu1 %730 }
  0xa3   : >> { %v743_v39 = vsel %vm12291_vm2, %v729_v35, %v731_v37 }
  0xa4   : >> { %768 = vmatpush1.bf16.msra.mxu0 %v744_v36 }
  0xa5   : >> { %769 = vmatprep.subr.bf16.mxu0 %v731_v37 }
  0xa6   : >> { %v725_v38 = vpop.permute.xlu0 %724  ;;  %v727_v40 = vpop.permute.xlu1 %726 }
  0xa7   : >> { %v742_v42 = vsel %vm12291_vm2, %v725_v38, %v727_v40 }
  0xa8   : >> { %770 = vmatpush1.bf16.msra.mxu0 %v743_v39 }
  0xa9   : >> { %771 = vmatprep.subr.bf16.mxu0 %v727_v40 }
  0xaa   : >> { %v721_v41 = vpop.permute.xlu0 %720  ;;  %v723_v43 = vpop.permute.xlu1 %722 }
  0xab   : >> { %v741_v45 = vsel %vm12291_vm2, %v721_v41, %v723_v43 }
  0xac   : >> { %772 = vmatpush1.bf16.msra.mxu0 %v742_v42 }
  0xad   : >> { %773 = vmatprep.subr.bf16.mxu0 %v723_v43 }
  0xae   : >> { %v831_v44 = vpop.permute.xlu0 %830  ;;  %v833_v46 = vpop.permute.xlu1 %832 }
  0xaf   : >> { %v839_v48 = vsel %vm834_vm3, %v831_v44, %v833_v46  ;;  %859 = vmatprep.subr.bf16.mxu1 %v833_v46 }
  0xb0   : >> { %774 = vmatpush1.bf16.msra.mxu0 %v741_v45  ;;  %860 = vmatpush1.bf16.msra.mxu1 %v839_v48 }
  0xb2   : >> { %v925_v49 = vpop.permute.xlu0 %924  ;;  %v927_v50 = vpop.permute.xlu1 %926 }
  0xb3   : >> { %7580 = vmatmul.mubr.msk.bf16.vlgmr.msra.gmra.mxu0 %vm12290_vm0, %v8867_v47  ;;  %v933_v51 = vsel %vm928_vm4, %v925_v49, %v927_v50  ;;  %953 = vmatprep.subr.bf16.mxu0 %v927_v50 }
  0xb4   : >> { %979 = vmatprep.mubr.bf16.mxu0 %v9180_v11  ;;  %954 = vmatpush1.bf16.msra.mxu0 %v933_v51  ;;  %v8868_v11 = vld [vmem:[%s12275_s1 + $0x18] sm:$0xff]  }
  0xb6   : >> { %v827_v52 = vpop.permute.xlu0 %826  ;;  %v829_v53 = vpop.permute.xlu1 %828 }
  0xb7   : >> { %v838_v54 = vsel %vm834_vm3, %v827_v52, %v829_v53  ;;  %861 = vmatprep.subr.bf16.mxu1 %v829_v53 }
  0xb8   : >> { %862 = vmatpush1.bf16.msra.mxu1 %v838_v54 }
  0xba   : >> { %v921_v55 = vpop.permute.xlu0 %920  ;;  %v923_v56 = vpop.permute.xlu1 %922 }
  0xbb   : >> { %v932_v57 = vsel %vm928_vm4, %v921_v55, %v923_v56  ;;  %955 = vmatprep.subr.bf16.mxu0 %v923_v56 }
  0xbc   : >> { %956 = vmatpush1.bf16.msra.mxu0 %v932_v57 }
  0xbe   : >> { %v823_v58 = vpop.permute.xlu0 %822  ;;  %v825_v59 = vpop.permute.xlu1 %824 }
  0xbf   : >> { %v837_v60 = vsel %vm834_vm3, %v823_v58, %v825_v59  ;;  %863 = vmatprep.subr.bf16.mxu1 %v825_v59 }
  0xc0   : >> { %864 = vmatpush1.bf16.msra.mxu1 %v837_v60 }
  0xc2   : >> { %v917_v61 = vpop.permute.xlu0 %916  ;;  %v919_v62 = vpop.permute.xlu1 %918 }
  0xc3   : >> { %v931_v63 = vsel %vm928_vm4, %v917_v61, %v919_v62  ;;  %957 = vmatprep.subr.bf16.mxu0 %v919_v62 }
  0xc4   : >> { %958 = vmatpush1.bf16.msra.mxu0 %v931_v63 }
  0xc6   : >> { %v819_v2 = vpop.permute.xlu0 %818  ;;  %v821_v3 = vpop.permute.xlu1 %820 }
  0xc7   : >> { %v836_v4 = vsel %vm834_vm3, %v819_v2, %v821_v3  ;;  %865 = vmatprep.subr.bf16.mxu1 %v821_v3  ;;  %v1031_v2 = vlaneseq (%p498_p4) }
  0xc8   : >> { %866 = vmatpush1.bf16.msra.mxu1 %v836_v4 }
  0xc9   : > { %v9403_v3 = vshrl.u32 (%p498_p4), %v1031_v2, 7 }
  0xca   : >> { %v913_v5 = vpop.permute.xlu0 %912  ;;  %v915_v6 = vpop.permute.xlu1 %914 }
  0xcb   : >> { %v930_v7 = vsel %vm928_vm4, %v913_v5, %v915_v6  ;;  %959 = vmatprep.subr.bf16.mxu0 %v915_v6  ;;  %v9406_v4 = vadd.s32 (%p498_p4), 8, %v9403_v3  ;;  %v9409_v5 = vadd.s32 (%p498_p4), 16, %v9403_v3  ;;  %v9412_v6 = vadd.s32 (%p498_p4), 24, %v9403_v3 }
  0xcc   : >> { %960 = vmatpush1.bf16.msra.mxu0 %v930_v7  ;;  %v1060_v7 = vand.u32 (%p498_p4), 127, %v1031_v2  ;;  %v9421_v0 = vadd.s32 (%p498_p4), 48, %v9403_v3  ;;  %v9424_v1 = vadd.s32 (%p498_p4), 56, %v9403_v3 }
  0xce   : >> { %v815_v8 = vpop.permute.xlu0 %814  ;;  %v817_v9 = vpop.permute.xlu1 %816 }
  0xcf   : >> { %v835_v10 = vsel %vm834_vm3, %v815_v8, %v817_v9  ;;  %867 = vmatprep.subr.bf16.mxu1 %v817_v9  ;;  %v9415_v8 = vadd.s32 (%p498_p4), 32, %v9403_v3  ;;  %v9418_v9 = vadd.s32 (%p498_p4), 40, %v9403_v3 }
  0xd0   : >> { %868 = vmatpush1.bf16.msra.mxu1 %v835_v10  ;;  %v9427_v10 = vadd.s32 (%p498_p4), 64, %v9403_v3 }
  0xd2   : >> { %v909_v12 = vpop.permute.xlu0 %908  ;;  %v911_v13 = vpop.permute.xlu1 %910 }
  0xd3   : >> { %v929_v14 = vsel %vm928_vm4, %v909_v12, %v911_v13  ;;  %7584 = vmatmul.mubr.msk.bf16.vlgmr.msra.gmra.mxu1 %vm12290_vm0, %v8868_v11  ;;  %961 = vmatprep.subr.bf16.mxu0 %v911_v13  ;;  %v9430_v11 = vadd.s32 (%p498_p4), 72, %v9403_v3  ;;  %v9433_v12 = vadd.s32 (%p498_p4), 80, %v9403_v3  ;;  %v9436_v13 = vadd.s32 (%p498_p4), 88, %v9403_v3 }
  0xd4   : >> { %962 = vmatpush1.bf16.msra.mxu0 %v929_v14  ;;  %v9439_v14 = vadd.s32 (%p498_p4), 96, %v9403_v3 }
  0xd7   : >> { %7588 = vmatmul.mubr.msk.bf16.vlgmr.msra.gmra.mxu0 %vm12290_vm0, %v8869_v15  ;;  %v9442_v15 = vadd.s32 (%p498_p4), 104, %v9403_v3 }
  0xdf   : >> { %v997_v36 = vpop.permute.xlu0 %996  ;;  %v1002_v50 = vpop.permute.xlu1 %1001 }
  0xe9   : >> { %v703_v19 = vpop.f32.mrf.mxu1 }
  0xeb   : >> { %v705_v21 = vpop.f32.mrf.mxu1 }
  0xed   : >> { %v707_v23 = vpop.f32.mrf.mxu1 }
  0xef   : >> { %v709_v26 = vpop.f32.mrf.mxu1 }
 0x15f   : >> { %v642_v16 = vpop.f32.mrf.mxu0 }
 0x160   : >> { %v704_v25 = vadd.f32 %v703_v19, %v642_v16  ;;  %v9445_v16 = vadd.s32 (%p498_p4), 112, %v9403_v3  ;;  %v9454_v19 = vadd.s32 (%p498_p4), 136, %v9403_v3 }
 0x161   : >> { %v644_v17 = vpop.f32.mrf.mxu0 }
 0x162   : >> { %v706_v29 = vadd.f32 %v705_v21, %v644_v17  ;;  %v9448_v17 = vadd.s32 (%p498_p4), 120, %v9403_v3  ;;  %v9460_v21 = vadd.s32 (%p498_p4), 152, %v9403_v3 }
 0x163   : >> { %v646_v18 = vpop.f32.mrf.mxu0 }
 0x164   : >> { %v708_v33 = vadd.f32 %v707_v23, %v646_v18  ;;  %v9451_v18 = vadd.s32 (%p498_p4), 128, %v9403_v3  ;;  %v9466_v23 = vadd.s32 (%p498_p4), 168, %v9403_v3 }
 0x165   : >> { %v648_v20 = vpop.f32.mrf.mxu0 }
 0x166   : >> { %v710_v39 = vadd.f32 %v709_v26, %v648_v20  ;;  %v9457_v20 = vadd.s32 (%p498_p4), 144, %v9403_v3  ;;  %v9474_v26 = vadd.s32 (%p498_p4), 184, %v9403_v3 }
 0x173   : >> { %v793_v22 = vpop.f32.mrf.mxu0 }
 0x174   : >> { %v802_v30 = vadd.f32 %v793_v22, %v704_v25  ;;  %v9463_v22 = vadd.s32 (%p498_p4), 160, %v9403_v3  ;;  %v9471_v25 = vmul.u32 (%p498_p4), 2, %v1060_v7 }
 0x175   : >> { %v795_v24 = vpop.f32.mrf.mxu0 }
 0x176   : >> { %v803_v34 = vadd.f32 %v795_v24, %v706_v29  ;;  %v9469_v24 = vadd.s32 (%p498_p4), 176, %v9403_v3  ;;  %v1058_v29 = vadd.s32 (%p498_p4), 208, %v9403_v3  ;;  %vm1064_vm10 = vcmp.eq.s32.totalorder (%p498_p4), %v9409_v5, %v9471_v25 }
 0x177   : >> { %v797_v27 = vpop.f32.mrf.mxu0  ;;  %vm12294_vm12 = vcmp.eq.s32.totalorder (%p498_p4), %v9415_v8, %v9471_v25  ;;  %vm12295_vm13 = vcmp.eq.s32.totalorder (%p498_p4), %v9418_v9, %v9471_v25  ;;  %vm1085_vm9 = vcmp.eq.s32.totalorder (%p498_p4), %v9474_v26, %v9471_v25 }
 0x178   : >> { %v804_v40 = vadd.f32 %v797_v27, %v708_v33  ;;  %v9477_v27 = vadd.s32 (%p498_p4), 192, %v9403_v3  ;;  %vm1088_vm15 = vcmp.eq.s32.totalorder (%p498_p4), %v1058_v29, %v9471_v25 }
 0x179   : >> { %v799_v31 = vpop.f32.mrf.mxu0 }
 0x17a   : >> { %v805_v45 = vadd.f32 %v799_v31, %v710_v39 }
 0x193   : >> { %v887_v28 = vpop.f32.mrf.mxu1 }
 0x194   : >> { %v896_v35 = vadd.f32 %v887_v28, %v802_v30  ;;  %v9480_v28 = vadd.s32 (%p498_p4), 200, %v9403_v3  ;;  %v12296_v30 = vmov (%p498_p4), 0.0  }
 0x195   : >> { %v889_v32 = vpop.f32.mrf.mxu1  ;;  %v9540_v31 = vsel (%p498_p4), %vm1064_vm10, 1.0, %v12296_v30  ;;  %v9552_v33 = vsel (%p498_p4), %vm12295_vm13, 1.0, %v12296_v30 }
 0x196   : >> { %v897_v41 = vadd.f32 %v889_v32, %v803_v34  ;;  %vm1087_vm11 = vcmp.eq.s32.totalorder (%p498_p4), %v9480_v28, %v9471_v25  ;;  %12308 = vst [vmem:[#allocation11_spill] sm:$0xff] (%p498_p4), %v9540_v31  ;;  %v9546_v32 = vsel (%p498_p4), %vm12294_vm12, 1.0, %v12296_v30 }
 0x197   : >> { %v891_v37 = vpop.f32.mrf.mxu1  ;;  %v981_v38 = vpop.f32.mrf.mxu0 }
 0x198   : >> { %v990_v42 = vadd.f32 %v981_v38, %v896_v35  ;;  %v898_v46 = vadd.f32 %v891_v37, %v804_v40  ;;  %v9561_v35 = vsel (%p498_p4), %vm1088_vm15, 1.0, %v12296_v30 }
 0x199   : >> { %v983_v43 = vpop.f32.mrf.mxu0  ;;  %v893_v44 = vpop.f32.mrf.mxu1  ;;  %v1156_v37 = vpack.c.bf16 (%p498_p4), %v9561_v35, %v9561_v35 }
 0x19a   : >> { %v991_v47 = vadd.f32 %v983_v43, %v897_v41  ;;  %v1004_v48 = vadd.f32 %v997_v36, %v990_v42  ;;  %v899_v52 = vadd.f32 %v893_v44, %v805_v45 }
 0x19b   : >> { %v985_v49 = vpop.f32.mrf.mxu0 }
 0x19c   : >> { %v1005_v51 = vadd.f32 %v997_v36, %v991_v47  ;;  %v992_v53 = vadd.f32 %v985_v49, %v898_v46  ;;  %v1008_v55 = vmax.f32 %v1004_v48, 0.0  ;;  %v1145_v36 = vpack.c.bf16 (%p498_p4), %v9552_v33, %v9546_v32 }
 0x19d   : >> { %v987_v54 = vpop.f32.mrf.mxu0 }
 0x19e   : >> { %v1009_v56 = vmax.f32 %v1005_v51, 0.0  ;;  %v1006_v57 = vadd.f32 %v1002_v50, %v992_v53  ;;  %v993_v58 = vadd.f32 %v987_v54, %v899_v52 }
 0x1a0   : >> { %v8187_v59 = vpack.c.bf16 %v1009_v56, %v1008_v55  ;;  %v1007_v60 = vadd.f32 %v1002_v50, %v993_v58  ;;  %v1010_v61 = vmax.f32 %v1006_v57, 0.0 }
 0x1a2   : >> { %1029 = vst.msk [vmem:[%s1025_s25] sm:$0xff] %vm1028_vm7, %v8187_v59  ;;  %v1011_v62 = vmax.f32 %v1007_v60, 0.0  ;;  %500 = sbr.rel (!%p498_p4) target bundleno = 17 (0x11), region = 218 }
 0x1a4   : >> { %v8188_v63 = vpack.c.bf16 %v1011_v62, %v1010_v61 }
 0x1a6   : >> { %1030 = vst.msk [vmem:[%s1025_s25 + $0x8] sm:$0xff] %vm1028_vm7, %v8188_v63  ;;  %vm12293_vm7 = vcmp.eq.s32.totalorder (%p498_p4), %v9439_v14, %v9471_v25 }
 0x1a7   : > { %v9558_v34 = vsel %vm12293_vm7, 1.0, %v12296_v30 }
 0x1a8 LB: >> { %vm12309_vm2 = vcmp.eq.s32.totalorder %v9445_v16, %v9471_v25  ;;  %vm12310_vm1 = vcmp.eq.s32.totalorder %v9448_v17, %v9471_v25  ;;  %v9185_v38 = vmov 0   ;;  %s7619_s17 = sshll.u32 %s9153_s16, 5  ;;  %v9186_v39 = vmov 1.0|1.0   ;;  %s9187_s24 = smov 126   ;;  %s9153_s16 = sphi %s9567_s16, %s1162_s16  }
 0x1a9   : >> { %vm7632_vm15 = vmpackc.low %vm12310_vm1, %vm12309_vm2  ;;  %1243 = vmatprep.subr.bf16.mxu0 %v9185_v38  ;;  %s8192_s19 = sadd.s32 16, %s7619_s17  ;;  %vm12311_vm7 = vcmp.eq.s32.totalorder %v9439_v14, %v9471_v25  ;;  %vm12312_vm0 = vcmp.eq.s32.totalorder %v9442_v15, %v9471_v25  ;;  %s8195_s27 = sadd.s32 32, %s7619_s17  ;;  %vm12313_vm5 = vcmp.eq.s32.totalorder %v9433_v12, %v9471_v25  ;;  %vm12314_vm6 = vcmp.eq.s32.totalorder %v9436_v13, %v9471_v25 }
 0x1aa   : >> { %7633 = vmatpush1.bf16.msk.msra.mxu0 %vm7632_vm15, %v9186_v39  ;;  %vm7634_vm4 = vmpackc.low %vm12312_vm0, %vm12311_vm7  ;;  %s1174_s26 = sshra.s32 %s8192_s19, 3  ;;  %s1168_s29 = scalar_lea.vmem [#allocation2], %s7619_s17  ;;  %vm12318_vm0 = vcmp.eq.s32.totalorder %v9430_v11, %v9471_v25  ;;  %vm12321_vm2 = vcmp.eq.s32.totalorder %v9421_v0, %v9471_v25  ;;  %vm12325_vm12 = vcmp.eq.s32.totalorder %v9415_v8, %v9471_v25  ;;  %vm12326_vm13 = vcmp.eq.s32.totalorder %v9418_v9, %v9471_v25 }
 0x1ab   : >> { %1245 = vmatprep.subr.bf16.mxu0 %v9185_v38  ;;  %s8193_s30 = sshll.u32 %s1174_s26, 3  ;;  %s1183_s20 = sshra.s32 %s8195_s27, 3  ;;  %vm9596_vm15 = vmpackc.low %vm12314_vm6, %vm12313_vm5  ;;  %vm1237_vm7 = vcmask 1042432   ;;  %v9189_v55 = vmov 65535   ;;  %v12334_v57 = vmov 0  ;;  %vm12337_vm8 = vcmp.eq.s32.totalorder %v9477_v27, %v9471_v25 }
 0x1ac   : >> { %s8196_s21 = sshll.u32 %s1183_s20, 3  ;;  %s1178_s22 = scalar_lea.vmem [#allocation2], %s8193_s30  ;;  %vm9638_vm5 = vmpackc.low %vm12326_vm13, %vm12325_vm12  ;;  %vm12332_vm12 = vcmp.eq.s32.totalorder %v9403_v3, %v9471_v25  ;;  %vm12333_vm13 = vcmp.eq.s32.totalorder %v9406_v4, %v9471_v25  ;;  %vm12338_vm3 = vcmp.eq.s32.totalorder %v9469_v24, %v9471_v25 }
 0x1ad   : >> { %v1169_v40 = vld [vmem:[%s1168_s29] sm:$0xff]  ;;  %v1170_v41 = vld [vmem:[%s1168_s29 + $0x8] sm:$0xff]  ;;  %s1187_s23 = scalar_lea.vmem [#allocation2], %s8196_s21  ;;  %s9188_s25 = smov 127   ;;  %vm9666_vm14 = vmpackc.low %vm12333_vm13, %vm12332_vm12 }
 0x1ae   : >> { %7635 = vmatpush1.bf16.msk.msra.mxu0 %vm7634_vm4, %v9186_v39  ;;  %v1179_v42 = vld [vmem:[%s1178_s22] sm:$0xff]  ;;  %v1180_v43 = vld [vmem:[%s1178_s22 + $0x8] sm:$0xff]  ;;  %vm12317_vm4 = vcmp.eq.s32.totalorder %v9427_v10, %v9471_v25  ;;  %v12335_v57 = vsel %vm9666_vm14, 4294967295, %v12334_v57  ;;  %vm7648_vm12 = vmpackc.low %vm1087_vm11, %vm12337_vm8  ;;  %vm12343_vm8 = vcmp.eq.s32.totalorder %v9451_v18, %v9471_v25  ;;  %s7629_s17 = sshll.u32 %s9153_s16, 4  ;;  %s1162_s16 = sadd.s32 1, %s9153_s16  }
 0x1af   : >> { %1247 = vmatprep.subr.bf16.mxu0 %v9185_v38  ;;  %v1188_v45 = vld [vmem:[%s1187_s23] sm:$0xff]  ;;  %v1190_v46 = vmax.bf16 %v1179_v42, %v1169_v40  ;;  %v1191_v47 = vmax.bf16 %v1180_v43, %v1170_v41  ;;  %v1189_v48 = vld [vmem:[%s1187_s23 + $0x8] sm:$0xff]  ;;  %vm9610_vm1 = vmpackc.low %vm12318_vm0, %vm12317_vm4  ;;  %vm12322_vm0 = vcmp.eq.s32.totalorder %v9424_v1, %v9471_v25  ;;  %12336 = vst [vmem:[#allocation12_spill] sm:$0xff] %v12335_v57  ;;  %s1292_s19 = sshra.s32 %s7629_s17, 3  ;;  %p1159_p5 = scmp.ge.s32.totalorder %s1162_s16, 107  }
 0x1b0   : >> { %vm9624_vm4 = vmpackc.low %vm12322_vm0, %vm12321_vm2  ;;  %vm1236_vm2 = vcmask 1041408   ;;  %vm12329_vm0 = vcmp.eq.s32.totalorder %v9412_v6, %v9471_v25  ;;  %s7661_s26 = sshll.u32 %s1292_s19, 2  ;;  %s9748_s16 = smov (%p1159_p5), 0  }
 0x1b1   : >> { %v1192_v49 = vmax.bf16 %v1190_v46, %v1188_v45  ;;  %v1193_v51 = vmax.bf16 %v1191_v47, %v1189_v48  ;;  %vm9652_vm6 = vmpackc.low %vm12329_vm0, %vm1064_vm10  ;;  %v1238_v56 = vsel %vm1236_vm2, 4294967295, %v9189_v55  ;;  %vm12340_vm2 = vcmp.eq.s32.totalorder %v9466_v23, %v9471_v25  ;;  %s1295_s27 = scalar_lea.vmem [#allocation3], %s7661_s26 }
 0x1b2   : >> { %7637 = vmatpush1.bf16.msk.msra.mxu0 %vm9596_vm15, %v9186_v39  ;;  %v9670_v58 = vsel %vm1237_vm7, %v1238_v56, 0  ;;  %vm7650_vm13 = vmpackc.low %vm1085_vm9, %vm12338_vm3  ;;  %vm12339_vm7 = vcmp.eq.s32.totalorder %v9463_v22, %v9471_v25  ;;  %vm12342_vm3 = vcmp.eq.s32.totalorder %v9460_v21, %v9471_v25 }
 0x1b3   : >> { %1249 = vmatprep.subr.bf16.mxu0 %v9185_v38  ;;  %1209 = vrot.lane.b32.xlu1 %v1192_v49, %s9187_s24  ;;  %v1241_v59 = vand.u32 %v9670_v58, %v1156_v37  ;;  %vm7652_vm0 = vmpackc.low %vm12340_vm2, %vm12339_vm7  ;;  %vm12344_vm7 = vcmp.eq.s32.totalorder %v9454_v19, %v9471_v25 }
 0x1b4   : >> { %1196 = vrot.lane.b32.xlu0 %v1192_v49, %s9188_s25  ;;  %vm7656_vm2 = vmpackc.low %vm12344_vm7, %vm12343_vm8  ;;  %vm1296_vm7 = vcmask 871424  }
 0x1b6   : >> { %7639 = vmatpush1.bf16.msk.msra.mxu0 %vm9610_vm1, %v9186_v39 }
 0x1b7   : >> { %1251 = vmatprep.subr.bf16.mxu0 %v9185_v38  ;;  %1211 = vrot.lane.b32.xlu1 %v1193_v51, %s9187_s24 }
 0x1b8   : >> { %1198 = vrot.lane.b32.xlu0 %v1193_v51, %s9188_s25 }
 0x1ba   : >> { %7641 = vmatpush1.bf16.msk.msra.mxu0 %vm9624_vm4, %v9186_v39 }
 0x1bb   : >> { %1253 = vmatprep.subr.bf16.mxu0 %v9185_v38 }
 0x1be   : >> { %7643 = vmatpush1.bf16.msk.msra.mxu0 %vm9638_vm5, %v9186_v39 }
 0x1bf   : >> { %1255 = vmatprep.subr.bf16.mxu0 %v9185_v38 }
 0x1c2   : >> { %7645 = vmatpush1.bf16.msk.msra.mxu0 %vm9652_vm6, %v9186_v39 }
 0x1c3   : >> { %1257 = vmatprep.subr.bf16.mxu0 %v9185_v38 }
 0x1c6   : >> { %7647 = vmatpush1.bf16.msk.msra.mxu0 %vm9666_vm14, %v9186_v39 }
 0x1c7   : >> { %1263 = vmatprep.subr.bf16.mxu0 %v9185_v38 }
 0x1ca   : >> { %1264 = vmatpush2.bf16.msra.mxu0 %v1241_v59 }
 0x1cb   : >> { %1265 = vmatprep.subr.bf16.mxu0 %v9185_v38 }
 0x1ce   : >> { %7649 = vmatpush2.bf16.msk.msra.mxu0 %vm7648_vm12, %v9186_v39  ;;  %vm12341_vm12 = vcmp.eq.s32.totalorder %v9457_v20, %v9471_v25 }
 0x1cf   : >> { %1267 = vmatprep.subr.bf16.mxu0 %v9185_v38 }
 0x1d2   : >> { %7651 = vmatpush2.bf16.msk.msra.mxu0 %vm7650_vm13, %v9186_v39  ;;  %vm7654_vm13 = vmpackc.low %vm12342_vm3, %vm12341_vm12  ;;  %vm12347_vm12 = vcmask 1031168  }
 0x1d3   : >> { %1269 = vmatprep.subr.bf16.mxu0 %v9185_v38  ;;  %vm12348_vm8 = vmmov %vm12347_vm12 }
 0x1d6   : >> { %7653 = vmatpush2.bf16.msk.msra.mxu0 %vm7652_vm0, %v9186_v39  ;;  %vm12345_vm0 = vcmask 1039360  }
 0x1d7   : >> { %1271 = vmatprep.subr.bf16.mxu0 %v9185_v38  ;;  %vm12346_vm3 = vmmov %vm12345_vm0 }
 0x1da   : >> { %7655 = vmatpush2.bf16.msk.msra.mxu0 %vm7654_vm13, %v9186_v39  ;;  %vm1232_vm13 = vcmask 695296  }
 0x1db   : >> { %1273 = vmatprep.subr.bf16.mxu0 %v9185_v38 }
 0x1de   : >> { %7657 = vmatpush2.bf16.msk.msra.mxu0 %vm7656_vm2, %v9186_v39 }
 0x225   : >> { %v1210_v60 = vpop.permute.xlu1 %1209 }
 0x226   : >> { %v1197_v61 = vpop.permute.xlu0 %1196  ;;  %v1213_v29 = vrot.slane %v1210_v60, 4 }
 0x227   : >> { %v1200_v62 = vrot.slane %v1197_v61, 4 }
 0x228   : >> { %v1216_v45 = vsel %vm12347_vm12, %v1210_v60, %v1213_v29 }
 0x229   : >> { %v1203_v63 = vsel %vm12345_vm0, %v1197_v61, %v1200_v62  ;;  %v1212_v2 = vpop.permute.xlu1 %1211  ;;  %v9731_v62 = vld [vmem:[%s12278_s4] sm:$0xff] (%p1159_p5) }
 0x22a   : >> { %v1199_v7 = vpop.permute.xlu0 %1198  ;;  %v1214_v40 = vrot.slane %v1212_v2, 4  ;;  %v1207_v41 = vmax.bf16 %v1203_v63, %v1192_v49  ;;  %v9736_v63 = vld [vmem:[%s12278_s4 + $0x8] sm:$0xff] (%p1159_p5) }
 0x22b   : >> { %v1201_v38 = vrot.slane %v1199_v7, 4 }
 0x22c   : >> { %v1217_v46 = vsel %vm12348_vm8, %v1212_v2, %v1214_v40  ;;  %v1220_v39 = vmax.bf16 %v1216_v45, %v1207_v41  ;;  %v9741_v2 = vld [vmem:[%s12278_s4 + $0x10] sm:$0xff] (%p1159_p5) }
 0x22d   : >> { %v1204_v42 = vsel %vm12346_vm3, %v1199_v7, %v1201_v38  ;;  %v9746_v7 = vld [vmem:[%s12278_s4 + $0x18] sm:$0xff] (%p1159_p5) }
 0x22e   : >> { %v1208_v43 = vmax.bf16 %v1204_v42, %v1193_v51 }
 0x230   : >> { %v1221_v47 = vmax.bf16 %v1217_v46, %v1208_v43 }
 0x232   : >> { %v7631_v48 = vcombine.high %v1220_v39, %v1221_v47  ;;  %v7630_v55 = vcombine.low %v1220_v39, %v1221_v47 }
 0x234   : >> { %7658 = vmatprep.mubr.msk.bf16.mxu0 %vm1232_vm13, %v7631_v48 }
 0x235   : >> { %1276 = vmatmul.mubr.bf16.vlgmr.msra.gmra.mxu0 %v7630_v55 }
 0x2f5   : >> { %v1277_v56 = vpop.f32.mrf.mxu0 }
 0x2f6   : >> { %v8197_v49 = vpack.c.bf16 %v1277_v56, %v1277_v56 }
 0x2f7   : >> { %v1279_v59 = vpop.f32.mrf.mxu0 }
 0x2f8   : >> { %1297 = vst.msk [vmem:[%s1295_s27] sm:$0xf] %vm1296_vm7, %v8197_v49  ;;  %1161 = sbr.rel (!%p1159_p5) target bundleno = 424 (0x1a8), region = 229 }
 0x2f9   : >> { %v1280_v51 = vpop.f32.mrf.mxu0 }
 0x2fa   : >> { %v8198_v60 = vpack.c.bf16 %v1280_v51, %v1280_v51 }
 0x2fb   : >> { %v1282_v61 = vpop.f32.mrf.mxu0 }
 0x2fc   : >> { %1298 = vst.msk [vmem:[%s1295_s27 + $0x4] sm:$0xf] %vm1296_vm7, %v8198_v60 }
 0x2fd LB: >> { %s7662_s17 = sshll.u32 %s9157_s16, 4  ;;  %s9190_s29 = smov 127   ;;  %v8877_v9 = vld [vmem:[%s12277_s3 + $0x10] sm:$0xff]   ;;  %v8878_v0 = vld [vmem:[%s12277_s3] sm:$0xff]   ;;  %vm12349_vm9 = vcmask 654336   ;;  %v8880_v1 = vld [vmem:[%s12277_s3 + $0x8] sm:$0xff]   ;;  %s9157_s16 = sphi %s9748_s16, %s1308_s16  }
 0x2fe   : >> { %s1310_s19 = sshra.s32 %s7662_s17, 3  ;;  %8513 = vmatprep.mubr.msk.bf16.mxu0 %vm12349_vm9, %v8877_v9  ;;  %vm12350_vm10 = vmmov %vm12349_vm9  ;;  %s9191_s23 = smov 126   ;;  %v8883_v10 = vld [vmem:[%s12277_s3 + $0x30] sm:$0xff]   ;;  %v9194_v11 = vmov 0   ;;  %v8879_v20 = vld [vmem:[%s12277_s3 + $0x18] sm:$0xff]  }
 0x2ff   : >> { %s7663_s26 = sshll.u32 %s1310_s19, 2  ;;  %8527 = vmatprep.mubr.msk.bf16.mxu1 %vm12350_vm10, %v8878_v0  ;;  %s9192_s17 = smov 125   ;;  %vm12351_vm11 = vmmov %vm12349_vm9  ;;  %8871 = vset.pattern.permute.xlu1 %v9194_v11  ;;  %v8881_v22 = vld [vmem:[%s12277_s3 + $0x20] sm:$0xff]   ;;  %v8882_v29 = vld [vmem:[%s12277_s3 + $0x28] sm:$0xff]  }
 0x300   : >> { %s1313_s27 = scalar_lea.vmem [#allocation3], %s7663_s26  ;;  %s9193_s19 = smov 124   ;;  %vm12352_vm2 = vmmov %vm12349_vm9  ;;  %8870 = vset.pattern.permute.xlu0 %v9194_v11  ;;  %v8884_v40 = vld [vmem:[%s12277_s3 + $0x38] sm:$0xff]   ;;  %v8885_v38 = vld [vmem:[%s12277_s3 + $0x40] sm:$0xff]   ;;  %vm1825_vm9 = vcmask 838656  }
 0x301   : >> { %vm12353_vm0 = vmmov %vm12352_vm2  ;;  %v8886_v45 = vld [vmem:[%s12277_s3 + $0x48] sm:$0xff]  }
 0x302   : >> { %vm12354_vm3 = vmmov %vm12353_vm0 }
 0x303   : >> { %v8872_v3 = vld [vmem:[%s1313_s27 + $0x20] sm:$0xff]   ;;  %v8873_v4 = vld [vmem:[%s1313_s27 + $0x18] sm:$0xff]   ;;  %v8874_v5 = vld [vmem:[%s1313_s27 + $0x10] sm:$0xff]  }
 0x304   : >> { %1376 = vrot.lane.b32.xlu0 %v8872_v3, %s9190_s29  ;;  %8517 = vmatprep.subr.bf16.mxu1 %v8872_v3  ;;  %v8876_v6 = vld [vmem:[%s1313_s27 + $0x8] sm:$0xff]   ;;  %v8875_v8 = vld [vmem:[%s1313_s27] sm:$0xff]   ;;  %vm12355_vm12 = vmmov %vm12353_vm0 }
 0x305   : >> { %8518 = vmatpush3.bf16.msra.mxu1 %v8872_v3  ;;  %1372 = vrot.lane.b32.xlu1 %v8874_v5, %s9190_s29  ;;  %vm12356_vm8 = vmmov %vm12353_vm0 }
 0x306   : >> { %8519 = vmatprep.subr.bf16.mxu1 %v8873_v4  ;;  %vm12357_vm13 = vmmov %vm12353_vm0 }
 0x307   : >> { %vm12358_vm7 = vmmov %vm12353_vm0 }
 0x308   : >> { %1374 = vrot.lane.b32.xlu0 %v8873_v4, %s9190_s29 }
 0x309   : >> { %8520 = vmatpush3.bf16.msra.mxu1 %v8873_v4  ;;  %1370 = vrot.lane.b32.xlu1 %v8876_v6, %s9190_s29 }
 0x30a   : >> { %8521 = vmatprep.subr.bf16.mxu1 %v8874_v5 }
 0x30c   : >> { %1368 = vrot.lane.b32.xlu0 %v8875_v8, %s9190_s29  ;;  %s7705_s29 = sshll.u32 %s9157_s16, 5  ;;  %s1308_s16 = sadd.s32 1, %s9157_s16  }
 0x30d   : >> { %8522 = vmatpush3.bf16.msra.mxu1 %v8874_v5  ;;  %1532 = vrot.lane.b32.xlu1 %v8872_v3, %s9191_s23  ;;  %s1821_s30 = sshra.s32 %s7705_s29, 3  ;;  %p1305_p6 = scmp.ge.s32.totalorder %s1308_s16, 103  }
 0x30e   : >> { %8523 = vmatprep.subr.bf16.mxu1 %v8876_v6  ;;  %s7710_s20 = sshll.u32 %s1821_s30, 2  ;;  %s9808_s22 = smov (%p1305_p6), 0  }
 0x30f   : >> { %s1824_s21 = scalar_lea.vmem [#allocation4], %s7710_s20 }
 0x310   : >> { %1530 = vrot.lane.b32.xlu0 %v8873_v4, %s9191_s23 }
 0x311   : >> { %8524 = vmatpush3.bf16.msra.mxu1 %v8876_v6  ;;  %1528 = vrot.lane.b32.xlu1 %v8874_v5, %s9191_s23 }
 0x312   : >> { %8525 = vmatprep.subr.bf16.mxu1 %v8875_v8 }
 0x314   : >> { %1526 = vrot.lane.b32.xlu0 %v8876_v6, %s9191_s23 }
 0x315   : >> { %8526 = vmatpush3.bf16.msra.mxu1 %v8875_v8  ;;  %1524 = vrot.lane.b32.xlu1 %v8875_v8, %s9191_s23 }
 0x318   : >> { %1621 = vrot.lane.b32.xlu0 %v8872_v3, %s9192_s17  ;;  %8528 = vmatmul.mubr.msk.bf16.vlgmr.msra.gmra.mxu1 %vm12351_vm11, %v8880_v1 }
 0x319   : >> { %1710 = vrot.lane.b32.xlu1 %v8872_v3, %s9193_s19  ;;  %8555 = vmatprep.mubr.msk.bf16.mxu1 %vm12352_vm2, %v8883_v10 }
 0x31c   : >> { %1619 = vrot.lane.b32.xlu0 %v8873_v4, %s9192_s17 }
 0x31d   : >> { %1708 = vrot.lane.b32.xlu1 %v8873_v4, %s9193_s19 }
 0x320   : >> { %1617 = vrot.lane.b32.xlu0 %v8874_v5, %s9192_s17 }
 0x321   : >> { %1706 = vrot.lane.b32.xlu1 %v8874_v5, %s9193_s19 }
 0x324   : >> { %1615 = vrot.lane.b32.xlu0 %v8876_v6, %s9192_s17 }
 0x325   : >> { %1704 = vrot.lane.b32.xlu1 %v8876_v6, %s9193_s19 }
 0x328   : >> { %1613 = vrot.lane.b32.xlu0 %v8875_v8, %s9192_s17 }
 0x329   : >> { %1702 = vrot.lane.b32.xlu1 %v8875_v8, %s9193_s19 }
 0x32c   : >> { %1779 = vperm.xlu0 %8870, %v9731_v62  }
 0x32d   : >> { %1784 = vperm.xlu1 %8871, %v9736_v63  }
 0x330   : >> { %1794 = vperm.xlu0 %8870, %v9746_v7  }
 0x331   : >> { %1789 = vperm.xlu1 %8871, %v9741_v2  }
 0x376   : >> { %v1377_v12 = vpop.permute.xlu0 %1376 }
 0x377   : >> { %8503 = vmatprep.subr.bf16.mxu0 %v1377_v12  ;;  %v1373_v13 = vpop.permute.xlu1 %1372 }
 0x378   : >> { %8504 = vmatpush3.bf16.msra.mxu0 %v1377_v12 }
 0x37a   : >> { %v1375_v14 = vpop.permute.xlu0 %1374 }
 0x37b   : >> { %8505 = vmatprep.subr.bf16.mxu0 %v1375_v14  ;;  %v1371_v16 = vpop.permute.xlu1 %1370 }
 0x37c   : >> { %8506 = vmatpush3.bf16.msra.mxu0 %v1375_v14 }
 0x37d   : >> { %8507 = vmatprep.subr.bf16.mxu0 %v1373_v13 }
 0x37e   : >> { %v1369_v15 = vpop.permute.xlu0 %1368 }
 0x37f   : >> { %v1533_v18 = vpop.permute.xlu1 %1532 }
 0x380   : >> { %8508 = vmatpush3.bf16.msra.mxu0 %v1373_v13 }
 0x381   : >> { %8509 = vmatprep.subr.bf16.mxu0 %v1371_v16 }
 0x382   : >> { %v1531_v17 = vpop.permute.xlu0 %1530 }
 0x383   : >> { %v1529_v21 = vpop.permute.xlu1 %1528 }
 0x384   : >> { %8510 = vmatpush3.bf16.msra.mxu0 %v1371_v16 }
 0x385   : >> { %8511 = vmatprep.subr.bf16.mxu0 %v1369_v15 }
 0x386   : >> { %v1527_v19 = vpop.permute.xlu0 %1526 }
 0x387   : >> { %v1525_v24 = vpop.permute.xlu1 %1524 }
 0x388   : >> { %8512 = vmatpush3.bf16.msra.mxu0 %v1369_v15 }
 0x389   : >> { %8531 = vmatprep.subr.bf16.mxu0 %v1533_v18 }
 0x38a   : >> { %v1622_v23 = vpop.permute.xlu0 %1621 }
 0x38b   : >> { %8514 = vmatmul.mubr.msk.bf16.vlgmr.msra.gmra.mxu0 %vm12353_vm0, %v8879_v20  ;;  %8545 = vmatprep.subr.bf16.mxu1 %v1622_v23  ;;  %v1711_v27 = vpop.permute.xlu1 %1710 }
 0x38c   : >> { %8532 = vmatpush3.bf16.msra.mxu0 %v1533_v18  ;;  %8546 = vmatpush3.bf16.msra.mxu1 %v1622_v23 }
 0x38d   : >> { %8533 = vmatprep.subr.bf16.mxu0 %v1531_v17  ;;  %8541 = vmatprep.mubr.msk.bf16.mxu0 %vm12354_vm3, %v8881_v22 }
 0x38e   : >> { %v1620_v25 = vpop.permute.xlu0 %1619 }
 0x38f   : >> { %8547 = vmatprep.subr.bf16.mxu1 %v1620_v25  ;;  %v1709_v35 = vpop.permute.xlu1 %1708 }
 0x390   : >> { %8534 = vmatpush3.bf16.msra.mxu0 %v1531_v17  ;;  %8548 = vmatpush3.bf16.msra.mxu1 %v1620_v25 }
 0x391   : >> { %8535 = vmatprep.subr.bf16.mxu0 %v1529_v21 }
 0x392   : >> { %v1618_v26 = vpop.permute.xlu0 %1617 }
 0x393   : >> { %8549 = vmatprep.subr.bf16.mxu1 %v1618_v26  ;;  %v1707_v41 = vpop.permute.xlu1 %1706 }
 0x394   : >> { %8536 = vmatpush3.bf16.msra.mxu0 %v1529_v21  ;;  %8550 = vmatpush3.bf16.msra.mxu1 %v1618_v26 }
 0x395   : >> { %8537 = vmatprep.subr.bf16.mxu0 %v1527_v19 }
 0x396   : >> { %v1616_v28 = vpop.permute.xlu0 %1615 }
 0x397   : >> { %8551 = vmatprep.subr.bf16.mxu1 %v1616_v28  ;;  %v1705_v42 = vpop.permute.xlu1 %1704 }
 0x398   : >> { %8538 = vmatpush3.bf16.msra.mxu0 %v1527_v19  ;;  %8552 = vmatpush3.bf16.msra.mxu1 %v1616_v28 }
 0x399   : >> { %8539 = vmatprep.subr.bf16.mxu0 %v1525_v24 }
 0x39a   : >> { %v1614_v37 = vpop.permute.xlu0 %1613 }
 0x39b   : >> { %8553 = vmatprep.subr.bf16.mxu1 %v1614_v37  ;;  %v1703_v43 = vpop.permute.xlu1 %1702 }
 0x39c   : >> { %8540 = vmatpush3.bf16.msra.mxu0 %v1525_v24  ;;  %8554 = vmatpush3.bf16.msra.mxu1 %v1614_v37 }
 0x39d   : >> { %8559 = vmatprep.subr.bf16.mxu0 %v1711_v27 }
 0x39f   : >> { %8542 = vmatmul.mubr.msk.bf16.vlgmr.msra.gmra.mxu0 %vm12355_vm12, %v8882_v29  ;;  %8556 = vmatmul.mubr.msk.bf16.vlgmr.msra.gmra.mxu1 %vm12356_vm8, %v8884_v40 }
 0x3a0   : >> { %8560 = vmatpush3.bf16.msra.mxu0 %v1711_v27  ;;  %8569 = vmatprep.mubr.msk.bf16.mxu0 %vm12357_vm13, %v8885_v38 }
 0x3a1   : >> { %8561 = vmatprep.subr.bf16.mxu0 %v1709_v35 }
 0x3a4   : >> { %8562 = vmatpush3.bf16.msra.mxu0 %v1709_v35 }
 0x3a5   : >> { %8563 = vmatprep.subr.bf16.mxu0 %v1707_v41 }
 0x3a7   : >> { %v1780_v15 = vpop.permute.xlu0 %1779 }
 0x3a8   : >> { %8564 = vmatpush3.bf16.msra.mxu0 %v1707_v41  ;;  %v1785_v4 = vpop.permute.xlu1 %1784 }
 0x3a9   : >> { %8565 = vmatprep.subr.bf16.mxu0 %v1705_v42 }
 0x3ab   : >> { %v1795_v29 = vpop.permute.xlu0 %1794 }
 0x3ac   : >> { %8566 = vmatpush3.bf16.msra.mxu0 %v1705_v42  ;;  %v1790_v17 = vpop.permute.xlu1 %1789 }
 0x3ad   : >> { %8567 = vmatprep.subr.bf16.mxu0 %v1703_v43 }
 0x3b0   : >> { %8568 = vmatpush3.bf16.msra.mxu0 %v1703_v43 }
 0x3b3   : >> { %8570 = vmatmul.mubr.msk.bf16.vlgmr.msra.gmra.mxu0 %vm12358_vm7, %v8886_v45 }
 0x3d8   : >> { %v8529_v39 = vpop.f32.mrf.mxu1 }
 0x3da   : >> { %v1494_v48 = vpop.f32.mrf.mxu1 }
 0x3dc   : >> { %v8530_v56 = vpop.f32.mrf.mxu1 }
 0x3de   : >> { %v1497_v51 = vpop.f32.mrf.mxu1 }
 0x44b   : >> { %v8515_v46 = vpop.f32.mrf.mxu0 }
 0x44c   : >> { %v1503_v3 = vadd.f32 %v8529_v39, %v8515_v46 }
 0x44d   : >> { %v1424_v47 = vpop.f32.mrf.mxu0 }
 0x44e   : >> { %v1495_v8 = vadd.f32 %v1494_v48, %v1424_v47 }
 0x44f   : >> { %v8516_v55 = vpop.f32.mrf.mxu0 }
 0x450   : >> { %v1506_v0 = vadd.f32 %v8530_v56, %v8516_v55  ;;  %v1830_v56 = vpack.c.bf16 (%p1305_p6), %v9558_v34, %v9558_v34 }
 0x451   : >> { %v1427_v49 = vpop.f32.mrf.mxu0 }
 0x452   : >> { %v1498_v12 = vadd.f32 %v1497_v51, %v1427_v49 }
 0x45f   : >> { %v8543_v59 = vpop.f32.mrf.mxu0  ;;  %v8557_v61 = vpop.f32.mrf.mxu1 }
 0x460   : >> { %v1596_v9 = vadd.f32 %v8543_v59, %v1503_v3 }
 0x461   : >> { %v1579_v60 = vpop.f32.mrf.mxu0  ;;  %v1668_v6 = vpop.f32.mrf.mxu1 }
 0x462   : >> { %v1594_v1 = vadd.f32 %v1579_v60, %v1495_v8  ;;  %v1685_v13 = vadd.f32 %v8557_v61, %v1596_v9 }
 0x463   : >> { %v8544_v5 = vpop.f32.mrf.mxu0  ;;  %v8558_v11 = vpop.f32.mrf.mxu1 }
 0x464   : >> { %v1597_v14 = vadd.f32 %v8544_v5, %v1506_v0  ;;  %v1683_v18 = vadd.f32 %v1668_v6, %v1594_v1 }
 0x465   : >> { %v1582_v10 = vpop.f32.mrf.mxu0  ;;  %v1671_v21 = vpop.f32.mrf.mxu1 }
 0x466   : >> { %v1595_v19 = vadd.f32 %v1582_v10, %v1498_v12  ;;  %v1686_v23 = vadd.f32 %v8558_v11, %v1597_v14 }
 0x468   : >> { %v1684_v27 = vadd.f32 %v1671_v21, %v1595_v19 }
 0x473   : >> { %v8571_v16 = vpop.f32.mrf.mxu0 }
 0x474   : >> { %v1774_v20 = vadd.f32 %v8571_v16, %v1685_v13 }
 0x475   : >> { %v1757_v22 = vpop.f32.mrf.mxu0 }
 0x476   : >> { %v1799_v24 = vadd.f32 %v1790_v17, %v1774_v20  ;;  %v1772_v25 = vadd.f32 %v1757_v22, %v1683_v18 }
 0x477   : >> { %v8572_v26 = vpop.f32.mrf.mxu0 }
 0x478   : >> { %v1803_v28 = vmax.f32 %v1799_v24, 0.0  ;;  %v1797_v35 = vadd.f32 %v1780_v15, %v1772_v25  ;;  %v1775_v37 = vadd.f32 %v8572_v26, %v1686_v23 }
 0x479   : >> { %v1760_v40 = vpop.f32.mrf.mxu0 }
 0x47a   : >> { %v8201_v38 = vpack.c.bf16 %v1803_v28, %v1803_v28  ;;  %v1801_v41 = vmax.f32 %v1797_v35, 0.0  ;;  %v1800_v42 = vadd.f32 %v1795_v29, %v1775_v37  ;;  %v1773_v43 = vadd.f32 %v1760_v40, %v1684_v27 }
 0x47c   : >> { %1828 = vst.msk [vmem:[%s1824_s21 + $0x8] sm:$0xf] %vm1825_vm9, %v8201_v38  ;;  %v8199_v45 = vpack.c.bf16 %v1801_v41, %v1801_v41  ;;  %v1804_v46 = vmax.f32 %v1800_v42, 0.0  ;;  %v1798_v39 = vadd.f32 %v1785_v4, %v1773_v43 }
 0x47e   : >> { %1826 = vst.msk [vmem:[%s1824_s21] sm:$0xf] %vm1825_vm9, %v8199_v45  ;;  %v8202_v47 = vpack.c.bf16 %v1804_v46, %v1804_v46  ;;  %v1802_v48 = vmax.f32 %v1798_v39, 0.0  ;;  %1307 = sbr.rel (!%p1305_p6) target bundleno = 765 (0x2fd), region = 240 }
 0x480   : >> { %1829 = vst.msk [vmem:[%s1824_s21 + $0xc] sm:$0xf] %vm1825_vm9, %v8202_v47  ;;  %v8200_v55 = vpack.c.bf16 %v1802_v48, %v1802_v48 }
 0x482   : >> { %1827 = vst.msk [vmem:[%s1824_s21 + $0x4] sm:$0xf] %vm1825_vm9, %v8200_v55 }
 0x483 LB: >> { %v1934_v49 = vand.u32 %v1830_v56, %v9670_v58  ;;  %s7711_s23 = sshll.u32 %s9161_s22, 6  ;;  %v9195_v62 = vmov 1.0|1.0   ;;  %vm1922_vm10 = vcmask 826368   ;;  %vm2005_vm11 = vcmask 412672   ;;  %s9161_s22 = sphi %s9808_s22, %s1836_s22  }
 0x484   : >> { %s1838_s16 = sshra.s32 %s7711_s23, 3  ;;  %s8204_s24 = sadd.s32 32, %s7711_s23 }
 0x485   : >> { %8573 = vmatprep.subr.bf16.mxu0 %v1934_v49  ;;  %s7712_s25 = sshll.u32 %s1838_s16, 2  ;;  %s1849_s17 = sshra.s32 %s8204_s24, 3 }
 0x486   : >> { %8574 = vmatpush3.bf16.msra.mxu0 %v1934_v49  ;;  %s7715_s19 = sshll.u32 %s1849_s17, 2  ;;  %s1841_s26 = scalar_lea.vmem [#allocation4], %s7712_s25 }
 0x487   : >> { %8575 = vmatprep.subr.msk.bf16.mxu0 %vm9596_vm15, %v9195_v62  ;;  %s8206_s27 = sadd.s32 64, %s7711_s23  ;;  %s1852_s29 = scalar_lea.vmem [#allocation4], %s7715_s19 }
 0x488   : >> { %s1859_s30 = sshra.s32 %s8206_s27, 3  ;;  %s9196_s23 = smov 127  }
 0x489   : >> { %v1844_v63 = vld [vmem:[%s1841_s26 + $0x8] sm:$0xf]  ;;  %v1842_v2 = vld [vmem:[%s1841_s26] sm:$0xf]  ;;  %s7717_s20 = sshll.u32 %s1859_s30, 2  ;;  %s9197_s16 = smov 126  }
 0x48a   : >> { %v1855_v7 = vld [vmem:[%s1852_s29 + $0x8] sm:$0xf]  ;;  %v1853_v59 = vld [vmem:[%s1852_s29] sm:$0xf]  ;;  %8576 = vmatpush3.bf16.msk.msra.mxu0 %vm9596_vm15, %v9195_v62  ;;  %v1845_v61 = vld [vmem:[%s1841_s26 + $0xc] sm:$0xf] }
 0x48b   : >> { %v1869_v51 = vmax.bf16 %v1855_v7, %v1844_v63  ;;  %v1867_v60 = vmax.bf16 %v1853_v59, %v1842_v2  ;;  %v1856_v3 = vld [vmem:[%s1852_s29 + $0xc] sm:$0xf]  ;;  %8577 = vmatprep.subr.msk.bf16.mxu0 %vm9610_vm1, %v9195_v62  ;;  %v1843_v5 = vld [vmem:[%s1841_s26 + $0x4] sm:$0xf]  ;;  %s1862_s21 = scalar_lea.vmem [#allocation4], %s7717_s20  ;;  %s7718_s24 = sshll.u32 %s9161_s22, 5 }
 0x48c   : >> { %v1870_v4 = vmax.bf16 %v1856_v3, %v1845_v61  ;;  %v1854_v6 = vld [vmem:[%s1852_s29 + $0x4] sm:$0xf]  ;;  %v1865_v8 = vld [vmem:[%s1862_s21 + $0x8] sm:$0xf]  ;;  %v1863_v9 = vld [vmem:[%s1862_s21] sm:$0xf] }
 0x48d   : >> { %v1866_v0 = vld [vmem:[%s1862_s21 + $0xc] sm:$0xf]  ;;  %v1868_v1 = vmax.bf16 %v1854_v6, %v1843_v5  ;;  %v1873_v10 = vmax.bf16 %v1869_v51, %v1865_v8  ;;  %v1871_v11 = vmax.bf16 %v1867_v60, %v1863_v9  ;;  %v1864_v12 = vld [vmem:[%s1862_s21 + $0x4] sm:$0xf]  ;;  %s2001_s25 = sshra.s32 %s7718_s24, 3  ;;  %s1836_s22 = sadd.s32 1, %s9161_s22  }
 0x48e   : >> { %8578 = vmatpush3.bf16.msk.msra.mxu0 %vm9610_vm1, %v9195_v62  ;;  %v1874_v13 = vmax.bf16 %v1870_v4, %v1866_v0  ;;  %s7739_s17 = sshll.u32 %s2001_s25, 2  ;;  %p1833_p7 = scmp.ge.s32.totalorder %s1836_s22, 51  }
 0x48f   : >> { %8579 = vmatprep.subr.msk.bf16.mxu0 %vm9624_vm4, %v9195_v62  ;;  %1883 = vrot.lane.b32.xlu1 %v1873_v10, %s9196_s23  ;;  %v1872_v14 = vmax.bf16 %v1868_v1, %v1864_v12  ;;  %s2004_s19 = scalar_lea.vmem [#allocation5], %s7739_s17  ;;  %v9849_v48 = vld [vmem:[%s12280_s6] sm:$0xff] (%p1833_p7)  ;;  %v9854_v55 = vld [vmem:[%s12280_s6 + $0x8] sm:$0xff] (%p1833_p7)  ;;  %v9859_v49 = vld [vmem:[%s12280_s6 + $0x10] sm:$0xff] (%p1833_p7)  ;;  %s9886_s30 = smov (%p1833_p7), 0  }
 0x490   : >> { %1879 = vrot.lane.b32.xlu0 %v1871_v11, %s9196_s23  ;;  %v9869_v34 = vld [vmem:[%s12280_s6 + $0x20] sm:$0xff] (%p1833_p7)  ;;  %v9874_v44 = vld [vmem:[%s12280_s6 + $0x28] sm:$0xff] (%p1833_p7)  ;;  %v9879_v50 = vld [vmem:[%s12280_s6 + $0x30] sm:$0xff] (%p1833_p7) }
 0x491   : > { %v9884_v52 = vld [vmem:[%s12280_s6 + $0x38] sm:$0xff] (%p1833_p7) }
 0x492   : >> { %8580 = vmatpush3.bf16.msk.msra.mxu0 %vm9624_vm4, %v9195_v62 }
 0x493   : >> { %8581 = vmatprep.subr.msk.bf16.mxu0 %vm9638_vm5, %v9195_v62  ;;  %1885 = vrot.lane.b32.xlu1 %v1874_v13, %s9196_s23 }
 0x494   : >> { %1881 = vrot.lane.b32.xlu0 %v1872_v14, %s9196_s23 }
 0x496   : >> { %8582 = vmatpush3.bf16.msk.msra.mxu0 %vm9638_vm5, %v9195_v62 }
 0x497   : >> { %8583 = vmatprep.subr.msk.bf16.mxu0 %vm9652_vm6, %v9195_v62  ;;  %1897 = vrot.lane.b32.xlu1 %v1872_v14, %s9197_s16 }
 0x498   : >> { %1895 = vrot.lane.b32.xlu0 %v1871_v11, %s9197_s16 }
 0x49a   : >> { %8584 = vmatpush3.bf16.msk.msra.mxu0 %vm9652_vm6, %v9195_v62 }
 0x49b   : >> { %8585 = vmatprep.subr.msk.bf16.mxu0 %vm9666_vm14, %v9195_v62  ;;  %1901 = vrot.lane.b32.xlu1 %v1874_v13, %s9197_s16 }
 0x49c   : >> { %1899 = vrot.lane.b32.xlu0 %v1873_v10, %s9197_s16 }
 0x49e   : >> { %8586 = vmatpush3.bf16.msk.msra.mxu0 %vm9666_vm14, %v9195_v62  ;;  %v9864_v62 = vld [vmem:[%s12280_s6 + $0x18] sm:$0xff] (%p1833_p7) }
 0x501   : >> { %v1884_v15 = vpop.permute.xlu1 %1883 }
 0x502   : >> { %v1880_v16 = vpop.permute.xlu0 %1879  ;;  %v1893_v25 = vmax.bf16 %v1884_v15, %v1873_v10 }
 0x503   : >> { %v1891_v19 = vmax.bf16 %v1880_v16, %v1871_v11 }
 0x505   : >> { %v1886_v17 = vpop.permute.xlu1 %1885 }
 0x506   : >> { %v1882_v18 = vpop.permute.xlu0 %1881  ;;  %v1894_v26 = vmax.bf16 %v1886_v17, %v1874_v13 }
 0x507   : >> { %v1892_v20 = vmax.bf16 %v1882_v18, %v1872_v14 }
 0x509   : >> { %v1898_v21 = vpop.permute.xlu1 %1897 }
 0x50a   : >> { %v1896_v22 = vpop.permute.xlu0 %1895  ;;  %v1908_v23 = vmax.bf16 %v1898_v21, %v1892_v20 }
 0x50b   : >> { %v1907_v24 = vmax.bf16 %v1896_v22, %v1891_v19 }
 0x50d   : >> { %v7719_v27 = vcombine.low %v1907_v24, %v1908_v23  ;;  %v1902_v28 = vpop.permute.xlu1 %1901 }
 0x50e   : >> { %v1900_v35 = vpop.permute.xlu0 %1899  ;;  %v1910_v37 = vmax.bf16 %v1902_v28, %v1894_v26 }
 0x50f   : >> { %v1909_v29 = vmax.bf16 %v1900_v35, %v1893_v25  ;;  %8587 = vmatprep.mubr.msk.bf16.mxu0 %vm1922_vm10, %v7719_v27 }
 0x511   : >> { %v7720_v40 = vcombine.low %v1909_v29, %v1910_v37 }
 0x513   : >> { %8588 = vmatmul.mubr.msk.bf16.vlgmr.msra.gmra.mxu0 %vm1922_vm10, %v7720_v40 }
 0x5d3   : >> { %v8589_v38 = vpop.f32.mrf.mxu0 }
 0x5d4   : >> { %v8209_v41 = vpack.c.bf16 %v8589_v38, %v8589_v38 }
 0x5d5   : >> { %v1970_v42 = vpop.f32.mrf.mxu0 }
 0x5d6   : >> { %2008 = vst.msk [vmem:[%s2004_s19 + $0x8] sm:$0xf] %vm2005_vm11, %v8209_v41  ;;  %v8207_v43 = vpack.c.bf16 %v1970_v42, %v1970_v42 }
 0x5d7   : >> { %v8590_v45 = vpop.f32.mrf.mxu0 }
 0x5d8   : >> { %2006 = vst.msk [vmem:[%s2004_s19] sm:$0xf] %vm2005_vm11, %v8207_v43  ;;  %v8210_v46 = vpack.c.bf16 %v8590_v45, %v8590_v45  ;;  %1835 = sbr.rel (!%p1833_p7) target bundleno = 1155 (0x483), region = 251 }
 0x5d9   : >> { %v1973_v39 = vpop.f32.mrf.mxu0 }
 0x5da   : >> { %2009 = vst.msk [vmem:[%s2004_s19 + $0xc] sm:$0xf] %vm2005_vm11, %v8210_v46  ;;  %v8208_v47 = vpack.c.bf16 %v1973_v39, %v1973_v39 }
 0x5dc   : >> { %2007 = vst.msk [vmem:[%s2004_s19 + $0x4] sm:$0xf] %vm2005_vm11, %v8208_v47 }
 0x5dd LB: >> { %v9198_v53 = vmov 0   ;;  %s7740_s20 = sshll.u32 %s9165_s30, 5  ;;  %s9199_s22 = smov 127   ;;  %vm2182_vm1 = vcmask 261120   ;;  %v8901_v61 = vld [vmem:[%s12279_s5 + $0x4] ss:$8 sps:$4 sm:$0xff]   ;;  %s9165_s30 = sphi %s9886_s30, %s2023_s30  }
 0x5de   : >> { %2318 = vmatprep.subr.bf16.mxu1 %v9198_v53  ;;  %2195 = vmatprep.subr.bf16.mxu0 %v9198_v53  ;;  %s2025_s21 = sshra.s32 %s7740_s20, 3  ;;  %s9200_s17 = smov 126   ;;  %v8907_v5 = vld [vmem:[%s12279_s5 + $0x44] ss:$8 sps:$4 sm:$0xff]   ;;  %v8899_v6 = vld [vmem:[%s12279_s5] ss:$8 sps:$4 sm:$0xff]  }
 0x5df   : >> { %8888 = vset.pattern.permute.xlu1 %v9198_v53  ;;  %8887 = vset.pattern.permute.xlu0 %v9198_v53  ;;  %s7741_s23 = sshll.u32 %s2025_s21, 2  ;;  %s9201_s19 = smov 125   ;;  %v8902_v8 = vld [vmem:[%s12279_s5 + $0x14] ss:$8 sps:$4 sm:$0xff]   ;;  %v8904_v9 = vld [vmem:[%s12279_s5 + $0x10] ss:$8 sps:$4 sm:$0xff]  }
 0x5e0   : >> { %s2028_s16 = scalar_lea.vmem [#allocation5], %s7741_s23  ;;  %7780 = vmatprep.mubr.msk.bf16.mxu1 %vm2182_vm1, %v8901_v61  ;;  %7768 = vmatprep.mubr.msk.bf16.mxu0 %vm2182_vm1, %v8907_v5  ;;  %v8908_v0 = vld [vmem:[%s12279_s5 + $0x24] ss:$8 sps:$4 sm:$0xff]   ;;  %v8910_v1 = vld [vmem:[%s12279_s5 + $0x20] ss:$8 sps:$4 sm:$0xff]   ;;  %vm2956_vm5 = vcmask 379904  }
 0x5e1   : >> { %v8914_v10 = vld [vmem:[%s12279_s5 + $0x34] ss:$8 sps:$4 sm:$0xff]   ;;  %v8916_v11 = vld [vmem:[%s12279_s5 + $0x30] ss:$8 sps:$4 sm:$0xff]   ;;  %v8922_v12 = vld [vmem:[%s12279_s5 + $0xc4] ss:$8 sps:$4 sm:$0xff]  }
 0x5e2   : >> { %v8905_v40 = vld [vmem:[%s12279_s5 + $0x40] ss:$8 sps:$4 sm:$0xff]   ;;  %v8911_v41 = vld [vmem:[%s12279_s5 + $0x54] ss:$8 sps:$4 sm:$0xff]   ;;  %v8913_v46 = vld [vmem:[%s12279_s5 + $0x50] ss:$8 sps:$4 sm:$0xff]  }
 0x5e3   : >> { %v9896_v58 = vld [vmem:[%s2028_s16 + $0x38] sm:$0xff]   ;;  %v9898_v56 = vld [vmem:[%s2028_s16 + $0x28] sm:$0xff]   ;;  %v9901_v63 = vld [vmem:[%s2028_s16 + $0x30] sm:$0xff]  }
 0x5e4   : >> { %2166 = vrot.lane.b32.xlu0 %v9896_v58, %s9199_s22  ;;  %2319 = vmatpush1.bf16.msra.mxu1 %v9896_v58  ;;  %v9905_v2 = vld [vmem:[%s2028_s16 + $0x20] sm:$0xff]   ;;  %v9909_v7 = vld [vmem:[%s2028_s16 + $0x18] sm:$0xff]   ;;  %v9913_v59 = vld [vmem:[%s2028_s16 + $0x10] sm:$0xff]  }
 0x5e5   : >> { %2162 = vrot.lane.b32.xlu1 %v9898_v56, %s9199_s22  ;;  %2320 = vmatprep.subr.bf16.mxu1 %v9198_v53  ;;  %v9916_v51 = vld [vmem:[%s2028_s16 + $0x8] sm:$0xff]   ;;  %v9919_v60 = vld [vmem:[%s2028_s16] sm:$0xff]   ;;  %v8925_v5 = vld [vmem:[%s12279_s5 + $0x70] ss:$8 sps:$4 sm:$0xff]  }
 0x5e6   : >> { %v9927_v3 = vld [vmem:[%s2028_s16 + $0x48] sm:$0xff]   ;;  %v9930_v4 = vld [vmem:[%s2028_s16 + $0x40] sm:$0xff]   ;;  %s9202_s16 = smov 124  }
 0x5e7   : >> { %v8917_v47 = vld [vmem:[%s12279_s5 + $0x64] ss:$8 sps:$4 sm:$0xff]   ;;  %v8920_v61 = vld [vmem:[%s12279_s5 + $0xc0] ss:$8 sps:$4 sm:$0xff]  }
 0x5e8   : >> { %2164 = vrot.lane.b32.xlu0 %v9901_v63, %s9199_s22  ;;  %2321 = vmatpush1.bf16.msra.mxu1 %v9901_v63 }
 0x5e9   : >> { %2160 = vrot.lane.b32.xlu1 %v9905_v2, %s9199_s22  ;;  %2322 = vmatprep.subr.bf16.mxu1 %v9198_v53 }
 0x5ec   : >> { %2158 = vrot.lane.b32.xlu0 %v9909_v7, %s9199_s22  ;;  %2323 = vmatpush1.bf16.msra.mxu1 %v9898_v56 }
 0x5ed   : >> { %2156 = vrot.lane.b32.xlu1 %v9913_v59, %s9199_s22  ;;  %2324 = vmatprep.subr.bf16.mxu1 %v9198_v53 }
 0x5f0   : >> { %2154 = vrot.lane.b32.xlu0 %v9916_v51, %s9199_s22  ;;  %2325 = vmatpush1.bf16.msra.mxu1 %v9905_v2 }
 0x5f1   : >> { %2152 = vrot.lane.b32.xlu1 %v9919_v60, %s9199_s22  ;;  %2326 = vmatprep.subr.bf16.mxu1 %v9198_v53 }
 0x5f4   : >> { %2170 = vrot.lane.b32.xlu0 %v9927_v3, %s9199_s22  ;;  %2327 = vmatpush1.bf16.msra.mxu1 %v9909_v7 }
 0x5f5   : >> { %2168 = vrot.lane.b32.xlu1 %v9930_v4, %s9199_s22  ;;  %2328 = vmatprep.subr.bf16.mxu1 %v9198_v53 }
 0x5f8   : >> { %2442 = vrot.lane.b32.xlu0 %v9896_v58, %s9200_s17  ;;  %2329 = vmatpush1.bf16.msra.mxu1 %v9913_v59 }
 0x5f9   : >> { %2602 = vrot.lane.b32.xlu1 %v9896_v58, %s9201_s19  ;;  %2330 = vmatprep.subr.bf16.mxu1 %v9198_v53 }
 0x5fc   : >> { %2440 = vrot.lane.b32.xlu0 %v9901_v63, %s9200_s17  ;;  %2331 = vmatpush1.bf16.msra.mxu1 %v9916_v51 }
 0x5fd   : >> { %2600 = vrot.lane.b32.xlu1 %v9901_v63, %s9201_s19  ;;  %2332 = vmatprep.subr.bf16.mxu1 %v9198_v53 }
 0x600   : >> { %2438 = vrot.lane.b32.xlu0 %v9898_v56, %s9200_s17  ;;  %2333 = vmatpush1.bf16.msra.mxu1 %v9919_v60 }
 0x601   : >> { %2598 = vrot.lane.b32.xlu1 %v9898_v56, %s9201_s19  ;;  %2346 = vmatprep.subr.bf16.mxu1 %v9198_v53 }
 0x604   : >> { %2436 = vrot.lane.b32.xlu0 %v9905_v2, %s9200_s17  ;;  %2347 = vmatpush2.bf16.msra.mxu1 %v9927_v3 }
 0x605   : >> { %2596 = vrot.lane.b32.xlu1 %v9905_v2, %s9201_s19  ;;  %2348 = vmatprep.subr.bf16.mxu1 %v9198_v53 }
 0x608   : >> { %2434 = vrot.lane.b32.xlu0 %v9909_v7, %s9200_s17  ;;  %2349 = vmatpush2.bf16.msra.mxu1 %v9930_v4 }
 0x609   : >> { %2594 = vrot.lane.b32.xlu1 %v9909_v7, %s9201_s19  ;;  %2630 = vmatprep.subr.bf16.mxu1 %v9198_v53 }
 0x60b   : >> { %2351 = vmatmul.mubr.bf16.vlgmr.msra.gmra.mxu1 %v8899_v6  ;;  %v8931_v6 = vld [vmem:[%s12279_s5 + $0x84] ss:$8 sps:$4 sm:$0xff]  }
 0x60c   : >> { %2432 = vrot.lane.b32.xlu0 %v9913_v59, %s9200_s17  ;;  %7781 = vmatprep.mubr.msk.bf16.mxu1 %vm2182_vm1, %v8902_v8 }
 0x60d   : >> { %2592 = vrot.lane.b32.xlu1 %v9913_v59, %s9201_s19 }
 0x610   : >> { %2430 = vrot.lane.b32.xlu0 %v9916_v51, %s9200_s17 }
 0x611   : >> { %2590 = vrot.lane.b32.xlu1 %v9916_v51, %s9201_s19 }
 0x613   : >> { %2359 = vmatmul.mubr.bf16.gmra.mxu1 %v8904_v9  ;;  %v8928_v9 = vld [vmem:[%s12279_s5 + $0xd0] ss:$8 sps:$4 sm:$0xff]  }
 0x614   : >> { %2428 = vrot.lane.b32.xlu0 %v9919_v60, %s9200_s17  ;;  %7782 = vmatprep.mubr.msk.bf16.mxu1 %vm2182_vm1, %v8908_v0 }
 0x615   : >> { %2588 = vrot.lane.b32.xlu1 %v9919_v60, %s9201_s19 }
 0x618   : >> { %2446 = vrot.lane.b32.xlu0 %v9927_v3, %s9200_s17 }
 0x619   : >> { %2606 = vrot.lane.b32.xlu1 %v9927_v3, %s9201_s19 }
 0x61b   : >> { %2367 = vmatmul.mubr.bf16.gmra.mxu1 %v8910_v1  ;;  %v8932_v1 = vld [vmem:[%s12279_s5 + $0xe4] ss:$8 sps:$4 sm:$0xff]  }
 0x61c   : >> { %2444 = vrot.lane.b32.xlu0 %v9930_v4, %s9200_s17  ;;  %7783 = vmatprep.mubr.msk.bf16.mxu1 %vm2182_vm1, %v8914_v10  ;;  %s7844_s17 = sshll.u32 %s9165_s30, 6  ;;  %s2023_s30 = sadd.s32 1, %s9165_s30  }
 0x61d   : >> { %2604 = vrot.lane.b32.xlu1 %v9930_v4, %s9201_s19  ;;  %s2952_s19 = sshra.s32 %s7844_s17, 3  ;;  %p2020_p8 = scmp.ge.s32.totalorder %s2023_s30, 47  }
 0x61e   : >> { %s7853_s25 = sshll.u32 %s2952_s19, 2  ;;  %s10277_s27 = smov (%p2020_p8), 0  }
 0x61f   : >> { %s10236_s26 = scalar_lea.vmem [#allocation6], %s7853_s25 }
 0x620   : >> { %2762 = vrot.lane.b32.xlu0 %v9896_v58, %s9202_s16 }
 0x621   : >> { %2760 = vrot.lane.b32.xlu1 %v9901_v63, %s9202_s16 }
 0x623   : >> { %2375 = vmatmul.mubr.bf16.gmra.mxu1 %v8916_v11  ;;  %v8934_v11 = vld [vmem:[%s12279_s5 + $0xe0] ss:$8 sps:$4 sm:$0xff]  }
 0x624   : >> { %2758 = vrot.lane.b32.xlu0 %v9898_v56, %s9202_s16  ;;  %7820 = vmatprep.mubr.msk.bf16.mxu1 %vm2182_vm1, %v8922_v12 }
 0x625   : >> { %2756 = vrot.lane.b32.xlu1 %v9905_v2, %s9202_s16  ;;  %v8919_v2 = vld [vmem:[%s12279_s5 + $0x60] ss:$8 sps:$4 sm:$0xff]  }
 0x628   : >> { %2754 = vrot.lane.b32.xlu0 %v9909_v7, %s9202_s16 }
 0x629   : >> { %2752 = vrot.lane.b32.xlu1 %v9913_v59, %s9202_s16  ;;  %v8923_v59 = vld [vmem:[%s12279_s5 + $0x74] ss:$8 sps:$4 sm:$0xff]  }
 0x62c   : >> { %2750 = vrot.lane.b32.xlu0 %v9916_v51, %s9202_s16 }
 0x62d   : >> { %2748 = vrot.lane.b32.xlu1 %v9919_v60, %s9202_s16 }
 0x630   : >> { %2766 = vrot.lane.b32.xlu0 %v9927_v3, %s9202_s16  ;;  %v8926_v3 = vld [vmem:[%s12279_s5 + $0xd4] ss:$8 sps:$4 sm:$0xff]  }
 0x631   : >> { %2764 = vrot.lane.b32.xlu1 %v9930_v4, %s9202_s16 }
 0x634   : >> { %2866 = vperm.xlu0 %8887, %v9849_v48  }
 0x635   : >> { %2871 = vperm.xlu1 %8888, %v9854_v55  }
 0x638   : >> { %2881 = vperm.xlu0 %8887, %v9864_v62  }
 0x639   : >> { %2876 = vperm.xlu1 %8888, %v9859_v49  }
 0x63c   : >> { %2891 = vperm.xlu0 %8887, %v9874_v44  }
 0x63d   : >> { %2886 = vperm.xlu1 %8888, %v9869_v34  }
 0x640   : >> { %2901 = vperm.xlu0 %8887, %v9884_v52  }
 0x641   : >> { %2896 = vperm.xlu1 %8888, %v9879_v50  }
 0x656   : >> { %v2167_v13 = vpop.permute.xlu0 %2166 }
 0x657   : >> { %v2163_v14 = vpop.permute.xlu1 %2162  ;;  %2196 = vmatpush1.bf16.msra.mxu0 %v2167_v13  ;;  %v8938_v13 = vld [vmem:[%s12279_s5 + $0xf4] ss:$8 sps:$4 sm:$0xff]  }
 0x658   : >> { %2197 = vmatprep.subr.bf16.mxu0 %v9198_v53 }
 0x65a   : >> { %v2165_v15 = vpop.permute.xlu0 %2164 }
 0x65b   : >> { %v2161_v16 = vpop.permute.xlu1 %2160  ;;  %2198 = vmatpush1.bf16.msra.mxu0 %v2165_v15  ;;  %v8935_v15 = vld [vmem:[%s12279_s5 + $0x94] ss:$8 sps:$4 sm:$0xff]  }
 0x65c   : >> { %2199 = vmatprep.subr.bf16.mxu0 %v9198_v53 }
 0x65e   : >> { %v2159_v17 = vpop.permute.xlu0 %2158 }
 0x65f   : >> { %v2157_v18 = vpop.permute.xlu1 %2156  ;;  %2200 = vmatpush1.bf16.msra.mxu0 %v2163_v14  ;;  %v8929_v14 = vld [vmem:[%s12279_s5 + $0x80] ss:$8 sps:$4 sm:$0xff]  }
 0x660   : >> { %2201 = vmatprep.subr.bf16.mxu0 %v9198_v53 }
 0x662   : >> { %v2155_v19 = vpop.permute.xlu0 %2154 }
 0x663   : >> { %v2153_v20 = vpop.permute.xlu1 %2152  ;;  %2202 = vmatpush1.bf16.msra.mxu0 %v2161_v16 }
 0x664   : >> { %2203 = vmatprep.subr.bf16.mxu0 %v9198_v53 }
 0x666   : >> { %v2171_v21 = vpop.permute.xlu0 %2170 }
 0x667   : >> { %v2169_v22 = vpop.permute.xlu1 %2168  ;;  %2204 = vmatpush1.bf16.msra.mxu0 %v2159_v17  ;;  %v8940_v17 = vld [vmem:[%s12279_s5 + $0xf0] ss:$8 sps:$4 sm:$0xff]  }
 0x668   : >> { %2205 = vmatprep.subr.bf16.mxu0 %v9198_v53 }
 0x66a   : >> { %v2443_v23 = vpop.permute.xlu0 %2442 }
 0x66b   : >> { %v2603_v24 = vpop.permute.xlu1 %2602  ;;  %2206 = vmatpush1.bf16.msra.mxu0 %v2157_v18 }
 0x66c   : >> { %2631 = vmatpush1.bf16.msra.mxu1 %v2603_v24  ;;  %2207 = vmatprep.subr.bf16.mxu0 %v9198_v53  ;;  %v8943_v24 = vld [vmem:[%s12279_s5 + $0xa0] ss:$8 sps:$4 sm:$0xff]  }
 0x66d   : >> { %2632 = vmatprep.subr.bf16.mxu1 %v9198_v53 }
 0x66e   : >> { %v2441_v25 = vpop.permute.xlu0 %2440 }
 0x66f   : >> { %v2601_v26 = vpop.permute.xlu1 %2600  ;;  %2208 = vmatpush1.bf16.msra.mxu0 %v2155_v19  ;;  %v8946_v19 = vld [vmem:[%s12279_s5 + $0x124] ss:$8 sps:$4 sm:$0xff]  }
 0x670   : >> { %2633 = vmatpush1.bf16.msra.mxu1 %v2601_v26  ;;  %2209 = vmatprep.subr.bf16.mxu0 %v9198_v53 }
 0x671   : >> { %2634 = vmatprep.subr.bf16.mxu1 %v9198_v53 }
 0x672   : >> { %v2439_v27 = vpop.permute.xlu0 %2438 }
 0x673   : >> { %v2599_v28 = vpop.permute.xlu1 %2598  ;;  %2210 = vmatpush1.bf16.msra.mxu0 %v2153_v20  ;;  %v8937_v20 = vld [vmem:[%s12279_s5 + $0x90] ss:$8 sps:$4 sm:$0xff]  }
 0x674   : >> { %2635 = vmatpush1.bf16.msra.mxu1 %v2599_v28  ;;  %2223 = vmatprep.subr.bf16.mxu0 %v9198_v53  ;;  %v8950_v28 = vld [vmem:[%s12279_s5 + $0x134] ss:$8 sps:$4 sm:$0xff]  }
 0x675   : >> { %2636 = vmatprep.subr.bf16.mxu1 %v9198_v53 }
 0x676   : >> { %v2437_v35 = vpop.permute.xlu0 %2436 }
 0x677   : >> { %v2597_v37 = vpop.permute.xlu1 %2596  ;;  %2224 = vmatpush2.bf16.msra.mxu0 %v2171_v21  ;;  %v8941_v21 = vld [vmem:[%s12279_s5 + $0xa4] ss:$8 sps:$4 sm:$0xff]  }
 0x678   : >> { %2637 = vmatpush1.bf16.msra.mxu1 %v2597_v37  ;;  %2225 = vmatprep.subr.bf16.mxu0 %v9198_v53  ;;  %v8955_v37 = vld [vmem:[%s12279_s5 + $0x104] ss:$8 sps:$4 sm:$0xff]  }
 0x679   : >> { %2638 = vmatprep.subr.bf16.mxu1 %v9198_v53 }
 0x67a   : >> { %v2435_v29 = vpop.permute.xlu0 %2434 }
 0x67b   : >> { %v2595_v38 = vpop.permute.xlu1 %2594  ;;  %2226 = vmatpush2.bf16.msra.mxu0 %v2169_v22 }
 0x67c   : >> { %2639 = vmatpush1.bf16.msra.mxu1 %v2595_v38  ;;  %2470 = vmatprep.subr.bf16.mxu0 %v9198_v53  ;;  %v8956_v38 = vld [vmem:[%s12279_s5 + $0x114] ss:$8 sps:$4 sm:$0xff]  }
 0x67d   : >> { %2640 = vmatprep.subr.bf16.mxu1 %v9198_v53 }
 0x67e   : >> { %v2433_v42 = vpop.permute.xlu0 %2432  ;;  %2228 = vmatmul.mubr.bf16.vlgmr.msra.gmra.mxu0 %v8905_v40  ;;  %v8953_v40 = vld [vmem:[%s12279_s5 + $0x100] ss:$8 sps:$4 sm:$0xff]  }
 0x67f   : >> { %v2593_v43 = vpop.permute.xlu1 %2592  ;;  %2471 = vmatpush1.bf16.msra.mxu0 %v2443_v23  ;;  %7769 = vmatprep.mubr.msk.bf16.mxu0 %vm2182_vm1, %v8911_v41 }
 0x680   : >> { %2641 = vmatpush1.bf16.msra.mxu1 %v2593_v43  ;;  %2472 = vmatprep.subr.bf16.mxu0 %v9198_v53 }
 0x681   : >> { %2642 = vmatprep.subr.bf16.mxu1 %v9198_v53 }
 0x682   : >> { %v2431_v45 = vpop.permute.xlu0 %2430 }
 0x683   : >> { %v2591_v39 = vpop.permute.xlu1 %2590  ;;  %2473 = vmatpush1.bf16.msra.mxu0 %v2441_v25  ;;  %v8947_v25 = vld [vmem:[%s12279_s5 + $0xb4] ss:$8 sps:$4 sm:$0xff]  }
 0x684   : >> { %2643 = vmatpush1.bf16.msra.mxu1 %v2591_v39  ;;  %2474 = vmatprep.subr.bf16.mxu0 %v9198_v53 }
 0x685   : >> { %2644 = vmatprep.subr.bf16.mxu1 %v9198_v53 }
 0x686   : >> { %v2429_v58 = vpop.permute.xlu0 %2428  ;;  %2236 = vmatmul.mubr.bf16.gmra.mxu0 %v8913_v46 }
 0x687   : >> { %v2589_v56 = vpop.permute.xlu1 %2588  ;;  %2475 = vmatpush1.bf16.msra.mxu0 %v2439_v27  ;;  %7770 = vmatprep.mubr.msk.bf16.mxu0 %vm2182_vm1, %v8917_v47  ;;  %v8944_v27 = vld [vmem:[%s12279_s5 + $0x120] ss:$8 sps:$4 sm:$0xff]  }
 0x688   : >> { %2645 = vmatpush1.bf16.msra.mxu1 %v2589_v56  ;;  %2476 = vmatprep.subr.bf16.mxu0 %v9198_v53 }
 0x689   : >> { %2658 = vmatprep.subr.bf16.mxu1 %v9198_v53 }
 0x68a   : >> { %v2447_v63 = vpop.permute.xlu0 %2446 }
 0x68b   : >> { %v2607_v7 = vpop.permute.xlu1 %2606  ;;  %2477 = vmatpush1.bf16.msra.mxu0 %v2437_v35  ;;  %v8949_v35 = vld [vmem:[%s12279_s5 + $0xb0] ss:$8 sps:$4 sm:$0xff]  }
 0x68c   : >> { %2659 = vmatpush2.bf16.msra.mxu1 %v2607_v7  ;;  %2478 = vmatprep.subr.bf16.mxu0 %v9198_v53 }
 0x68d   : >> { %2660 = vmatprep.subr.bf16.mxu1 %v9198_v53 }
 0x68e   : >> { %v2445_v51 = vpop.permute.xlu0 %2444  ;;  %2244 = vmatmul.mubr.bf16.gmra.mxu0 %v8919_v2 }
 0x68f   : >> { %v2605_v60 = vpop.permute.xlu1 %2604  ;;  %2479 = vmatpush1.bf16.msra.mxu0 %v2435_v29  ;;  %7771 = vmatprep.mubr.msk.bf16.mxu0 %vm2182_vm1, %v8923_v59  ;;  %v8952_v29 = vld [vmem:[%s12279_s5 + $0x130] ss:$8 sps:$4 sm:$0xff]  }
 0x690   : >> { %2661 = vmatpush2.bf16.msra.mxu1 %v2605_v60  ;;  %2480 = vmatprep.subr.bf16.mxu0 %v9198_v53 }
 0x691   : >> { %8706 = vmatprep.subr.bf16.mxu1 %v9198_v53 }
 0x692   : >> { %v2763_v4 = vpop.permute.xlu0 %2762 }
 0x693   : >> { %2481 = vmatpush1.bf16.msra.mxu0 %v2433_v42  ;;  %2663 = vmatmul.mubr.bf16.vlgmr.msra.gmra.mxu1 %v8920_v61  ;;  %v2761_v8 = vpop.permute.xlu1 %2760 }
 0x694   : >> { %8716 = vmatpush1.bf16.msra.mxu1 %v2763_v4  ;;  %2482 = vmatprep.subr.bf16.mxu0 %v9198_v53 }
 0x695   : >> { %8707 = vmatprep.subr.bf16.mxu1 %v9198_v53  ;;  %7821 = vmatprep.mubr.msk.bf16.mxu1 %vm2182_vm1, %v8926_v3 }
 0x696   : >> { %2252 = vmatmul.mubr.bf16.gmra.mxu0 %v8925_v5  ;;  %v2759_v0 = vpop.permute.xlu0 %2758 }
 0x697   : >> { %2483 = vmatpush1.bf16.msra.mxu0 %v2431_v45  ;;  %7800 = vmatprep.mubr.msk.bf16.mxu0 %vm2182_vm1, %v8931_v6  ;;  %v2757_v10 = vpop.permute.xlu1 %2756 }
 0x698   : >> { %8717 = vmatpush1.bf16.msra.mxu1 %v2761_v8  ;;  %2484 = vmatprep.subr.bf16.mxu0 %v9198_v53 }
 0x699   : >> { %8708 = vmatprep.subr.bf16.mxu1 %v9198_v53 }
 0x69a   : >> { %v2755_v12 = vpop.permute.xlu0 %2754 }
 0x69b   : >> { %2485 = vmatpush1.bf16.msra.mxu0 %v2429_v58  ;;  %2671 = vmatmul.mubr.bf16.gmra.mxu1 %v8928_v9  ;;  %v2753_v16 = vpop.permute.xlu1 %2752 }
 0x69c   : >> { %8718 = vmatpush1.bf16.msra.mxu1 %v2759_v0  ;;  %2498 = vmatprep.subr.bf16.mxu0 %v9198_v53 }
 0x69d   : >> { %8709 = vmatprep.subr.bf16.mxu1 %v9198_v53  ;;  %7822 = vmatprep.mubr.msk.bf16.mxu1 %vm2182_vm1, %v8932_v1 }
 0x69e   : >> { %v2751_v18 = vpop.permute.xlu0 %2750 }
 0x69f   : >> { %2499 = vmatpush2.bf16.msra.mxu0 %v2447_v63  ;;  %v2749_v22 = vpop.permute.xlu1 %2748 }
 0x6a0   : >> { %8719 = vmatpush1.bf16.msra.mxu1 %v2757_v10  ;;  %2500 = vmatprep.subr.bf16.mxu0 %v9198_v53 }
 0x6a1   : >> { %8710 = vmatprep.subr.bf16.mxu1 %v9198_v53 }
 0x6a2   : >> { %v2767_v23 = vpop.permute.xlu0 %2766 }
 0x6a3   : >> { %2501 = vmatpush2.bf16.msra.mxu0 %v2445_v51  ;;  %2679 = vmatmul.mubr.bf16.gmra.mxu1 %v8934_v11  ;;  %v2765_v26 = vpop.permute.xlu1 %2764 }
 0x6a4   : >> { %8720 = vmatpush1.bf16.msra.mxu1 %v2755_v12  ;;  %2790 = vmatprep.subr.bf16.mxu0 %v9198_v53 }
 0x6a5   : >> { %8711 = vmatprep.subr.bf16.mxu1 %v9198_v53  ;;  %7823 = vmatprep.mubr.msk.bf16.mxu1 %vm2182_vm1, %v8938_v13 }
 0x6a6   : >> { %2503 = vmatmul.mubr.bf16.vlgmr.msra.gmra.mxu0 %v8929_v14 }
 0x6a7   : >> { %2791 = vmatpush1.bf16.msra.mxu0 %v2763_v4  ;;  %7801 = vmatprep.mubr.msk.bf16.mxu0 %vm2182_vm1, %v8935_v15 }
 0x6a8   : >> { %8721 = vmatpush1.bf16.msra.mxu1 %v2753_v16  ;;  %2792 = vmatprep.subr.bf16.mxu0 %v9198_v53 }
 0x6a9   : >> { %8712 = vmatprep.subr.bf16.mxu1 %v9198_v53 }
 0x6ab   : >> { %2793 = vmatpush1.bf16.msra.mxu0 %v2761_v8  ;;  %2687 = vmatmul.mubr.bf16.gmra.mxu1 %v8940_v17 }
 0x6ac   : >> { %8722 = vmatpush1.bf16.msra.mxu1 %v2751_v18  ;;  %2794 = vmatprep.subr.bf16.mxu0 %v9198_v53 }
 0x6ad   : >> { %8713 = vmatprep.subr.bf16.mxu1 %v9198_v53  ;;  %7842 = vmatprep.mubr.msk.bf16.mxu1 %vm2182_vm1, %v8946_v19 }
 0x6ae   : >> { %2511 = vmatmul.mubr.bf16.gmra.mxu0 %v8937_v20 }
 0x6af   : >> { %2795 = vmatpush1.bf16.msra.mxu0 %v2759_v0  ;;  %7802 = vmatprep.mubr.msk.bf16.mxu0 %vm2182_vm1, %v8941_v21 }
 0x6b0   : >> { %8723 = vmatpush1.bf16.msra.mxu1 %v2749_v22  ;;  %2796 = vmatprep.subr.bf16.mxu0 %v9198_v53 }
 0x6b1   : >> { %8714 = vmatprep.subr.bf16.mxu1 %v9198_v53 }
 0x6b3   : >> { %2797 = vmatpush1.bf16.msra.mxu0 %v2757_v10 }
 0x6b4   : >> { %8724 = vmatpush2.bf16.msra.mxu1 %v2767_v23  ;;  %2798 = vmatprep.subr.bf16.mxu0 %v9198_v53 }
 0x6b5   : >> { %8715 = vmatprep.subr.bf16.mxu1 %v9198_v53 }
 0x6b6   : >> { %2519 = vmatmul.mubr.bf16.gmra.mxu0 %v8943_v24 }
 0x6b7   : >> { %2799 = vmatpush1.bf16.msra.mxu0 %v2755_v12  ;;  %7803 = vmatprep.mubr.msk.bf16.mxu0 %vm2182_vm1, %v8947_v25 }
 0x6b8   : >> { %8725 = vmatpush2.bf16.msra.mxu1 %v2765_v26  ;;  %2800 = vmatprep.subr.bf16.mxu0 %v9198_v53 }
 0x6bb   : >> { %2839 = vmatmul.mubr.bf16.vlgmr.msra.gmra.mxu1 %v8944_v27  ;;  %2801 = vmatpush1.bf16.msra.mxu0 %v2753_v16 }
 0x6bc   : >> { %2802 = vmatprep.subr.bf16.mxu0 %v9198_v53  ;;  %7843 = vmatprep.mubr.msk.bf16.mxu1 %vm2182_vm1, %v8950_v28 }
 0x6be   : >> { %2527 = vmatmul.mubr.bf16.gmra.mxu0 %v8949_v35 }
 0x6bf   : >> { %2803 = vmatpush1.bf16.msra.mxu0 %v2751_v18  ;;  %7840 = vmatprep.mubr.msk.bf16.mxu0 %vm2182_vm1, %v8955_v37 }
 0x6c0   : >> { %2804 = vmatprep.subr.bf16.mxu0 %v9198_v53 }
 0x6c3   : >> { %2847 = vmatmul.mubr.bf16.gmra.mxu1 %v8952_v29  ;;  %2805 = vmatpush1.bf16.msra.mxu0 %v2749_v22 }
 0x6c4   : >> { %2818 = vmatprep.subr.bf16.mxu0 %v9198_v53 }
 0x6c7   : >> { %2819 = vmatpush2.bf16.msra.mxu0 %v2767_v23 }
 0x6c8   : >> { %2820 = vmatprep.subr.bf16.mxu0 %v9198_v53  ;;  %v8958_v53 = vld [vmem:[%s12279_s5 + $0x110] ss:$8 sps:$4 sm:$0xff]  }
 0x6cb   : >> { %2821 = vmatpush2.bf16.msra.mxu0 %v2765_v26  ;;  %v10188_v41 = vpop.f32.mrf.mxu1 }
 0x6cd   : >> { %v2354_v42 = vpop.f32.mrf.mxu1 }
 0x6ce   : >> { %2823 = vmatmul.mubr.bf16.vlgmr.msra.gmra.mxu0 %v8953_v40 }
 0x6cf   : >> { %7841 = vmatprep.mubr.msk.bf16.mxu0 %vm2182_vm1, %v8956_v38  ;;  %v10191_v43 = vpop.f32.mrf.mxu1 }
 0x6d1   : >> { %v2357_v45 = vpop.f32.mrf.mxu1 }
 0x6d3   : >> { %v10196_v46 = vpop.f32.mrf.mxu1 }
 0x6d5   : >> { %v2362_v39 = vpop.f32.mrf.mxu1 }
 0x6d6   : >> { %2831 = vmatmul.mubr.bf16.gmra.mxu0 %v8958_v53  ;;  %v10224_v39 = vpop.permute.xlu1 %2871 }
 0x6d7   : >> { %v10198_v47 = vpop.f32.mrf.mxu1 }
 0x6d9   : >> { %v2365_v58 = vpop.f32.mrf.mxu1 }
 0x6db   : >> { %v2368_v56 = vpop.f32.mrf.mxu1 }
 0x6dd   : >> { %v2370_v63 = vpop.f32.mrf.mxu1 }
 0x6df   : >> { %v2371_v2 = vpop.f32.mrf.mxu1 }
 0x6e1   : >> { %v2373_v7 = vpop.f32.mrf.mxu1 }
 0x6e3   : >> { %v2376_v59 = vpop.f32.mrf.mxu1 }
 0x6e5   : >> { %v2378_v51 = vpop.f32.mrf.mxu1 }
 0x6e7   : >> { %v10200_v60 = vpop.f32.mrf.mxu1 }
 0x6e9   : >> { %v2381_v61 = vpop.f32.mrf.mxu1 }
 0x6ea   : >> { %v10228_v61 = vpop.permute.xlu0 %2866 }
 0x73e   : >> { %v10202_v3 = vpop.f32.mrf.mxu0 }
 0x740   : >> { %v2231_v4 = vpop.f32.mrf.mxu0 }
 0x742   : >> { %v10204_v5 = vpop.f32.mrf.mxu0 }
 0x744   : >> { %v2234_v6 = vpop.f32.mrf.mxu0 }
 0x746   : >> { %v10206_v8 = vpop.f32.mrf.mxu0 }
 0x748   : >> { %v2239_v9 = vpop.f32.mrf.mxu0 }
 0x749   : >> { %v10230_v9 = vpop.permute.xlu1 %2876 }
 0x74a   : >> { %v10208_v0 = vpop.f32.mrf.mxu0 }
 0x74c   : >> { %v2242_v1 = vpop.f32.mrf.mxu0 }
 0x74e   : >> { %v2245_v10 = vpop.f32.mrf.mxu0 }
 0x74f   : >> { %v2369_v6 = vadd.f32 %v2368_v56, %v2245_v10 }
 0x750   : >> { %v2247_v11 = vpop.f32.mrf.mxu0 }
 0x752   : >> { %v2248_v12 = vpop.f32.mrf.mxu0 }
 0x753   : >> { %v10210_v13 = vpop.f32.mrf.mxu1 }
 0x754   : >> { %v2250_v14 = vpop.f32.mrf.mxu0 }
 0x755   : >> { %v2666_v15 = vpop.f32.mrf.mxu1 }
 0x756   : >> { %v2253_v16 = vpop.f32.mrf.mxu0  ;;  %v2372_v15 = vadd.f32 %v2371_v2, %v2248_v12 }
 0x757   : >> { %v10212_v17 = vpop.f32.mrf.mxu1 }
 0x758   : >> { %v2255_v18 = vpop.f32.mrf.mxu0 }
 0x759   : >> { %v2669_v19 = vpop.f32.mrf.mxu1 }
 0x75a   : >> { %v2256_v20 = vpop.f32.mrf.mxu0  ;;  %v10233_v19 = vpop.permute.xlu0 %2881 }
 0x75b   : >> { %v10214_v21 = vpop.f32.mrf.mxu1 }
 0x75c   : >> { %v2258_v22 = vpop.f32.mrf.mxu0 }
 0x75d   : >> { %v2674_v23 = vpop.f32.mrf.mxu1 }
 0x75f   : >> { %v10216_v24 = vpop.f32.mrf.mxu1 }
 0x761   : >> { %v2677_v25 = vpop.f32.mrf.mxu1 }
 0x763   : >> { %v2680_v26 = vpop.f32.mrf.mxu1 }
 0x765   : >> { %v2682_v27 = vpop.f32.mrf.mxu1 }
 0x766   : >> { %v10218_v28 = vpop.f32.mrf.mxu0  ;;  %v2887_v27 = vpop.permute.xlu1 %2886 }
 0x767   : >> { %v2683_v35 = vpop.f32.mrf.mxu1 }
 0x768   : >> { %v2506_v37 = vpop.f32.mrf.mxu0 }
 0x769   : >> { %v2685_v29 = vpop.f32.mrf.mxu1 }
 0x76a   : >> { %v10220_v40 = vpop.f32.mrf.mxu0 }
 0x76b   : >> { %v2688_v38 = vpop.f32.mrf.mxu1 }
 0x76c   : >> { %v2509_v42 = vpop.f32.mrf.mxu0 }
 0x76d   : >> { %v2690_v45 = vpop.f32.mrf.mxu1  ;;  %v2377_v42 = vadd.f32 %v2376_v59, %v2253_v16 }
 0x76e   : >> { %v10222_v53 = vpop.f32.mrf.mxu0 }
 0x76f   : >> { %v2691_v58 = vpop.f32.mrf.mxu1 }
 0x770   : >> { %v2514_v63 = vpop.f32.mrf.mxu0 }
 0x771   : >> { %v2693_v7 = vpop.f32.mrf.mxu1 }
 0x772   : >> { %v10226_v51 = vpop.f32.mrf.mxu0 }
 0x774   : >> { %v2517_v4 = vpop.f32.mrf.mxu0 }
 0x776   : >> { %v2520_v1 = vpop.f32.mrf.mxu0 }
 0x777   : >> { %v2539_v11 = vadd.f32 %v2520_v1, %v2369_v6  ;;  %v2892_v6 = vpop.permute.xlu0 %2891  ;;  %v2380_v1 = vadd.f32 %v10200_v60, %v2256_v20 }
 0x778   : >> { %v2522_v14 = vpop.f32.mrf.mxu0 }
 0x779   : >> { %v2699_v18 = vadd.f32 %v2680_v26, %v2539_v11 }
 0x77a   : >> { %v2523_v22 = vpop.f32.mrf.mxu0 }
 0x77b   : >> { %v2540_v23 = vadd.f32 %v2523_v22, %v2372_v15  ;;  %v2840_v25 = vpop.f32.mrf.mxu1 }
 0x77c   : >> { %v2859_v37 = vadd.f32 %v2840_v25, %v2699_v18  ;;  %v2525_v29 = vpop.f32.mrf.mxu0 }
 0x77d   : >> { %v2842_v45 = vpop.f32.mrf.mxu1  ;;  %v2700_v56 = vadd.f32 %v2683_v35, %v2540_v23  ;;  %v2897_v35 = vpop.permute.xlu1 %2896  ;;  %v2353_v29 = vadd.f32 %v10188_v41, %v10202_v3 }
 0x77e   : >> { %v2908_v10 = vadd.f32 %v2887_v27, %v2859_v37  ;;  %v2528_v63 = vpop.f32.mrf.mxu0  ;;  %v2902_v45 = vpop.permute.xlu0 %2901 }
 0x77f   : >> { %v2541_v7 = vadd.f32 %v2528_v63, %v2377_v42  ;;  %v2843_v4 = vpop.f32.mrf.mxu1  ;;  %v2535_v63 = vadd.f32 %v10218_v28, %v2353_v29 }
 0x780   : >> { %v2916_v2 = vmax.f32 %v2908_v10, 0.0  ;;  %v2860_v12 = vadd.f32 %v2843_v4, %v2700_v56  ;;  %v2530_v26 = vpop.f32.mrf.mxu0 }
 0x781   : >> { %v2845_v11 = vpop.f32.mrf.mxu1  ;;  %v2701_v14 = vadd.f32 %v2688_v38, %v2541_v7  ;;  %v2695_v3 = vadd.f32 %v10210_v13, %v2535_v63  ;;  %v2364_v13 = vadd.f32 %v10198_v47, %v10208_v0 }
 0x782   : >> { %v8215_v15 = vpack.c.bf16 %v2916_v2, %v2916_v2  ;;  %v2909_v18 = vadd.f32 %v2892_v6, %v2860_v12  ;;  %v2531_v22 = vpop.f32.mrf.mxu0 }
 0x783   : >> { %v2542_v59 = vadd.f32 %v2531_v22, %v2380_v1  ;;  %v2848_v16 = vpop.f32.mrf.mxu1  ;;  %v2361_v1 = vadd.f32 %v10196_v46, %v10206_v8  ;;  %v2538_v46 = vadd.f32 %v10226_v51, %v2364_v13 }
 0x784   : >> { %2961 = vst.msk [vmem:[%s10236_s26 + $0x10] sm:$0xf] %vm2956_vm5, %v8215_v15  ;;  %v2917_v23 = vmax.f32 %v2909_v18, 0.0  ;;  %v2861_v25 = vadd.f32 %v2848_v16, %v2701_v14  ;;  %v2533_v27 = vpop.f32.mrf.mxu0 }
 0x785   : >> { %v2850_v60 = vpop.f32.mrf.mxu1  ;;  %v2702_v20 = vadd.f32 %v2691_v58, %v2542_v59  ;;  %v2356_v58 = vadd.f32 %v10191_v43, %v10204_v5  ;;  %v2537_v14 = vadd.f32 %v10222_v53, %v2361_v1 }
 0x786   : >> { %v8216_v37 = vpack.c.bf16 %v2917_v23, %v2917_v23  ;;  %v2910_v38 = vadd.f32 %v2897_v35, %v2861_v25  ;;  %v2698_v23 = vadd.f32 %v10216_v24, %v2538_v46 }
 0x787   : >> { %v2851_v42 = vpop.f32.mrf.mxu1  ;;  %v2536_v41 = vadd.f32 %v10220_v40, %v2356_v58  ;;  %v2697_v16 = vadd.f32 %v10214_v21, %v2537_v14 }
 0x788   : >> { %2962 = vst.msk [vmem:[%s10236_s26 + $0x14] sm:$0xf] %vm2956_vm5, %v8216_v37  ;;  %v2918_v56 = vmax.f32 %v2910_v38, 0.0  ;;  %v2862_v10 = vadd.f32 %v2851_v42, %v2702_v20 }
 0x789   : >> { %v2853_v7 = vpop.f32.mrf.mxu1  ;;  %v2696_v5 = vadd.f32 %v10212_v17, %v2536_v41 }
 0x78a   : >> { %v8217_v4 = vpack.c.bf16 %v2918_v56, %v2918_v56  ;;  %v2911_v6 = vadd.f32 %v2902_v45, %v2862_v10 }
 0x78c   : >> { %2963 = vst.msk [vmem:[%s10236_s26 + $0x18] sm:$0xf] %vm2956_vm5, %v8217_v4  ;;  %v2919_v2 = vmax.f32 %v2911_v6, 0.0 }
 0x78e   : >> { %v8218_v12 = vpack.c.bf16 %v2919_v2, %v2919_v2  ;;  %v2824_v26 = vpop.f32.mrf.mxu0 }
 0x78f   : >> { %v2855_v11 = vadd.f32 %v2824_v26, %v2695_v3 }
 0x790   : >> { %2964 = vst.msk [vmem:[%s10236_s26 + $0x1c] sm:$0xf] %vm2956_vm5, %v8218_v12  ;;  %v2826_v28 = vpop.f32.mrf.mxu0 }
 0x791   : >> { %v2904_v43 = vadd.f32 %v10228_v61, %v2855_v11 }
 0x792   : >> { %v2827_v15 = vpop.f32.mrf.mxu0 }
 0x793   : >> { %v2912_v40 = vmax.f32 %v2904_v43, 0.0  ;;  %v2856_v18 = vadd.f32 %v2827_v15, %v2696_v5 }
 0x794   : >> { %v2829_v22 = vpop.f32.mrf.mxu0 }
 0x795   : >> { %v8211_v8 = vpack.c.bf16 %v2912_v40, %v2912_v40  ;;  %v2905_v59 = vadd.f32 %v10224_v39, %v2856_v18 }
 0x796   : >> { %v2832_v53 = vpop.f32.mrf.mxu0 }
 0x797   : >> { %2957 = vst.msk [vmem:[%s10236_s26] sm:$0xf] %vm2956_vm5, %v8211_v8  ;;  %v2913_v17 = vmax.f32 %v2905_v59, 0.0  ;;  %v2857_v61 = vadd.f32 %v2832_v53, %v2697_v16 }
 0x798   : >> { %v2834_v35 = vpop.f32.mrf.mxu0 }
 0x799   : >> { %v8212_v47 = vpack.c.bf16 %v2913_v17, %v2913_v17  ;;  %v2906_v0 = vadd.f32 %v10230_v9, %v2857_v61 }
 0x79a   : >> { %v2835_v25 = vpop.f32.mrf.mxu0 }
 0x79b   : >> { %2958 = vst.msk [vmem:[%s10236_s26 + $0x4] sm:$0xf] %vm2956_vm5, %v8212_v47  ;;  %v2914_v51 = vmax.f32 %v2906_v0, 0.0  ;;  %v2858_v39 = vadd.f32 %v2835_v25, %v2698_v23 }
 0x79c   : >> { %v2837_v27 = vpop.f32.mrf.mxu0 }
 0x79d   : >> { %v8213_v21 = vpack.c.bf16 %v2914_v51, %v2914_v51  ;;  %v2907_v60 = vadd.f32 %v10233_v19, %v2858_v39 }
 0x79f   : >> { %2959 = vst.msk [vmem:[%s10236_s26 + $0x8] sm:$0xf] %vm2956_vm5, %v8213_v21  ;;  %v2915_v20 = vmax.f32 %v2907_v60, 0.0  ;;  %2022 = sbr.rel (!%p2020_p8) target bundleno = 1501 (0x5dd), region = 262 }
 0x7a1   : >> { %v8214_v37 = vpack.c.bf16 %v2915_v20, %v2915_v20 }
 0x7a3   : >> { %2960 = vst.msk [vmem:[%s10236_s26 + $0xc] sm:$0xf] %vm2956_vm5, %v8214_v37 }
 0x7a4 LB: >> { %s7854_s29 = sshll.u32 %s9169_s27, 7  ;;  %vm3135_vm15 = vcmask 1045504   ;;  %vm3136_vm4 = vcmask 1046528   ;;  %v9204_v15 = vmov 65535   ;;  %v9205_v61 = vmov 1.0|1.0   ;;  %s9169_s27 = sphi %s10277_s27, %s2970_s27  }
 0x7a5   : >> { %s2972_s20 = sshra.s32 %s7854_s29, 3  ;;  %s8220_s21 = sadd.s32 64, %s7854_s29  ;;  %v3137_v13 = vsel %vm3135_vm15, 4294967295, %v9204_v15  ;;  %vm3122_vm2 = vcmask 367616   ;;  %vm3243_vm0 = vcmask 183296  }
 0x7a6   : >> { %s7855_s23 = sshll.u32 %s2972_s20, 2  ;;  %s2987_s16 = sshra.s32 %s8220_s21, 3  ;;  %v3138_v46 = vsel %vm3136_vm4, %v3137_v13, 0 }
 0x7a7   : >> { %s7858_s22 = sshll.u32 %s2987_s16, 2  ;;  %s10283_s24 = scalar_lea.vmem [#allocation6], %s7855_s23  ;;  %v3140_v16 = vand.u32 %v3138_v46, %v1145_v36 }
 0x7a8   : >> { %s8222_s30 = sadd.s32 128, %s7854_s29  ;;  %s10287_s17 = scalar_lea.vmem [#allocation6], %s7858_s22 }
 0x7a9   : >> { %s3001_s19 = sshra.s32 %s8222_s30, 3  ;;  %s9203_s29 = smov 127   ;;  %8591 = vmatprep.subr.bf16.mxu0 %v3140_v16  ;;  %8726 = vmatprep.subr.bf16.mxu1 %v3140_v16 }
 0x7aa   : >> { %v2980_v48 = vld [vmem:[%s10283_s24 + $0x10] sm:$0xf]  ;;  %v2976_v55 = vld [vmem:[%s10283_s24] sm:$0xf]  ;;  %s7860_s25 = sshll.u32 %s3001_s19, 2  ;;  %8592 = vmatpush3.bf16.msra.mxu0 %v3140_v16  ;;  %8729 = vmatpush3.bf16.msra.mxu1 %v3140_v16  ;;  %s9206_s20 = smov 126  }
 0x7ab   : >> { %v2995_v49 = vld [vmem:[%s10287_s17 + $0x10] sm:$0xf]  ;;  %v2991_v62 = vld [vmem:[%s10287_s17] sm:$0xf]  ;;  %v2981_v50 = vld [vmem:[%s10283_s24 + $0x14] sm:$0xf]  ;;  %8593 = vmatprep.subr.msk.bf16.mxu0 %vm9652_vm6, %v9205_v61  ;;  %8727 = vmatprep.subr.msk.bf16.mxu1 %vm9652_vm6, %v9205_v61 }
 0x7ac   : >> { %v3017_v34 = vmax.bf16 %v2995_v49, %v2980_v48  ;;  %v3013_v44 = vmax.bf16 %v2991_v62, %v2976_v55  ;;  %v2996_v52 = vld [vmem:[%s10287_s17 + $0x14] sm:$0xf]  ;;  %v2977_v9 = vld [vmem:[%s10283_s24 + $0x4] sm:$0xf]  ;;  %s10295_s26 = scalar_lea.vmem [#allocation6], %s7860_s25  ;;  %s7861_s21 = sshll.u32 %s9169_s27, 6 }
 0x7ad   : >> { %v3018_v24 = vmax.bf16 %v2996_v52, %v2981_v50  ;;  %v2992_v19 = vld [vmem:[%s10287_s17 + $0x4] sm:$0xf]  ;;  %v3009_v38 = vld [vmem:[%s10295_s26 + $0x10] sm:$0xf]  ;;  %v3005_v29 = vld [vmem:[%s10295_s26] sm:$0xf] }
 0x7ae   : >> { %v3010_v42 = vld [vmem:[%s10295_s26 + $0x14] sm:$0xf]  ;;  %v3014_v45 = vmax.bf16 %v2992_v19, %v2977_v9  ;;  %v10300_v56 = vmax.bf16 %v3017_v34, %v3009_v38  ;;  %v10302_v10 = vmax.bf16 %v3013_v44, %v3005_v29  ;;  %v3006_v63 = vld [vmem:[%s10295_s26 + $0x4] sm:$0xf]  ;;  %v2979_v7 = vld [vmem:[%s10283_s24 + $0xc] sm:$0xf]  ;;  %8594 = vmatpush3.bf16.msk.msra.mxu0 %vm9652_vm6, %v9205_v61  ;;  %8730 = vmatpush3.bf16.msk.msra.mxu1 %vm9652_vm6, %v9205_v61 }
 0x7af   : >> { %v2994_v4 = vld [vmem:[%s10287_s17 + $0xc] sm:$0xf]  ;;  %v2978_v2 = vld [vmem:[%s10283_s24 + $0x8] sm:$0xf]  ;;  %v10314_v3 = vmax.bf16 %v3018_v24, %v3010_v42  ;;  %v2983_v11 = vld [vmem:[%s10283_s24 + $0x1c] sm:$0xf]  ;;  %8595 = vmatprep.subr.msk.bf16.mxu0 %vm9666_vm14, %v9205_v61  ;;  %8728 = vmatprep.subr.msk.bf16.mxu1 %vm9666_vm14, %v9205_v61 }
 0x7b0   : >> { %v3008_v6 = vld [vmem:[%s10295_s26 + $0xc] sm:$0xf]  ;;  %v3016_v58 = vmax.bf16 %v2994_v4, %v2979_v7  ;;  %v2993_v41 = vld [vmem:[%s10287_s17 + $0x8] sm:$0xf]  ;;  %3045 = vrot.lane.b32.xlu1 %v10300_v56, %s9203_s29  ;;  %3037 = vrot.lane.b32.xlu0 %v10302_v10, %s9203_s29  ;;  %v3022_v12 = vmax.bf16 %v3014_v45, %v3006_v63  ;;  %s3239_s23 = sshra.s32 %s7861_s21, 3  ;;  %s2970_s27 = sadd.s32 1, %s9169_s27  }
 0x7b1   : >> { %v3007_v26 = vld [vmem:[%s10295_s26 + $0x8] sm:$0xf]  ;;  %v3015_v1 = vmax.bf16 %v2993_v41, %v2978_v2  ;;  %v2998_v28 = vld [vmem:[%s10287_s17 + $0x1c] sm:$0xf]  ;;  %v2982_v14 = vld [vmem:[%s10283_s24 + $0x18] sm:$0xf] }
 0x7b2   : >> { %v2997_v43 = vld [vmem:[%s10287_s17 + $0x18] sm:$0xf]  ;;  %v10321_v5 = vmax.bf16 %v3016_v58, %v3008_v6  ;;  %v3020_v18 = vmax.bf16 %v2998_v28, %v2983_v11  ;;  %v3012_v8 = vld [vmem:[%s10295_s26 + $0x1c] sm:$0xf]  ;;  %8596 = vmatpush3.bf16.msk.msra.mxu0 %vm9666_vm14, %v9205_v61  ;;  %8731 = vmatpush3.bf16.msk.msra.mxu1 %vm9666_vm14, %v9205_v61  ;;  %s7882_s16 = sshll.u32 %s3239_s23, 2  ;;  %p2967_p9 = scmp.ge.s32.totalorder %s2970_s27, 23  }
 0x7b3   : >> { %v10326_v40 = vmax.bf16 %v3015_v1, %v3007_v26  ;;  %v3019_v22 = vmax.bf16 %v2997_v43, %v2982_v14  ;;  %v3011_v59 = vld [vmem:[%s10295_s26 + $0x18] sm:$0xf]  ;;  %s3242_s22 = scalar_lea.vmem [#allocation7], %s7882_s16  ;;  %v10389_v16 = vld [vmem:[%s12282_s8 + $0x8] sm:$0xff] (%p2967_p9)  ;;  %s10401_s27 = smov (%p2967_p9), 0  }
 0x7b4   : >> { %3047 = vrot.lane.b32.xlu1 %v10314_v3, %s9203_s29  ;;  %3039 = vrot.lane.b32.xlu0 %v3022_v12, %s9203_s29  ;;  %v3028_v53 = vmax.bf16 %v3020_v18, %v3012_v8  ;;  %12360 = vst [vmem:[#allocation14_spill] sm:$0xff] (%p2967_p9), %v10389_v16 }
 0x7b5   : >> { %v3027_v17 = vmax.bf16 %v3019_v22, %v3011_v59  ;;  %v10384_v59 = vld [vmem:[%s12282_s8] sm:$0xff] (%p2967_p9) }
 0x7b6   : > { %12359 = vst [vmem:[#allocation13_spill] sm:$0xff] (%p2967_p9), %v10384_v59 }
 0x7b8   : >> { %3043 = vrot.lane.b32.xlu1 %v10321_v5, %s9203_s29  ;;  %3041 = vrot.lane.b32.xlu0 %v10326_v40, %s9203_s29 }
 0x7bc   : >> { %3051 = vrot.lane.b32.xlu1 %v3028_v53, %s9203_s29  ;;  %3049 = vrot.lane.b32.xlu0 %v3027_v17, %s9203_s29 }
 0x7c0   : >> { %3071 = vrot.lane.b32.xlu1 %v3022_v12, %s9206_s20  ;;  %3069 = vrot.lane.b32.xlu0 %v10302_v10, %s9206_s20 }
 0x7c4   : >> { %3079 = vrot.lane.b32.xlu1 %v10314_v3, %s9206_s20  ;;  %3077 = vrot.lane.b32.xlu0 %v10300_v56, %s9206_s20 }
 0x7c8   : >> { %3075 = vrot.lane.b32.xlu1 %v10321_v5, %s9206_s20  ;;  %3073 = vrot.lane.b32.xlu0 %v10326_v40, %s9206_s20 }
 0x7cc   : >> { %3083 = vrot.lane.b32.xlu1 %v3028_v53, %s9206_s20  ;;  %3081 = vrot.lane.b32.xlu0 %v3027_v17, %s9206_s20 }
 0x822   : >> { %v3046_v35 = vpop.permute.xlu1 %3045  ;;  %v3038_v47 = vpop.permute.xlu0 %3037 }
 0x823   : >> { %v3061_v21 = vmax.bf16 %v3038_v47, %v10302_v10  ;;  %v3065_v49 = vmax.bf16 %v3046_v35, %v10300_v56 }
 0x826   : >> { %v3048_v0 = vpop.permute.xlu1 %3047  ;;  %v3040_v23 = vpop.permute.xlu0 %3039 }
 0x827   : >> { %v3062_v60 = vmax.bf16 %v3040_v23, %v3022_v12  ;;  %v3066_v62 = vmax.bf16 %v3048_v0, %v10314_v3 }
 0x82a   : >> { %v3044_v25 = vpop.permute.xlu1 %3043  ;;  %v3042_v51 = vpop.permute.xlu0 %3041 }
 0x82b   : >> { %v3064_v9 = vmax.bf16 %v3044_v25, %v10321_v5  ;;  %v3063_v19 = vmax.bf16 %v3042_v51, %v10326_v40 }
 0x82e   : >> { %v3052_v39 = vpop.permute.xlu1 %3051  ;;  %v3050_v27 = vpop.permute.xlu0 %3049 }
 0x82f   : >> { %v3068_v56 = vmax.bf16 %v3052_v39, %v3028_v53  ;;  %v3067_v63 = vmax.bf16 %v3050_v27, %v3027_v17  ;;  %v10394_v53 = vld [vmem:[%s12282_s8 + $0x10] sm:$0xff] (%p2967_p9)  ;;  %v10399_v17 = vld [vmem:[%s12282_s8 + $0x18] sm:$0xff] (%p2967_p9) }
 0x830   : > { %12361 = vst [vmem:[#allocation15_spill] sm:$0xff] (%p2967_p9), %v10394_v53  ;;  %12362 = vst [vmem:[#allocation16_spill] sm:$0xff] (%p2967_p9), %v10399_v17 }
 0x832   : >> { %v3072_v20 = vpop.permute.xlu1 %3071  ;;  %v3070_v37 = vpop.permute.xlu0 %3069 }
 0x833   : >> { %v3094_v48 = vmax.bf16 %v3072_v20, %v3062_v60  ;;  %v3093_v55 = vmax.bf16 %v3070_v37, %v3061_v21 }
 0x835   : >> { %v7862_v34 = vcombine.low %v3093_v55, %v3094_v48 }
 0x836   : >> { %v3080_v44 = vpop.permute.xlu1 %3079  ;;  %v3078_v50 = vpop.permute.xlu0 %3077 }
 0x837   : >> { %v3098_v52 = vmax.bf16 %v3080_v44, %v3066_v62  ;;  %v3097_v24 = vmax.bf16 %v3078_v50, %v3065_v49  ;;  %8597 = vmatprep.mubr.msk.bf16.mxu0 %vm3122_vm2, %v7862_v34 }
 0x839   : >> { %v7864_v38 = vcombine.low %v3097_v24, %v3098_v52 }
 0x83a   : >> { %v3076_v29 = vpop.permute.xlu1 %3075  ;;  %v3074_v42 = vpop.permute.xlu0 %3073 }
 0x83b   : >> { %v3096_v45 = vmax.bf16 %v3076_v29, %v3064_v9  ;;  %v3095_v10 = vmax.bf16 %v3074_v42, %v3063_v19  ;;  %8601 = vmatprep.mubr.msk.bf16.mxu1 %vm3122_vm2, %v7864_v38 }
 0x83d   : >> { %v7863_v7 = vcombine.low %v3095_v10, %v3096_v45 }
 0x83e   : >> { %v3084_v4 = vpop.permute.xlu1 %3083  ;;  %v3082_v6 = vpop.permute.xlu0 %3081 }
 0x83f   : >> { %v3100_v58 = vmax.bf16 %v3084_v4, %v3068_v56  ;;  %v3099_v2 = vmax.bf16 %v3082_v6, %v3067_v63  ;;  %8598 = vmatmul.mubr.msk.bf16.vlgmr.msra.gmra.mxu0 %vm3122_vm2, %v7863_v7 }
 0x841   : >> { %v7865_v41 = vcombine.low %v3099_v2, %v3100_v58 }
 0x843   : >> { %8602 = vmatmul.mubr.msk.bf16.vlgmr.msra.gmra.mxu1 %vm3122_vm2, %v7865_v41 }
 0x8ff   : >> { %v8599_v3 = vpop.f32.mrf.mxu0 }
 0x900   : >> { %v8225_v12 = vpack.c.bf16 %v8599_v3, %v8599_v3 }
 0x901   : >> { %v3176_v26 = vpop.f32.mrf.mxu0 }
 0x902   : >> { %3246 = vst.msk [vmem:[%s3242_s22 + $0x8] sm:$0xf] %vm3243_vm0, %v8225_v12  ;;  %v8223_v1 = vpack.c.bf16 %v3176_v26, %v3176_v26 }
 0x903   : >> { %v8600_v11 = vpop.f32.mrf.mxu0  ;;  %v8603_v28 = vpop.f32.mrf.mxu1 }
 0x904   : >> { %3244 = vst.msk [vmem:[%s3242_s22] sm:$0xf] %vm3243_vm0, %v8223_v1  ;;  %v8226_v14 = vpack.c.bf16 %v8600_v11, %v8600_v11  ;;  %v8229_v43 = vpack.c.bf16 %v8603_v28, %v8603_v28 }
 0x905   : >> { %v3179_v5 = vpop.f32.mrf.mxu0  ;;  %v3192_v15 = vpop.f32.mrf.mxu1 }
 0x906   : >> { %3247 = vst.msk [vmem:[%s3242_s22 + $0xc] sm:$0xf] %vm3243_vm0, %v8226_v14  ;;  %3250 = vst.msk [vmem:[%s3242_s22 + $0x18] sm:$0xf] %vm3243_vm0, %v8229_v43  ;;  %v8224_v13 = vpack.c.bf16 %v3179_v5, %v3179_v5  ;;  %v8227_v40 = vpack.c.bf16 %v3192_v15, %v3192_v15 }
 0x907   : >> { %v8604_v18 = vpop.f32.mrf.mxu1 }
 0x908   : >> { %3245 = vst.msk [vmem:[%s3242_s22 + $0x4] sm:$0xf] %vm3243_vm0, %v8224_v13  ;;  %3248 = vst.msk [vmem:[%s3242_s22 + $0x10] sm:$0xf] %vm3243_vm0, %v8227_v40  ;;  %v8230_v22 = vpack.c.bf16 %v8604_v18, %v8604_v18  ;;  %2969 = sbr.rel (!%p2967_p9) target bundleno = 1956 (0x7a4), region = 273 }
 0x909   : >> { %v3195_v46 = vpop.f32.mrf.mxu1 }
 0x90a   : >> { %3251 = vst.msk [vmem:[%s3242_s22 + $0x1c] sm:$0xf] %vm3243_vm0, %v8230_v22  ;;  %v8228_v8 = vpack.c.bf16 %v3195_v46, %v3195_v46 }
 0x90c   : >> { %3249 = vst.msk [vmem:[%s3242_s22 + $0x14] sm:$0xf] %vm3243_vm0, %v8228_v8 }
 0x90d LB: >> { %s7883_s21 = sshll.u32 %s9173_s27, 6  ;;  %s9207_s24 = smov 127   ;;  %vm3514_vm6 = vcmask 523264   ;;  %v8981_v21 = vld [vmem:[%s12281_s7 + $0x38] ss:$12 sps:$4 sm:$0xff]   ;;  %v12363_v16 = vld [vmem:[#allocation14_spill] sm:$0xff]  ;;  %s9173_s27 = sphi %s10401_s27, %s3261_s27  }
 0x90e   : >> { %s3263_s23 = sshra.s32 %s7883_s21, 3  ;;  %8613 = vmatprep.mubr.msk.bf16.mxu1 %vm3514_vm6, %v8981_v21  ;;  %v8985_v48 = vld [vmem:[%s12281_s7 + $0x34] ss:$12 sps:$4 sm:$0xff]   ;;  %s9208_s26 = smov 126   ;;  %v8982_v42 = vld [vmem:[%s12281_s7 + $0x50] ss:$12 sps:$4 sm:$0xff]  }
 0x90f   : >> { %s7884_s16 = sshll.u32 %s3263_s23, 2  ;;  %3553 = vmatprep.mubr.bf16.mxu0 %v8985_v48  ;;  %s9209_s29 = smov 125   ;;  %v8988_v56 = vld [vmem:[%s12281_s7 + $0x4] ss:$12 sps:$4 sm:$0xff]   ;;  %v8989_v11 = vld [vmem:[%s12281_s7 + $0x4c] ss:$12 sps:$4 sm:$0xff]  }
 0x910   : >> { %s10407_s22 = scalar_lea.vmem [#allocation7], %s7884_s16  ;;  %s9210_s20 = smov 124   ;;  %v8983_v1 = vld [vmem:[%s12281_s7 + $0x30] ss:$12 sps:$4 sm:$0xff]   ;;  %v8991_v15 = vld [vmem:[%s12281_s7 + $0x48] ss:$12 sps:$4 sm:$0xff]  }
 0x911   : >> { %v8986_v13 = vld [vmem:[%s12281_s7] ss:$12 sps:$4 sm:$0xff]   ;;  %v8992_v40 = vld [vmem:[%s12281_s7 + $0x1c] ss:$12 sps:$4 sm:$0xff]   ;;  %v8999_v22 = vld [vmem:[%s12281_s7 + $0x64] ss:$12 sps:$4 sm:$0xff]  }
 0x912   : >> { %v12364_v59 = vld [vmem:[#allocation13_spill] sm:$0xff]  ;;  %v12365_v53 = vld [vmem:[#allocation15_spill] sm:$0xff]  ;;  %v12366_v17 = vld [vmem:[#allocation16_spill] sm:$0xff]  ;;  %s7977_s25 = sshll.u32 %s9173_s27, 5  ;;  %vm4443_vm3 = vcmask 150528   ;;  %s3261_s27 = sadd.s32 1, %s9173_s27  }
 0x913   : >> { %v10410_v32 = vld [vmem:[%s10407_s22 + $0x98] sm:$0xff]   ;;  %v10418_v36 = vld [vmem:[%s10407_s22 + $0x90] sm:$0xff]   ;;  %v10428_v61 = vld [vmem:[%s10407_s22 + $0x88] sm:$0xff]   ;;  %p3258_p10 = scmp.ge.s32.totalorder %s3261_s27, 19  }
 0x914   : >> { %v10413_v33 = vld [vmem:[%s10407_s22 + $0x78] sm:$0xff]   ;;  %3492 = vrot.lane.b32.xlu0 %v10410_v32, %s9207_s24  ;;  %v10433_v35 = vld [vmem:[%s10407_s22 + $0x70] sm:$0xff]   ;;  %v10443_v0 = vld [vmem:[%s10407_s22 + $0x80] sm:$0xff]   ;;  %s10752_s23 = smov (%p3258_p10), 0  }
 0x915   : >> { %3484 = vrot.lane.b32.xlu1 %v10413_v33, %s9207_s24  ;;  %v10423_v54 = vld [vmem:[%s10407_s22 + $0x38] sm:$0xff]   ;;  %v10438_v47 = vld [vmem:[%s10407_s22 + $0x30] sm:$0xff]   ;;  %v10448_v23 = vld [vmem:[%s10407_s22 + $0x68] sm:$0xff]  }
 0x916   : >> { %v10453_v25 = vld [vmem:[%s10407_s22 + $0x28] sm:$0xff]   ;;  %v10458_v51 = vld [vmem:[%s10407_s22 + $0x60] sm:$0xff]   ;;  %v10466_v27 = vld [vmem:[%s10407_s22 + $0x58] sm:$0xff]  }
 0x917   : >> { %v10463_v39 = vld [vmem:[%s10407_s22 + $0x20] sm:$0xff]   ;;  %v10472_v60 = vld [vmem:[%s10407_s22 + $0x18] sm:$0xff]   ;;  %v10480_v20 = vld [vmem:[%s10407_s22 + $0x50] sm:$0xff]  }
 0x918   : >> { %3490 = vrot.lane.b32.xlu0 %v10418_v36, %s9207_s24  ;;  %v10483_v37 = vld [vmem:[%s10407_s22 + $0x10] sm:$0xff]   ;;  %v10495_v55 = vld [vmem:[%s10407_s22 + $0x48] sm:$0xff]   ;;  %v10505_v62 = vld [vmem:[%s10407_s22 + $0x40] sm:$0xff]  }
 0x919   : >> { %3468 = vrot.lane.b32.xlu1 %v10423_v54, %s9207_s24  ;;  %v10500_v49 = vld [vmem:[%s10407_s22 + $0x8] sm:$0xff]   ;;  %v10510_v34 = vld [vmem:[%s10407_s22] sm:$0xff]  }
 0x91c   : >> { %3488 = vrot.lane.b32.xlu0 %v10428_v61, %s9207_s24 }
 0x91d   : >> { %3482 = vrot.lane.b32.xlu1 %v10433_v35, %s9207_s24 }
 0x920   : >> { %3466 = vrot.lane.b32.xlu0 %v10438_v47, %s9207_s24 }
 0x921   : >> { %3486 = vrot.lane.b32.xlu1 %v10443_v0, %s9207_s24 }
 0x924   : >> { %3480 = vrot.lane.b32.xlu0 %v10448_v23, %s9207_s24 }
 0x925   : >> { %3464 = vrot.lane.b32.xlu1 %v10453_v25, %s9207_s24 }
 0x928   : >> { %3478 = vrot.lane.b32.xlu0 %v10458_v51, %s9207_s24 }
 0x929   : >> { %3462 = vrot.lane.b32.xlu1 %v10463_v39, %s9207_s24 }
 0x92c   : >> { %3476 = vrot.lane.b32.xlu0 %v10466_v27, %s9207_s24 }
 0x92d   : >> { %3460 = vrot.lane.b32.xlu1 %v10472_v60, %s9207_s24 }
 0x930   : >> { %3474 = vrot.lane.b32.xlu0 %v10480_v20, %s9207_s24 }
 0x931   : >> { %3458 = vrot.lane.b32.xlu1 %v10483_v37, %s9207_s24 }
 0x934   : >> { %3472 = vrot.lane.b32.xlu0 %v10495_v55, %s9207_s24 }
 0x935   : >> { %3456 = vrot.lane.b32.xlu1 %v10500_v49, %s9207_s24 }
 0x938   : >> { %3470 = vrot.lane.b32.xlu0 %v10505_v62, %s9207_s24 }
 0x939   : >> { %3454 = vrot.lane.b32.xlu1 %v10510_v34, %s9207_s24 }
 0x93c   : >> { %3842 = vrot.lane.b32.xlu0 %v10413_v33, %s9208_s26 }
 0x93d   : >> { %3826 = vrot.lane.b32.xlu1 %v10423_v54, %s9208_s26 }
 0x940   : >> { %3840 = vrot.lane.b32.xlu0 %v10433_v35, %s9208_s26 }
 0x941   : >> { %3824 = vrot.lane.b32.xlu1 %v10438_v47, %s9208_s26 }
 0x944   : >> { %3838 = vrot.lane.b32.xlu0 %v10448_v23, %s9208_s26 }
 0x945   : >> { %3822 = vrot.lane.b32.xlu1 %v10453_v25, %s9208_s26 }
 0x948   : >> { %3836 = vrot.lane.b32.xlu0 %v10458_v51, %s9208_s26 }
 0x949   : >> { %3820 = vrot.lane.b32.xlu1 %v10463_v39, %s9208_s26 }
 0x94c   : >> { %3834 = vrot.lane.b32.xlu0 %v10466_v27, %s9208_s26 }
 0x94d   : >> { %3818 = vrot.lane.b32.xlu1 %v10472_v60, %s9208_s26 }
 0x950   : >> { %3832 = vrot.lane.b32.xlu0 %v10480_v20, %s9208_s26 }
 0x951   : >> { %3816 = vrot.lane.b32.xlu1 %v10483_v37, %s9208_s26 }
 0x954   : >> { %3830 = vrot.lane.b32.xlu0 %v10495_v55, %s9208_s26 }
 0x955   : >> { %3814 = vrot.lane.b32.xlu1 %v10500_v49, %s9208_s26 }
 0x958   : >> { %3850 = vrot.lane.b32.xlu0 %v10410_v32, %s9208_s26 }
 0x959   : >> { %3828 = vrot.lane.b32.xlu1 %v10505_v62, %s9208_s26 }
 0x95c   : >> { %3812 = vrot.lane.b32.xlu0 %v10510_v34, %s9208_s26 }
 0x95d   : >> { %3848 = vrot.lane.b32.xlu1 %v10418_v36, %s9208_s26 }
 0x960   : >> { %4057 = vrot.lane.b32.xlu0 %v10410_v32, %s9209_s29 }
 0x961   : >> { %3846 = vrot.lane.b32.xlu1 %v10428_v61, %s9208_s26 }
 0x964   : >> { %4055 = vrot.lane.b32.xlu0 %v10418_v36, %s9209_s29 }
 0x965   : >> { %3844 = vrot.lane.b32.xlu1 %v10443_v0, %s9208_s26  ;;  %s4439_s26 = sshra.s32 %s7977_s25, 3 }
 0x968   : >> { %4053 = vrot.lane.b32.xlu0 %v10428_v61, %s9209_s29 }
 0x969   : >> { %4049 = vrot.lane.b32.xlu1 %v10413_v33, %s9209_s29 }
 0x96c   : >> { %4033 = vrot.lane.b32.xlu0 %v10423_v54, %s9209_s29 }
 0x96d   : >> { %4051 = vrot.lane.b32.xlu1 %v10443_v0, %s9209_s29 }
 0x970   : >> { %4047 = vrot.lane.b32.xlu0 %v10433_v35, %s9209_s29 }
 0x971   : >> { %4031 = vrot.lane.b32.xlu1 %v10438_v47, %s9209_s29 }
 0x974   : >> { %4256 = vrot.lane.b32.xlu0 %v10413_v33, %s9210_s20 }
 0x975   : >> { %4240 = vrot.lane.b32.xlu1 %v10423_v54, %s9210_s20 }
 0x978   : >> { %4045 = vrot.lane.b32.xlu0 %v10448_v23, %s9209_s29 }
 0x979   : >> { %4029 = vrot.lane.b32.xlu1 %v10453_v25, %s9209_s29 }
 0x97c   : >> { %4254 = vrot.lane.b32.xlu0 %v10433_v35, %s9210_s20 }
 0x97d   : >> { %4238 = vrot.lane.b32.xlu1 %v10438_v47, %s9210_s20 }
 0x980   : >> { %4043 = vrot.lane.b32.xlu0 %v10458_v51, %s9209_s29 }
 0x981   : >> { %4027 = vrot.lane.b32.xlu1 %v10463_v39, %s9209_s29 }
 0x984   : >> { %4252 = vrot.lane.b32.xlu0 %v10448_v23, %s9210_s20 }
 0x985   : >> { %4236 = vrot.lane.b32.xlu1 %v10453_v25, %s9210_s20 }
 0x986   : >> { %v3493_v44 = vpop.permute.xlu0 %3492 }
 0x987   : >> { %v3485_v50 = vpop.permute.xlu1 %3484  ;;  %8605 = vmatprep.subr.bf16.mxu1 %v3493_v44 }
 0x988   : >> { %8312 = vmatprep.subr.bf16.mxu0 %v3485_v50  ;;  %8606 = vmatpush3.bf16.msra.mxu1 %v3493_v44  ;;  %v9005_v44 = vld [vmem:[%s12281_s7 + $0x98] ss:$12 sps:$4 sm:$0xff]   ;;  %v9004_v50 = vld [vmem:[%s12281_s7 + $0x80] ss:$12 sps:$4 sm:$0xff]  }
 0x989   : >> { %4041 = vrot.lane.b32.xlu0 %v10466_v27, %s9209_s29  ;;  %4025 = vrot.lane.b32.xlu1 %v10472_v60, %s9209_s29 }
 0x98a   : >> { %v3491_v52 = vpop.permute.xlu0 %3490 }
 0x98b   : >> { %v3469_v24 = vpop.permute.xlu1 %3468  ;;  %8607 = vmatprep.subr.bf16.mxu1 %v3491_v52 }
 0x98c   : >> { %8313 = vmatpush3.bf16.msra.mxu0 %v3469_v24  ;;  %8608 = vmatpush3.bf16.msra.mxu1 %v3491_v52  ;;  %v9009_v52 = vld [vmem:[%s12281_s7 + $0x94] ss:$12 sps:$4 sm:$0xff]  }
 0x98d   : >> { %4250 = vrot.lane.b32.xlu0 %v10458_v51, %s9210_s20  ;;  %4234 = vrot.lane.b32.xlu1 %v10463_v39, %s9210_s20 }
 0x98e   : >> { %v3489_v9 = vpop.permute.xlu0 %3488 }
 0x98f   : >> { %v3483_v19 = vpop.permute.xlu1 %3482  ;;  %8609 = vmatprep.subr.bf16.mxu1 %v3489_v9 }
 0x990   : >> { %8314 = vmatprep.subr.bf16.mxu0 %v3483_v19  ;;  %8610 = vmatpush3.bf16.msra.mxu1 %v3489_v9 }
 0x991   : >> { %4039 = vrot.lane.b32.xlu0 %v10480_v20, %s9209_s29  ;;  %4023 = vrot.lane.b32.xlu1 %v10483_v37, %s9209_s29 }
 0x992   : >> { %v3467_v38 = vpop.permute.xlu0 %3466 }
 0x993   : >> { %v3487_v29 = vpop.permute.xlu1 %3486  ;;  %8315 = vmatpush3.bf16.msra.mxu0 %v3467_v38 }
 0x994   : >> { %8611 = vmatprep.subr.bf16.mxu1 %v3487_v29 }
 0x995   : >> { %8612 = vmatpush3.bf16.msra.mxu1 %v3487_v29  ;;  %4248 = vrot.lane.b32.xlu0 %v10466_v27, %s9210_s20  ;;  %v9006_v29 = vld [vmem:[%s12281_s7 + $0xb0] ss:$12 sps:$4 sm:$0xff]  }
 0x996   : >> { %4232 = vrot.lane.b32.xlu1 %v10472_v60, %s9210_s20  ;;  %v3481_v45 = vpop.permute.xlu0 %3480  ;;  %8346 = vmatprep.subr.bf16.mxu1 %v10413_v33 }
 0x997   : >> { %v3465_v10 = vpop.permute.xlu1 %3464  ;;  %8316 = vmatprep.subr.bf16.mxu0 %v3481_v45 }
 0x998   : >> { %8317 = vmatpush3.bf16.msra.mxu0 %v3465_v10  ;;  %8614 = vmatmul.mubr.msk.bf16.vlgmr.msra.gmra.mxu1 %vm3514_vm6, %v8982_v42  ;;  %v9015_v42 = vld [vmem:[%s12281_s7 + $0xc4] ss:$12 sps:$4 sm:$0xff]  }
 0x999   : >> { %8347 = vmatpush3.bf16.msra.mxu1 %v10423_v54  ;;  %4037 = vrot.lane.b32.xlu0 %v10495_v55, %s9209_s29  ;;  %v8994_v54 = vld [vmem:[%s12281_s7 + $0x18] ss:$12 sps:$4 sm:$0xff]  }
 0x99a   : >> { %4021 = vrot.lane.b32.xlu1 %v10500_v49, %s9209_s29  ;;  %v3479_v63 = vpop.permute.xlu0 %3478  ;;  %8348 = vmatprep.subr.bf16.mxu1 %v10433_v35  ;;  %v8995_v35 = vld [vmem:[%s12281_s7 + $0x8] ss:$12 sps:$4 sm:$0xff]  }
 0x99b   : >> { %v3463_v7 = vpop.permute.xlu1 %3462  ;;  %8318 = vmatprep.subr.bf16.mxu0 %v3479_v63  ;;  %3707 = vmatprep.mubr.bf16.mxu1 %v8988_v56 }
 0x99c   : >> { %8319 = vmatpush3.bf16.msra.mxu0 %v3463_v7 }
 0x99d   : >> { %8349 = vmatpush3.bf16.msra.mxu1 %v10438_v47  ;;  %4246 = vrot.lane.b32.xlu0 %v10480_v20, %s9210_s20 }
 0x99e   : >> { %4230 = vrot.lane.b32.xlu1 %v10483_v37, %s9210_s20  ;;  %v3477_v4 = vpop.permute.xlu0 %3476  ;;  %8350 = vmatprep.subr.bf16.mxu1 %v10448_v23 }
 0x99f   : >> { %v3461_v6 = vpop.permute.xlu1 %3460  ;;  %8320 = vmatprep.subr.bf16.mxu0 %v3477_v4 }
 0x9a0   : >> { %8321 = vmatpush3.bf16.msra.mxu0 %v3461_v6 }
 0x9a1   : >> { %8351 = vmatpush3.bf16.msra.mxu1 %v10453_v25  ;;  %4035 = vrot.lane.b32.xlu0 %v10505_v62, %s9209_s29 }
 0x9a2   : >> { %4019 = vrot.lane.b32.xlu1 %v10510_v34, %s9209_s29  ;;  %v3475_v58 = vpop.permute.xlu0 %3474  ;;  %8352 = vmatprep.subr.bf16.mxu1 %v10458_v51  ;;  %v9003_v51 = vld [vmem:[%s12281_s7 + $0x68] ss:$12 sps:$4 sm:$0xff]   ;;  %s7982_s29 = sshll.u32 %s4439_s26, 2 }
 0x9a3   : >> { %v3459_v2 = vpop.permute.xlu1 %3458  ;;  %8322 = vmatprep.subr.bf16.mxu0 %v3475_v58  ;;  %s4442_s21 = scalar_lea.vmem [#allocation8], %s7982_s29 }
 0x9a4   : >> { %8323 = vmatpush3.bf16.msra.mxu0 %v3459_v2 }
 0x9a5   : >> { %8353 = vmatpush3.bf16.msra.mxu1 %v10463_v39  ;;  %4244 = vrot.lane.b32.xlu0 %v10495_v55, %s9210_s20 }
 0x9a6   : >> { %4228 = vrot.lane.b32.xlu1 %v10500_v49, %s9210_s20  ;;  %v3473_v41 = vpop.permute.xlu0 %3472  ;;  %8354 = vmatprep.subr.bf16.mxu1 %v10466_v27 }
 0x9a7   : >> { %v3457_v3 = vpop.permute.xlu1 %3456  ;;  %8324 = vmatprep.subr.bf16.mxu0 %v3473_v41 }
 0x9a8   : >> { %8325 = vmatpush3.bf16.msra.mxu0 %v3457_v3  ;;  %v9211_v3 = vmov 0  }
 0x9a9   : >> { %8355 = vmatpush3.bf16.msra.mxu1 %v10472_v60  ;;  %4264 = vrot.lane.b32.xlu0 %v10410_v32, %s9210_s20 }
 0x9aa   : >> { %4242 = vrot.lane.b32.xlu1 %v10505_v62, %s9210_s20  ;;  %v3471_v12 = vpop.permute.xlu0 %3470  ;;  %8356 = vmatprep.subr.bf16.mxu1 %v10480_v20 }
 0x9ab   : >> { %v3455_v26 = vpop.permute.xlu1 %3454  ;;  %8326 = vmatprep.subr.bf16.mxu0 %v3471_v12  ;;  %8960 = vset.pattern.permute.xlu1 %v9211_v3 }
 0x9ac   : >> { %8327 = vmatpush3.bf16.msra.mxu0 %v3455_v26  ;;  %8959 = vset.pattern.permute.xlu0 %v9211_v3 }
 0x9ad   : >> { %8357 = vmatpush3.bf16.msra.mxu1 %v10483_v37  ;;  %4226 = vrot.lane.b32.xlu0 %v10510_v34, %s9210_s20  ;;  %v9000_v37 = vld [vmem:[%s12281_s7 + $0x7c] ss:$12 sps:$4 sm:$0xff]  }
 0x9ae   : >> { %4262 = vrot.lane.b32.xlu1 %v10418_v36, %s9210_s20  ;;  %v3843_v28 = vpop.permute.xlu0 %3842  ;;  %8358 = vmatprep.subr.bf16.mxu1 %v10495_v55 }
 0x9af   : >> { %v3827_v14 = vpop.permute.xlu1 %3826  ;;  %3554 = vmatmul.mubr.bf16.vlgmr.msra.gmra.mxu0 %v8983_v1  ;;  %8380 = vmatprep.subr.bf16.mxu0 %v3843_v28 }
 0x9b0   : >> { %8381 = vmatpush3.bf16.msra.mxu0 %v3827_v14  ;;  %3561 = vmatprep.mubr.bf16.mxu0 %v8989_v11 }
 0x9b1   : >> { %8359 = vmatpush3.bf16.msra.mxu1 %v10500_v49  ;;  %4260 = vrot.lane.b32.xlu0 %v10428_v61, %s9210_s20 }
 0x9b2   : >> { %v3841_v43 = vpop.permute.xlu0 %3840  ;;  %8360 = vmatprep.subr.bf16.mxu1 %v10505_v62  ;;  %4258 = vrot.lane.b32.xlu1 %v10443_v0, %s9210_s20  ;;  %v9002_v62 = vld [vmem:[%s12281_s7 + $0x78] ss:$12 sps:$4 sm:$0xff]  }
 0x9b3   : >> { %v3825_v5 = vpop.permute.xlu1 %3824  ;;  %8382 = vmatprep.subr.bf16.mxu0 %v3841_v43 }
 0x9b4   : >> { %8383 = vmatpush3.bf16.msra.mxu0 %v3825_v5 }
 0x9b5   : >> { %8361 = vmatpush3.bf16.msra.mxu1 %v10510_v34  ;;  %4397 = vperm.xlu0 %8959, %v12364_v59  }
 0x9b6   : >> { %v3839_v18 = vpop.permute.xlu0 %3838  ;;  %8617 = vmatprep.subr.bf16.mxu1 %v10410_v32  ;;  %4402 = vperm.xlu1 %8960, %v12363_v16  }
 0x9b7   : >> { %v3823_v46 = vpop.permute.xlu1 %3822  ;;  %3562 = vmatmul.mubr.bf16.gmra.mxu0 %v8991_v15  ;;  %8384 = vmatprep.subr.bf16.mxu0 %v3839_v18 }
 0x9b8   : >> { %3708 = vmatmul.mubr.bf16.vlgmr.msra.gmra.mxu1 %v8986_v13  ;;  %8385 = vmatpush3.bf16.msra.mxu0 %v3823_v46 }
 0x9b9   : >> { %8618 = vmatpush3.bf16.msra.mxu1 %v10410_v32  ;;  %3715 = vmatprep.mubr.bf16.mxu1 %v8992_v40 }
 0x9ba   : >> { %v3837_v8 = vpop.permute.xlu0 %3836  ;;  %8619 = vmatprep.subr.bf16.mxu1 %v10418_v36  ;;  %3910 = vmatprep.mubr.bf16.mxu0 %v8999_v22 }
 0x9bb   : >> { %v3821_v33 = vpop.permute.xlu1 %3820  ;;  %8386 = vmatprep.subr.bf16.mxu0 %v3837_v8  ;;  %4407 = vperm.xlu1 %8960, %v12365_v53  }
 0x9bc   : >> { %8387 = vmatpush3.bf16.msra.mxu0 %v3821_v33  ;;  %4412 = vperm.xlu0 %8959, %v12366_v17  }
 0x9bd   : >> { %8620 = vmatpush3.bf16.msra.mxu1 %v10418_v36  ;;  %v8996_v36 = vld [vmem:[%s12281_s7 + $0x20] ss:$12 sps:$4 sm:$0xff]  }
 0x9be   : >> { %v3835_v47 = vpop.permute.xlu0 %3834  ;;  %8621 = vmatprep.subr.bf16.mxu1 %v10428_v61 }
 0x9bf   : >> { %v3819_v32 = vpop.permute.xlu1 %3818  ;;  %8388 = vmatprep.subr.bf16.mxu0 %v3835_v47 }
 0x9c0   : >> { %3716 = vmatmul.mubr.bf16.gmra.mxu1 %v8994_v54  ;;  %8389 = vmatpush3.bf16.msra.mxu0 %v3819_v32  ;;  %v9007_v54 = vld [vmem:[%s12281_s7 + $0x90] ss:$12 sps:$4 sm:$0xff]  }
 0x9c1   : >> { %8622 = vmatpush3.bf16.msra.mxu1 %v10428_v61  ;;  %8625 = vmatprep.mubr.msk.bf16.mxu1 %vm3514_vm6, %v8995_v35  ;;  %v9010_v35 = vld [vmem:[%s12281_s7 + $0xac] ss:$12 sps:$4 sm:$0xff]  }
 0x9c2   : >> { %v3833_v23 = vpop.permute.xlu0 %3832  ;;  %8623 = vmatprep.subr.bf16.mxu1 %v10443_v0 }
 0x9c3   : >> { %v3817_v25 = vpop.permute.xlu1 %3816  ;;  %8390 = vmatprep.subr.bf16.mxu0 %v3833_v23 }
 0x9c4   : >> { %8391 = vmatpush3.bf16.msra.mxu0 %v3817_v25 }
 0x9c5   : >> { %8624 = vmatpush3.bf16.msra.mxu1 %v10443_v0  ;;  %v8997_v0 = vld [vmem:[%s12281_s7 + $0x60] ss:$12 sps:$4 sm:$0xff]  }
 0x9c6   : >> { %v3831_v39 = vpop.permute.xlu0 %3830 }
 0x9c7   : >> { %v3815_v61 = vpop.permute.xlu1 %3814  ;;  %8392 = vmatprep.subr.bf16.mxu0 %v3831_v39 }
 0x9c8   : >> { %8626 = vmatmul.mubr.msk.bf16.vlgmr.msra.gmra.mxu1 %vm3514_vm6, %v8996_v36  ;;  %8393 = vmatpush3.bf16.msra.mxu0 %v3815_v61  ;;  %v9012_v36 = vld [vmem:[%s12281_s7 + $0xa8] ss:$12 sps:$4 sm:$0xff]   ;;  %v9013_v61 = vld [vmem:[%s12281_s7 + $0xc0] ss:$12 sps:$4 sm:$0xff]  }
 0x9c9   : >> { %8637 = vmatprep.mubr.msk.bf16.mxu1 %vm3514_vm6, %v9003_v51  ;;  %v9019_v51 = vld [vmem:[%s12281_s7 + $0xc8] ss:$12 sps:$4 sm:$0xff]  }
 0x9ca   : >> { %v3851_v27 = vpop.permute.xlu0 %3850 }
 0x9cb   : >> { %v3829_v21 = vpop.permute.xlu1 %3828  ;;  %8629 = vmatprep.subr.bf16.mxu1 %v3851_v27 }
 0x9cc   : >> { %8394 = vmatprep.subr.bf16.mxu0 %v3829_v21  ;;  %8630 = vmatpush3.bf16.msra.mxu1 %v3851_v27  ;;  %v9016_v21 = vld [vmem:[%s12281_s7 + $0xdc] ss:$12 sps:$4 sm:$0xff]  }
 0x9ce   : >> { %v3813_v60 = vpop.permute.xlu0 %3812 }
 0x9cf   : >> { %v3849_v20 = vpop.permute.xlu1 %3848  ;;  %8395 = vmatpush3.bf16.msra.mxu0 %v3813_v60 }
 0x9d0   : >> { %8631 = vmatprep.subr.bf16.mxu1 %v3849_v20 }
 0x9d1   : >> { %8632 = vmatpush3.bf16.msra.mxu1 %v3849_v20  ;;  %v9018_v20 = vld [vmem:[%s12281_s7 + $0xd8] ss:$12 sps:$4 sm:$0xff]  }
 0x9d2   : >> { %v4058_v48 = vpop.permute.xlu0 %4057  ;;  %3911 = vmatmul.mubr.bf16.vlgmr.msra.gmra.mxu0 %v8997_v0 }
 0x9d3   : >> { %v3847_v55 = vpop.permute.xlu1 %3846  ;;  %8641 = vmatprep.subr.bf16.mxu0 %v4058_v48  ;;  %3918 = vmatprep.mubr.bf16.mxu0 %v9000_v37  ;;  %v9020_v37 = vld [vmem:[%s12281_s7 + $0xe0] ss:$12 sps:$4 sm:$0xff]  }
 0x9d4   : >> { %8633 = vmatprep.subr.bf16.mxu1 %v3847_v55  ;;  %8642 = vmatpush3.bf16.msra.mxu0 %v4058_v48 }
 0x9d5   : >> { %8634 = vmatpush3.bf16.msra.mxu1 %v3847_v55 }
 0x9d6   : >> { %v4056_v49 = vpop.permute.xlu0 %4055 }
 0x9d7   : >> { %v3845_v34 = vpop.permute.xlu1 %3844  ;;  %8643 = vmatprep.subr.bf16.mxu0 %v4056_v49 }
 0x9d8   : >> { %8635 = vmatprep.subr.bf16.mxu1 %v3845_v34  ;;  %8644 = vmatpush3.bf16.msra.mxu0 %v4056_v49 }
 0x9d9   : >> { %8636 = vmatpush3.bf16.msra.mxu1 %v3845_v34 }
 0x9da   : >> { %v4054_v24 = vpop.permute.xlu0 %4053  ;;  %3919 = vmatmul.mubr.bf16.gmra.mxu0 %v9002_v62 }
 0x9db   : >> { %v4050_v9 = vpop.permute.xlu1 %4049  ;;  %8645 = vmatprep.subr.bf16.mxu0 %v4054_v24  ;;  %8649 = vmatprep.mubr.msk.bf16.mxu0 %vm3514_vm6, %v9005_v44 }
 0x9dc   : >> { %8638 = vmatmul.mubr.msk.bf16.vlgmr.msra.gmra.mxu1 %vm3514_vm6, %v9004_v50  ;;  %8414 = vmatprep.subr.bf16.mxu1 %v4050_v9 }
 0x9dd   : >> { %8646 = vmatpush3.bf16.msra.mxu0 %v4054_v24  ;;  %4117 = vmatprep.mubr.bf16.mxu1 %v9009_v52 }
 0x9de   : >> { %v4034_v19 = vpop.permute.xlu0 %4033 }
 0x9df   : >> { %v4052_v38 = vpop.permute.xlu1 %4051  ;;  %8415 = vmatpush3.bf16.msra.mxu1 %v4034_v19 }
 0x9e0   : >> { %8647 = vmatprep.subr.bf16.mxu0 %v4052_v38 }
 0x9e1   : >> { %8648 = vmatpush3.bf16.msra.mxu0 %v4052_v38 }
 0x9e2   : >> { %v4048_v45 = vpop.permute.xlu0 %4047 }
 0x9e3   : >> { %v4032_v10 = vpop.permute.xlu1 %4031  ;;  %8416 = vmatprep.subr.bf16.mxu1 %v4048_v45 }
 0x9e4   : >> { %8417 = vmatpush3.bf16.msra.mxu1 %v4032_v10  ;;  %8650 = vmatmul.mubr.msk.bf16.vlgmr.msra.gmra.mxu0 %vm3514_vm6, %v9006_v29 }
 0x9e5   : >> { %4324 = vmatprep.mubr.bf16.mxu0 %v9015_v42 }
 0x9e6   : >> { %v4257_v56 = vpop.permute.xlu0 %4256 }
 0x9e7   : >> { %v4241_v63 = vpop.permute.xlu1 %4240  ;;  %8448 = vmatprep.subr.bf16.mxu0 %v4257_v56 }
 0x9e8   : >> { %8449 = vmatpush3.bf16.msra.mxu0 %v4241_v63 }
 0x9ea   : >> { %v4046_v7 = vpop.permute.xlu0 %4045 }
 0x9eb   : >> { %v4030_v4 = vpop.permute.xlu1 %4029  ;;  %8418 = vmatprep.subr.bf16.mxu1 %v4046_v7 }
 0x9ec   : >> { %8419 = vmatpush3.bf16.msra.mxu1 %v4030_v4 }
 0x9ee   : >> { %v4255_v6 = vpop.permute.xlu0 %4254 }
 0x9ef   : >> { %v4239_v58 = vpop.permute.xlu1 %4238  ;;  %8450 = vmatprep.subr.bf16.mxu0 %v4255_v6 }
 0x9f0   : >> { %8451 = vmatpush3.bf16.msra.mxu0 %v4239_v58 }
 0x9f2   : >> { %v4044_v2 = vpop.permute.xlu0 %4043 }
 0x9f3   : >> { %v4028_v41 = vpop.permute.xlu1 %4027  ;;  %8420 = vmatprep.subr.bf16.mxu1 %v4044_v2 }
 0x9f4   : >> { %8421 = vmatpush3.bf16.msra.mxu1 %v4028_v41 }
 0x9f6   : >> { %v4253_v12 = vpop.permute.xlu0 %4252 }
 0x9f7   : >> { %v4237_v26 = vpop.permute.xlu1 %4236  ;;  %8452 = vmatprep.subr.bf16.mxu0 %v4253_v12 }
 0x9f8   : >> { %8453 = vmatpush3.bf16.msra.mxu0 %v4237_v26 }
 0x9fb   : >> { %v4042_v1 = vpop.permute.xlu0 %4041  ;;  %v4026_v11 = vpop.permute.xlu1 %4025 }
 0x9fc   : >> { %8422 = vmatprep.subr.bf16.mxu1 %v4042_v1 }
 0x9fd   : >> { %8423 = vmatpush3.bf16.msra.mxu1 %v4026_v11 }
 0x9ff   : >> { %v4251_v28 = vpop.permute.xlu0 %4250  ;;  %v4235_v14 = vpop.permute.xlu1 %4234 }
 0xa00   : >> { %8454 = vmatprep.subr.bf16.mxu0 %v4251_v28 }
 0xa01   : >> { %8455 = vmatpush3.bf16.msra.mxu0 %v4235_v14 }
 0xa03   : >> { %v4040_v43 = vpop.permute.xlu0 %4039  ;;  %v4024_v5 = vpop.permute.xlu1 %4023 }
 0xa04   : >> { %8424 = vmatprep.subr.bf16.mxu1 %v4040_v43 }
 0xa05   : >> { %8425 = vmatpush3.bf16.msra.mxu1 %v4024_v5 }
 0xa07   : >> { %v4249_v15 = vpop.permute.xlu0 %4248 }
 0xa08   : >> { %v4233_v13 = vpop.permute.xlu1 %4232  ;;  %8456 = vmatprep.subr.bf16.mxu0 %v4249_v15 }
 0xa09   : >> { %8457 = vmatpush3.bf16.msra.mxu0 %v4233_v13 }
 0xa0b   : >> { %v4038_v40 = vpop.permute.xlu0 %4037 }
 0xa0c   : >> { %v4022_v18 = vpop.permute.xlu1 %4021  ;;  %8426 = vmatprep.subr.bf16.mxu1 %v4038_v40 }
 0xa0d   : >> { %8427 = vmatpush3.bf16.msra.mxu1 %v4022_v18 }
 0xa0f   : >> { %v4247_v22 = vpop.permute.xlu0 %4246 }
 0xa10   : >> { %v4231_v46 = vpop.permute.xlu1 %4230  ;;  %8458 = vmatprep.subr.bf16.mxu0 %v4247_v22 }
 0xa11   : >> { %8459 = vmatpush3.bf16.msra.mxu0 %v4231_v46 }
 0xa13   : >> { %v4036_v8 = vpop.permute.xlu0 %4035 }
 0xa14   : >> { %v4020_v33 = vpop.permute.xlu1 %4019  ;;  %8428 = vmatprep.subr.bf16.mxu1 %v4036_v8 }
 0xa15   : >> { %8429 = vmatpush3.bf16.msra.mxu1 %v4020_v33 }
 0xa17   : >> { %v4245_v47 = vpop.permute.xlu0 %4244 }
 0xa18   : >> { %v4229_v32 = vpop.permute.xlu1 %4228  ;;  %4118 = vmatmul.mubr.bf16.vlgmr.msra.gmra.mxu1 %v9007_v54  ;;  %8460 = vmatprep.subr.bf16.mxu0 %v4245_v47 }
 0xa19   : >> { %8461 = vmatpush3.bf16.msra.mxu0 %v4229_v32  ;;  %4125 = vmatprep.mubr.bf16.mxu1 %v9010_v35 }
 0xa1b   : >> { %v4265_v23 = vpop.permute.xlu0 %4264 }
 0xa1c   : >> { %v4243_v25 = vpop.permute.xlu1 %4242  ;;  %8653 = vmatprep.subr.bf16.mxu1 %v4265_v23 }
 0xa1d   : >> { %8462 = vmatprep.subr.bf16.mxu0 %v4243_v25  ;;  %8654 = vmatpush3.bf16.msra.mxu1 %v4265_v23 }
 0xa1f   : >> { %v4227_v39 = vpop.permute.xlu0 %4226 }
 0xa20   : >> { %v4263_v27 = vpop.permute.xlu1 %4262  ;;  %4126 = vmatmul.mubr.bf16.gmra.mxu1 %v9012_v36  ;;  %8463 = vmatpush3.bf16.msra.mxu0 %v4227_v39 }
 0xa21   : >> { %8655 = vmatprep.subr.bf16.mxu1 %v4263_v27  ;;  %8661 = vmatprep.mubr.msk.bf16.mxu1 %vm3514_vm6, %v9019_v51 }
 0xa22   : >> { %8656 = vmatpush3.bf16.msra.mxu1 %v4263_v27 }
 0xa23   : >> { %v4261_v60 = vpop.permute.xlu0 %4260  ;;  %4325 = vmatmul.mubr.bf16.vlgmr.msra.gmra.mxu0 %v9013_v61 }
 0xa24   : >> { %8657 = vmatprep.subr.bf16.mxu1 %v4261_v60  ;;  %v4259_v0 = vpop.permute.xlu1 %4258  ;;  %4332 = vmatprep.mubr.bf16.mxu0 %v9016_v21 }
 0xa26   : >> { %8658 = vmatpush3.bf16.msra.mxu1 %v4261_v60 }
 0xa27   : >> { %8659 = vmatprep.subr.bf16.mxu1 %v4259_v0 }
 0xa2a   : >> { %8660 = vmatpush3.bf16.msra.mxu1 %v4259_v0 }
 0xa2b   : >> { %4333 = vmatmul.mubr.bf16.gmra.mxu0 %v9018_v20 }
 0xa2d   : >> { %8662 = vmatmul.mubr.msk.bf16.vlgmr.msra.gmra.mxu1 %vm3514_vm6, %v9020_v37 }
 0xa58   : >> { %v8615_v48 = vpop.f32.mrf.mxu1 }
 0xa5a   : >> { %v3604_v55 = vpop.f32.mrf.mxu1 }
 0xa5c   : >> { %v10737_v49 = vpop.f32.mrf.mxu1 }
 0xa5e   : >> { %v3607_v62 = vpop.f32.mrf.mxu1 }
 0xa6f   : >> { %v8328_v34 = vpop.f32.mrf.mxu0 }
 0xa71   : >> { %v8329_v50 = vpop.f32.mrf.mxu0 }
 0xa72   : >> { %v8330_v32 = vadd.f32 %v8329_v50, %v8328_v34 }
 0xa73   : >> { %v8331_v24 = vpop.f32.mrf.mxu0 }
 0xa74   : >> { %v3605_v27 = vadd.f32 %v8330_v32, %v3604_v55 }
 0xa75   : >> { %v8332_v19 = vpop.f32.mrf.mxu0 }
 0xa76   : >> { %v8333_v51 = vadd.f32 %v8332_v19, %v8331_v24 }
 0xa77   : >> { %v8334_v29 = vpop.f32.mrf.mxu0 }
 0xa78   : >> { %v8362_v44 = vpop.f32.mrf.mxu1  ;;  %v3608_v17 = vadd.f32 %v8333_v51, %v3607_v62 }
 0xa79   : >> { %v8335_v45 = vpop.f32.mrf.mxu0 }
 0xa7a   : >> { %v8363_v52 = vpop.f32.mrf.mxu1  ;;  %v8336_v39 = vadd.f32 %v8335_v45, %v8334_v29 }
 0xa7b   : >> { %v8337_v56 = vpop.f32.mrf.mxu0  ;;  %v8364_v60 = vadd.f32 %v8363_v52, %v8362_v44  ;;  %v4403_v44 = vpop.permute.xlu1 %4402 }
 0xa7c   : >> { %v8365_v9 = vpop.f32.mrf.mxu1  ;;  %v3613_v53 = vadd.f32 %v8615_v48, %v8336_v39 }
 0xa7d   : >> { %v8338_v7 = vpop.f32.mrf.mxu0  ;;  %v3710_v29 = vadd.f32 %v8364_v60, %v3605_v27 }
 0xa7e   : >> { %v8366_v38 = vpop.f32.mrf.mxu1  ;;  %v8339_v30 = vadd.f32 %v8338_v7, %v8337_v56 }
 0xa7f   : >> { %v8367_v34 = vadd.f32 %v8366_v38, %v8365_v9 }
 0xa80   : >> { %v8368_v42 = vpop.f32.mrf.mxu1  ;;  %v3616_v52 = vadd.f32 %v10737_v49, %v8339_v30 }
 0xa81   : >> { %v3713_v38 = vadd.f32 %v8367_v34, %v3608_v17  ;;  %v4398_v17 = vpop.permute.xlu0 %4397 }
 0xa82   : >> { %v8369_v10 = vpop.f32.mrf.mxu1 }
 0xa83   : >> { %v8370_v0 = vadd.f32 %v8369_v10, %v8368_v42 }
 0xa84   : >> { %v8371_v63 = vpop.f32.mrf.mxu1 }
 0xa85   : >> { %v3718_v19 = vadd.f32 %v8370_v0, %v3613_v53  ;;  %v4413_v60 = vpop.permute.xlu0 %4412 }
 0xa86   : >> { %v8372_v6 = vpop.f32.mrf.mxu1 }
 0xa87   : >> { %v8373_v50 = vadd.f32 %v8372_v6, %v8371_v63 }
 0xa88   : >> { %v8627_v2 = vpop.f32.mrf.mxu1 }
 0xa89   : >> { %v3767_v48 = vadd.f32 %v8627_v2, %v3718_v19  ;;  %v3721_v9 = vadd.f32 %v8373_v50, %v3616_v52 }
 0xa8a   : >> { %v3758_v3 = vpop.f32.mrf.mxu1 }
 0xa8b   : >> { %v3759_v56 = vadd.f32 %v3758_v3, %v3710_v29  ;;  %v12371_v29 = vld [vmem:[#allocation11_spill] sm:$0xff] (%p3258_p10) }
 0xa8c   : >> { %v10739_v26 = vpop.f32.mrf.mxu1 }
 0xa8d   : >> { %12367 = vst [vmem:[#allocation17_spill] sm:$0xff] %v10739_v26 }
 0xa8e   : >> { %v10741_v11 = vpop.f32.mrf.mxu1 }
 0xa8f   : >> { %12368 = vst [vmem:[#allocation18_spill] sm:$0xff] %v10741_v11 }
 0xa92   : >> { %v8396_v4 = vpop.f32.mrf.mxu0 }
 0xa94   : >> { %v8397_v58 = vpop.f32.mrf.mxu0  ;;  %v12369_v30 = vld [vmem:[#allocation17_spill] sm:$0xff] }
 0xa95   : >> { %v8398_v20 = vadd.f32 %v8397_v58, %v8396_v4  ;;  %v3770_v49 = vadd.f32 %v12369_v30, %v3721_v9 }
 0xa96   : >> { %v8399_v41 = vpop.f32.mrf.mxu0 }
 0xa98   : >> { %v8400_v12 = vpop.f32.mrf.mxu0 }
 0xa99   : >> { %v8401_v11 = vadd.f32 %v8400_v12, %v8399_v41 }
 0xa9a   : >> { %v8402_v1 = vpop.f32.mrf.mxu0 }
 0xa9c   : >> { %v8639_v28 = vpop.f32.mrf.mxu1  ;;  %v8403_v14 = vpop.f32.mrf.mxu0 }
 0xa9d   : >> { %v8404_v37 = vadd.f32 %v8403_v14, %v8402_v1 }
 0xa9e   : >> { %v3961_v43 = vpop.f32.mrf.mxu1  ;;  %v8405_v5 = vpop.f32.mrf.mxu0 }
 0xa9f   : >> { %v3970_v55 = vadd.f32 %v8639_v28, %v8404_v37  ;;  %v3962_v45 = vadd.f32 %v8398_v20, %v3961_v43 }
 0xaa0   : >> { %v8640_v15 = vpop.f32.mrf.mxu1  ;;  %v8406_v13 = vpop.f32.mrf.mxu0 }
 0xaa1   : >> { %v8407_v26 = vadd.f32 %v8406_v13, %v8405_v5  ;;  %v3978_v41 = vadd.f32 %v3970_v55, %v3767_v48  ;;  %v3976_v12 = vadd.f32 %v3962_v45, %v3759_v56  ;;  %v4448_v55 = vpack.c.bf16 (%p3258_p10), %v12371_v29, %v12371_v29 }
 0xaa2   : >> { %v3964_v18 = vpop.f32.mrf.mxu1 }
 0xaa3   : >> { %v3973_v63 = vadd.f32 %v8640_v15, %v8407_v26  ;;  %v3965_v6 = vadd.f32 %v8401_v11, %v3964_v18  ;;  %v4408_v11 = vpop.permute.xlu1 %4407 }
 0xaa4   : >> { %v8651_v40 = vpop.f32.mrf.mxu0 }
 0xaa5   : >> { %v3979_v13 = vadd.f32 %v3973_v63, %v3770_v49 }
 0xaa6   : >> { %v4168_v46 = vpop.f32.mrf.mxu0 }
 0xaa8   : >> { %v8652_v54 = vpop.f32.mrf.mxu0 }
 0xaaa   : >> { %v4171_v23 = vpop.f32.mrf.mxu0 }
 0xad8   : >> { %v8430_v22 = vpop.f32.mrf.mxu1 }
 0xada   : >> { %v8431_v8 = vpop.f32.mrf.mxu1 }
 0xadb   : >> { %v8432_v59 = vadd.f32 %v8431_v8, %v8430_v22 }
 0xadc   : >> { %v8433_v33 = vpop.f32.mrf.mxu1 }
 0xadd   : >> { %v4169_v7 = vadd.f32 %v8432_v59, %v4168_v46 }
 0xade   : >> { %v8434_v35 = vpop.f32.mrf.mxu1 }
 0xadf   : >> { %v8435_v42 = vadd.f32 %v8434_v35, %v8433_v33  ;;  %v4183_v26 = vadd.f32 %v4169_v7, %v3976_v12 }
 0xae0   : >> { %v8436_v47 = vpop.f32.mrf.mxu1 }
 0xae1   : >> { %v4172_v43 = vadd.f32 %v8435_v42, %v4171_v23 }
 0xae2   : >> { %v8437_v25 = vpop.f32.mrf.mxu1 }
 0xae3   : >> { %v8464_v36 = vpop.f32.mrf.mxu0  ;;  %v8438_v57 = vadd.f32 %v8437_v25, %v8436_v47 }
 0xae4   : >> { %v8439_v61 = vpop.f32.mrf.mxu1 }
 0xae5   : >> { %v8465_v21 = vpop.f32.mrf.mxu0  ;;  %v4177_v4 = vadd.f32 %v8651_v40, %v8438_v57 }
 0xae6   : >> { %v8440_v31 = vpop.f32.mrf.mxu1  ;;  %v8466_v1 = vadd.f32 %v8465_v21, %v8464_v36 }
 0xae7   : >> { %v8467_v16 = vpop.f32.mrf.mxu0  ;;  %v8441_v10 = vadd.f32 %v8440_v31, %v8439_v61  ;;  %v12370_v31 = vld [vmem:[#allocation18_spill] sm:$0xff]  ;;  %v4185_v15 = vadd.f32 %v4177_v4, %v3978_v41 }
 0xae8   : >> { %v3762_v14 = vadd.f32 %v12370_v31, %v3713_v38 }
 0xae9   : >> { %v8468_v24 = vpop.f32.mrf.mxu0  ;;  %v4180_v2 = vadd.f32 %v8652_v54, %v8441_v10 }
 0xaea   : >> { %v3977_v40 = vadd.f32 %v3965_v6, %v3762_v14  ;;  %v8469_v46 = vadd.f32 %v8468_v24, %v8467_v16 }
 0xaeb   : >> { %v8470_v62 = vpop.f32.mrf.mxu0  ;;  %v4186_v54 = vadd.f32 %v4180_v2, %v3979_v13 }
 0xaec   : >> { %v4184_v47 = vadd.f32 %v4172_v43, %v3977_v40 }
 0xaed   : >> { %v8663_v58 = vpop.f32.mrf.mxu1  ;;  %v8471_v53 = vpop.f32.mrf.mxu0 }
 0xaee   : >> { %v8472_v28 = vadd.f32 %v8471_v53, %v8470_v62 }
 0xaef   : >> { %v4375_v3 = vpop.f32.mrf.mxu1  ;;  %v8473_v59 = vpop.f32.mrf.mxu0 }
 0xaf0   : >> { %v4384_v57 = vadd.f32 %v8663_v58, %v8472_v28  ;;  %v4376_v5 = vadd.f32 %v8466_v1, %v4375_v3 }
 0xaf1   : >> { %v8664_v18 = vpop.f32.mrf.mxu1  ;;  %v8474_v22 = vpop.f32.mrf.mxu0 }
 0xaf2   : >> { %v4390_v8 = vadd.f32 %v4376_v5, %v4183_v26  ;;  %v8475_v33 = vadd.f32 %v8474_v22, %v8473_v59  ;;  %v4392_v35 = vadd.f32 %v4384_v57, %v4185_v15 }
 0xaf3   : >> { %v4378_v32 = vpop.f32.mrf.mxu1 }
 0xaf4   : >> { %v4415_v23 = vadd.f32 %v4398_v17, %v4390_v8  ;;  %v4387_v25 = vadd.f32 %v8664_v18, %v8475_v33  ;;  %v4379_v36 = vadd.f32 %v8469_v46, %v4378_v32  ;;  %v4417_v51 = vadd.f32 %v4408_v11, %v4392_v35 }
 0xaf6   : >> { %v4419_v39 = vmax.f32 %v4415_v23, 0.0  ;;  %v4391_v61 = vadd.f32 %v4379_v36, %v4184_v47  ;;  %v4393_v27 = vadd.f32 %v4387_v25, %v4186_v54  ;;  %v4421_v21 = vmax.f32 %v4417_v51, 0.0 }
 0xaf8   : >> { %v8231_v0 = vpack.c.bf16 %v4419_v39, %v4419_v39  ;;  %v4416_v20 = vadd.f32 %v4403_v44, %v4391_v61  ;;  %v4418_v16 = vadd.f32 %v4413_v60, %v4393_v27  ;;  %v8233_v37 = vpack.c.bf16 %v4421_v21, %v4421_v21 }
 0xafa   : >> { %4444 = vst.msk [vmem:[%s4442_s21] sm:$0xf] %vm4443_vm3, %v8231_v0  ;;  %v4420_v34 = vmax.f32 %v4416_v20, 0.0  ;;  %v4422_v50 = vmax.f32 %v4418_v16, 0.0  ;;  %4446 = vst.msk [vmem:[%s4442_s21 + $0x8] sm:$0xf] %vm4443_vm3, %v8233_v37 }
 0xafb   : > { %3260 = sbr.rel (!%p3258_p10) target bundleno = 2317 (0x90d), region = 284 }
 0xafc   : >> { %v8232_v24 = vpack.c.bf16 %v4420_v34, %v4420_v34  ;;  %v8234_v19 = vpack.c.bf16 %v4422_v50, %v4422_v50 }
 0xafe   : >> { %4445 = vst.msk [vmem:[%s4442_s21 + $0x4] sm:$0xf] %vm4443_vm3, %v8232_v24  ;;  %4447 = vst.msk [vmem:[%s4442_s21 + $0xc] sm:$0xf] %vm4443_vm3, %v8234_v19 }
 0xb00 LB: >> { %s7983_s16 = sshll.u32 %s9177_s23, 6  ;;  %vm4547_vm12 = vcmask 1040384   ;;  %v9212_v45 = vmov 0   ;;  %v9213_v31 = vmov 1.0|1.0   ;;  %vm4540_vm8 = vcmask 138240   ;;  %s9177_s23 = sphi %s10752_s23, %s4454_s23  }
 0xb01   : >> { %s4456_s20 = sshra.s32 %s7983_s16, 3  ;;  %s8236_s22 = sadd.s32 32, %s7983_s16  ;;  %v4549_v44 = vsel %vm4547_vm12, 65535, %v9212_v45  ;;  %vm4622_vm13 = vcmask 68608  }
 0xb02   : >> { %s7984_s24 = sshll.u32 %s4456_s20, 2  ;;  %s4467_s30 = sshra.s32 %s8236_s22, 3  ;;  %v4551_v62 = vand.u32 %v4549_v44, %v4448_v55 }
 0xb03   : >> { %s7987_s17 = sshll.u32 %s4467_s30, 2  ;;  %s4459_s27 = scalar_lea.vmem [#allocation8], %s7984_s24 }
 0xb04   : >> { %s8238_s19 = sadd.s32 64, %s7983_s16  ;;  %s4470_s25 = scalar_lea.vmem [#allocation8], %s7987_s17  ;;  %8665 = vmatprep.subr.bf16.mxu0 %v4551_v62 }
 0xb05   : >> { %v4462_v52 = vld [vmem:[%s4459_s27 + $0x8] sm:$0xf]  ;;  %v4460_v42 = vld [vmem:[%s4459_s27] sm:$0xf]  ;;  %s4477_s26 = sshra.s32 %s8238_s19, 3  ;;  %8666 = vmatpush3.bf16.msra.mxu0 %v4551_v62  ;;  %s9214_s16 = smov 127  }
 0xb06   : >> { %v4473_v48 = vld [vmem:[%s4470_s25 + $0x8] sm:$0xf]  ;;  %v4471_v56 = vld [vmem:[%s4470_s25] sm:$0xf]  ;;  %s7989_s29 = sshll.u32 %s4477_s26, 2  ;;  %8667 = vmatprep.subr.msk.bf16.mxu0 %vm9666_vm14, %v9213_v31  ;;  %s9215_s20 = smov 126  }
 0xb07   : >> { %v4487_v7 = vmax.bf16 %v4473_v48, %v4462_v52  ;;  %v4485_v4 = vmax.bf16 %v4471_v56, %v4460_v42  ;;  %v4463_v9 = vld [vmem:[%s4459_s27 + $0xc] sm:$0xf]  ;;  %v4461_v6 = vld [vmem:[%s4459_s27 + $0x4] sm:$0xf]  ;;  %s4480_s21 = scalar_lea.vmem [#allocation8], %s7989_s29  ;;  %s7990_s22 = sshll.u32 %s9177_s23, 5 }
 0xb08   : >> { %v4474_v38 = vld [vmem:[%s4470_s25 + $0xc] sm:$0xf]  ;;  %v4472_v58 = vld [vmem:[%s4470_s25 + $0x4] sm:$0xf]  ;;  %v4483_v53 = vld [vmem:[%s4480_s21 + $0x8] sm:$0xf] }
 0xb09   : >> { %v4488_v63 = vmax.bf16 %v4474_v38, %v4463_v9  ;;  %v4481_v41 = vld [vmem:[%s4480_s21] sm:$0xf]  ;;  %v4484_v12 = vld [vmem:[%s4480_s21 + $0xc] sm:$0xf]  ;;  %v4486_v1 = vmax.bf16 %v4472_v58, %v4461_v6  ;;  %v4491_v28 = vmax.bf16 %v4487_v7, %v4483_v53  ;;  %v4482_v49 = vld [vmem:[%s4480_s21 + $0x4] sm:$0xf]  ;;  %8668 = vmatpush3.bf16.msk.msra.mxu0 %vm9666_vm14, %v9213_v31 }
 0xb0a   : >> { %v4489_v30 = vmax.bf16 %v4485_v4, %v4481_v41  ;;  %s4618_s24 = sshra.s32 %s7990_s22, 3  ;;  %s4454_s23 = sadd.s32 1, %s9177_s23  }
 0xb0b   : >> { %4501 = vrot.lane.b32.xlu1 %v4491_v28, %s9214_s16  ;;  %v4492_v43 = vmax.bf16 %v4488_v63, %v4484_v12  ;;  %v4490_v2 = vmax.bf16 %v4486_v1, %v4482_v49  ;;  %s8001_s30 = sshll.u32 %s4618_s24, 2  ;;  %p4451_p11 = scmp.ge.s32.totalorder %s4454_s23, 9  }
 0xb0c   : >> { %4497 = vrot.lane.b32.xlu0 %v4489_v30, %s9214_s16  ;;  %s4621_s17 = scalar_lea.vmem [#allocation9], %s8001_s30  ;;  %s9216_s27 = smov (%p4451_p11), 127   ;;  %v9217_v16 = vmov (%p4451_p11), 0   ;;  %v10813_v55 = vld [vmem:[%s12283_s9 + $0x14] ss:$8 sps:$4 sm:$0xff] (%p4451_p11)   ;;  %vm5137_vm14 = vcmask (%p4451_p11), 35840  }
 0xb0d   : > { %4747 = vmatprep.subr.bf16.mxu0 (%p4451_p11), %v9217_v16  ;;  %4810 = vmatprep.subr.bf16.mxu1 (%p4451_p11), %v9217_v16  ;;  %s9218_s23 = smov (%p4451_p11), 126   ;;  %v10818_v45 = vld [vmem:[%s12283_s9 + $0x4] ss:$8 sps:$4 sm:$0xff] (%p4451_p11)   ;;  %v10839_v44 = vld [vmem:[%s12283_s9] ss:$8 sps:$4 sm:$0xff] (%p4451_p11)   ;;  %s9220_s22 = smov (%p4451_p11), 124  }
 0xb0e   : > { %9022 = vset.pattern.permute.xlu1 (%p4451_p11), %v9217_v16  ;;  %9021 = vset.pattern.permute.xlu0 (%p4451_p11), %v9217_v16  ;;  %v10868_v52 = vld [vmem:[%s12283_s9 + $0x34] ss:$8 sps:$4 sm:$0xff] (%p4451_p11)   ;;  %vm9221_vm7 = vmmov (%p4451_p11), 0   ;;  %vm7389_vm9 = vcmask (%p4451_p11), 3072  }
 0xb0f   : >> { %4503 = vrot.lane.b32.xlu1 %v4492_v43, %s9214_s16  ;;  %8019 = vmatprep.mubr.msk.bf16.mxu1 (%p4451_p11), %vm2182_vm1, %v10818_v45 }
 0xb10   : >> { %4499 = vrot.lane.b32.xlu0 %v4490_v2, %s9214_s16 }
 0xb13   : >> { %4515 = vrot.lane.b32.xlu1 %v4490_v2, %s9215_s20 }
 0xb14   : >> { %4513 = vrot.lane.b32.xlu0 %v4489_v30, %s9215_s20 }
 0xb17   : >> { %4519 = vrot.lane.b32.xlu1 %v4492_v43, %s9215_s20 }
 0xb18   : >> { %4517 = vrot.lane.b32.xlu0 %v4491_v28, %s9215_s20  ;;  %s9219_s20 = smov (%p4451_p11), 125  }
 0xb7d   : >> { %v4502_v3 = vpop.permute.xlu1 %4501 }
 0xb7e   : >> { %v4498_v59 = vpop.permute.xlu0 %4497  ;;  %v4511_v18 = vmax.bf16 %v4502_v3, %v4491_v28 }
 0xb7f   : >> { %v4509_v17 = vmax.bf16 %v4498_v59, %v4489_v30 }
 0xb81   : >> { %v4504_v57 = vpop.permute.xlu1 %4503 }
 0xb82   : >> { %v4500_v5 = vpop.permute.xlu0 %4499  ;;  %v4512_v22 = vmax.bf16 %v4504_v57, %v4492_v43 }
 0xb83   : >> { %v4510_v26 = vmax.bf16 %v4500_v5, %v4490_v2 }
 0xb85   : >> { %v4516_v11 = vpop.permute.xlu1 %4515 }
 0xb86   : >> { %v4514_v15 = vpop.permute.xlu0 %4513  ;;  %v4526_v13 = vmax.bf16 %v4516_v11, %v4510_v26 }
 0xb87   : >> { %v4525_v40 = vmax.bf16 %v4514_v15, %v4509_v17 }
 0xb89   : >> { %v7991_v46 = vcombine.low %v4525_v40, %v4526_v13  ;;  %v4520_v8 = vpop.permute.xlu1 %4519 }
 0xb8a   : >> { %v4518_v33 = vpop.permute.xlu0 %4517  ;;  %v4528_v35 = vmax.bf16 %v4520_v8, %v4512_v22 }
 0xb8b   : >> { %v4527_v47 = vmax.bf16 %v4518_v33, %v4511_v18  ;;  %8669 = vmatprep.mubr.msk.bf16.mxu0 %vm4540_vm8, %v7991_v46  ;;  %v10998_v18 = vld [vmem:[%s12283_s9 + $0x10] ss:$8 sps:$4 sm:$0xff] (%p4451_p11)   ;;  %v11013_v33 = vld [vmem:[%s12283_s9 + $0x24] ss:$8 sps:$4 sm:$0xff] (%p4451_p11)  }
 0xb8d   : >> { %v7992_v32 = vcombine.low %v4527_v47, %v4528_v35 }
 0xb8f   : >> { %8670 = vmatmul.mubr.msk.bf16.vlgmr.msra.gmra.mxu0 %vm4540_vm8, %v7992_v32 }
 0xb90   : > { %8016 = vmatprep.mubr.msk.bf16.mxu0 (%p4451_p11), %vm2182_vm1, %v10813_v55 }
 0xc4f   : >> { %v8671_v54 = vpop.f32.mrf.mxu0 }
 0xc50   : >> { %v8241_v23 = vpack.c.bf16 %v8671_v54, %v8671_v54 }
 0xc51   : >> { %v4587_v25 = vpop.f32.mrf.mxu0 }
 0xc52   : >> { %4625 = vst.msk [vmem:[%s4621_s17 + $0x8] sm:$0xf] %vm4622_vm13, %v8241_v23  ;;  %v8239_v36 = vpack.c.bf16 %v4587_v25, %v4587_v25 }
 0xc53   : >> { %v8672_v51 = vpop.f32.mrf.mxu0 }
 0xc54   : >> { %4623 = vst.msk [vmem:[%s4621_s17] sm:$0xf] %vm4622_vm13, %v8239_v36  ;;  %v8242_v39 = vpack.c.bf16 %v8672_v51, %v8672_v51  ;;  %4453 = sbr.rel (!%p4451_p11) target bundleno = 2816 (0xb00), region = 295 }
 0xc55   : >> { %v4590_v61 = vpop.f32.mrf.mxu0 }
 0xc56   : >> { %4626 = vst.msk [vmem:[%s4621_s17 + $0xc] sm:$0xf] %vm4622_vm13, %v8242_v39  ;;  %v8240_v27 = vpack.c.bf16 %v4590_v61, %v4590_v61 }
 0xc58   : >> { %4624 = vst.msk [vmem:[%s4621_s17 + $0x4] sm:$0xf] %vm4622_vm13, %v8240_v27 }
 0xc5f   : > { %v10769_v21 = vld [vmem:[#allocation9 + $0x38] sm:$0xff]   ;;  %v10771_v60 = vld [vmem:[#allocation9 + $0x28] sm:$0xff]   ;;  %v10775_v0 = vld [vmem:[#allocation9 + $0x30] sm:$0xff]  }
 0xc60   : > { %4727 = vrot.lane.b32.xlu0 %v10769_v21, %s9216_s27  ;;  %4723 = vrot.lane.b32.xlu1 %v10771_v60, %s9216_s27  ;;  %v10779_v20 = vld [vmem:[#allocation9 + $0x20] sm:$0xff]   ;;  %v9027_v37 = vld [vmem:[#allocation9 + $0x18] sm:$0xff]   ;;  %v9028_v34 = vld [vmem:[#allocation9 + $0x10] sm:$0xff]  }
 0xc61   : > { %4811 = vmatpush1.bf16.msra.mxu1 %v10769_v21  ;;  %v9029_v50 = vld [vmem:[#allocation9 + $0x8] sm:$0xff]   ;;  %v9030_v24 = vld [vmem:[#allocation9] sm:$0xff]   ;;  %v10884_v62 = vld [vmem:[#allocation9 + $0x38] sm:$0xff]  }
 0xc62   : > { %4812 = vmatprep.subr.bf16.mxu1 %v9217_v16  ;;  %v9031_v19 = vld [vmem:[#allocation9 + $0x48] sm:$0xff]   ;;  %v9032_v29 = vld [vmem:[#allocation9 + $0x40] sm:$0xff]   ;;  %v10888_v48 = vld [vmem:[#allocation9 + $0x30] sm:$0xff]  }
 0xc63   : > { %v10877_v42 = vld [vmem:[#allocation9 + $0x48] sm:$0xff]   ;;  %v10880_v10 = vld [vmem:[#allocation9 + $0x40] sm:$0xff]   ;;  %v10900_v4 = vld [vmem:[#allocation9 + $0x18] sm:$0xff]  }
 0xc64   : > { %4725 = vrot.lane.b32.xlu0 %v10775_v0, %s9216_s27  ;;  %4721 = vrot.lane.b32.xlu1 %v10779_v20, %s9216_s27  ;;  %v10892_v56 = vld [vmem:[#allocation9 + $0x28] sm:$0xff]   ;;  %v10896_v7 = vld [vmem:[#allocation9 + $0x20] sm:$0xff]   ;;  %v10904_v9 = vld [vmem:[#allocation9 + $0x10] sm:$0xff]  }
 0xc65   : > { %4813 = vmatpush1.bf16.msra.mxu1 %v10775_v0  ;;  %v10908_v38 = vld [vmem:[#allocation9 + $0x58] sm:$0xff]   ;;  %v10912_v63 = vld [vmem:[#allocation9 + $0x50] sm:$0xff]   ;;  %v10980_v26 = vld [vmem:[#allocation9 + $0x48] sm:$0xff]  }
 0xc66   : > { %4814 = vmatprep.subr.bf16.mxu1 %v9217_v16  ;;  %v10964_v2 = vld [vmem:[#allocation9 + $0x58] sm:$0xff]   ;;  %v10971_v57 = vld [vmem:[#allocation9 + $0x50] sm:$0xff]   ;;  %v10991_v13 = vld [vmem:[#allocation9 + $0x40] sm:$0xff]  }
 0xc67   : > { %v11007_v46 = vld [vmem:[#allocation9 + $0x38] sm:$0xff]   ;;  %v11023_v47 = vld [vmem:[#allocation9 + $0x30] sm:$0xff]   ;;  %v11035_v23 = vld [vmem:[#allocation9 + $0x28] sm:$0xff]  }
 0xc68   : > { %4719 = vrot.lane.b32.xlu0 %v9027_v37, %s9216_s27  ;;  %4717 = vrot.lane.b32.xlu1 %v9028_v34, %s9216_s27  ;;  %v11045_v51 = vld [vmem:[#allocation9 + $0x20] sm:$0xff]   ;;  %v11055_v27 = vld [vmem:[#allocation9 + $0x68] sm:$0xff]  }
 0xc69   : > { %4815 = vmatpush1.bf16.msra.mxu1 %v10771_v60 }
 0xc6a   : > { %4816 = vmatprep.subr.bf16.mxu1 %v9217_v16 }
 0xc6c   : > { %4715 = vrot.lane.b32.xlu0 %v9029_v50, %s9216_s27  ;;  %4713 = vrot.lane.b32.xlu1 %v9030_v24, %s9216_s27 }
 0xc6d   : > { %4817 = vmatpush1.bf16.msra.mxu1 %v10779_v20 }
 0xc6e   : > { %4818 = vmatprep.subr.bf16.mxu1 %v9217_v16 }
 0xc70   : > { %4731 = vrot.lane.b32.xlu0 %v9031_v19, %s9216_s27  ;;  %4729 = vrot.lane.b32.xlu1 %v9032_v29, %s9216_s27 }
 0xc71   : > { %4819 = vmatpush1.bf16.msra.mxu1 %v9027_v37 }
 0xc72   : > { %4820 = vmatprep.subr.bf16.mxu1 %v9217_v16 }
 0xc74   : > { %4877 = vrot.lane.b32.xlu0 %v10769_v21, %s9218_s23  ;;  %4875 = vrot.lane.b32.xlu1 %v10775_v0, %s9218_s23 }
 0xc75   : > { %4821 = vmatpush1.bf16.msra.mxu1 %v9028_v34 }
 0xc76   : > { %4822 = vmatprep.subr.bf16.mxu1 %v9217_v16 }
 0xc78   : > { %4873 = vrot.lane.b32.xlu0 %v10771_v60, %s9218_s23  ;;  %4871 = vrot.lane.b32.xlu1 %v10779_v20, %s9218_s23 }
 0xc79   : > { %4823 = vmatpush1.bf16.msra.mxu1 %v9029_v50 }
 0xc7a   : > { %4824 = vmatprep.subr.bf16.mxu1 %v9217_v16 }
 0xc7c   : > { %4869 = vrot.lane.b32.xlu0 %v9027_v37, %s9218_s23  ;;  %4867 = vrot.lane.b32.xlu1 %v9028_v34, %s9218_s23 }
 0xc7d   : > { %4825 = vmatpush1.bf16.msra.mxu1 %v9030_v24 }
 0xc7e   : > { %4838 = vmatprep.subr.bf16.mxu1 %v9217_v16 }
 0xc80   : > { %4865 = vrot.lane.b32.xlu0 %v9029_v50, %s9218_s23  ;;  %4863 = vrot.lane.b32.xlu1 %v9030_v24, %s9218_s23 }
 0xc81   : > { %4839 = vmatpush2.bf16.msra.mxu1 %v9031_v19 }
 0xc82   : > { %4840 = vmatprep.subr.bf16.mxu1 %v9217_v16 }
 0xc84   : > { %4881 = vrot.lane.b32.xlu0 %v9031_v19, %s9218_s23  ;;  %4879 = vrot.lane.b32.xlu1 %v9032_v29, %s9218_s23 }
 0xc85   : > { %4841 = vmatpush2.bf16.msra.mxu1 %v9032_v29 }
 0xc86   : > { %4984 = vmatprep.subr.bf16.mxu1 %v9217_v16 }
 0xc88   : > { %4965 = vrot.lane.b32.xlu0 %v10769_v21, %s9219_s20  ;;  %5053 = vrot.lane.b32.xlu1 %v10769_v21, %s9220_s22 }
 0xc89   : > { %4843 = vmatmul.mubr.bf16.vlgmr.msra.gmra.mxu1 %v10839_v44 }
 0xc8a   : > { %8029 = vmatprep.mubr.msk.bf16.mxu1 %vm2182_vm1, %v10868_v52 }
 0xc8c   : > { %4963 = vrot.lane.b32.xlu0 %v10775_v0, %s9219_s20  ;;  %5051 = vrot.lane.b32.xlu1 %v10775_v0, %s9220_s22  ;;  %v11065_v0 = vld [vmem:[#allocation9 + $0x60] sm:$0xff]  }
 0xc90   : > { %4961 = vrot.lane.b32.xlu0 %v10771_v60, %s9219_s20  ;;  %5049 = vrot.lane.b32.xlu1 %v10771_v60, %s9220_s22 }
 0xc94   : > { %4959 = vrot.lane.b32.xlu0 %v10779_v20, %s9219_s20  ;;  %5047 = vrot.lane.b32.xlu1 %v10779_v20, %s9220_s22 }
 0xc98   : > { %4957 = vrot.lane.b32.xlu0 %v9027_v37, %s9219_s20  ;;  %5045 = vrot.lane.b32.xlu1 %v9027_v37, %s9220_s22 }
 0xc9c   : > { %4955 = vrot.lane.b32.xlu0 %v9028_v34, %s9219_s20  ;;  %5043 = vrot.lane.b32.xlu1 %v9028_v34, %s9220_s22 }
 0xca0   : > { %4953 = vrot.lane.b32.xlu0 %v9029_v50, %s9219_s20  ;;  %5041 = vrot.lane.b32.xlu1 %v9029_v50, %s9220_s22 }
 0xca4   : > { %4951 = vrot.lane.b32.xlu0 %v9030_v24, %s9219_s20  ;;  %5039 = vrot.lane.b32.xlu1 %v9030_v24, %s9220_s22 }
 0xca8   : > { %4969 = vrot.lane.b32.xlu0 %v9031_v19, %s9219_s20  ;;  %5057 = vrot.lane.b32.xlu1 %v9031_v19, %s9220_s22 }
 0xcac   : > { %4967 = vrot.lane.b32.xlu0 %v9032_v29, %s9219_s20  ;;  %5055 = vrot.lane.b32.xlu1 %v9032_v29, %s9220_s22 }
 0xcb0   : > { %5238 = vrot.lane.b32.xlu0 %v10877_v42, %s9216_s27  ;;  %5236 = vrot.lane.b32.xlu1 %v10880_v10, %s9216_s27 }
 0xcb4   : > { %5234 = vrot.lane.b32.xlu0 %v10884_v62, %s9216_s27  ;;  %5232 = vrot.lane.b32.xlu1 %v10888_v48, %s9216_s27 }
 0xcb8   : > { %5230 = vrot.lane.b32.xlu0 %v10892_v56, %s9216_s27  ;;  %5228 = vrot.lane.b32.xlu1 %v10896_v7, %s9216_s27 }
 0xcbc   : > { %5226 = vrot.lane.b32.xlu0 %v10900_v4, %s9216_s27  ;;  %5224 = vrot.lane.b32.xlu1 %v10904_v9, %s9216_s27 }
 0xcc0   : > { %5242 = vrot.lane.b32.xlu0 %v10908_v38, %s9216_s27  ;;  %5240 = vrot.lane.b32.xlu1 %v10912_v63, %s9216_s27 }
 0xcc4   : > { %5386 = vrot.lane.b32.xlu0 %v10877_v42, %s9218_s23  ;;  %5473 = vrot.lane.b32.xlu1 %v10877_v42, %s9219_s20 }
 0xcc8   : > { %5384 = vrot.lane.b32.xlu0 %v10880_v10, %s9218_s23  ;;  %5471 = vrot.lane.b32.xlu1 %v10880_v10, %s9219_s20 }
 0xccc   : > { %5382 = vrot.lane.b32.xlu0 %v10884_v62, %s9218_s23  ;;  %5469 = vrot.lane.b32.xlu1 %v10884_v62, %s9219_s20 }
 0xcd0   : > { %5380 = vrot.lane.b32.xlu0 %v10888_v48, %s9218_s23  ;;  %5467 = vrot.lane.b32.xlu1 %v10888_v48, %s9219_s20 }
 0xcd2   : > { %v4728_v6 = vpop.permute.xlu0 %4727  ;;  %v4724_v58 = vpop.permute.xlu1 %4723 }
 0xcd3   : > { %4748 = vmatpush1.bf16.msra.mxu0 %v4728_v6 }
 0xcd4   : > { %5378 = vrot.lane.b32.xlu0 %v10892_v56, %s9218_s23  ;;  %4749 = vmatprep.subr.bf16.mxu0 %v9217_v16 }
 0xcd5   : > { %5465 = vrot.lane.b32.xlu1 %v10892_v56, %s9219_s20 }
 0xcd6   : > { %v4726_v53 = vpop.permute.xlu0 %4725  ;;  %v4722_v41 = vpop.permute.xlu1 %4721 }
 0xcd7   : > { %4750 = vmatpush1.bf16.msra.mxu0 %v4726_v53  ;;  %v11106_v53 = vld [vmem:[%s12283_s9 + $0x20] ss:$8 sps:$4 sm:$0xff]  }
 0xcd8   : > { %5376 = vrot.lane.b32.xlu0 %v10896_v7, %s9218_s23  ;;  %4751 = vmatprep.subr.bf16.mxu0 %v9217_v16 }
 0xcd9   : > { %5463 = vrot.lane.b32.xlu1 %v10896_v7, %s9219_s20 }
 0xcda   : > { %v4720_v12 = vpop.permute.xlu0 %4719  ;;  %v4718_v1 = vpop.permute.xlu1 %4717 }
 0xcdb   : > { %4752 = vmatpush1.bf16.msra.mxu0 %v4724_v58 }
 0xcdc   : > { %5374 = vrot.lane.b32.xlu0 %v10900_v4, %s9218_s23  ;;  %4753 = vmatprep.subr.bf16.mxu0 %v9217_v16 }
 0xcdd   : > { %5461 = vrot.lane.b32.xlu1 %v10900_v4, %s9219_s20 }
 0xcde   : > { %v4716_v28 = vpop.permute.xlu0 %4715  ;;  %v4714_v30 = vpop.permute.xlu1 %4713 }
 0xcdf   : > { %4754 = vmatpush1.bf16.msra.mxu0 %v4722_v41  ;;  %v11111_v41 = vld [vmem:[%s12283_s9 + $0x30] ss:$8 sps:$4 sm:$0xff]  }
 0xce0   : > { %5372 = vrot.lane.b32.xlu0 %v10904_v9, %s9218_s23  ;;  %4755 = vmatprep.subr.bf16.mxu0 %v9217_v16 }
 0xce1   : > { %5459 = vrot.lane.b32.xlu1 %v10904_v9, %s9219_s20 }
 0xce2   : > { %v4732_v49 = vpop.permute.xlu0 %4731  ;;  %v4730_v31 = vpop.permute.xlu1 %4729 }
 0xce3   : > { %4756 = vmatpush1.bf16.msra.mxu0 %v4720_v12 }
 0xce4   : > { %5390 = vrot.lane.b32.xlu0 %v10908_v38, %s9218_s23  ;;  %4757 = vmatprep.subr.bf16.mxu0 %v9217_v16 }
 0xce5   : > { %5477 = vrot.lane.b32.xlu1 %v10908_v38, %s9219_s20 }
 0xce6   : > { %v4878_v14 = vpop.permute.xlu0 %4877  ;;  %v4876_v43 = vpop.permute.xlu1 %4875 }
 0xce7   : > { %4758 = vmatpush1.bf16.msra.mxu0 %v4718_v1 }
 0xce8   : > { %5388 = vrot.lane.b32.xlu0 %v10912_v63, %s9218_s23  ;;  %4759 = vmatprep.subr.bf16.mxu0 %v9217_v16 }
 0xce9   : > { %5475 = vrot.lane.b32.xlu1 %v10912_v63, %s9219_s20 }
 0xcea   : > { %v4874_v3 = vpop.permute.xlu0 %4873  ;;  %v4872_v59 = vpop.permute.xlu1 %4871 }
 0xceb   : > { %4760 = vmatpush1.bf16.msra.mxu0 %v4716_v28  ;;  %v11127_v28 = vld [vmem:[%s12283_s9 + $0x44] ss:$8 sps:$4 sm:$0xff]  }
 0xcec   : > { %5560 = vrot.lane.b32.xlu0 %v10877_v42, %s9220_s22  ;;  %4761 = vmatprep.subr.bf16.mxu0 %v9217_v16 }
 0xced   : > { %5735 = vrot.lane.b32.xlu1 %v10964_v2, %s9216_s27 }
 0xcee   : > { %v4870_v5 = vpop.permute.xlu0 %4869  ;;  %v10973_v17 = vpop.permute.xlu1 %4867 }
 0xcef   : > { %4762 = vmatpush1.bf16.msra.mxu0 %v4714_v30 }
 0xcf0   : > { %5558 = vrot.lane.b32.xlu0 %v10880_v10, %s9220_s22  ;;  %4775 = vmatprep.subr.bf16.mxu0 %v9217_v16 }
 0xcf1   : > { %5733 = vrot.lane.b32.xlu1 %v10971_v57, %s9216_s27 }
 0xcf2   : > { %v10982_v11 = vpop.permute.xlu0 %4865  ;;  %v10984_v15 = vpop.permute.xlu1 %4863 }
 0xcf3   : > { %4776 = vmatpush2.bf16.msra.mxu0 %v4732_v49 }
 0xcf4   : > { %5556 = vrot.lane.b32.xlu0 %v10884_v62, %s9220_s22  ;;  %4777 = vmatprep.subr.bf16.mxu0 %v9217_v16 }
 0xcf5   : > { %5731 = vrot.lane.b32.xlu1 %v10980_v26, %s9216_s27 }
 0xcf6   : > { %v10993_v40 = vpop.permute.xlu0 %4881  ;;  %v11000_v22 = vpop.permute.xlu1 %4879 }
 0xcf7   : > { %4778 = vmatpush2.bf16.msra.mxu0 %v4730_v31 }
 0xcf8   : > { %5554 = vrot.lane.b32.xlu0 %v10888_v48, %s9220_s22  ;;  %4896 = vmatprep.subr.bf16.mxu0 %v9217_v16 }
 0xcf9   : > { %5729 = vrot.lane.b32.xlu1 %v10991_v13, %s9216_s27 }
 0xcfa   : > { %v4966_v8 = vpop.permute.xlu0 %4965  ;;  %4780 = vmatmul.mubr.bf16.vlgmr.msra.gmra.mxu0 %v10998_v18  ;;  %v11015_v35 = vpop.permute.xlu1 %5053 }
 0xcfb   : > { %4897 = vmatpush1.bf16.msra.mxu0 %v4878_v14  ;;  %4985 = vmatpush1.bf16.msra.mxu1 %v4966_v8 }
 0xcfc   : > { %5552 = vrot.lane.b32.xlu0 %v10892_v56, %s9220_s22  ;;  %4898 = vmatprep.subr.bf16.mxu0 %v9217_v16 }
 0xcfd   : > { %5727 = vrot.lane.b32.xlu1 %v11007_v46, %s9216_s27  ;;  %4986 = vmatprep.subr.bf16.mxu1 %v9217_v16 }
 0xcfe   : > { %v4964_v32 = vpop.permute.xlu0 %4963  ;;  %8024 = vmatprep.mubr.msk.bf16.mxu0 %vm2182_vm1, %v11013_v33  ;;  %v11027_v54 = vpop.permute.xlu1 %5051 }
 0xcff   : > { %4899 = vmatpush1.bf16.msra.mxu0 %v4876_v43  ;;  %4987 = vmatpush1.bf16.msra.mxu1 %v4964_v32 }
 0xd00   : > { %5550 = vrot.lane.b32.xlu0 %v10896_v7, %s9220_s22  ;;  %4900 = vmatprep.subr.bf16.mxu0 %v9217_v16 }
 0xd01   : > { %5725 = vrot.lane.b32.xlu1 %v11023_v47, %s9216_s27  ;;  %4988 = vmatprep.subr.bf16.mxu1 %v9217_v16 }
 0xd02   : > { %v4962_v25 = vpop.permute.xlu0 %4961  ;;  %v11037_v36 = vpop.permute.xlu1 %5049 }
 0xd03   : > { %4901 = vmatpush1.bf16.msra.mxu0 %v4874_v3  ;;  %4989 = vmatpush1.bf16.msra.mxu1 %v4962_v25 }
 0xd04   : > { %5548 = vrot.lane.b32.xlu0 %v10900_v4, %s9220_s22  ;;  %4902 = vmatprep.subr.bf16.mxu0 %v9217_v16 }
 0xd05   : > { %5723 = vrot.lane.b32.xlu1 %v11035_v23, %s9216_s27  ;;  %4990 = vmatprep.subr.bf16.mxu1 %v9217_v16 }
 0xd06   : > { %v4960_v39 = vpop.permute.xlu0 %4959  ;;  %v11047_v61 = vpop.permute.xlu1 %5047 }
 0xd07   : > { %4903 = vmatpush1.bf16.msra.mxu0 %v4872_v59  ;;  %4991 = vmatpush1.bf16.msra.mxu1 %v4960_v39 }
 0xd08   : > { %5546 = vrot.lane.b32.xlu0 %v10904_v9, %s9220_s22  ;;  %4904 = vmatprep.subr.bf16.mxu0 %v9217_v16 }
 0xd09   : > { %5721 = vrot.lane.b32.xlu1 %v11045_v51, %s9216_s27  ;;  %4992 = vmatprep.subr.bf16.mxu1 %v9217_v16 }
 0xd0a   : > { %v4958_v21 = vpop.permute.xlu0 %4957  ;;  %v11057_v60 = vpop.permute.xlu1 %5045 }
 0xd0b   : > { %4905 = vmatpush1.bf16.msra.mxu0 %v4870_v5  ;;  %4993 = vmatpush1.bf16.msra.mxu1 %v4958_v21 }
 0xd0c   : > { %5564 = vrot.lane.b32.xlu0 %v10908_v38, %s9220_s22  ;;  %4906 = vmatprep.subr.bf16.mxu0 %v9217_v16 }
 0xd0d   : > { %5739 = vrot.lane.b32.xlu1 %v11055_v27, %s9216_s27  ;;  %4994 = vmatprep.subr.bf16.mxu1 %v9217_v16 }
 0xd0e   : > { %v4956_v20 = vpop.permute.xlu0 %4955  ;;  %v11068_v37 = vpop.permute.xlu1 %5043 }
 0xd0f   : > { %4907 = vmatpush1.bf16.msra.mxu0 %v10973_v17  ;;  %4995 = vmatpush1.bf16.msra.mxu1 %v4956_v20 }
 0xd10   : > { %5562 = vrot.lane.b32.xlu0 %v10912_v63, %s9220_s22  ;;  %4908 = vmatprep.subr.bf16.mxu0 %v9217_v16 }
 0xd11   : > { %5737 = vrot.lane.b32.xlu1 %v11065_v0, %s9216_s27  ;;  %4996 = vmatprep.subr.bf16.mxu1 %v9217_v16 }
 0xd12   : > { %v4954_v34 = vpop.permute.xlu0 %4953  ;;  %v11077_v50 = vpop.permute.xlu1 %5041 }
 0xd13   : > { %4909 = vmatpush1.bf16.msra.mxu0 %v10982_v11  ;;  %4997 = vmatpush1.bf16.msra.mxu1 %v4954_v34 }
 0xd14   : > { %5883 = vrot.lane.b32.xlu0 %v10964_v2, %s9218_s23  ;;  %4910 = vmatprep.subr.bf16.mxu0 %v9217_v16 }
 0xd15   : > { %5881 = vrot.lane.b32.xlu1 %v10971_v57, %s9218_s23  ;;  %4998 = vmatprep.subr.bf16.mxu1 %v9217_v16 }
 0xd16   : > { %v4952_v24 = vpop.permute.xlu0 %4951  ;;  %v11086_v19 = vpop.permute.xlu1 %5039 }
 0xd17   : > { %4911 = vmatpush1.bf16.msra.mxu0 %v10984_v15  ;;  %4999 = vmatpush1.bf16.msra.mxu1 %v4952_v24 }
 0xd18   : > { %5879 = vrot.lane.b32.xlu0 %v10980_v26, %s9218_s23  ;;  %4924 = vmatprep.subr.bf16.mxu0 %v9217_v16 }
 0xd19   : > { %5877 = vrot.lane.b32.xlu1 %v10991_v13, %s9218_s23  ;;  %5012 = vmatprep.subr.bf16.mxu1 %v9217_v16 }
 0xd1a   : > { %v4970_v29 = vpop.permute.xlu0 %4969  ;;  %v11095_v6 = vpop.permute.xlu1 %5057 }
 0xd1b   : > { %4925 = vmatpush2.bf16.msra.mxu0 %v10993_v40  ;;  %5013 = vmatpush2.bf16.msra.mxu1 %v4970_v29  ;;  %v11265_v29 = vld [vmem:[#allocation9 + $0x40] sm:$0xff]  }
 0xd1c   : > { %5875 = vrot.lane.b32.xlu0 %v11007_v46, %s9218_s23  ;;  %4926 = vmatprep.subr.bf16.mxu0 %v9217_v16 }
 0xd1d   : > { %5873 = vrot.lane.b32.xlu1 %v11023_v47, %s9218_s23  ;;  %5014 = vmatprep.subr.bf16.mxu1 %v9217_v16 }
 0xd1e   : > { %v4968_v58 = vpop.permute.xlu0 %4967  ;;  %v11114_v12 = vpop.permute.xlu1 %5055 }
 0xd1f   : > { %4927 = vmatpush2.bf16.msra.mxu0 %v11000_v22  ;;  %5015 = vmatpush2.bf16.msra.mxu1 %v4968_v58  ;;  %v11273_v58 = vld [vmem:[#allocation9 + $0x38] sm:$0xff]  }
 0xd20   : > { %5871 = vrot.lane.b32.xlu0 %v11035_v23, %s9218_s23  ;;  %5072 = vmatprep.subr.bf16.mxu0 %v9217_v16 }
 0xd21   : > { %5869 = vrot.lane.b32.xlu1 %v11045_v51, %s9218_s23  ;;  %5257 = vmatprep.subr.bf16.mxu1 %v9217_v16 }
 0xd22   : > { %v5239_v1 = vpop.permute.xlu0 %5238  ;;  %4929 = vmatmul.mubr.bf16.vlgmr.msra.gmra.mxu0 %v11106_v53  ;;  %5017 = vmatmul.mubr.bf16.vlgmr.msra.gmra.mxu1 %v11111_v41  ;;  %v5237_v30 = vpop.permute.xlu1 %5236 }
 0xd23   : > { %5073 = vmatpush1.bf16.msra.mxu0 %v11015_v35  ;;  %5258 = vmatpush1.bf16.msra.mxu1 %v5239_v1 }
 0xd24   : > { %5887 = vrot.lane.b32.xlu0 %v11055_v27, %s9218_s23  ;;  %5074 = vmatprep.subr.bf16.mxu0 %v9217_v16 }
 0xd25   : > { %5885 = vrot.lane.b32.xlu1 %v11065_v0, %s9218_s23  ;;  %5259 = vmatprep.subr.bf16.mxu1 %v9217_v16 }
 0xd26   : > { %v5235_v49 = vpop.permute.xlu0 %5234  ;;  %8034 = vmatprep.mubr.msk.bf16.mxu0 %vm2182_vm1, %v11127_v28  ;;  %8051 = vmatprep.mubr.msk.bf16.mxu1 %vm2182_vm1, %v10813_v55  ;;  %v5233_v31 = vpop.permute.xlu1 %5232 }
 0xd27   : > { %5075 = vmatpush1.bf16.msra.mxu0 %v11027_v54  ;;  %5260 = vmatpush1.bf16.msra.mxu1 %v5237_v30  ;;  %v11207_v54 = vld [vmem:[%s12283_s9 + $0x40] ss:$8 sps:$4 sm:$0xff]   ;;  %v11286_v30 = vld [vmem:[#allocation9 + $0x78] sm:$0xff]  }
 0xd28   : > { %5970 = vrot.lane.b32.xlu0 %v10964_v2, %s9219_s20  ;;  %5076 = vmatprep.subr.bf16.mxu0 %v9217_v16 }
 0xd29   : > { %6057 = vrot.lane.b32.xlu1 %v10964_v2, %s9220_s22  ;;  %5261 = vmatprep.subr.bf16.mxu1 %v9217_v16 }
 0xd2a   : > { %v5231_v14 = vpop.permute.xlu0 %5230  ;;  %v5229_v43 = vpop.permute.xlu1 %5228 }
 0xd2b   : > { %5077 = vmatpush1.bf16.msra.mxu0 %v11037_v36  ;;  %5262 = vmatpush1.bf16.msra.mxu1 %v5235_v49  ;;  %v11291_v49 = vld [vmem:[#allocation9 + $0x70] sm:$0xff]  }
 0xd2c   : > { %5968 = vrot.lane.b32.xlu0 %v10971_v57, %s9219_s20  ;;  %5078 = vmatprep.subr.bf16.mxu0 %v9217_v16 }
 0xd2d   : > { %6055 = vrot.lane.b32.xlu1 %v10971_v57, %s9220_s22  ;;  %5263 = vmatprep.subr.bf16.mxu1 %v9217_v16 }
 0xd2e   : > { %v5227_v55 = vpop.permute.xlu0 %5226  ;;  %v5225_v3 = vpop.permute.xlu1 %5224 }
 0xd2f   : > { %5079 = vmatpush1.bf16.msra.mxu0 %v11047_v61  ;;  %5264 = vmatpush1.bf16.msra.mxu1 %v5233_v31 }
 0xd30   : > { %5966 = vrot.lane.b32.xlu0 %v10980_v26, %s9219_s20  ;;  %5080 = vmatprep.subr.bf16.mxu0 %v9217_v16 }
 0xd31   : > { %6053 = vrot.lane.b32.xlu1 %v10980_v26, %s9220_s22  ;;  %5265 = vmatprep.subr.bf16.mxu1 %v9217_v16 }
 0xd32   : > { %v5243_v59 = vpop.permute.xlu0 %5242  ;;  %v5241_v5 = vpop.permute.xlu1 %5240 }
 0xd33   : > { %5081 = vmatpush1.bf16.msra.mxu0 %v11057_v60  ;;  %5266 = vmatpush1.bf16.msra.mxu1 %v5231_v14  ;;  %v11228_v60 = vld [vmem:[#allocation9 + $0x68] sm:$0xff]  }
 0xd34   : > { %5964 = vrot.lane.b32.xlu0 %v10991_v13, %s9219_s20  ;;  %5082 = vmatprep.subr.bf16.mxu0 %v9217_v16 }
 0xd35   : > { %6051 = vrot.lane.b32.xlu1 %v10991_v13, %s9220_s22  ;;  %5267 = vmatprep.subr.bf16.mxu1 %v9217_v16 }
 0xd36   : > { %v5387_v17 = vpop.permute.xlu0 %5386  ;;  %v11169_v11 = vpop.permute.xlu1 %5473 }
 0xd37   : > { %5083 = vmatpush1.bf16.msra.mxu0 %v11068_v37  ;;  %5268 = vmatpush1.bf16.msra.mxu1 %v5229_v43 }
 0xd38   : > { %5962 = vrot.lane.b32.xlu0 %v11007_v46, %s9219_s20  ;;  %5084 = vmatprep.subr.bf16.mxu0 %v9217_v16 }
 0xd39   : > { %6049 = vrot.lane.b32.xlu1 %v11007_v46, %s9220_s22  ;;  %5269 = vmatprep.subr.bf16.mxu1 %v9217_v16 }
 0xd3a   : > { %v5385_v15 = vpop.permute.xlu0 %5384  ;;  %v11178_v40 = vpop.permute.xlu1 %5471 }
 0xd3b   : > { %5085 = vmatpush1.bf16.msra.mxu0 %v11077_v50  ;;  %5270 = vmatpush1.bf16.msra.mxu1 %v5227_v55  ;;  %v11247_v50 = vld [vmem:[#allocation9 + $0x58] sm:$0xff]  }
 0xd3c   : > { %5960 = vrot.lane.b32.xlu0 %v11023_v47, %s9219_s20  ;;  %5086 = vmatprep.subr.bf16.mxu0 %v9217_v16 }
 0xd3d   : > { %6047 = vrot.lane.b32.xlu1 %v11023_v47, %s9220_s22  ;;  %5271 = vmatprep.subr.bf16.mxu1 %v9217_v16 }
 0xd3e   : > { %v5383_v22 = vpop.permute.xlu0 %5382  ;;  %v11187_v8 = vpop.permute.xlu1 %5469 }
 0xd3f   : > { %5087 = vmatpush1.bf16.msra.mxu0 %v11086_v19  ;;  %5272 = vmatpush1.bf16.msra.mxu1 %v5225_v3  ;;  %v11260_v19 = vld [vmem:[#allocation9 + $0x48] sm:$0xff]  }
 0xd40   : > { %5958 = vrot.lane.b32.xlu0 %v11035_v23, %s9219_s20  ;;  %5100 = vmatprep.subr.bf16.mxu0 %v9217_v16 }
 0xd41   : > { %6045 = vrot.lane.b32.xlu1 %v11035_v23, %s9220_s22  ;;  %5285 = vmatprep.subr.bf16.mxu1 %v9217_v16 }
 0xd42   : > { %v5381_v35 = vpop.permute.xlu0 %5380  ;;  %v11196_v32 = vpop.permute.xlu1 %5467 }
 0xd43   : > { %5101 = vmatpush2.bf16.msra.mxu0 %v11095_v6  ;;  %5286 = vmatpush2.bf16.msra.mxu1 %v5243_v59 }
 0xd44   : > { %5956 = vrot.lane.b32.xlu0 %v11045_v51, %s9219_s20  ;;  %5102 = vmatprep.subr.bf16.mxu0 %v9217_v16 }
 0xd45   : > { %6043 = vrot.lane.b32.xlu1 %v11045_v51, %s9220_s22  ;;  %5287 = vmatprep.subr.bf16.mxu1 %v9217_v16 }
 0xd46   : > { %v5379_v25 = vpop.permute.xlu0 %5378 }
 0xd47   : > { %5103 = vmatpush2.bf16.msra.mxu0 %v11114_v12  ;;  %5288 = vmatpush2.bf16.msra.mxu1 %v5241_v5  ;;  %v11210_v36 = vpop.permute.xlu1 %5465  ;;  %v11278_v12 = vld [vmem:[#allocation9 + $0x30] sm:$0xff]  }
 0xd48   : > { %5974 = vrot.lane.b32.xlu0 %v11055_v27, %s9219_s20  ;;  %5320 = vmatprep.subr.bf16.mxu0 %v9217_v16 }
 0xd49   : > { %6061 = vrot.lane.b32.xlu1 %v11055_v27, %s9220_s22  ;;  %5405 = vmatprep.subr.bf16.mxu1 %v9217_v16  ;;  %v11223_v21 = vpop.f32.mrf.mxu1 }
 0xd4a   : > { %5105 = vmatmul.mubr.bf16.vlgmr.msra.gmra.mxu0 %v11207_v54  ;;  %5290 = vmatmul.mubr.bf16.vlgmr.msra.gmra.mxu1 %v10998_v18  ;;  %v5377_v39 = vpop.permute.xlu0 %5376  ;;  %v11233_v18 = vld [vmem:[#allocation9 + $0x60] sm:$0xff]  }
 0xd4b   : > { %5321 = vmatpush1.bf16.msra.mxu0 %v10877_v42  ;;  %5406 = vmatpush1.bf16.msra.mxu1 %v5387_v17  ;;  %v11221_v61 = vpop.permute.xlu1 %5463  ;;  %v4846_v42 = vpop.f32.mrf.mxu1 }
 0xd4c   : > { %5972 = vrot.lane.b32.xlu0 %v11065_v0, %s9219_s20  ;;  %5322 = vmatprep.subr.bf16.mxu0 %v9217_v16 }
 0xd4d   : > { %6059 = vrot.lane.b32.xlu1 %v11065_v0, %s9220_s22  ;;  %5407 = vmatprep.subr.bf16.mxu1 %v9217_v16  ;;  %v11242_v34 = vpop.f32.mrf.mxu1 }
 0xd4e   : > { %v5375_v20 = vpop.permute.xlu0 %5374  ;;  %8054 = vmatprep.mubr.msk.bf16.mxu0 %vm2182_vm1, %v10818_v45  ;;  %8059 = vmatprep.mubr.msk.bf16.mxu1 %vm2182_vm1, %v11013_v33  ;;  %v11252_v45 = vld [vmem:[#allocation9 + $0x50] sm:$0xff]  }
 0xd4f   : > { %5323 = vmatpush1.bf16.msra.mxu0 %v10880_v10  ;;  %5408 = vmatpush1.bf16.msra.mxu1 %v5385_v15  ;;  %v11240_v37 = vpop.permute.xlu1 %5461  ;;  %v4849_v10 = vpop.f32.mrf.mxu1 }
 0xd50   : > { %6232 = vrot.lane.b32.xlu0 %v11228_v60, %s9216_s27  ;;  %5324 = vmatprep.subr.bf16.mxu0 %v9217_v16 }
 0xd51   : > { %6230 = vrot.lane.b32.xlu1 %v11233_v18, %s9216_s27  ;;  %5409 = vmatprep.subr.bf16.mxu1 %v9217_v16 }
 0xd52   : > { %v5373_v33 = vpop.permute.xlu0 %5372 }
 0xd53   : > { %5325 = vmatpush1.bf16.msra.mxu0 %v10884_v62  ;;  %5410 = vmatpush1.bf16.msra.mxu1 %v5383_v22  ;;  %v11255_v24 = vpop.permute.xlu1 %5459 }
 0xd54   : > { %6228 = vrot.lane.b32.xlu0 %v11247_v50, %s9216_s27  ;;  %5326 = vmatprep.subr.bf16.mxu0 %v9217_v16 }
 0xd55   : > { %6226 = vrot.lane.b32.xlu1 %v11252_v45, %s9216_s27  ;;  %5411 = vmatprep.subr.bf16.mxu1 %v9217_v16 }
 0xd56   : > { %v5391_v6 = vpop.permute.xlu0 %5390 }
 0xd57   : > { %5327 = vmatpush1.bf16.msra.mxu0 %v10888_v48  ;;  %5412 = vmatpush1.bf16.msra.mxu1 %v5381_v35  ;;  %v11268_v62 = vpop.permute.xlu1 %5477 }
 0xd58   : > { %6224 = vrot.lane.b32.xlu0 %v11260_v19, %s9216_s27  ;;  %5328 = vmatprep.subr.bf16.mxu0 %v9217_v16 }
 0xd59   : > { %6222 = vrot.lane.b32.xlu1 %v11265_v29, %s9216_s27  ;;  %5413 = vmatprep.subr.bf16.mxu1 %v9217_v16 }
 0xd5a   : > { %v5389_v1 = vpop.permute.xlu0 %5388 }
 0xd5b   : > { %5329 = vmatpush1.bf16.msra.mxu0 %v10892_v56  ;;  %5414 = vmatpush1.bf16.msra.mxu1 %v5379_v25  ;;  %v11281_v48 = vpop.permute.xlu1 %5475  ;;  %v11413_v25 = vld [vmem:[#allocation9 + $0x70] sm:$0xff]  }
 0xd5c   : > { %6220 = vrot.lane.b32.xlu0 %v11273_v58, %s9216_s27  ;;  %5330 = vmatprep.subr.bf16.mxu0 %v9217_v16 }
 0xd5d   : > { %6218 = vrot.lane.b32.xlu1 %v11278_v12, %s9216_s27  ;;  %5415 = vmatprep.subr.bf16.mxu1 %v9217_v16 }
 0xd5e   : > { %v5561_v31 = vpop.permute.xlu0 %5560 }
 0xd5f   : > { %5331 = vmatpush1.bf16.msra.mxu0 %v10896_v7  ;;  %5416 = vmatpush1.bf16.msra.mxu1 %v5377_v39  ;;  %v11294_v56 = vpop.permute.xlu1 %5735 }
 0xd60   : > { %6236 = vrot.lane.b32.xlu0 %v11286_v30, %s9216_s27  ;;  %5332 = vmatprep.subr.bf16.mxu0 %v9217_v16 }
 0xd61   : > { %6234 = vrot.lane.b32.xlu1 %v11291_v49, %s9216_s27  ;;  %5417 = vmatprep.subr.bf16.mxu1 %v9217_v16 }
 0xd62   : > { %v5559_v14 = vpop.permute.xlu0 %5558 }
 0xd63   : > { %5333 = vmatpush1.bf16.msra.mxu0 %v10900_v4  ;;  %5418 = vmatpush1.bf16.msra.mxu1 %v5375_v20  ;;  %v11303_v43 = vpop.permute.xlu1 %5733 }
 0xd64   : > { %6380 = vrot.lane.b32.xlu0 %v11228_v60, %s9218_s23  ;;  %5334 = vmatprep.subr.bf16.mxu0 %v9217_v16 }
 0xd65   : > { %6467 = vrot.lane.b32.xlu1 %v11228_v60, %s9219_s20  ;;  %5419 = vmatprep.subr.bf16.mxu1 %v9217_v16 }
 0xd66   : > { %v5557_v7 = vpop.permute.xlu0 %5556 }
 0xd67   : > { %5335 = vmatpush1.bf16.msra.mxu0 %v10904_v9  ;;  %5420 = vmatpush1.bf16.msra.mxu1 %v5373_v33  ;;  %v11312_v55 = vpop.permute.xlu1 %5731 }
 0xd68   : > { %6378 = vrot.lane.b32.xlu0 %v11233_v18, %s9218_s23  ;;  %5348 = vmatprep.subr.bf16.mxu0 %v9217_v16 }
 0xd69   : > { %6465 = vrot.lane.b32.xlu1 %v11233_v18, %s9219_s20  ;;  %5433 = vmatprep.subr.bf16.mxu1 %v9217_v16 }
 0xd6a   : > { %v5555_v4 = vpop.permute.xlu0 %5554 }
 0xd6b   : > { %5349 = vmatpush2.bf16.msra.mxu0 %v10908_v38  ;;  %5434 = vmatpush2.bf16.msra.mxu1 %v5391_v6  ;;  %v11321_v3 = vpop.permute.xlu1 %5729 }
 0xd6c   : > { %6376 = vrot.lane.b32.xlu0 %v11247_v50, %s9218_s23  ;;  %5350 = vmatprep.subr.bf16.mxu0 %v9217_v16 }
 0xd6d   : > { %6463 = vrot.lane.b32.xlu1 %v11247_v50, %s9219_s20  ;;  %5435 = vmatprep.subr.bf16.mxu1 %v9217_v16 }
 0xd6e   : > { %v5553_v9 = vpop.permute.xlu0 %5552 }
 0xd6f   : > { %5351 = vmatpush2.bf16.msra.mxu0 %v10912_v63  ;;  %5436 = vmatpush2.bf16.msra.mxu1 %v5389_v1  ;;  %v11330_v59 = vpop.permute.xlu1 %5727  ;;  %v11466_v1 = vld [vmem:[%s12283_s9 + $0x4] ss:$8 sps:$4 sm:$0xff]  }
 0xd70   : > { %6374 = vrot.lane.b32.xlu0 %v11252_v45, %s9218_s23  ;;  %5492 = vmatprep.subr.bf16.mxu0 %v9217_v16 }
 0xd71   : > { %6461 = vrot.lane.b32.xlu1 %v11252_v45, %s9219_s20  ;;  %5579 = vmatprep.subr.bf16.mxu1 %v9217_v16 }
 0xd72   : > { %5353 = vmatmul.mubr.bf16.vlgmr.msra.gmra.mxu0 %v10839_v44  ;;  %5438 = vmatmul.mubr.bf16.vlgmr.msra.gmra.mxu1 %v11106_v53  ;;  %v5551_v38 = vpop.permute.xlu0 %5550 }
 0xd73   : > { %5493 = vmatpush1.bf16.msra.mxu0 %v11169_v11  ;;  %5580 = vmatpush1.bf16.msra.mxu1 %v5561_v31  ;;  %v11341_v63 = vpop.permute.xlu1 %5725  ;;  %v11496_v31 = vld [vmem:[#allocation9 + $0x48] sm:$0xff]  }
 0xd74   : > { %6372 = vrot.lane.b32.xlu0 %v11260_v19, %s9218_s23  ;;  %5494 = vmatprep.subr.bf16.mxu0 %v9217_v16  ;;  %12377 = vst [vmem:[#allocation16_spill] sm:$0xff] %v11496_v31 }
 0xd75   : > { %6459 = vrot.lane.b32.xlu1 %v11260_v19, %s9219_s20  ;;  %5581 = vmatprep.subr.bf16.mxu1 %v9217_v16 }
 0xd76   : > { %v5549_v5 = vpop.permute.xlu0 %5548  ;;  %8064 = vmatprep.mubr.msk.bf16.mxu0 %vm2182_vm1, %v10868_v52  ;;  %8069 = vmatprep.mubr.msk.bf16.mxu1 %vm2182_vm1, %v11127_v28 }
 0xd77   : > { %5495 = vmatpush1.bf16.msra.mxu0 %v11178_v40  ;;  %5582 = vmatpush1.bf16.msra.mxu1 %v5559_v14  ;;  %v11354_v44 = vpop.permute.xlu1 %5723  ;;  %v11510_v14 = vld [vmem:[#allocation9 + $0x40] sm:$0xff]  }
 0xd78   : > { %6370 = vrot.lane.b32.xlu0 %v11265_v29, %s9218_s23  ;;  %5496 = vmatprep.subr.bf16.mxu0 %v9217_v16  ;;  %12378 = vst [vmem:[#allocation11_spill] sm:$0xff] %v11510_v14 }
 0xd79   : > { %6457 = vrot.lane.b32.xlu1 %v11265_v29, %s9219_s20  ;;  %5583 = vmatprep.subr.bf16.mxu1 %v9217_v16 }
 0xd7a   : > { %v5547_v53 = vpop.permute.xlu0 %5546 }
 0xd7b   : > { %5497 = vmatpush1.bf16.msra.mxu0 %v11187_v8  ;;  %5584 = vmatpush1.bf16.msra.mxu1 %v5557_v7  ;;  %v11363_v52 = vpop.permute.xlu1 %5721  ;;  %v11400_v8 = vld [vmem:[#allocation9 + $0x78] sm:$0xff]   ;;  %v11524_v7 = vld [vmem:[#allocation9 + $0x88] sm:$0xff]  }
 0xd7c   : > { %6368 = vrot.lane.b32.xlu0 %v11273_v58, %s9218_s23  ;;  %5498 = vmatprep.subr.bf16.mxu0 %v9217_v16  ;;  %12379 = vst [vmem:[#allocation12_spill] sm:$0xff] %v11524_v7 }
 0xd7d   : > { %6455 = vrot.lane.b32.xlu1 %v11273_v58, %s9219_s20  ;;  %5585 = vmatprep.subr.bf16.mxu1 %v9217_v16 }
 0xd7e   : > { %v5565_v28 = vpop.permute.xlu0 %5564 }
 0xd7f   : > { %5499 = vmatpush1.bf16.msra.mxu0 %v11196_v32  ;;  %5586 = vmatpush1.bf16.msra.mxu1 %v5555_v4  ;;  %v11372_v17 = vpop.permute.xlu1 %5739  ;;  %v11538_v4 = vld [vmem:[#allocation9 + $0x80] sm:$0xff]  }
 0xd80   : > { %6366 = vrot.lane.b32.xlu0 %v11278_v12, %s9218_s23  ;;  %5500 = vmatprep.subr.bf16.mxu0 %v9217_v16  ;;  %12380 = vst [vmem:[#allocation19_spill] sm:$0xff] %v11538_v4 }
 0xd81   : > { %6453 = vrot.lane.b32.xlu1 %v11278_v12, %s9219_s20  ;;  %5587 = vmatprep.subr.bf16.mxu1 %v9217_v16 }
 0xd82   : > { %v5563_v11 = vpop.permute.xlu0 %5562 }
 0xd83   : > { %5501 = vmatpush1.bf16.msra.mxu0 %v11210_v36  ;;  %5588 = vmatpush1.bf16.msra.mxu1 %v5553_v9  ;;  %v11381_v15 = vpop.permute.xlu1 %5737 }
 0xd84   : > { %6384 = vrot.lane.b32.xlu0 %v11286_v30, %s9218_s23  ;;  %5502 = vmatprep.subr.bf16.mxu0 %v9217_v16 }
 0xd85   : > { %6471 = vrot.lane.b32.xlu1 %v11286_v30, %s9219_s20  ;;  %5589 = vmatprep.subr.bf16.mxu1 %v9217_v16 }
 0xd86   : > { %v11389_v40 = vpop.permute.xlu0 %5883 }
 0xd87   : > { %5503 = vmatpush1.bf16.msra.mxu0 %v11221_v61  ;;  %5590 = vmatpush1.bf16.msra.mxu1 %v5551_v38  ;;  %v11392_v22 = vpop.permute.xlu1 %5881  ;;  %v11426_v61 = vld [vmem:[#allocation9 + $0x68] sm:$0xff]  }
 0xd88   : > { %6382 = vrot.lane.b32.xlu0 %v11291_v49, %s9218_s23  ;;  %5504 = vmatprep.subr.bf16.mxu0 %v9217_v16 }
 0xd89   : > { %6469 = vrot.lane.b32.xlu1 %v11291_v49, %s9219_s20  ;;  %5591 = vmatprep.subr.bf16.mxu1 %v9217_v16 }
 0xd8a   : > { %v11402_v35 = vpop.permute.xlu0 %5879 }
 0xd8b   : > { %5505 = vmatpush1.bf16.msra.mxu0 %v11240_v37  ;;  %5592 = vmatpush1.bf16.msra.mxu1 %v5549_v5  ;;  %v11405_v32 = vpop.permute.xlu1 %5877  ;;  %v11439_v37 = vld [vmem:[#allocation9 + $0x60] sm:$0xff]  }
 0xd8c   : > { %6554 = vrot.lane.b32.xlu0 %v11228_v60, %s9220_s22  ;;  %5506 = vmatprep.subr.bf16.mxu0 %v9217_v16  ;;  %12374 = vst [vmem:[#allocation13_spill] sm:$0xff] %v11439_v37 }
 0xd8d   : > { %6729 = vrot.lane.b32.xlu1 %v11400_v8, %s9216_s27  ;;  %5593 = vmatprep.subr.bf16.mxu1 %v9217_v16 }
 0xd8e   : > { %v11415_v36 = vpop.permute.xlu0 %5875 }
 0xd8f   : > { %5507 = vmatpush1.bf16.msra.mxu0 %v11255_v24  ;;  %5594 = vmatpush1.bf16.msra.mxu1 %v5547_v53  ;;  %v11418_v39 = vpop.permute.xlu1 %5873  ;;  %v11452_v24 = vld [vmem:[#allocation9 + $0x58] sm:$0xff]  }
 0xd90   : > { %6552 = vrot.lane.b32.xlu0 %v11233_v18, %s9220_s22  ;;  %5520 = vmatprep.subr.bf16.mxu0 %v9217_v16  ;;  %12375 = vst [vmem:[#allocation14_spill] sm:$0xff] %v11452_v24  ;;  %v11595_v53 = vld [vmem:[%s12283_s9 + $0x10] ss:$8 sps:$4 sm:$0xff]  }
 0xd91   : > { %6727 = vrot.lane.b32.xlu1 %v11413_v25, %s9216_s27  ;;  %5607 = vmatprep.subr.bf16.mxu1 %v9217_v16 }
 0xd92   : > { %v11428_v42 = vpop.permute.xlu0 %5871 }
 0xd93   : > { %5521 = vmatpush2.bf16.msra.mxu0 %v11268_v62  ;;  %5608 = vmatpush2.bf16.msra.mxu1 %v5565_v28  ;;  %v11431_v20 = vpop.permute.xlu1 %5869  ;;  %v11461_v62 = vld [vmem:[%s12283_s9 + $0x14] ss:$8 sps:$4 sm:$0xff]  }
 0xd94   : > { %6550 = vrot.lane.b32.xlu0 %v11247_v50, %s9220_s22  ;;  %5522 = vmatprep.subr.bf16.mxu0 %v9217_v16 }
 0xd95   : > { %6725 = vrot.lane.b32.xlu1 %v11426_v61, %s9216_s27  ;;  %5609 = vmatprep.subr.bf16.mxu1 %v9217_v16 }
 0xd96   : > { %v11441_v10 = vpop.permute.xlu0 %5887 }
 0xd97   : > { %5523 = vmatpush2.bf16.msra.mxu0 %v11281_v48  ;;  %5610 = vmatpush2.bf16.msra.mxu1 %v5563_v11  ;;  %v11444_v33 = vpop.permute.xlu1 %5885 }
 0xd98   : > { %6548 = vrot.lane.b32.xlu0 %v11252_v45, %s9220_s22  ;;  %5754 = vmatprep.subr.bf16.mxu0 %v9217_v16 }
 0xd99   : > { %6723 = vrot.lane.b32.xlu1 %v11439_v37, %s9216_s27  ;;  %5817 = vmatprep.subr.bf16.mxu1 %v9217_v16 }
 0xd9a   : > { %5525 = vmatmul.mubr.bf16.vlgmr.msra.gmra.mxu0 %v11111_v41  ;;  %5612 = vmatmul.mubr.bf16.vlgmr.msra.gmra.mxu1 %v11207_v54  ;;  %v11456_v6 = vpop.permute.xlu0 %5970  ;;  %v11478_v41 = vld [vmem:[#allocation9 + $0x50] sm:$0xff]  }
 0xd9b   : > { %5755 = vmatpush1.bf16.msra.mxu0 %v11294_v56  ;;  %5818 = vmatpush1.bf16.msra.mxu1 %v10964_v2  ;;  %v11470_v48 = vpop.permute.xlu1 %6057  ;;  %12376 = vst [vmem:[#allocation15_spill] sm:$0xff] %v11478_v41 }
 0xd9c   : > { %6546 = vrot.lane.b32.xlu0 %v11260_v19, %s9220_s22  ;;  %5756 = vmatprep.subr.bf16.mxu0 %v9217_v16 }
 0xd9d   : > { %6721 = vrot.lane.b32.xlu1 %v11452_v24, %s9216_s27  ;;  %5819 = vmatprep.subr.bf16.mxu1 %v9217_v16 }
 0xd9e   : > { %v11480_v54 = vpop.permute.xlu0 %5968  ;;  %8086 = vmatprep.mubr.msk.bf16.mxu0 %vm2182_vm1, %v11461_v62  ;;  %8089 = vmatprep.mubr.msk.bf16.mxu1 %vm2182_vm1, %v11466_v1 }
 0xd9f   : > { %5757 = vmatpush1.bf16.msra.mxu0 %v11303_v43  ;;  %5820 = vmatpush1.bf16.msra.mxu1 %v10971_v57  ;;  %v11488_v2 = vpop.permute.xlu1 %6055 }
 0xda0   : > { %6544 = vrot.lane.b32.xlu0 %v11265_v29, %s9220_s22  ;;  %5758 = vmatprep.subr.bf16.mxu0 %v9217_v16 }
 0xda1   : > { %6719 = vrot.lane.b32.xlu1 %v11478_v41, %s9216_s27  ;;  %5821 = vmatprep.subr.bf16.mxu1 %v9217_v16 }
 0xda2   : > { %v11498_v56 = vpop.permute.xlu0 %5966 }
 0xda3   : > { %5759 = vmatpush1.bf16.msra.mxu0 %v11312_v55  ;;  %5822 = vmatpush1.bf16.msra.mxu1 %v10980_v26  ;;  %v11502_v57 = vpop.permute.xlu1 %6053 }
 0xda4   : > { %6542 = vrot.lane.b32.xlu0 %v11273_v58, %s9220_s22  ;;  %5760 = vmatprep.subr.bf16.mxu0 %v9217_v16 }
 0xda5   : > { %6717 = vrot.lane.b32.xlu1 %v11496_v31, %s9216_s27  ;;  %5823 = vmatprep.subr.bf16.mxu1 %v9217_v16 }
 0xda6   : > { %v11512_v43 = vpop.permute.xlu0 %5964 }
 0xda7   : > { %5761 = vmatpush1.bf16.msra.mxu0 %v11321_v3  ;;  %5824 = vmatpush1.bf16.msra.mxu1 %v10991_v13  ;;  %v11516_v26 = vpop.permute.xlu1 %6051 }
 0xda8   : > { %6540 = vrot.lane.b32.xlu0 %v11278_v12, %s9220_s22  ;;  %5762 = vmatprep.subr.bf16.mxu0 %v9217_v16 }
 0xda9   : > { %6715 = vrot.lane.b32.xlu1 %v11510_v14, %s9216_s27  ;;  %5825 = vmatprep.subr.bf16.mxu1 %v9217_v16 }
 0xdaa   : > { %v11526_v55 = vpop.permute.xlu0 %5962 }
 0xdab   : > { %5763 = vmatpush1.bf16.msra.mxu0 %v11330_v59  ;;  %5826 = vmatpush1.bf16.msra.mxu1 %v11007_v46  ;;  %v11530_v13 = vpop.permute.xlu1 %6049 }
 0xdac   : > { %6558 = vrot.lane.b32.xlu0 %v11286_v30, %s9220_s22  ;;  %5764 = vmatprep.subr.bf16.mxu0 %v9217_v16 }
 0xdad   : > { %6733 = vrot.lane.b32.xlu1 %v11524_v7, %s9216_s27  ;;  %5827 = vmatprep.subr.bf16.mxu1 %v9217_v16 }
 0xdae   : > { %v11540_v3 = vpop.permute.xlu0 %5960 }
 0xdaf   : > { %5765 = vmatpush1.bf16.msra.mxu0 %v11341_v63  ;;  %5828 = vmatpush1.bf16.msra.mxu1 %v11023_v47  ;;  %v11544_v46 = vpop.permute.xlu1 %6047 }
 0xdb0   : > { %6556 = vrot.lane.b32.xlu0 %v11291_v49, %s9220_s22  ;;  %5766 = vmatprep.subr.bf16.mxu0 %v9217_v16 }
 0xdb1   : > { %6731 = vrot.lane.b32.xlu1 %v11538_v4, %s9216_s27  ;;  %5829 = vmatprep.subr.bf16.mxu1 %v9217_v16 }
 0xdb2   : > { %v11552_v9 = vpop.permute.xlu0 %5958 }
 0xdb3   : > { %5767 = vmatpush1.bf16.msra.mxu0 %v11354_v44  ;;  %5830 = vmatpush1.bf16.msra.mxu1 %v11035_v23  ;;  %v11556_v59 = vpop.permute.xlu1 %6045 }
 0xdb4   : > { %6877 = vrot.lane.b32.xlu0 %v11400_v8, %s9218_s23  ;;  %5768 = vmatprep.subr.bf16.mxu0 %v9217_v16 }
 0xdb5   : > { %6875 = vrot.lane.b32.xlu1 %v11413_v25, %s9218_s23  ;;  %5831 = vmatprep.subr.bf16.mxu1 %v9217_v16 }
 0xdb6   : > { %v11564_v47 = vpop.permute.xlu0 %5956 }
 0xdb7   : > { %5769 = vmatpush1.bf16.msra.mxu0 %v11363_v52  ;;  %5832 = vmatpush1.bf16.msra.mxu1 %v11045_v51  ;;  %v11568_v38 = vpop.permute.xlu1 %6043 }
 0xdb8   : > { %6873 = vrot.lane.b32.xlu0 %v11426_v61, %s9218_s23  ;;  %5782 = vmatprep.subr.bf16.mxu0 %v9217_v16 }
 0xdb9   : > { %6871 = vrot.lane.b32.xlu1 %v11439_v37, %s9218_s23  ;;  %5845 = vmatprep.subr.bf16.mxu1 %v9217_v16 }
 0xdba   : > { %v11576_v23 = vpop.f32.mrf.mxu0  ;;  %v11578_v63 = vpop.permute.xlu0 %5974 }
 0xdbb   : > { %5783 = vmatpush2.bf16.msra.mxu0 %v11372_v17  ;;  %5846 = vmatpush2.bf16.msra.mxu1 %v11055_v27  ;;  %v11582_v51 = vpop.permute.xlu1 %6061  ;;  %v11600_v27 = vld [vmem:[%s12283_s9] ss:$8 sps:$4 sm:$0xff]  }
 0xdbc   : > { %6869 = vrot.lane.b32.xlu0 %v11452_v24, %s9218_s23  ;;  %v4783_v5 = vpop.f32.mrf.mxu0  ;;  %5784 = vmatprep.subr.bf16.mxu0 %v9217_v16 }
 0xdbd   : > { %6867 = vrot.lane.b32.xlu1 %v11478_v41, %s9218_s23  ;;  %5847 = vmatprep.subr.bf16.mxu1 %v9217_v16 }
 0xdbe   : > { %v11590_v44 = vpop.f32.mrf.mxu0  ;;  %v11602_v52 = vpop.permute.xlu0 %5972 }
 0xdbf   : > { %5785 = vmatpush2.bf16.msra.mxu0 %v11381_v15  ;;  %5848 = vmatpush2.bf16.msra.mxu1 %v11065_v0  ;;  %v11606_v28 = vpop.permute.xlu1 %6059  ;;  %v11621_v0 = vld [vmem:[%s12283_s9 + $0x24] ss:$8 sps:$4 sm:$0xff]   ;;  %v11626_v15 = vld [vmem:[%s12283_s9 + $0x34] ss:$8 sps:$4 sm:$0xff]  }
 0xdc0   : > { %6865 = vrot.lane.b32.xlu0 %v11496_v31, %s9218_s23  ;;  %v4786_v17 = vpop.f32.mrf.mxu0  ;;  %5902 = vmatprep.subr.bf16.mxu0 %v9217_v16 }
 0xdc1   : > { %6863 = vrot.lane.b32.xlu1 %v11510_v14, %s9218_s23  ;;  %5989 = vmatprep.subr.bf16.mxu1 %v9217_v16 }
 0xdc2   : > { %5787 = vmatmul.mubr.bf16.vlgmr.msra.gmra.mxu0 %v11595_v53  ;;  %5850 = vmatmul.mubr.bf16.vlgmr.msra.gmra.mxu1 %v11600_v27  ;;  %v11616_v11 = vpop.permute.xlu0 %6232 }
 0xdc3   : > { %5903 = vmatpush1.bf16.msra.mxu0 %v11389_v40  ;;  %5990 = vmatpush1.bf16.msra.mxu1 %v11456_v6  ;;  %v11630_v5 = vpop.permute.xlu1 %6230 }
 0xdc4   : > { %6881 = vrot.lane.b32.xlu0 %v11524_v7, %s9218_s23  ;;  %5904 = vmatprep.subr.bf16.mxu0 %v9217_v16 }
 0xdc5   : > { %6879 = vrot.lane.b32.xlu1 %v11538_v4, %s9218_s23  ;;  %5991 = vmatprep.subr.bf16.mxu1 %v9217_v16 }
 0xdc6   : > { %v11638_v17 = vpop.permute.xlu0 %6228  ;;  %8094 = vmatprep.mubr.msk.bf16.mxu0 %vm2182_vm1, %v11621_v0  ;;  %8099 = vmatprep.mubr.msk.bf16.mxu1 %vm2182_vm1, %v11626_v15 }
 0xdc7   : > { %5905 = vmatpush1.bf16.msra.mxu0 %v11392_v22  ;;  %5992 = vmatpush1.bf16.msra.mxu1 %v11480_v54  ;;  %v11646_v40 = vpop.permute.xlu1 %6226 }
 0xdc8   : > { %6964 = vrot.lane.b32.xlu0 %v11400_v8, %s9219_s20  ;;  %5906 = vmatprep.subr.bf16.mxu0 %v9217_v16 }
 0xdc9   : > { %7051 = vrot.lane.b32.xlu1 %v11400_v8, %s9220_s22  ;;  %5993 = vmatprep.subr.bf16.mxu1 %v9217_v16 }
 0xdca   : > { %v11654_v6 = vpop.permute.xlu0 %6224 }
 0xdcb   : > { %5907 = vmatpush1.bf16.msra.mxu0 %v11402_v35  ;;  %5994 = vmatpush1.bf16.msra.mxu1 %v11498_v56  ;;  %v11658_v22 = vpop.permute.xlu1 %6222 }
 0xdcc   : > { %6962 = vrot.lane.b32.xlu0 %v11413_v25, %s9219_s20  ;;  %5908 = vmatprep.subr.bf16.mxu0 %v9217_v16 }
 0xdcd   : > { %7049 = vrot.lane.b32.xlu1 %v11413_v25, %s9220_s22  ;;  %5995 = vmatprep.subr.bf16.mxu1 %v9217_v16 }
 0xdce   : > { %v11666_v54 = vpop.permute.xlu0 %6220 }
 0xdcf   : > { %5909 = vmatpush1.bf16.msra.mxu0 %v11405_v32  ;;  %5996 = vmatpush1.bf16.msra.mxu1 %v11512_v43  ;;  %v11670_v35 = vpop.permute.xlu1 %6218 }
 0xdd0   : > { %6960 = vrot.lane.b32.xlu0 %v11426_v61, %s9219_s20  ;;  %5910 = vmatprep.subr.bf16.mxu0 %v9217_v16 }
 0xdd1   : > { %7047 = vrot.lane.b32.xlu1 %v11426_v61, %s9220_s22  ;;  %5997 = vmatprep.subr.bf16.mxu1 %v9217_v16 }
 0xdd2   : > { %v11678_v56 = vpop.permute.xlu0 %6236 }
 0xdd3   : > { %5911 = vmatpush1.bf16.msra.mxu0 %v11415_v36  ;;  %5998 = vmatpush1.bf16.msra.mxu1 %v11526_v55  ;;  %v11682_v32 = vpop.permute.xlu1 %6234 }
 0xdd4   : > { %6958 = vrot.lane.b32.xlu0 %v11439_v37, %s9219_s20  ;;  %5912 = vmatprep.subr.bf16.mxu0 %v9217_v16 }
 0xdd5   : > { %7045 = vrot.lane.b32.xlu1 %v11439_v37, %s9220_s22  ;;  %5999 = vmatprep.subr.bf16.mxu1 %v9217_v16 }
 0xdd6   : > { %v11690_v43 = vpop.permute.xlu0 %6380 }
 0xdd7   : > { %5913 = vmatpush1.bf16.msra.mxu0 %v11418_v39  ;;  %6000 = vmatpush1.bf16.msra.mxu1 %v11540_v3  ;;  %v11694_v36 = vpop.permute.xlu1 %6467 }
 0xdd8   : > { %6956 = vrot.lane.b32.xlu0 %v11452_v24, %s9219_s20  ;;  %5914 = vmatprep.subr.bf16.mxu0 %v9217_v16 }
 0xdd9   : > { %7043 = vrot.lane.b32.xlu1 %v11452_v24, %s9220_s22  ;;  %6001 = vmatprep.subr.bf16.mxu1 %v9217_v16 }
 0xdda   : > { %v11702_v55 = vpop.permute.xlu0 %6378 }
 0xddb   : > { %5915 = vmatpush1.bf16.msra.mxu0 %v11428_v42  ;;  %6002 = vmatpush1.bf16.msra.mxu1 %v11552_v9  ;;  %v11706_v39 = vpop.permute.xlu1 %6465  ;;  %v4845_v9 = vadd.f32 %v11223_v21, %v11576_v23 }
 0xddc   : > { %6954 = vrot.lane.b32.xlu0 %v11478_v41, %s9219_s20  ;;  %5916 = vmatprep.subr.bf16.mxu0 %v9217_v16 }
 0xddd   : > { %7041 = vrot.lane.b32.xlu1 %v11478_v41, %s9220_s22  ;;  %6003 = vmatprep.subr.bf16.mxu1 %v9217_v16 }
 0xdde   : > { %v11714_v3 = vpop.permute.xlu0 %6376 }
 0xddf   : > { %5917 = vmatpush1.bf16.msra.mxu0 %v11431_v20  ;;  %6004 = vmatpush1.bf16.msra.mxu1 %v11564_v47  ;;  %v11718_v42 = vpop.permute.xlu1 %6463 }
 0xde0   : > { %6952 = vrot.lane.b32.xlu0 %v11496_v31, %s9219_s20  ;;  %5930 = vmatprep.subr.bf16.mxu0 %v9217_v16 }
 0xde1   : > { %7039 = vrot.lane.b32.xlu1 %v11496_v31, %s9220_s22  ;;  %6017 = vmatprep.subr.bf16.mxu1 %v9217_v16  ;;  %v4848_v31 = vadd.f32 %v11242_v34, %v11590_v44 }
 0xde2   : > { %v4930_v41 = vpop.f32.mrf.mxu0  ;;  %v5018_v24 = vpop.f32.mrf.mxu1 }
 0xde3   : > { %v4937_v20 = vadd.f32 %v4930_v41, %v4845_v9  ;;  %5931 = vmatpush2.bf16.msra.mxu0 %v11441_v10  ;;  %6018 = vmatpush2.bf16.msra.mxu1 %v11578_v63  ;;  %v11730_v47 = vpop.permute.xlu0 %6374  ;;  %v11732_v37 = vpop.permute.xlu1 %6461  ;;  %v11747_v9 = vld [vmem:[%s12283_s9 + $0x20] ss:$8 sps:$4 sm:$0xff]  }
 0xde4   : > { %6950 = vrot.lane.b32.xlu0 %v11510_v14, %s9219_s20  ;;  %v4932_v21 = vpop.f32.mrf.mxu0  ;;  %v5020_v23 = vpop.f32.mrf.mxu1  ;;  %5932 = vmatprep.subr.bf16.mxu0 %v9217_v16 }
 0xde5   : > { %7037 = vrot.lane.b32.xlu1 %v11510_v14, %s9220_s22  ;;  %v11741_v10 = vadd.f32 %v5018_v24, %v4937_v20  ;;  %6019 = vmatprep.subr.bf16.mxu1 %v9217_v16  ;;  %v11752_v21 = vld [vmem:[%s12283_s9 + $0x30] ss:$8 sps:$4 sm:$0xff]  }
 0xde6   : > { %v4933_v41 = vpop.f32.mrf.mxu0  ;;  %v5021_v63 = vpop.f32.mrf.mxu1 }
 0xde7   : > { %v4938_v34 = vadd.f32 %v4933_v41, %v4848_v31  ;;  %5933 = vmatpush2.bf16.msra.mxu0 %v11444_v33  ;;  %6020 = vmatpush2.bf16.msra.mxu1 %v11602_v52  ;;  %v11756_v24 = vpop.permute.xlu0 %6372  ;;  %v11758_v44 = vpop.permute.xlu1 %6459  ;;  %v11773_v33 = vld [vmem:[%s12283_s9 + $0x44] ss:$8 sps:$4 sm:$0xff]  }
 0xde8   : > { %6968 = vrot.lane.b32.xlu0 %v11524_v7, %s9219_s20  ;;  %v4935_v20 = vpop.f32.mrf.mxu0  ;;  %6076 = vmatprep.subr.bf16.mxu0 %v9217_v16  ;;  %v5023_v23 = vpop.f32.mrf.mxu1 }
 0xde9   : > { %7055 = vrot.lane.b32.xlu1 %v11524_v7, %s9220_s22  ;;  %v11765_v14 = vadd.f32 %v5021_v63, %v4938_v34  ;;  %6251 = vmatprep.subr.bf16.mxu1 %v9217_v16 }
 0xdea   : > { %5935 = vmatmul.mubr.bf16.vlgmr.msra.gmra.mxu0 %v11747_v9  ;;  %6022 = vmatmul.mubr.bf16.vlgmr.msra.gmra.mxu1 %v11752_v21 }
 0xdeb   : > { %6077 = vmatpush1.bf16.msra.mxu0 %v11470_v48  ;;  %6252 = vmatpush1.bf16.msra.mxu1 %v11616_v11  ;;  %v11777_v31 = vpop.permute.xlu0 %6370  ;;  %v11779_v52 = vpop.permute.xlu1 %6457  ;;  %v4627_v48 = vld [vmem:[%s12284_s10] sm:$0xff]  ;;  %v4628_v11 = vld [vmem:[%s12284_s10 + $0x8] sm:$0xff] }
 0xdec   : > { %6966 = vrot.lane.b32.xlu0 %v11538_v4, %s9219_s20  ;;  %6078 = vmatprep.subr.bf16.mxu0 %v9217_v16 }
 0xded   : > { %7053 = vrot.lane.b32.xlu1 %v11538_v4, %s9220_s22  ;;  %6253 = vmatprep.subr.bf16.mxu1 %v9217_v16 }
 0xdee   : > { %8104 = vmatprep.mubr.msk.bf16.mxu0 %vm2182_vm1, %v11773_v33  ;;  %8121 = vmatprep.mubr.msk.bf16.mxu1 %vm2182_vm1, %v11461_v62 }
 0xdef   : > { %6079 = vmatpush1.bf16.msra.mxu0 %v11488_v2  ;;  %6254 = vmatpush1.bf16.msra.mxu1 %v11630_v5  ;;  %v11799_v41 = vpop.permute.xlu0 %6368  ;;  %v11801_v63 = vpop.permute.xlu1 %6455 }
 0xdf0   : > { %5117 = vperm.xlu0 %9021, %v4627_v48   ;;  %6080 = vmatprep.subr.bf16.mxu0 %v9217_v16 }
 0xdf1   : > { %5122 = vperm.xlu1 %9022, %v4628_v11   ;;  %6255 = vmatprep.subr.bf16.mxu1 %v9217_v16 }
 0xdf3   : > { %6081 = vmatpush1.bf16.msra.mxu0 %v11502_v57  ;;  %6256 = vmatpush1.bf16.msra.mxu1 %v11638_v17  ;;  %v11807_v34 = vpop.permute.xlu0 %6366  ;;  %v11809_v20 = vpop.permute.xlu1 %6453 }
 0xdf4   : > { %6082 = vmatprep.subr.bf16.mxu0 %v9217_v16  ;;  %6257 = vmatprep.subr.bf16.mxu1 %v9217_v16 }
 0xdf7   : > { %6083 = vmatpush1.bf16.msra.mxu0 %v11516_v26  ;;  %6258 = vmatpush1.bf16.msra.mxu1 %v11646_v40  ;;  %v11815_v2 = vpop.permute.xlu0 %6384  ;;  %v11817_v5 = vpop.permute.xlu1 %6471 }
 0xdf8   : > { %6084 = vmatprep.subr.bf16.mxu0 %v9217_v16  ;;  %6259 = vmatprep.subr.bf16.mxu1 %v9217_v16 }
 0xdfb   : > { %6085 = vmatpush1.bf16.msra.mxu0 %v11530_v13  ;;  %6260 = vmatpush1.bf16.msra.mxu1 %v11654_v6  ;;  %v11823_v57 = vpop.permute.xlu0 %6382  ;;  %v11825_v17 = vpop.permute.xlu1 %6469 }
 0xdfc   : > { %6086 = vmatprep.subr.bf16.mxu0 %v9217_v16  ;;  %6261 = vmatprep.subr.bf16.mxu1 %v9217_v16 }
 0xdff   : > { %6087 = vmatpush1.bf16.msra.mxu0 %v11544_v46  ;;  %6262 = vmatpush1.bf16.msra.mxu1 %v11658_v22  ;;  %v11831_v26 = vpop.permute.xlu0 %6554  ;;  %v11833_v40 = vpop.permute.xlu1 %6729 }
 0xe00   : > { %6088 = vmatprep.subr.bf16.mxu0 %v9217_v16  ;;  %6263 = vmatprep.subr.bf16.mxu1 %v9217_v16 }
 0xe03   : > { %6089 = vmatpush1.bf16.msra.mxu0 %v11556_v59  ;;  %6264 = vmatpush1.bf16.msra.mxu1 %v11666_v54  ;;  %v11839_v13 = vpop.permute.xlu0 %6552  ;;  %v11841_v6 = vpop.permute.xlu1 %6727 }
 0xe04   : > { %6090 = vmatprep.subr.bf16.mxu0 %v9217_v16  ;;  %6265 = vmatprep.subr.bf16.mxu1 %v9217_v16 }
 0xe07   : > { %6091 = vmatpush1.bf16.msra.mxu0 %v11568_v38  ;;  %6266 = vmatpush1.bf16.msra.mxu1 %v11670_v35  ;;  %v11847_v46 = vpop.permute.xlu0 %6550  ;;  %v11849_v22 = vpop.permute.xlu1 %6725 }
 0xe08   : > { %6104 = vmatprep.subr.bf16.mxu0 %v9217_v16  ;;  %6279 = vmatprep.subr.bf16.mxu1 %v9217_v16 }
 0xe0a   : > { %v5106_v59 = vpop.f32.mrf.mxu0  ;;  %v11853_v54 = vpop.f32.mrf.mxu1 }
 0xe0b   : > { %v11856_v23 = vadd.f32 %v5106_v59, %v11741_v10  ;;  %6105 = vmatpush2.bf16.msra.mxu0 %v11582_v51  ;;  %6280 = vmatpush2.bf16.msra.mxu1 %v11678_v56  ;;  %v11860_v38 = vpop.permute.xlu0 %6548  ;;  %v11862_v35 = vpop.permute.xlu1 %6723  ;;  %v11869_v10 = vld [vmem:[%s12283_s9 + $0x40] ss:$8 sps:$4 sm:$0xff]  }
 0xe0c   : > { %v5108_v48 = vpop.f32.mrf.mxu0  ;;  %6106 = vmatprep.subr.bf16.mxu0 %v9217_v16  ;;  %6281 = vmatprep.subr.bf16.mxu1 %v9217_v16  ;;  %v5293_v11 = vpop.f32.mrf.mxu1 }
 0xe0e   : > { %v5109_v4 = vpop.f32.mrf.mxu0  ;;  %v11871_v59 = vpop.f32.mrf.mxu1 }
 0xe0f   : > { %v11874_v51 = vadd.f32 %v5109_v4, %v11765_v14  ;;  %6107 = vmatpush2.bf16.msra.mxu0 %v11606_v28  ;;  %6282 = vmatpush2.bf16.msra.mxu1 %v11682_v32  ;;  %v11878_v56 = vpop.permute.xlu0 %6546  ;;  %v11880_v48 = vpop.permute.xlu1 %6721 }
 0xe10   : > { %v5111_v11 = vpop.f32.mrf.mxu0  ;;  %6314 = vmatprep.subr.bf16.mxu0 %v9217_v16  ;;  %6399 = vmatprep.subr.bf16.mxu1 %v9217_v16  ;;  %v5296_v7 = vpop.f32.mrf.mxu1 }
 0xe12   : > { %6109 = vmatmul.mubr.bf16.vlgmr.msra.gmra.mxu0 %v11869_v10  ;;  %6284 = vmatmul.mubr.bf16.vlgmr.msra.gmra.mxu1 %v11595_v53 }
 0xe13   : > { %6315 = vmatpush1.bf16.msra.mxu0 %v11228_v60  ;;  %6400 = vmatpush1.bf16.msra.mxu1 %v11690_v43  ;;  %v11888_v14 = vpop.permute.xlu0 %6544  ;;  %v11890_v4 = vpop.permute.xlu1 %6719 }
 0xe14   : > { %6316 = vmatprep.subr.bf16.mxu0 %v9217_v16  ;;  %6401 = vmatprep.subr.bf16.mxu1 %v9217_v16 }
 0xe15   : > { %8124 = vmatprep.mubr.msk.bf16.mxu0 %vm2182_vm1, %v11466_v1  ;;  %8129 = vmatprep.mubr.msk.bf16.mxu1 %vm2182_vm1, %v11621_v0 }
 0xe17   : > { %6317 = vmatpush1.bf16.msra.mxu0 %v11233_v18  ;;  %6402 = vmatpush1.bf16.msra.mxu1 %v11702_v55  ;;  %v11900_v60 = vpop.permute.xlu0 %6542  ;;  %v11902_v7 = vpop.permute.xlu1 %6717 }
 0xe18   : > { %6318 = vmatprep.subr.bf16.mxu0 %v9217_v16  ;;  %6403 = vmatprep.subr.bf16.mxu1 %v9217_v16 }
 0xe1b   : > { %6319 = vmatpush1.bf16.msra.mxu0 %v11247_v50  ;;  %6404 = vmatpush1.bf16.msra.mxu1 %v11714_v3  ;;  %v11908_v28 = vpop.permute.xlu0 %6540  ;;  %v11910_v32 = vpop.permute.xlu1 %6715 }
 0xe1c   : > { %6320 = vmatprep.subr.bf16.mxu0 %v9217_v16  ;;  %6405 = vmatprep.subr.bf16.mxu1 %v9217_v16 }
 0xe1f   : > { %6321 = vmatpush1.bf16.msra.mxu0 %v11252_v45  ;;  %6406 = vmatpush1.bf16.msra.mxu1 %v11730_v47  ;;  %v11916_v18 = vpop.permute.xlu0 %6558  ;;  %v11918_v43 = vpop.permute.xlu1 %6733 }
 0xe20   : > { %6322 = vmatprep.subr.bf16.mxu0 %v9217_v16  ;;  %6407 = vmatprep.subr.bf16.mxu1 %v9217_v16 }
 0xe23   : > { %6323 = vmatpush1.bf16.msra.mxu0 %v11260_v19  ;;  %6408 = vmatpush1.bf16.msra.mxu1 %v11756_v24  ;;  %v11924_v50 = vpop.permute.xlu0 %6556  ;;  %v11926_v55 = vpop.permute.xlu1 %6731 }
 0xe24   : > { %6324 = vmatprep.subr.bf16.mxu0 %v9217_v16  ;;  %6409 = vmatprep.subr.bf16.mxu1 %v9217_v16 }
 0xe27   : > { %6325 = vmatpush1.bf16.msra.mxu0 %v11265_v29  ;;  %6410 = vmatpush1.bf16.msra.mxu1 %v11777_v31  ;;  %v11932_v45 = vpop.permute.xlu0 %6877  ;;  %v11934_v3 = vpop.permute.xlu1 %6875 }
 0xe28   : > { %6326 = vmatprep.subr.bf16.mxu0 %v9217_v16  ;;  %6411 = vmatprep.subr.bf16.mxu1 %v9217_v16 }
 0xe2b   : > { %6327 = vmatpush1.bf16.msra.mxu0 %v11273_v58  ;;  %6412 = vmatpush1.bf16.msra.mxu1 %v11799_v41  ;;  %v11940_v19 = vpop.permute.xlu0 %6873  ;;  %v11942_v47 = vpop.permute.xlu1 %6871 }
 0xe2c   : > { %6328 = vmatprep.subr.bf16.mxu0 %v9217_v16  ;;  %6413 = vmatprep.subr.bf16.mxu1 %v9217_v16 }
 0xe2f   : > { %6329 = vmatpush1.bf16.msra.mxu0 %v11278_v12  ;;  %6414 = vmatpush1.bf16.msra.mxu1 %v11807_v34  ;;  %v11948_v29 = vpop.permute.xlu0 %6869  ;;  %v11950_v24 = vpop.permute.xlu1 %6867 }
 0xe30   : > { %12381 = vst [vmem:[#allocation20_spill] sm:$0xff] %v11948_v29  ;;  %12382 = vst [vmem:[#allocation21_spill] sm:$0xff] %v11950_v24  ;;  %6342 = vmatprep.subr.bf16.mxu0 %v9217_v16  ;;  %6427 = vmatprep.subr.bf16.mxu1 %v9217_v16 }
 0xe32   : > { %v11954_v58 = vpop.f32.mrf.mxu0  ;;  %v11956_v31 = vpop.f32.mrf.mxu1 }
 0xe33   : > { %6343 = vmatpush2.bf16.msra.mxu0 %v11286_v30  ;;  %6428 = vmatpush2.bf16.msra.mxu1 %v11815_v2  ;;  %v11960_v41 = vpop.permute.xlu0 %6865  ;;  %v11962_v12 = vpop.permute.xlu1 %6863 }
 0xe34   : > { %12383 = vst [vmem:[#allocation22_spill] sm:$0xff] %v11960_v41  ;;  %v5356_v34 = vpop.f32.mrf.mxu0  ;;  %v5441_v11 = vpop.f32.mrf.mxu1  ;;  %6344 = vmatprep.subr.bf16.mxu0 %v9217_v16  ;;  %6429 = vmatprep.subr.bf16.mxu1 %v9217_v16 }
 0xe36   : > { %v11966_v24 = vpop.f32.mrf.mxu0  ;;  %v11968_v29 = vpop.f32.mrf.mxu1 }
 0xe37   : > { %6345 = vmatpush2.bf16.msra.mxu0 %v11291_v49  ;;  %6430 = vmatpush2.bf16.msra.mxu1 %v11823_v57  ;;  %v11972_v30 = vpop.permute.xlu0 %6881  ;;  %v11974_v2 = vpop.permute.xlu1 %6879 }
 0xe38   : > { %v5359_v41 = vpop.f32.mrf.mxu0  ;;  %6486 = vmatprep.subr.bf16.mxu0 %v9217_v16  ;;  %6573 = vmatprep.subr.bf16.mxu1 %v9217_v16  ;;  %v5444_v34 = vpop.f32.mrf.mxu1 }
 0xe3a   : > { %6347 = vmatmul.mubr.bf16.vlgmr.msra.gmra.mxu0 %v11600_v27  ;;  %6432 = vmatmul.mubr.bf16.vlgmr.msra.gmra.mxu1 %v11747_v9 }
 0xe3b   : > { %6487 = vmatpush1.bf16.msra.mxu0 %v11694_v36  ;;  %6574 = vmatpush1.bf16.msra.mxu1 %v11831_v26  ;;  %v11982_v49 = vpop.permute.xlu0 %6964  ;;  %v11984_v57 = vpop.permute.xlu1 %7051 }
 0xe3c   : > { %6488 = vmatprep.subr.bf16.mxu0 %v9217_v16  ;;  %6575 = vmatprep.subr.bf16.mxu1 %v9217_v16 }
 0xe3d   : > { %8134 = vmatprep.mubr.msk.bf16.mxu0 %vm2182_vm1, %v11626_v15  ;;  %8139 = vmatprep.mubr.msk.bf16.mxu1 %vm2182_vm1, %v11773_v33 }
 0xe3f   : > { %6489 = vmatpush1.bf16.msra.mxu0 %v11706_v39  ;;  %6576 = vmatpush1.bf16.msra.mxu1 %v11839_v13  ;;  %v11994_v36 = vpop.permute.xlu0 %6962  ;;  %v11996_v26 = vpop.permute.xlu1 %7049 }
 0xe40   : > { %6490 = vmatprep.subr.bf16.mxu0 %v9217_v16  ;;  %6577 = vmatprep.subr.bf16.mxu1 %v9217_v16 }
 0xe43   : > { %6491 = vmatpush1.bf16.msra.mxu0 %v11718_v42  ;;  %6578 = vmatpush1.bf16.msra.mxu1 %v11847_v46  ;;  %v12002_v41 = vpop.permute.xlu0 %6960  ;;  %v12004_v11 = vpop.permute.xlu1 %7047 }
 0xe44   : > { %6492 = vmatprep.subr.bf16.mxu0 %v9217_v16  ;;  %6579 = vmatprep.subr.bf16.mxu1 %v9217_v16 }
 0xe47   : > { %6493 = vmatpush1.bf16.msra.mxu0 %v11732_v37  ;;  %6580 = vmatpush1.bf16.msra.mxu1 %v11860_v38  ;;  %v12010_v39 = vpop.permute.xlu0 %6958  ;;  %v12012_v13 = vpop.permute.xlu1 %7045 }
 0xe48   : > { %6494 = vmatprep.subr.bf16.mxu0 %v9217_v16  ;;  %6581 = vmatprep.subr.bf16.mxu1 %v9217_v16 }
 0xe4b   : > { %6495 = vmatpush1.bf16.msra.mxu0 %v11758_v44  ;;  %6582 = vmatpush1.bf16.msra.mxu1 %v11878_v56  ;;  %v12018_v42 = vpop.permute.xlu0 %6956  ;;  %v12020_v46 = vpop.permute.xlu1 %7043 }
 0xe4c   : > { %6496 = vmatprep.subr.bf16.mxu0 %v9217_v16  ;;  %6583 = vmatprep.subr.bf16.mxu1 %v9217_v16 }
 0xe4f   : > { %6497 = vmatpush1.bf16.msra.mxu0 %v11779_v52  ;;  %6584 = vmatpush1.bf16.msra.mxu1 %v11888_v14  ;;  %v12026_v37 = vpop.permute.xlu0 %6954  ;;  %v12028_v38 = vpop.permute.xlu1 %7041 }
 0xe50   : > { %12384 = vst [vmem:[#allocation23_spill] sm:$0xff] %v12028_v38  ;;  %6498 = vmatprep.subr.bf16.mxu0 %v9217_v16  ;;  %6585 = vmatprep.subr.bf16.mxu1 %v9217_v16 }
 0xe53   : > { %6499 = vmatpush1.bf16.msra.mxu0 %v11801_v63  ;;  %6586 = vmatpush1.bf16.msra.mxu1 %v11900_v60  ;;  %v12034_v44 = vpop.permute.xlu0 %6952  ;;  %v12036_v56 = vpop.permute.xlu1 %7039 }
 0xe54   : > { %12385 = vst [vmem:[#allocation24_spill] sm:$0xff] %v12036_v56  ;;  %6500 = vmatprep.subr.bf16.mxu0 %v9217_v16  ;;  %6587 = vmatprep.subr.bf16.mxu1 %v9217_v16 }
 0xe57   : > { %6501 = vmatpush1.bf16.msra.mxu0 %v11809_v20  ;;  %6588 = vmatpush1.bf16.msra.mxu1 %v11908_v28  ;;  %v12044_v52 = vpop.permute.xlu0 %6950  ;;  %v12046_v63 = vpop.permute.xlu1 %7037 }
 0xe58   : > { %6514 = vmatprep.subr.bf16.mxu0 %v9217_v16  ;;  %6601 = vmatprep.subr.bf16.mxu1 %v9217_v16  ;;  %12386 = vst [vmem:[#allocation25_spill] sm:$0xff] %v12046_v63 }
 0xe5a   : > { %v5526_v14 = vpop.f32.mrf.mxu0  ;;  %v5613_v60 = vpop.f32.mrf.mxu1 }
 0xe5b   : > { %6515 = vmatpush2.bf16.msra.mxu0 %v11817_v5  ;;  %6602 = vmatpush2.bf16.msra.mxu1 %v11916_v18  ;;  %v12054_v38 = vpop.permute.xlu0 %6968  ;;  %v12056_v63 = vpop.permute.xlu1 %7055  ;;  %v5355_v5 = vadd.f32 %v11954_v58, %v11853_v54 }
 0xe5c   : > { %v5528_v34 = vpop.f32.mrf.mxu0  ;;  %v5615_v56 = vpop.f32.mrf.mxu1  ;;  %6516 = vmatprep.subr.bf16.mxu0 %v9217_v16  ;;  %6603 = vmatprep.subr.bf16.mxu1 %v9217_v16 }
 0xe5d   : > { %v5358_v34 = vadd.f32 %v11966_v24, %v11871_v59 }
 0xe5e   : > { %v5529_v20 = vpop.f32.mrf.mxu0  ;;  %v5616_v28 = vpop.f32.mrf.mxu1 }
 0xe5f   : > { %6517 = vmatpush2.bf16.msra.mxu0 %v11825_v17  ;;  %6604 = vmatpush2.bf16.msra.mxu1 %v11924_v50  ;;  %v5446_v17 = vadd.f32 %v11956_v31, %v5355_v5  ;;  %v5447_v54 = vadd.f32 %v11968_v29, %v5358_v34  ;;  %v12072_v50 = vpop.permute.xlu0 %6966 }
 0xe60   : > { %v5531_v18 = vpop.f32.mrf.mxu0  ;;  %6748 = vmatprep.subr.bf16.mxu0 %v9217_v16  ;;  %6811 = vmatprep.subr.bf16.mxu1 %v9217_v16  ;;  %v5618_v56 = vpop.f32.mrf.mxu1 }
 0xe61   : > { %v5533_v59 = vadd.f32 %v5526_v14, %v5446_v17  ;;  %v12390_v56 = vld [vmem:[#allocation16_spill] sm:$0xff] }
 0xe62   : > { %6519 = vmatmul.mubr.bf16.vlgmr.msra.gmra.mxu0 %v11752_v21  ;;  %6606 = vmatmul.mubr.bf16.vlgmr.msra.gmra.mxu1 %v11869_v10 }
 0xe63   : > { %6749 = vmatpush1.bf16.msra.mxu0 %v11833_v40  ;;  %6812 = vmatpush1.bf16.msra.mxu1 %v11400_v8  ;;  %v12078_v40 = vpop.permute.xlu1 %7053  ;;  %v5534_v8 = vadd.f32 %v5529_v20, %v5447_v54  ;;  %v5620_v29 = vadd.f32 %v5613_v60, %v5533_v59  ;;  %v12387_v20 = vld [vmem:[#allocation13_spill] sm:$0xff] }
 0xe64   : > { %6750 = vmatprep.subr.bf16.mxu0 %v9217_v16  ;;  %6813 = vmatprep.subr.bf16.mxu1 %v9217_v16 }
 0xe65   : > { %8156 = vmatprep.mubr.msk.bf16.mxu0 %vm2182_vm1, %v11461_v62  ;;  %8159 = vmatprep.mubr.msk.bf16.mxu1 %vm2182_vm1, %v11466_v1  ;;  %v5621_v24 = vadd.f32 %v5616_v28, %v5534_v8 }
 0xe67   : > { %6751 = vmatpush1.bf16.msra.mxu0 %v11841_v6  ;;  %6814 = vmatpush1.bf16.msra.mxu1 %v11413_v25 }
 0xe68   : > { %6752 = vmatprep.subr.bf16.mxu0 %v9217_v16  ;;  %6815 = vmatprep.subr.bf16.mxu1 %v9217_v16 }
 0xe6b   : > { %6753 = vmatpush1.bf16.msra.mxu0 %v11849_v22  ;;  %6816 = vmatpush1.bf16.msra.mxu1 %v11426_v61  ;;  %v12086_v62 = vpop.permute.xlu0 %5117 }
 0xe6c   : > { %v12088_v1 = vpop.permute.xlu1 %5122  ;;  %v5125_v58 = vadd.f32 %v12086_v62, %v11856_v23  ;;  %v5622_v6 = vadd.f32 %v5620_v29, %v12086_v62  ;;  %6754 = vmatprep.subr.bf16.mxu0 %v9217_v16  ;;  %6817 = vmatprep.subr.bf16.mxu1 %v9217_v16 }
 0xe6d   : > { %v5126_v25 = vadd.f32 %v12088_v1, %v11874_v51  ;;  %v5623_v22 = vadd.f32 %v5621_v24, %v12088_v1  ;;  %v12389_v51 = vld [vmem:[#allocation15_spill] sm:$0xff]  ;;  %v12393_v24 = vld [vmem:[#allocation19_spill] sm:$0xff] }
 0xe6e   : > { %v5127_v31 = vmax.f32 %v5125_v58, 0.0  ;;  %v5624_v61 = vmax.f32 %v5622_v6, 0.0 }
 0xe6f   : > { %v5128_v14 = vmax.f32 %v5126_v25, 0.0  ;;  %v5625_v60 = vmax.f32 %v5623_v22, 0.0  ;;  %6755 = vmatpush1.bf16.msra.mxu0 %v11862_v35  ;;  %6818 = vmatpush1.bf16.msra.mxu1 %v12387_v20  ;;  %v12388_v35 = vld [vmem:[#allocation14_spill] sm:$0xff] }
 0xe70   : > { %v8243_v23 = vpack.c.bf16 %v5127_v31, %v5127_v31  ;;  %v8245_v28 = vpack.c.bf16 %v5624_v61, %v5624_v61  ;;  %6756 = vmatprep.subr.bf16.mxu0 %v9217_v16  ;;  %6819 = vmatprep.subr.bf16.mxu1 %v9217_v16 }
 0xe71   : > { %v8244_v5 = vpack.c.bf16 %v5128_v14, %v5128_v14  ;;  %v8246_v18 = vpack.c.bf16 %v5625_v60, %v5625_v60 }
 0xe72   : > { %5138 = vst.msk [vmem:[#allocation10] sm:$0xf] %vm5137_vm14, %v8243_v23  ;;  %5635 = vst.msk [vmem:[#allocation10 + $0x8] sm:$0xf] %vm5137_vm14, %v8245_v28 }
 0xe73   : > { %5139 = vst.msk [vmem:[#allocation10 + $0x4] sm:$0xf] %vm5137_vm14, %v8244_v5  ;;  %5636 = vst.msk [vmem:[#allocation10 + $0xc] sm:$0xf] %vm5137_vm14, %v8246_v18  ;;  %6757 = vmatpush1.bf16.msra.mxu0 %v11880_v48  ;;  %6820 = vmatpush1.bf16.msra.mxu1 %v12388_v35  ;;  %v12391_v48 = vld [vmem:[#allocation11_spill] sm:$0xff] }
 0xe74   : > { %6758 = vmatprep.subr.bf16.mxu0 %v9217_v16  ;;  %6821 = vmatprep.subr.bf16.mxu1 %v9217_v16 }
 0xe77   : > { %6759 = vmatpush1.bf16.msra.mxu0 %v11890_v4  ;;  %6822 = vmatpush1.bf16.msra.mxu1 %v12389_v51 }
 0xe78   : > { %6760 = vmatprep.subr.bf16.mxu0 %v9217_v16  ;;  %6823 = vmatprep.subr.bf16.mxu1 %v9217_v16 }
 0xe7b   : > { %6761 = vmatpush1.bf16.msra.mxu0 %v11902_v7  ;;  %6824 = vmatpush1.bf16.msra.mxu1 %v12390_v56  ;;  %v12392_v7 = vld [vmem:[#allocation12_spill] sm:$0xff] }
 0xe7c   : > { %6762 = vmatprep.subr.bf16.mxu0 %v9217_v16  ;;  %6825 = vmatprep.subr.bf16.mxu1 %v9217_v16 }
 0xe7f   : > { %6763 = vmatpush1.bf16.msra.mxu0 %v11910_v32  ;;  %6826 = vmatpush1.bf16.msra.mxu1 %v12391_v48 }
 0xe80   : > { %6776 = vmatprep.subr.bf16.mxu0 %v9217_v16  ;;  %6839 = vmatprep.subr.bf16.mxu1 %v9217_v16 }
 0xe82   : > { %v5788_v4 = vpop.f32.mrf.mxu0  ;;  %v5851_v34 = vpop.f32.mrf.mxu1 }
 0xe83   : > { %v12122_v17 = vadd.f32 %v5851_v34, %v5788_v4  ;;  %6777 = vmatpush2.bf16.msra.mxu0 %v11918_v43  ;;  %6840 = vmatpush2.bf16.msra.mxu1 %v12392_v7 }
 0xe84   : > { %v5790_v54 = vpop.f32.mrf.mxu0  ;;  %v5853_v59 = vpop.f32.mrf.mxu1  ;;  %6778 = vmatprep.subr.bf16.mxu0 %v9217_v16  ;;  %6841 = vmatprep.subr.bf16.mxu1 %v9217_v16 }
 0xe86   : > { %v5791_v32 = vpop.f32.mrf.mxu0  ;;  %v5854_v8 = vpop.f32.mrf.mxu1 }
 0xe87   : > { %v12128_v29 = vadd.f32 %v5854_v8, %v5791_v32  ;;  %6779 = vmatpush2.bf16.msra.mxu0 %v11926_v55  ;;  %6842 = vmatpush2.bf16.msra.mxu1 %v12393_v24 }
 0xe88   : > { %v5793_v58 = vpop.f32.mrf.mxu0  ;;  %6896 = vmatprep.subr.bf16.mxu0 %v9217_v16  ;;  %6983 = vmatprep.subr.bf16.mxu1 %v9217_v16  ;;  %v5856_v43 = vpop.f32.mrf.mxu1 }
 0xe8a   : > { %6781 = vmatmul.mubr.bf16.vlgmr.msra.gmra.mxu0 %v11595_v53  ;;  %6844 = vmatmul.mubr.bf16.vlgmr.msra.gmra.mxu1 %v11600_v27  ;;  %v12394_v53 = vld [vmem:[#allocation20_spill] sm:$0xff]  ;;  %v12395_v27 = vld [vmem:[#allocation21_spill] sm:$0xff] }
 0xe8b   : > { %6897 = vmatpush1.bf16.msra.mxu0 %v11932_v45  ;;  %6984 = vmatpush1.bf16.msra.mxu1 %v11982_v49 }
 0xe8c   : > { %6898 = vmatprep.subr.bf16.mxu0 %v9217_v16  ;;  %6985 = vmatprep.subr.bf16.mxu1 %v9217_v16 }
 0xe8d   : > { %8164 = vmatprep.mubr.msk.bf16.mxu0 %vm2182_vm1, %v11621_v0  ;;  %8169 = vmatprep.mubr.msk.bf16.mxu1 %vm2182_vm1, %v11626_v15  ;;  %v12396_v0 = vld [vmem:[#allocation22_spill] sm:$0xff] }
 0xe8f   : > { %6899 = vmatpush1.bf16.msra.mxu0 %v11934_v3  ;;  %6986 = vmatpush1.bf16.msra.mxu1 %v11994_v36 }
 0xe90   : > { %6900 = vmatprep.subr.bf16.mxu0 %v9217_v16  ;;  %6987 = vmatprep.subr.bf16.mxu1 %v9217_v16 }
 0xe93   : > { %6901 = vmatpush1.bf16.msra.mxu0 %v11940_v19  ;;  %6988 = vmatpush1.bf16.msra.mxu1 %v12002_v41 }
 0xe94   : > { %6902 = vmatprep.subr.bf16.mxu0 %v9217_v16  ;;  %6989 = vmatprep.subr.bf16.mxu1 %v9217_v16 }
 0xe97   : > { %6903 = vmatpush1.bf16.msra.mxu0 %v11942_v47  ;;  %6990 = vmatpush1.bf16.msra.mxu1 %v12010_v39 }
 0xe98   : > { %6904 = vmatprep.subr.bf16.mxu0 %v9217_v16  ;;  %6991 = vmatprep.subr.bf16.mxu1 %v9217_v16 }
 0xe9b   : > { %6905 = vmatpush1.bf16.msra.mxu0 %v12394_v53  ;;  %6992 = vmatpush1.bf16.msra.mxu1 %v12018_v42 }
 0xe9c   : > { %6906 = vmatprep.subr.bf16.mxu0 %v9217_v16  ;;  %6993 = vmatprep.subr.bf16.mxu1 %v9217_v16 }
 0xe9f   : > { %6907 = vmatpush1.bf16.msra.mxu0 %v12395_v27  ;;  %6994 = vmatpush1.bf16.msra.mxu1 %v12026_v37 }
 0xea0   : > { %6908 = vmatprep.subr.bf16.mxu0 %v9217_v16  ;;  %6995 = vmatprep.subr.bf16.mxu1 %v9217_v16 }
 0xea3   : > { %6909 = vmatpush1.bf16.msra.mxu0 %v12396_v0  ;;  %6996 = vmatpush1.bf16.msra.mxu1 %v12034_v44 }
 0xea4   : > { %6910 = vmatprep.subr.bf16.mxu0 %v9217_v16  ;;  %6997 = vmatprep.subr.bf16.mxu1 %v9217_v16 }
 0xea7   : > { %6911 = vmatpush1.bf16.msra.mxu0 %v11962_v12  ;;  %6998 = vmatpush1.bf16.msra.mxu1 %v12044_v52 }
 0xea8   : > { %6924 = vmatprep.subr.bf16.mxu0 %v9217_v16  ;;  %7011 = vmatprep.subr.bf16.mxu1 %v9217_v16 }
 0xeaa   : > { %v5936_v15 = vpop.f32.mrf.mxu0  ;;  %v6023_v55 = vpop.f32.mrf.mxu1 }
 0xeab   : > { %6925 = vmatpush2.bf16.msra.mxu0 %v11972_v30  ;;  %7012 = vmatpush2.bf16.msra.mxu1 %v12054_v38  ;;  %v12399_v30 = vld [vmem:[#allocation25_spill] sm:$0xff] }
 0xeac   : > { %v5938_v45 = vpop.f32.mrf.mxu0  ;;  %v6025_v3 = vpop.f32.mrf.mxu1  ;;  %6926 = vmatprep.subr.bf16.mxu0 %v9217_v16  ;;  %7013 = vmatprep.subr.bf16.mxu1 %v9217_v16 }
 0xeae   : > { %v5939_v19 = vpop.f32.mrf.mxu0  ;;  %v6026_v47 = vpop.f32.mrf.mxu1 }
 0xeaf   : > { %6927 = vmatpush2.bf16.msra.mxu0 %v11974_v2  ;;  %7014 = vmatpush2.bf16.msra.mxu1 %v12072_v50 }
 0xeb0   : > { %v5941_v12 = vpop.f32.mrf.mxu0  ;;  %7070 = vmatprep.subr.bf16.mxu0 %v9217_v16  ;;  %v6028_v49 = vpop.f32.mrf.mxu1 }
 0xeb2   : > { %6929 = vmatmul.mubr.bf16.vlgmr.msra.gmra.mxu0 %v11747_v9  ;;  %7016 = vmatmul.mubr.bf16.vlgmr.msra.gmra.mxu1 %v11752_v21  ;;  %v12397_v9 = vld [vmem:[#allocation23_spill] sm:$0xff]  ;;  %v12398_v21 = vld [vmem:[#allocation24_spill] sm:$0xff] }
 0xeb3   : > { %7071 = vmatpush1.bf16.msra.mxu0 %v11984_v57  ;;  %8174 = vmatprep.mubr.msk.bf16.mxu0 %vm2182_vm1, %v11773_v33  ;;  %v5943_v33 = vadd.f32 %v5936_v15, %v12122_v17  ;;  %v5944_v57 = vadd.f32 %v5939_v19, %v12128_v29 }
 0xeb4   : > { %7072 = vmatprep.subr.bf16.mxu0 %v9217_v16 }
 0xeb5   : > { %v6030_v2 = vadd.f32 %v6023_v55, %v5943_v33 }
 0xeb7   : > { %7073 = vmatpush1.bf16.msra.mxu0 %v11996_v26 }
 0xeb8   : > { %7074 = vmatprep.subr.bf16.mxu0 %v9217_v16 }
 0xebb   : > { %7075 = vmatpush1.bf16.msra.mxu0 %v12004_v11 }
 0xebc   : > { %7076 = vmatprep.subr.bf16.mxu0 %v9217_v16 }
 0xebf   : > { %7077 = vmatpush1.bf16.msra.mxu0 %v12012_v13  ;;  %v6031_v13 = vadd.f32 %v6026_v47, %v5944_v57 }
 0xec0   : > { %7078 = vmatprep.subr.bf16.mxu0 %v9217_v16 }
 0xec3   : > { %7079 = vmatpush1.bf16.msra.mxu0 %v12020_v46 }
 0xec4   : > { %7080 = vmatprep.subr.bf16.mxu0 %v9217_v16 }
 0xec7   : > { %7081 = vmatpush1.bf16.msra.mxu0 %v12397_v9 }
 0xec8   : > { %7082 = vmatprep.subr.bf16.mxu0 %v9217_v16 }
 0xecb   : > { %7083 = vmatpush1.bf16.msra.mxu0 %v12398_v21 }
 0xecc   : > { %7084 = vmatprep.subr.bf16.mxu0 %v9217_v16 }
 0xecf   : > { %7085 = vmatpush1.bf16.msra.mxu0 %v12399_v30 }
 0xed0   : > { %7098 = vmatprep.subr.bf16.mxu0 %v9217_v16 }
 0xed2   : > { %v6110_v36 = vpop.f32.mrf.mxu0  ;;  %v6285_v26 = vpop.f32.mrf.mxu1 }
 0xed3   : > { %v6117_v41 = vadd.f32 %v6110_v36, %v6030_v2  ;;  %7099 = vmatpush2.bf16.msra.mxu0 %v12056_v63 }
 0xed4   : > { %v6112_v11 = vpop.f32.mrf.mxu0  ;;  %7100 = vmatprep.subr.bf16.mxu0 %v9217_v16  ;;  %v6287_v39 = vpop.f32.mrf.mxu1 }
 0xed5   : > { %v6119_v42 = vadd.f32 %v6117_v41, %v12086_v62 }
 0xed6   : > { %v6113_v46 = vpop.f32.mrf.mxu0  ;;  %v6288_v37 = vpop.f32.mrf.mxu1 }
 0xed7   : > { %v6121_v38 = vmax.f32 %v6119_v42, 0.0  ;;  %v6118_v44 = vadd.f32 %v6113_v46, %v6031_v13  ;;  %7101 = vmatpush2.bf16.msra.mxu0 %v12078_v40 }
 0xed8   : > { %v6115_v52 = vpop.f32.mrf.mxu0  ;;  %v6290_v50 = vpop.f32.mrf.mxu1 }
 0xed9   : > { %v8247_v6 = vpack.c.bf16 %v6121_v38, %v6121_v38  ;;  %v6120_v25 = vadd.f32 %v6118_v44, %v12088_v1 }
 0xeda   : > { %7103 = vmatmul.mubr.bf16.vlgmr.msra.gmra.mxu0 %v11869_v10 }
 0xedb   : > { %6132 = vst.msk [vmem:[#allocation10 + $0x10] sm:$0xf] %vm5137_vm14, %v8247_v6  ;;  %v6122_v16 = vmax.f32 %v6120_v25, 0.0 }
 0xedd   : > { %v8248_v63 = vpack.c.bf16 %v6122_v16, %v6122_v16 }
 0xedf   : > { %6133 = vst.msk [vmem:[#allocation10 + $0x14] sm:$0xf] %vm5137_vm14, %v8248_v63 }
 0xefa   : > { %v6348_v22 = vpop.f32.mrf.mxu0  ;;  %v6433_v31 = vpop.f32.mrf.mxu1 }
 0xefb   : > { %v6349_v28 = vadd.f32 %v6348_v22, %v6285_v26 }
 0xefc   : > { %v6350_v61 = vpop.f32.mrf.mxu0  ;;  %v6435_v14 = vpop.f32.mrf.mxu1 }
 0xefd   : > { %v6440_v5 = vadd.f32 %v6433_v31, %v6349_v28  ;;  %v7132_v14 = vld [vmem:[#allocation10 + $0x10] sm:$0xf] }
 0xefe   : > { %v6351_v60 = vpop.f32.mrf.mxu0  ;;  %v6436_v20 = vpop.f32.mrf.mxu1 }
 0xeff   : > { %v6352_v18 = vadd.f32 %v6351_v60, %v6288_v37 }
 0xf00   : > { %v6353_v40 = vpop.f32.mrf.mxu0  ;;  %v6438_v23 = vpop.f32.mrf.mxu1 }
 0xf01   : > { %v6441_v4 = vadd.f32 %v6436_v20, %v6352_v18  ;;  %v7128_v18 = vld [vmem:[#allocation10] sm:$0xf] }
 0xf22   : > { %v6520_v35 = vpop.f32.mrf.mxu0  ;;  %v6607_v51 = vpop.f32.mrf.mxu1 }
 0xf23   : > { %v6527_v10 = vadd.f32 %v6520_v35, %v6440_v5  ;;  %v7130_v35 = vld [vmem:[#allocation10 + $0x8] sm:$0xf] }
 0xf24   : > { %v6522_v56 = vpop.f32.mrf.mxu0  ;;  %v6609_v48 = vpop.f32.mrf.mxu1 }
 0xf25   : > { %v6614_v34 = vadd.f32 %v6607_v51, %v6527_v10  ;;  %v7134_v51 = vmax.bf16 %v7130_v35, %v7128_v18  ;;  %v7129_v10 = vld [vmem:[#allocation10 + $0x4] sm:$0xf]  ;;  %v7131_v56 = vld [vmem:[#allocation10 + $0xc] sm:$0xf] }
 0xf26   : > { %v6523_v17 = vpop.f32.mrf.mxu0  ;;  %v6610_v7 = vpop.f32.mrf.mxu1 }
 0xf27   : > { %v6616_v54 = vadd.f32 %v6614_v34, %v12086_v62  ;;  %v6528_v59 = vadd.f32 %v6523_v17, %v6441_v4  ;;  %v7136_v48 = vmax.bf16 %v7134_v51, %v7132_v14  ;;  %v7135_v4 = vmax.bf16 %v7131_v56, %v7129_v10 }
 0xf28   : > { %v6525_v32 = vpop.f32.mrf.mxu0  ;;  %v6612_v8 = vpop.f32.mrf.mxu1 }
 0xf29   : > { %v6618_v29 = vmax.f32 %v6616_v54, 0.0  ;;  %v6615_v24 = vadd.f32 %v6610_v7, %v6528_v59 }
 0xf2b   : > { %v8249_v58 = vpack.c.bf16 %v6618_v29, %v6618_v29  ;;  %v6617_v43 = vadd.f32 %v6615_v24, %v12088_v1 }
 0xf2d   : > { %6629 = vst.msk [vmem:[#allocation10 + $0x18] sm:$0xf] %vm5137_vm14, %v8249_v58  ;;  %v6619_v53 = vmax.f32 %v6617_v43, 0.0 }
 0xf2f   : > { %v8250_v27 = vpack.c.bf16 %v6619_v53, %v6619_v53 }
 0xf31   : > { %6630 = vst.msk [vmem:[#allocation10 + $0x1c] sm:$0xf] %vm5137_vm14, %v8250_v27 }
 0xf34   : > { %v7156_v61 = vld [vmem:[#allocation10 + $0x18] sm:$0xf] }
 0xf35   : > { %v7160_v60 = vmax.bf16 %v7156_v61, %v7132_v14  ;;  %v7315_v61 = vld [vmem:[%s12288_s14] sm:$0xf] }
 0xf38   : > { %v7157_v40 = vld [vmem:[#allocation10 + $0x1c] sm:$0xf] }
 0xf4a   : > { %v6782_v0 = vpop.f32.mrf.mxu0  ;;  %v6845_v15 = vpop.f32.mrf.mxu1 }
 0xf4b   : > { %v6846_v55 = vadd.f32 %v6845_v15, %v6782_v0 }
 0xf4c   : > { %v6784_v45 = vpop.f32.mrf.mxu0  ;;  %v6847_v3 = vpop.f32.mrf.mxu1 }
 0xf4e   : > { %v6785_v19 = vpop.f32.mrf.mxu0  ;;  %v6848_v47 = vpop.f32.mrf.mxu1 }
 0xf4f   : > { %v6849_v12 = vadd.f32 %v6848_v47, %v6785_v19  ;;  %v7208_v19 = vld [vmem:[%s12285_s11] sm:$0xff] }
 0xf50   : > { %v6787_v49 = vpop.f32.mrf.mxu0  ;;  %v6850_v9 = vpop.f32.mrf.mxu1  ;;  %8689 = vmatprep.mubr.msk.f32.mxu1 %vm3514_vm6, %v7208_v19 }
 0xf72   : > { %v6930_v21 = vpop.f32.mrf.mxu0  ;;  %v7017_v33 = vpop.f32.mrf.mxu1 }
 0xf73   : > { %v6937_v11 = vadd.f32 %v6930_v21, %v6846_v55 }
 0xf74   : > { %v6932_v30 = vpop.f32.mrf.mxu0  ;;  %v7019_v2 = vpop.f32.mrf.mxu1 }
 0xf75   : > { %v7024_v39 = vadd.f32 %v7017_v33, %v6937_v11  ;;  %v7210_v11 = vld [vmem:[%s12285_s11 + $0x10] sm:$0xff] }
 0xf76   : > { %v6933_v57 = vpop.f32.mrf.mxu0  ;;  %v7020_v36 = vpop.f32.mrf.mxu1 }
 0xf77   : > { %v6938_v13 = vadd.f32 %v6933_v57, %v6849_v12 }
 0xf78   : > { %v6935_v26 = vpop.f32.mrf.mxu0  ;;  %v7022_v41 = vpop.f32.mrf.mxu1 }
 0xf79   : > { %v7025_v38 = vadd.f32 %v7020_v36, %v6938_v13  ;;  %v7209_v41 = vld [vmem:[%s12285_s11 + $0x8] sm:$0xff]  ;;  %v7211_v13 = vld [vmem:[%s12285_s11 + $0x18] sm:$0xff] }
 0xf9a   : > { %v7104_v42 = vpop.f32.mrf.mxu0 }
 0xf9b   : > { %v7111_v46 = vadd.f32 %v7104_v42, %v7024_v39  ;;  %v12400_v39 = vmov 0.0  }
 0xf9c   : > { %v7106_v37 = vpop.f32.mrf.mxu0 }
 0xf9d   : > { %v7113_v44 = vadd.f32 %v7111_v46, %v12086_v62  ;;  %v7133_v62 = vld [vmem:[#allocation10 + $0x14] sm:$0xf] }
 0xf9e   : > { %v7107_v52 = vpop.f32.mrf.mxu0  ;;  %v7161_v28 = vmax.bf16 %v7157_v40, %v7133_v62  ;;  %v7137_v34 = vmax.bf16 %v7135_v4, %v7133_v62  ;;  %v7215_v37 = vld [vmem:[%s12286_s12 + $0x18] sm:$0xff] }
 0xf9f   : > { %v7115_v50 = vmax.f32 %v7113_v44, 0.0  ;;  %v7112_v6 = vadd.f32 %v7107_v52, %v7025_v38  ;;  %v7214_v44 = vld [vmem:[%s12286_s12 + $0x10] sm:$0xff] }
 0xfa0   : > { %v7109_v25 = vpop.f32.mrf.mxu0 }
 0xfa1   : > { %v8251_v16 = vpack.c.bf16 %v7115_v50, %v7115_v50  ;;  %v7114_v63 = vadd.f32 %v7112_v6, %v12088_v1  ;;  %v7213_v50 = vld [vmem:[%s12286_s12 + $0x8] sm:$0xff] }
 0xfa3   : > { %7126 = vst.msk [vmem:[#allocation10 + $0x20] sm:$0xf] %vm5137_vm14, %v8251_v16  ;;  %v7116_v22 = vmax.f32 %v7114_v63, 0.0  ;;  %v7212_v16 = vld [vmem:[%s12286_s12] sm:$0xff] }
 0xfa5   : > { %v8252_v31 = vpack.c.bf16 %v7116_v22, %v7116_v22 }
 0xfa7   : > { %7127 = vst.msk [vmem:[#allocation10 + $0x24] sm:$0xf] %vm5137_vm14, %v8252_v31  ;;  %v7314_v31 = vld [vmem:[%s12287_s13] sm:$0xf] }
 0xfaa   : > { %v7158_v20 = vld [vmem:[#allocation10 + $0x20] sm:$0xf] }
 0xfab   : > { %v7162_v23 = vmax.bf16 %v7160_v60, %v7158_v20 }
 0xfad   : > { %7166 = vrot.lane.b32.xlu1 %v7162_v23, %s9216_s27 }
 0xfae   : > { %v7159_v5 = vld [vmem:[#allocation10 + $0x24] sm:$0xf] }
 0xfaf   : > { %v7163_v1 = vmax.bf16 %v7161_v28, %v7159_v5 }
 0xfb1   : > { %7168 = vrot.lane.b32.xlu0 %v7163_v1, %s9216_s27  ;;  %7174 = vrot.lane.b32.xlu1 %v7162_v23, %s9218_s23 }
 0xfb5   : > { %7176 = vrot.lane.b32.xlu0 %v7163_v1, %s9218_s23  ;;  %7140 = vrot.lane.b32.xlu1 %v7136_v48, %s9216_s27 }
 0xfb9   : > { %7142 = vrot.lane.b32.xlu0 %v7137_v34, %s9216_s27  ;;  %7148 = vrot.lane.b32.xlu1 %v7136_v48, %s9218_s23 }
 0xfbd   : > { %7150 = vrot.lane.b32.xlu0 %v7137_v34, %s9218_s23 }
0x101f   : > { %v7167_v17 = vpop.permute.xlu1 %7166 }
0x1020   : > { %v7172_v59 = vmax.bf16 %v7167_v17, %v7162_v23 }
0x1023   : > { %v7175_v7 = vpop.permute.xlu1 %7174  ;;  %v7169_v54 = vpop.permute.xlu0 %7168 }
0x1024   : > { %v7173_v32 = vmax.bf16 %v7169_v54, %v7163_v1  ;;  %v7180_v24 = vmax.bf16 %v7175_v7, %v7172_v59 }
0x1027   : > { %v7141_v8 = vpop.permute.xlu1 %7140  ;;  %v7177_v29 = vpop.permute.xlu0 %7176 }
0x1028   : > { %v7181_v58 = vmax.bf16 %v7177_v29, %v7173_v32  ;;  %v7146_v0 = vmax.bf16 %v7141_v8, %v7136_v48 }
0x102a   : > { %v8178_v43 = vcombine.low %v7180_v24, %v7181_v58 }
0x102b   : > { %v7143_v53 = vpop.permute.xlu0 %7142  ;;  %v7149_v27 = vpop.permute.xlu1 %7148 }
0x102c   : > { %7197 = vrot.lane.b32.xlu1 %v8178_v43, %s9218_s23  ;;  %v7147_v15 = vmax.bf16 %v7143_v53, %v7137_v34  ;;  %v7154_v45 = vmax.bf16 %v7149_v27, %v7146_v0  ;;  %v7205_v21 = vunpack.c.h.bf16 %v8178_v43  ;;  %v7204_v33 = vunpack.c.l.bf16 %v8178_v43 }
0x102f   : > { %v7151_v55 = vpop.permute.xlu0 %7150 }
0x1030   : > { %v7155_v3 = vmax.bf16 %v7151_v55, %v7147_v15 }
0x1032   : > { %v8177_v47 = vcombine.low %v7154_v45, %v7155_v3 }
0x1034   : > { %7188 = vrot.lane.b32.xlu0 %v8177_v47, %s9218_s23  ;;  %v7201_v36 = vunpack.c.h.bf16 %v8177_v47  ;;  %v7200_v26 = vunpack.c.l.bf16 %v8177_v47 }
0x109e   : > { %v7198_v12 = vpop.permute.xlu1 %7197 }
0x109f   : > { %v7207_v49 = vunpack.c.h.bf16 %v7198_v12  ;;  %v7206_v9 = vunpack.c.l.bf16 %v7198_v12 }
0x10a1   : > { %8673 = vmatprep.subr.mxu1 %v7207_v49 }
0x10a2   : > { %8674 = vmatpush3.msra.mxu1 %v7207_v49 }
0x10a3   : > { %8675 = vmatprep.subr.mxu1 %v7206_v9 }
0x10a4   : > { %8676 = vmatpush3.msra.mxu1 %v7206_v9 }
0x10a5   : > { %8677 = vmatprep.subr.mxu1 %v7205_v21 }
0x10a6   : > { %8678 = vmatpush3.msra.mxu1 %v7205_v21  ;;  %v7189_v30 = vpop.permute.xlu0 %7188 }
0x10a7   : > { %v7203_v2 = vunpack.c.h.bf16 %v7189_v30  ;;  %8679 = vmatprep.subr.mxu1 %v7204_v33  ;;  %v7202_v57 = vunpack.c.l.bf16 %v7189_v30 }
0x10a8   : > { %8680 = vmatpush3.msra.mxu1 %v7204_v33 }
0x10a9   : > { %8681 = vmatprep.subr.mxu1 %v7203_v2 }
0x10aa   : > { %8682 = vmatpush3.msra.mxu1 %v7203_v2 }
0x10ab   : > { %8683 = vmatprep.subr.mxu1 %v7202_v57 }
0x10ac   : > { %8684 = vmatpush3.msra.mxu1 %v7202_v57 }
0x10ad   : > { %8685 = vmatprep.subr.mxu1 %v7201_v36 }
0x10ae   : > { %8686 = vmatpush3.msra.mxu1 %v7201_v36 }
0x10af   : > { %8687 = vmatprep.subr.mxu1 %v7200_v26 }
0x10b0   : > { %8688 = vmatpush3.msra.mxu1 %v7200_v26 }
0x10b1   : > { %8690 = vmatmul.mubr.msk.f32.vlgmr.msra.gmra.mxu1 %vm3514_vm6, %v7209_v41  ;;  %8695 = vmatprep.subr.mxu1 %v12400_v39 }
0x10b2   : > { %8692 = vmatprep.mubr.msk.f32.mxu1 %vm3514_vm6, %v7210_v11 }
0x10b5   : > { %8693 = vmatmul.mubr.msk.f32.gmra.mxu1 %vm3514_vm6, %v7211_v13 }
0x10b6   : > { %8703 = vmatprep.mubr.msk.f32.mxu1 %vm9221_vm7, %v12400_v39 }
0x1171   : > { %v8691_v42 = vpop.f32.mrf.mxu1 }
0x1172   : > { %v7301_v63 = vadd.f32 %v8691_v42, %v7213_v50 }
0x1173   : > { %v7295_v46 = vpop.f32.mrf.mxu1 }
0x1174   : > { %v7296_v22 = vadd.f32 %v7295_v46, %v7212_v16 }
0x1175   : > { %v8694_v38 = vpop.f32.mrf.mxu1 }
0x1176   : > { %v7311_v52 = vadd.f32 %v8694_v38, %v7215_v37 }
0x1177   : > { %v7305_v6 = vpop.f32.mrf.mxu1 }
0x1178   : > { %v7306_v25 = vadd.f32 %v7305_v6, %v7214_v44  ;;  %8696 = vmatpush3.msra.mxu1 %v7311_v52 }
0x1179   : > { %8697 = vmatprep.subr.mxu1 %v12400_v39 }
0x117a   : > { %8698 = vmatpush3.msra.mxu1 %v7306_v25 }
0x117b   : > { %8699 = vmatprep.subr.mxu1 %v12400_v39 }
0x117c   : > { %8700 = vmatpush3.msra.mxu1 %v7301_v63 }
0x117d   : > { %8701 = vmatprep.subr.mxu1 %v12400_v39 }
0x117e   : > { %8702 = vmatpush3.msra.mxu1 %v7296_v22 }
0x117f   : > { %8704 = vmatmul.mubr.msk.f32.vlgmr.msra.gmra.mxu1 %vm2182_vm1, %v7314_v31 }
0x123f   : > { %v7385_v14 = vpop.f32.mrf.mxu1 }
0x1240   : > { %v7386_v60 = vadd.f32 %v7385_v14, %v7315_v61 }
0x1241   : > { %v8705_v20 = vpop.f32.mrf.mxu1 }
0x1242   : > { %v7390_v40 = vsel %vm7389_vm9, %v7386_v60, -inf }
0x1243   : > { %v7391_v23 = vrot.slane %v7390_v40, 4 }
0x1245   : > { %v7392_v62 = vmax.f32 %v7390_v40, %v7391_v23 }
0x1247   : > { %v7393_v28 = vrot.slane %v7392_v62, 2 }
0x1249   : > { %v7394_v5 = vmax.f32 %v7392_v62, %v7393_v28 }
0x124b   : > { %v7395_v18 = vrot.slane %v7394_v5, 1 }
0x124d   : > { %v7396_v35 = vmax.f32 %v7394_v5, %v7395_v18 }
0x124f   : > { %v7397_v1 = vsub.f32 %v7386_v60, %v7396_v35 }
0x1251   : > { %v7398_v51 = vmul.f32 1.442695, %v7397_v1 }
0x1253   : > { %9103 = vpow2.f32 %v7398_v51 }
0x1260   : > { %v9104_v10 = vpop.eup %9103 }
0x1261   : > { %v7400_v56 = vsel %vm7389_vm9, %v9104_v10, 0.0 }
0x1262   : > { %v7401_v48 = vrot.slane %v7400_v56, 4 }
0x1264   : > { %v7402_v4 = vadd.f32 %v7401_v48, %v7400_v56 }
0x1266   : > { %v7403_v34 = vrot.slane %v7402_v4, 2 }
0x1268   : > { %v7404_v17 = vadd.f32 %v7403_v34, %v7402_v4 }
0x126a   : > { %v7405_v7 = vrot.slane %v7404_v17, 1 }
0x126c   : > { %v7406_v54 = vadd.f32 %v7405_v7, %v7404_v17 }
0x126e   : > { %9105 = vrcp.f32 %v7406_v54 }
0x127b   : > { %v9106_v59 = vpop.eup %9105 }
0x127c   : > { %v7408_v32 = vmul.f32 %v9106_v59, %v9104_v10 }
0x127e   : > { %7409 = vst.msk [vmem:[%s9323_s28] sm:$0xf] %vm7389_vm9, %v7408_v32 }
0x127f PF: > { %s25_s18 = sadd.s32 1, %s9145_s18  }
0x1280   : > { %p22_p12 = scmp.ge.s32.totalorder %s25_s18, 4  }
0x1282   :  { %24 = sbr.rel (!%p22_p12) target bundleno = 1 (0x1), region = 306 }

</bundles_post_ra>
